<compile_context>
chip_gen: v7x
topology: tpu7x:2x2x1
jax: 0.10.0
libtpu: 0.0.40
codegen_flags: <defaults>
</compile_context>

<pallas_src>
import functools

import jax
import jax.numpy as jnp
from jax.experimental import pallas as pl
from jax.experimental.pallas import tpu as pltpu


# ----------------------------------------------------------------------------
# Tiled matmul + bias + activation kernel (bf16 operands, f32 accumulator)
# ----------------------------------------------------------------------------

def _round_up(x, m):
    return ((x + m - 1) // m) * m


def _pick_tile(dim, cap, align):
    """Largest `align`-multiple tile <= cap that keeps padding minimal."""
    best_t, best_pad = align, _round_up(dim, align)
    for t in range(align, cap + 1, align):
        pad = _round_up(dim, t)
        if pad < best_pad or (pad == best_pad and t > best_t):
            best_t, best_pad = t, pad
    return best_t, best_pad


def _mm_kernel(a_ref, b_ref, bias_ref, o_ref, acc_ref, *, act):
    @pl.when(pl.program_id(2) == 0)
    def _():
        acc_ref[...] = jnp.zeros_like(acc_ref)

    acc_ref[...] += jnp.dot(a_ref[...], b_ref[...],
                            preferred_element_type=jnp.float32)

    @pl.when(pl.program_id(2) == pl.num_programs(2) - 1)
    def _():
        r = acc_ref[...] + bias_ref[...]
        if act == "relu":
            r = jnp.maximum(r, 0.0)
        elif act == "sigmoid":
            r = jax.nn.sigmoid(r)
        o_ref[...] = r.astype(o_ref.dtype)


def matmul_bias_act(a, b, bias, act=None, out_dtype=jnp.float32):
    """(M, K) @ (K, N) + bias with optional fused activation, tiled on the MXU."""
    M, K = a.shape
    K2, N = b.shape
    assert K == K2
    tm, Mp = _pick_tile(M, 512, 8)
    tk, Kp = _pick_tile(K, 512, 128)
    tn, Np = _pick_tile(N, 256, 128)

    a_p = a.astype(jnp.bfloat16)
    b_p = b.astype(jnp.bfloat16)
    if Mp > M or Kp > K:
        a_p = jnp.pad(a_p, ((0, Mp - M), (0, Kp - K)))
    if Kp > K or Np > N:
        b_p = jnp.pad(b_p, ((0, Kp - K), (0, Np - N)))
    bias_p = bias.reshape(1, N).astype(jnp.float32)
    if Np > N:
        bias_p = jnp.pad(bias_p, ((0, 0), (0, Np - N)))

    out = pl.pallas_call(
        functools.partial(_mm_kernel, act=act),
        out_shape=jax.ShapeDtypeStruct((Mp, Np), out_dtype),
        grid=(Mp // tm, Np // tn, Kp // tk),
        in_specs=[pl.BlockSpec((tm, tk), lambda i, j, k: (i, k)),
                  pl.BlockSpec((tk, tn), lambda i, j, k: (k, j)),
                  pl.BlockSpec((1, tn), lambda i, j, k: (0, j))],
        out_specs=pl.BlockSpec((tm, tn), lambda i, j, k: (i, j)),
        scratch_shapes=[pltpu.VMEM((tm, tn), jnp.float32)],
        compiler_params=pltpu.CompilerParams(
            dimension_semantics=("parallel", "parallel", "arbitrary")),
    )(a_p, b_p, bias_p)
    if Mp > M or Np > N:
        out = out[:M, :N]
    return out


# ----------------------------------------------------------------------------
# Fused LSH-attention kernel (per-segment adjacency + fc MLP + softmax + PV)
# ----------------------------------------------------------------------------

def _lsh_attn_kernel(xc_ref, xb_ref, xf_ref,
                     yc_ref, yb_ref, yf_ref,
                     fcc_ref, fcb_ref, fcf_ref,
                     w1_ref, b1_ref, w2t_ref, b2_ref,
                     ret_ref, lse_ref):
    f32 = jnp.float32
    bf16 = jnp.bfloat16

    q = xc_ref[0]                                   # (Kb, ck, C) bf16 queries
    kb, ck, _ = q.shape
    cr = yc_ref.shape[-1]

    yc = yc_ref[0]                                  # (Kb, ck, CR) values
    fcc = fcc_ref[0]                                # (Kb, ck, CR) fc features
    w1 = w1_ref[...]                                # (CR, ck) bf16
    b1 = b1_ref[...]                                # (1, ck)  f32

    def l2norm(k):
        kf = k.astype(f32)
        ss = jnp.sum(kf * kf, axis=-1, keepdims=True)
        # F.normalize(p=2, dim=-1, eps=5e-5)  ->  x / max(||x||, eps)
        return (kf * jax.lax.rsqrt(jnp.maximum(ss, 2.5e-9))).astype(bf16)

    def fc_hidden(t):
        # First fc layer (Linear CR->ck, ReLU), once per token.
        n = t.shape[0] * t.shape[1]
        h = jnp.dot(t.reshape(n, cr), w1, preferred_element_type=f32) + b1
        return jnp.maximum(h, 0.0).astype(bf16).reshape(t.shape[0], t.shape[1], ck)

    # Per-token work (normalize + fc layer 1) done ONCE; the back/fwd segments
    # reuse it via cheap leading-axis shifts (no 3x-expanded tensors).
    kc = l2norm(q)
    kbk = l2norm(xb_ref[0])
    kfw = l2norm(xf_ref[0])
    hc = fc_hidden(fcc)
    hb = fc_hidden(fcb_ref[0])
    hf = fc_hidden(fcf_ref[0])

    if kb == 1:
        keys = (kc, kbk, kfw)
        hs = (hc, hb, hf)
        vals = (yc, yb_ref[0], yf_ref[0])
    else:
        cat = lambda a, b: jnp.concatenate([a, b], axis=0)
        keys = (kc, cat(kbk, kc[:-1]), cat(kc[1:], kfw))
        hs = (hc, cat(hb, hc[:-1]), cat(hc[1:], hf))
        vals = (yc, cat(yb_ref[0], yc[:-1]), cat(yc[1:], yf_ref[0]))

    # Second fc layer is folded into the score einsum with w2^T so raw scores
    # are produced directly as (g, i, j) — no per-group transpose.
    w2t = jnp.broadcast_to(w2t_ref[...][None], (kb, ck, ck))     # hoisted once

    raws = []
    for ks, h in zip(keys, hs):
        r = jnp.einsum("gic,gjc->gij", q, ks, preferred_element_type=f32)
        r = r + jnp.einsum("gim,gjm->gij", w2t, h, preferred_element_type=f32)
        raws.append(r)                                           # (Kb, ck, ck)

    m = jnp.maximum(
        jnp.maximum(jnp.max(raws[0], axis=-1, keepdims=True),
                    jnp.max(raws[1], axis=-1, keepdims=True)),
        jnp.max(raws[2], axis=-1, keepdims=True))                # (Kb, ck, 1)

    # Unnormalized softmax + PV per segment; normalization deferred to the end.
    l = jnp.zeros((kb, ck, 1), f32)
    acc = jnp.zeros((kb, ck, cr), f32)
    for r, v in zip(raws, vals):
        e = jnp.exp(r - m)
        l = l + jnp.sum(e, axis=-1, keepdims=True)
        acc = acc + jnp.einsum("gij,gjd->gid", e.astype(bf16), v,
                               preferred_element_type=f32)

    inv = 1.0 / l                                                # tiny, exact
    ret_ref[0] = (acc * inv).astype(ret_ref.dtype)
    # b2 is constant along the softmax axis, so it cancels in the in-bucket
    # softmax and is only added back to the bucket logsumexp here.
    lse_ref[0] = m[..., 0] + jnp.log(l[..., 0]) + b2_ref[...]


def _choose_block_chunks(n_chunks, cap=8):
    """Buckets per grid step: largest divisor of n_chunks that is <= cap."""
    for d in range(min(cap, n_chunks), 0, -1):
        if n_chunks % d == 0:
            return d
    return 1


def lsh_attention(x_att, y_att, fc_att, fc1_w, fc1_b, fc2_w, fc2_b):
    """x_att:(B,K,ck,C); y_att/fc_att:(B,K,ck,CR) with CR == channels.
    Returns ret:(B,K,ck,CR) bf16 and bucket logsumexp lse:(B,K,ck) f32."""
    B, nK, ck, C = x_att.shape
    CR = y_att.shape[-1]
    Kb = _choose_block_chunks(nK)
    bf16 = jnp.bfloat16

    x_att = x_att.astype(bf16)
    y_att = y_att.astype(bf16)
    fc_att = fc_att.astype(bf16)
    w1 = fc1_w.astype(bf16)                       # (CR, ck)
    w2t = fc2_w.T.astype(bf16)                    # (ck, ck), pre-transposed once
    b1 = fc1_b.reshape(1, -1).astype(jnp.float32)
    b2 = fc2_b.reshape(1, -1).astype(jnp.float32)

    def center(d):
        return pl.BlockSpec((1, Kb, ck, d), lambda b, j: (b, j, 0, 0))

    def back(d):
        return pl.BlockSpec((1, 1, ck, d),
                            lambda b, j: (b, (j * Kb + nK - 1) % nK, 0, 0))

    def fwd(d):
        return pl.BlockSpec((1, 1, ck, d),
                            lambda b, j: (b, (j * Kb + Kb) % nK, 0, 0))

    def full(shape):
        return pl.BlockSpec(shape, lambda b, j: (0,) * len(shape))

    ret, lse = pl.pallas_call(
        _lsh_attn_kernel,
        out_shape=(jax.ShapeDtypeStruct((B, nK, ck, CR), bf16),
                   jax.ShapeDtypeStruct((B, nK, ck), jnp.float32)),
        grid=(B, nK // Kb),
        in_specs=[center(C), back(C), fwd(C),
                  center(CR), back(CR), fwd(CR),
                  center(CR), back(CR), fwd(CR),
                  full((CR, ck)), full((1, ck)),
                  full((ck, ck)), full((1, ck))],
        out_specs=(pl.BlockSpec((1, Kb, ck, CR), lambda b, j: (b, j, 0, 0)),
                   pl.BlockSpec((1, Kb, ck), lambda b, j: (b, j, 0))),
        compiler_params=pltpu.CompilerParams(
            dimension_semantics=("parallel", "parallel"),
            vmem_limit_bytes=48 * 1024 * 1024),
    )(x_att, x_att, x_att, y_att, y_att, y_att,
      fc_att, fc_att, fc_att, w1, b1, w2t, b2)
    return ret, lse


# ----------------------------------------------------------------------------
# Conv / module glue — whole forward stays NHWC (one transpose in, one out)
# ----------------------------------------------------------------------------

def conv2d_nhwc(x, w, b, act=None, out_dtype=jnp.float32):
    """'same' conv, stride 1, NHWC in/out.  w: (Cout, Cin, k, k) PyTorch layout."""
    N, H, W, Cin = x.shape
    Cout, _, k, _ = w.shape
    pad = k // 2
    xb = x.astype(jnp.bfloat16)
    # TODO(synk): im2col still materializes the k*k patch tensor (in bf16).
    if k == 1:
        pat = xb.reshape(N * H * W, Cin)
    else:
        xp = jnp.pad(xb, ((0, 0), (pad, pad), (pad, pad), (0, 0)))
        cols = [xp[:, dy:dy + H, dx:dx + W, :]
                for dy in range(k) for dx in range(k)]
        pat = jnp.concatenate(cols, axis=-1).reshape(N * H * W, k * k * Cin)
    wm = jnp.transpose(w, (2, 3, 1, 0)).reshape(k * k * Cin, Cout)
    out = matmul_bias_act(pat, wm, b, act=act, out_dtype=out_dtype)
    return out.reshape(N, H, W, Cout)


def cca_layer(p, x):
    """Contrast-aware channel attention (stdv + avg-pool, 1x1 squeeze/excite)."""
    N, H, W, C2 = x.shape
    mean = jnp.mean(x, axis=(1, 2))                               # (N, C2)
    var = jnp.mean((x - mean[:, None, None, :]) ** 2, axis=(1, 2))
    y = jnp.sqrt(var) + mean                                      # stdv + avg_pool
    w1 = p["cca_w1"][:, :, 0, 0].T                                # (C2, mid)
    w2 = p["cca_w2"][:, :, 0, 0].T                                # (mid, C2)
    mid = matmul_bias_act(y, w1, p["cca_b1"], act="relu")
    scale = matmul_bias_act(mid, w2, p["cca_b2"], act="sigmoid")
    return x * scale[:, None, None, :]


def resblock_small(p, x, r):
    # TODO(synk): common.ResBlockSmall assumed to be conv1x1 -> ReLU -> conv1x1
    # with res_scale=1 residual.
    h = conv2d_nhwc(x, p[f"res{r}_w1"], p[f"res{r}_b1"], act="relu")
    h = conv2d_nhwc(h, p[f"res{r}_w2"], p[f"res{r}_b2"], act=None)
    return x + h


def _orthogonal(key, rows, cols):
    """Semi-orthogonal (rows, cols) matrix, mirroring torch.nn.init.orthogonal_."""
    n, m = max(rows, cols), min(rows, cols)
    g = jax.random.normal(key, (n, m), jnp.float32)
    q, r = jnp.linalg.qr(g)
    q = q * jnp.sign(jnp.diagonal(r))
    if rows < cols:
        q = q.T
    return q


# ----------------------------------------------------------------------------
# DNLF forward
# ----------------------------------------------------------------------------

def dnlf_forward(params, x, hash_key, *, n_hashes, reduction, chunk_size, res_scale):
    N, channels, H, W = x.shape
    L = H * W
    xh = jnp.transpose(x, (0, 2, 3, 1))                           # NHWC once

    # Feature extraction (Pallas tiled matmul inside conv2d); embeddings are
    # consumed in bf16, so emit them in bf16 directly.
    bf16 = jnp.bfloat16
    x_embed = conv2d_nhwc(xh, params["conv_match_w"], params["conv_match_b"],
                          act="relu", out_dtype=bf16).reshape(N, L, -1)
    # TODO(synk): DeformableConv2d with zero-initialized offset branch equals a
    # plain 3x3 conv; deformable sampling itself is not implemented.
    y_embed = conv2d_nhwc(xh, params["conv_assembly_w"], params["conv_assembly_b"],
                          act=None, out_dtype=bf16).reshape(N, L, -1)
    fc_embed = conv2d_nhwc(xh, params["conv_assembly_fc_w"],
                           params["conv_assembly_fc_b"],
                           act="relu", out_dtype=bf16).reshape(N, L, -1)
    C = x_embed.shape[-1]
    CR = y_embed.shape[-1]                                        # CR == channels

    hash_buckets = min(L // chunk_size + (L // chunk_size) % 2, 128)

    # ---- SBLSH (semi-orthogonal random rotations, argmax bucketing) ----
    rkeys = jax.random.split(hash_key, n_hashes)
    rots = jnp.stack([_orthogonal(rkeys[h], C, hash_buckets)
                      for h in range(n_hashes)], axis=0)          # (nh, C, hb)
    rotated = jnp.einsum("ntf,hfi->nhti", x_embed.astype(jnp.float32), rots)
    hash_codes = jnp.argmax(rotated, axis=-1)                     # (N, nh, L)
    offsets = (jnp.arange(n_hashes) * hash_buckets).reshape(1, -1, 1)
    hash_codes = (hash_codes + offsets).reshape(N, -1)            # (N, nh*L)

    indices = jnp.argsort(hash_codes, axis=-1)
    undo_sort = jnp.argsort(indices, axis=-1)
    mod_indices = indices % L

    padding = (chunk_size - L % chunk_size) if (L % chunk_size != 0) else 0
    Lp = L + padding
    # Single gather producing the sorted, padded, blocked layout directly.
    gi = mod_indices.reshape(N, n_hashes, L)
    if padding:
        gi = jnp.concatenate([gi, gi[:, :, -padding:]], axis=-1)
    gi = gi.reshape(N, n_hashes * Lp)

    def gather_rows(values, idx):
        idx3 = jnp.broadcast_to(idx[:, :, None],
                                (values.shape[0], idx.shape[1], values.shape[2]))
        return jnp.take_along_axis(values, idx3, axis=1)

    B = N * n_hashes
    nK = Lp // chunk_size
    x_att = gather_rows(x_embed, gi).reshape(B, nK, chunk_size, C)
    y_att = gather_rows(y_embed, gi).reshape(B, nK, chunk_size, CR)
    fc_att = gather_rows(fc_embed, gi).reshape(B, nK, chunk_size, CR)

    # ---- Attention hot path (single fused Pallas kernel) ----
    ret, lse = lsh_attention(x_att, y_att, fc_att,
                             params["fc1_w"], params["fc1_b"],
                             params["fc2_w"], params["fc2_b"])

    ret = ret.reshape(N, n_hashes, Lp, CR)
    bucket_score = lse.reshape(N, n_hashes, Lp)
    if padding:
        ret = ret[:, :, :L, :]
        bucket_score = bucket_score[:, :, :L]
    ret = ret.reshape(N, n_hashes * L, CR)
    bucket_score = bucket_score.reshape(N, n_hashes * L)
    ret = gather_rows(ret, undo_sort)                             # bf16 gather
    bucket_score = jnp.take_along_axis(bucket_score, undo_sort, axis=1)
    ret = ret.reshape(N, n_hashes, L, CR).astype(jnp.float32)
    bucket_score = bucket_score.reshape(N, n_hashes, L, 1)
    probs = jax.nn.softmax(bucket_score, axis=1)
    ret = jnp.sum(ret * probs, axis=1)                            # (N, L, CR)
    ret = ret.reshape(N, H, W, CR)                                # NHWC, no transpose

    # ---- Fusion + shrink (all NHWC) ----
    x_fused = jnp.concatenate([xh, ret], axis=-1)                 # (N, H, W, 2*ch)
    f = cca_layer(params, x_fused)
    for r in range(2):
        f = resblock_small(params, f, r)
    x_fused = x_fused + f
    x_fused = conv2d_nhwc(x_fused, params["shrink_w"], params["shrink_b"], act=None)
    out = x_fused * res_scale + xh
    return jnp.transpose(out, (0, 3, 1, 2))                       # back to NCHW


# ----------------------------------------------------------------------------
# Deterministic parameter init (synthetic weights — no checkpoint loading)
# ----------------------------------------------------------------------------

def init_params(key, channels, reduction, chunk_size):
    C2 = 2 * channels
    cm = channels // reduction
    cca_mid = max(C2 // 16, 1)

    def nrm(k, shape, scale=0.05):
        return jax.random.normal(k, shape, jnp.float32) * scale

    keys = iter(jax.random.split(key, 32))
    p = {}
    p["conv_match_w"] = nrm(next(keys), (cm, channels, 3, 3))
    p["conv_match_b"] = nrm(next(keys), (cm,))
    p["conv_assembly_w"] = nrm(next(keys), (channels, channels, 3, 3))
    p["conv_assembly_b"] = nrm(next(keys), (channels,))
    p["conv_assembly_fc_w"] = nrm(next(keys), (channels, channels, 3, 3))
    p["conv_assembly_fc_b"] = nrm(next(keys), (channels,))
    p["fc1_w"] = nrm(next(keys), (channels, chunk_size))           # (in, out)
    p["fc1_b"] = nrm(next(keys), (chunk_size,))
    p["fc2_w"] = nrm(next(keys), (chunk_size, chunk_size))
    p["fc2_b"] = nrm(next(keys), (chunk_size,))
    p["cca_w1"] = nrm(next(keys), (cca_mid, C2, 1, 1))
    p["cca_b1"] = nrm(next(keys), (cca_mid,))
    p["cca_w2"] = nrm(next(keys), (C2, cca_mid, 1, 1))
    p["cca_b2"] = nrm(next(keys), (C2,))
    for r in range(2):
        p[f"res{r}_w1"] = nrm(next(keys), (C2, C2, 1, 1))
        p[f"res{r}_b1"] = nrm(next(keys), (C2,))
        p[f"res{r}_w2"] = nrm(next(keys), (C2, C2, 1, 1))
        p[f"res{r}_b2"] = nrm(next(keys), (C2,))
    p["shrink_w"] = nrm(next(keys), (channels, C2, 1, 1))
    p["shrink_b"] = nrm(next(keys), (channels,))
    return p


# ----------------------------------------------------------------------------

if __name__ == "__main__":
    key = jax.random.PRNGKey(0)
    k_par, k_in, k_hash = jax.random.split(key, 3)

    # Small shapes consistent with the module: NCHW input, C divisible by reduction.
    N, channels, H, W = 2, 32, 16, 16
    n_hashes, reduction, chunk_size, res_scale = 2, 4, 16, 0.1

    params = init_params(k_par, channels, reduction, chunk_size)
    x = jax.random.normal(k_in, (N, channels, H, W), jnp.float32)

    fwd = jax.jit(functools.partial(
        dnlf_forward, n_hashes=n_hashes, reduction=reduction,
        chunk_size=chunk_size, res_scale=res_scale))
    out = fwd(params, x, k_hash)
    out = jax.block_until_ready(out)
    assert out.shape == x.shape and out.dtype == jnp.float32
    assert bool(jnp.all(jnp.isfinite(out)))
    print("KERNEL_OK")
</pallas_src>

<mosaic_0001>
module attributes {stable_mosaic.version = 11 : i64} {
  func.func private @main(%arg0: i32) attributes {dimension_semantics = [#tpu.dimension_semantics<core_parallel>], iteration_bounds = array<i64: 2>, tpu.core_type = #tpu.core_type<sc_scalar_subcore>, window_params = []} {
    return
  }
}

module attributes {stable_mosaic.version = 11 : i64} {
  func.func private @main(%arg0: i32) attributes {dimension_semantics = [#tpu.dimension_semantics<core_parallel>], iteration_bounds = array<i64: 2>, tpu.core_type = #tpu.core_type<sc_scalar_subcore>, window_params = []} {
    return
  }
}

module attributes {stable_mosaic.version = 11 : i64} {
  func.func @_mm_kernel(%arg0: i32, %arg1: i32, %arg2: i32, %arg3: memref<512x384xbf16, #tpu.memory_space<vmem>>, %arg4: memref<384x128xbf16, #tpu.memory_space<vmem>>, %arg5: memref<1x128xf32, #tpu.memory_space<vmem>>, %arg6: memref<512x128xbf16, #tpu.memory_space<vmem>>, %arg7: memref<512x128xf32, #tpu.memory_space<vmem>>) attributes {dimension_semantics = [#tpu.dimension_semantics<parallel>, #tpu.dimension_semantics<parallel>, #tpu.dimension_semantics<arbitrary>], iteration_bounds = array<i64: 1, 1, 1>, scalar_prefetch = 0 : i64, scratch_operands = 1 : i64, tpu.core_type = #tpu.core_type<tc>, window_params = [{transform_indices = @transform_0, window_bounds = array<i64: 512, 384>}, {transform_indices = @transform_1, window_bounds = array<i64: 384, 128>}, {transform_indices = @transform_2, window_bounds = array<i64: 1, 128>}, {transform_indices = @transform_3, window_bounds = array<i64: 512, 128>}]} {
    %c0_i32 = arith.constant 0 : i32
    %0 = arith.cmpi eq, %arg2, %c0_i32 : i32
    %1 = arith.extui %0 : i1 to i32
    %c0_i32_0 = arith.constant 0 : i32
    %2 = arith.cmpi ne, %1, %c0_i32_0 : i32
    scf.if %2 {
      %cst_10 = arith.constant 0.000000e+00 : f32
      %12 = vector.broadcast %cst_10 : f32 to vector<512x128xf32>
      %c0_11 = arith.constant 0 : index
      %c0_12 = arith.constant 0 : index
      %13 = vector.load %arg7[%c0_11, %c0_12] : memref<512x128xf32, #tpu.memory_space<vmem>>, vector<512x128xf32>
      tpu.vector_store %arg7[%c0_11, %c0_12], %12 {strides = array<i32>} : memref<512x128xf32, #tpu.memory_space<vmem>>, vector<512x128xf32>,
    } else {
    }
    %c0 = arith.constant 0 : index
    %c0_1 = arith.constant 0 : index
    %3 = vector.load %arg7[%c0, %c0_1] : memref<512x128xf32, #tpu.memory_space<vmem>>, vector<512x128xf32>
    %c0_2 = arith.constant 0 : index
    %c0_3 = arith.constant 0 : index
    %4 = vector.load %arg3[%c0_2, %c0_3] : memref<512x384xbf16, #tpu.memory_space<vmem>>, vector<512x384xbf16>
    %c0_4 = arith.constant 0 : index
    %c0_5 = arith.constant 0 : index
    %5 = vector.load %arg4[%c0_4, %c0_5] : memref<384x128xbf16, #tpu.memory_space<vmem>>, vector<384x128xbf16>
    %cst = arith.constant dense<0.000000e+00> : vector<512x128xf32>
    %6 = tpu.matmul %4, %5, %cst {dimension_numbers = #tpu.dot_dimension_numbers<[1], [0], [0], [1], [0, 0, 1, 1], [], []>} : vector<512x384xbf16>, vector<384x128xbf16>, vector<512x128xf32> -> vector<512x128xf32>
    %7 = arith.addf %3, %6 : vector<512x128xf32>
    %c0_6 = arith.constant 0 : index
    %c0_7 = arith.constant 0 : index
    %8 = vector.load %arg7[%c0_6, %c0_7] : memref<512x128xf32, #tpu.memory_space<vmem>>, vector<512x128xf32>
    tpu.vector_store %arg7[%c0_6, %c0_7], %7 {strides = array<i32>} : memref<512x128xf32, #tpu.memory_space<vmem>>, vector<512x128xf32>,
    %c0_i32_8 = arith.constant 0 : i32
    %9 = arith.cmpi eq, %arg2, %c0_i32_8 : i32
    %10 = arith.extui %9 : i1 to i32
    %c0_i32_9 = arith.constant 0 : i32
    %11 = arith.cmpi ne, %10, %c0_i32_9 : i32
    scf.if %11 {
      %c0_10 = arith.constant 0 : index
      %c0_11 = arith.constant 0 : index
      %12 = vector.load %arg7[%c0_10, %c0_11] : memref<512x128xf32, #tpu.memory_space<vmem>>, vector<512x128xf32>
      %c0_12 = arith.constant 0 : index
      %c0_13 = arith.constant 0 : index
      %13 = vector.load %arg5[%c0_12, %c0_13] : memref<1x128xf32, #tpu.memory_space<vmem>>, vector<1x128xf32>
      %14 = vector.broadcast %13 : vector<1x128xf32> to vector<512x128xf32>
      %15 = arith.addf %12, %14 : vector<512x128xf32>
      %cst_14 = arith.constant 0.000000e+00 : f32
      %16 = vector.broadcast %cst_14 : f32 to vector<512x128xf32>
      %17 = arith.maximumf %15, %16 : vector<512x128xf32>
      %18 = arith.truncf %17 : vector<512x128xf32> to vector<512x128xbf16>
      %c0_15 = arith.constant 0 : index
      %c0_16 = arith.constant 0 : index
      %19 = vector.load %arg6[%c0_15, %c0_16] : memref<512x128xbf16, #tpu.memory_space<vmem>>, vector<512x128xbf16>
      tpu.vector_store %arg6[%c0_15, %c0_16], %18 {strides = array<i32>} : memref<512x128xbf16, #tpu.memory_space<vmem>>, vector<512x128xbf16>,
    } else {
    }
    return
  }
  func.func @transform_0(%arg0: i32, %arg1: i32, %arg2: i32) -> (i32, i32) {
    %c0_i32 = arith.constant 0 : i32
    return %arg0, %arg2 : i32, i32
  }
  func.func @transform_1(%arg0: i32, %arg1: i32, %arg2: i32) -> (i32, i32) {
    %c0_i32 = arith.constant 0 : i32
    return %arg2, %arg1 : i32, i32
  }
  func.func @transform_2(%arg0: i32, %arg1: i32, %arg2: i32) -> (i32, i32) {
    %c0_i32 = arith.constant 0 : i32
    %c0_i32_0 = arith.constant 0 : i32
    return %c0_i32, %arg1 : i32, i32
  }
  func.func @transform_3(%arg0: i32, %arg1: i32, %arg2: i32) -> (i32, i32) {
    %c0_i32 = arith.constant 0 : i32
    return %arg0, %arg1 : i32, i32
  }
}

module attributes {stable_mosaic.version = 11 : i64} {
  func.func @_mm_kernel(%arg0: i32, %arg1: i32, %arg2: i32, %arg3: memref<512x384xbf16, #tpu.memory_space<vmem>>, %arg4: memref<384x128xbf16, #tpu.memory_space<vmem>>, %arg5: memref<1x128xf32, #tpu.memory_space<vmem>>, %arg6: memref<512x128xbf16, #tpu.memory_space<vmem>>, %arg7: memref<512x128xf32, #tpu.memory_space<vmem>>) attributes {dimension_semantics = [#tpu.dimension_semantics<parallel>, #tpu.dimension_semantics<parallel>, #tpu.dimension_semantics<arbitrary>], iteration_bounds = array<i64: 1, 1, 1>, scalar_prefetch = 0 : i64, scratch_operands = 1 : i64, tpu.core_type = #tpu.core_type<tc>, window_params = [{transform_indices = @transform_0, window_bounds = array<i64: 512, 384>}, {transform_indices = @transform_1, window_bounds = array<i64: 384, 128>}, {transform_indices = @transform_2, window_bounds = array<i64: 1, 128>}, {transform_indices = @transform_3, window_bounds = array<i64: 512, 128>}]} {
    %c0_i32 = arith.constant 0 : i32
    %0 = arith.cmpi eq, %arg2, %c0_i32 : i32
    %1 = arith.extui %0 : i1 to i32
    %c0_i32_0 = arith.constant 0 : i32
    %2 = arith.cmpi ne, %1, %c0_i32_0 : i32
    scf.if %2 {
      %cst_10 = arith.constant 0.000000e+00 : f32
      %12 = vector.broadcast %cst_10 : f32 to vector<512x128xf32>
      %c0_11 = arith.constant 0 : index
      %c0_12 = arith.constant 0 : index
      %13 = vector.load %arg7[%c0_11, %c0_12] : memref<512x128xf32, #tpu.memory_space<vmem>>, vector<512x128xf32>
      tpu.vector_store %arg7[%c0_11, %c0_12], %12 {strides = array<i32>} : memref<512x128xf32, #tpu.memory_space<vmem>>, vector<512x128xf32>,
    } else {
    }
    %c0 = arith.constant 0 : index
    %c0_1 = arith.constant 0 : index
    %3 = vector.load %arg7[%c0, %c0_1] : memref<512x128xf32, #tpu.memory_space<vmem>>, vector<512x128xf32>
    %c0_2 = arith.constant 0 : index
    %c0_3 = arith.constant 0 : index
    %4 = vector.load %arg3[%c0_2, %c0_3] : memref<512x384xbf16, #tpu.memory_space<vmem>>, vector<512x384xbf16>
    %c0_4 = arith.constant 0 : index
    %c0_5 = arith.constant 0 : index
    %5 = vector.load %arg4[%c0_4, %c0_5] : memref<384x128xbf16, #tpu.memory_space<vmem>>, vector<384x128xbf16>
    %cst = arith.constant dense<0.000000e+00> : vector<512x128xf32>
    %6 = tpu.matmul %4, %5, %cst {dimension_numbers = #tpu.dot_dimension_numbers<[1], [0], [0], [1], [0, 0, 1, 1], [], []>} : vector<512x384xbf16>, vector<384x128xbf16>, vector<512x128xf32> -> vector<512x128xf32>
    %7 = arith.addf %3, %6 : vector<512x128xf32>
    %c0_6 = arith.constant 0 : index
    %c0_7 = arith.constant 0 : index
    %8 = vector.load %arg7[%c0_6, %c0_7] : memref<512x128xf32, #tpu.memory_space<vmem>>, vector<512x128xf32>
    tpu.vector_store %arg7[%c0_6, %c0_7], %7 {strides = array<i32>} : memref<512x128xf32, #tpu.memory_space<vmem>>, vector<512x128xf32>,
    %c0_i32_8 = arith.constant 0 : i32
    %9 = arith.cmpi eq, %arg2, %c0_i32_8 : i32
    %10 = arith.extui %9 : i1 to i32
    %c0_i32_9 = arith.constant 0 : i32
    %11 = arith.cmpi ne, %10, %c0_i32_9 : i32
    scf.if %11 {
      %c0_10 = arith.constant 0 : index
      %c0_11 = arith.constant 0 : index
      %12 = vector.load %arg7[%c0_10, %c0_11] : memref<512x128xf32, #tpu.memory_space<vmem>>, vector<512x128xf32>
      %c0_12 = arith.constant 0 : index
      %c0_13 = arith.constant 0 : index
      %13 = vector.load %arg5[%c0_12, %c0_13] : memref<1x128xf32, #tpu.memory_space<vmem>>, vector<1x128xf32>
      %14 = vector.broadcast %13 : vector<1x128xf32> to vector<512x128xf32>
      %15 = arith.addf %12, %14 : vector<512x128xf32>
      %cst_14 = arith.constant 0.000000e+00 : f32
      %16 = vector.broadcast %cst_14 : f32 to vector<512x128xf32>
      %17 = arith.maximumf %15, %16 : vector<512x128xf32>
      %18 = arith.truncf %17 : vector<512x128xf32> to vector<512x128xbf16>
      %c0_15 = arith.constant 0 : index
      %c0_16 = arith.constant 0 : index
      %19 = vector.load %arg6[%c0_15, %c0_16] : memref<512x128xbf16, #tpu.memory_space<vmem>>, vector<512x128xbf16>
      tpu.vector_store %arg6[%c0_15, %c0_16], %18 {strides = array<i32>} : memref<512x128xbf16, #tpu.memory_space<vmem>>, vector<512x128xbf16>,
    } else {
    }
    return
  }
  func.func @transform_0(%arg0: i32, %arg1: i32, %arg2: i32) -> (i32, i32) {
    %c0_i32 = arith.constant 0 : i32
    return %arg0, %arg2 : i32, i32
  }
  func.func @transform_1(%arg0: i32, %arg1: i32, %arg2: i32) -> (i32, i32) {
    %c0_i32 = arith.constant 0 : i32
    return %arg2, %arg1 : i32, i32
  }
  func.func @transform_2(%arg0: i32, %arg1: i32, %arg2: i32) -> (i32, i32) {
    %c0_i32 = arith.constant 0 : i32
    %c0_i32_0 = arith.constant 0 : i32
    return %c0_i32, %arg1 : i32, i32
  }
  func.func @transform_3(%arg0: i32, %arg1: i32, %arg2: i32) -> (i32, i32) {
    %c0_i32 = arith.constant 0 : i32
    return %arg0, %arg1 : i32, i32
  }
}

module attributes {stable_mosaic.version = 11 : i64} {
  func.func @_mm_kernel(%arg0: i32, %arg1: i32, %arg2: i32, %arg3: memref<512x384xbf16, #tpu.memory_space<vmem>>, %arg4: memref<384x128xbf16, #tpu.memory_space<vmem>>, %arg5: memref<1x128xf32, #tpu.memory_space<vmem>>, %arg6: memref<512x128xbf16, #tpu.memory_space<vmem>>, %arg7: memref<512x128xf32, #tpu.memory_space<vmem>>) attributes {dimension_semantics = [#tpu.dimension_semantics<parallel>, #tpu.dimension_semantics<parallel>, #tpu.dimension_semantics<arbitrary>], iteration_bounds = array<i64: 1, 1, 1>, scalar_prefetch = 0 : i64, scratch_operands = 1 : i64, tpu.core_type = #tpu.core_type<tc>, window_params = [{transform_indices = @transform_0, window_bounds = array<i64: 512, 384>}, {transform_indices = @transform_1, window_bounds = array<i64: 384, 128>}, {transform_indices = @transform_2, window_bounds = array<i64: 1, 128>}, {transform_indices = @transform_3, window_bounds = array<i64: 512, 128>}]} {
    %c0_i32 = arith.constant 0 : i32
    %0 = arith.cmpi eq, %arg2, %c0_i32 : i32
    %1 = arith.extui %0 : i1 to i32
    %c0_i32_0 = arith.constant 0 : i32
    %2 = arith.cmpi ne, %1, %c0_i32_0 : i32
    scf.if %2 {
      %cst_10 = arith.constant 0.000000e+00 : f32
      %12 = vector.broadcast %cst_10 : f32 to vector<512x128xf32>
      %c0_11 = arith.constant 0 : index
      %c0_12 = arith.constant 0 : index
      %13 = vector.load %arg7[%c0_11, %c0_12] : memref<512x128xf32, #tpu.memory_space<vmem>>, vector<512x128xf32>
      tpu.vector_store %arg7[%c0_11, %c0_12], %12 {strides = array<i32>} : memref<512x128xf32, #tpu.memory_space<vmem>>, vector<512x128xf32>,
    } else {
    }
    %c0 = arith.constant 0 : index
    %c0_1 = arith.constant 0 : index
    %3 = vector.load %arg7[%c0, %c0_1] : memref<512x128xf32, #tpu.memory_space<vmem>>, vector<512x128xf32>
    %c0_2 = arith.constant 0 : index
    %c0_3 = arith.constant 0 : index
    %4 = vector.load %arg3[%c0_2, %c0_3] : memref<512x384xbf16, #tpu.memory_space<vmem>>, vector<512x384xbf16>
    %c0_4 = arith.constant 0 : index
    %c0_5 = arith.constant 0 : index
    %5 = vector.load %arg4[%c0_4, %c0_5] : memref<384x128xbf16, #tpu.memory_space<vmem>>, vector<384x128xbf16>
    %cst = arith.constant dense<0.000000e+00> : vector<512x128xf32>
    %6 = tpu.matmul %4, %5, %cst {dimension_numbers = #tpu.dot_dimension_numbers<[1], [0], [0], [1], [0, 0, 1, 1], [], []>} : vector<512x384xbf16>, vector<384x128xbf16>, vector<512x128xf32> -> vector<512x128xf32>
    %7 = arith.addf %3, %6 : vector<512x128xf32>
    %c0_6 = arith.constant 0 : index
    %c0_7 = arith.constant 0 : index
    %8 = vector.load %arg7[%c0_6, %c0_7] : memref<512x128xf32, #tpu.memory_space<vmem>>, vector<512x128xf32>
    tpu.vector_store %arg7[%c0_6, %c0_7], %7 {strides = array<i32>} : memref<512x128xf32, #tpu.memory_space<vmem>>, vector<512x128xf32>,
    %c0_i32_8 = arith.constant 0 : i32
    %9 = arith.cmpi eq, %arg2, %c0_i32_8 : i32
    %10 = arith.extui %9 : i1 to i32
    %c0_i32_9 = arith.constant 0 : i32
    %11 = arith.cmpi ne, %10, %c0_i32_9 : i32
    scf.if %11 {
      %c0_10 = arith.constant 0 : index
      %c0_11 = arith.constant 0 : index
      %12 = vector.load %arg7[%c0_10, %c0_11] : memref<512x128xf32, #tpu.memory_space<vmem>>, vector<512x128xf32>
      %c0_12 = arith.constant 0 : index
      %c0_13 = arith.constant 0 : index
      %13 = vector.load %arg5[%c0_12, %c0_13] : memref<1x128xf32, #tpu.memory_space<vmem>>, vector<1x128xf32>
      %14 = vector.broadcast %13 : vector<1x128xf32> to vector<512x128xf32>
      %15 = arith.addf %12, %14 : vector<512x128xf32>
      %16 = arith.truncf %15 : vector<512x128xf32> to vector<512x128xbf16>
      %c0_14 = arith.constant 0 : index
      %c0_15 = arith.constant 0 : index
      %17 = vector.load %arg6[%c0_14, %c0_15] : memref<512x128xbf16, #tpu.memory_space<vmem>>, vector<512x128xbf16>
      tpu.vector_store %arg6[%c0_14, %c0_15], %16 {strides = array<i32>} : memref<512x128xbf16, #tpu.memory_space<vmem>>, vector<512x128xbf16>,
    } else {
    }
    return
  }
  func.func @transform_0(%arg0: i32, %arg1: i32, %arg2: i32) -> (i32, i32) {
    %c0_i32 = arith.constant 0 : i32
    return %arg0, %arg2 : i32, i32
  }
  func.func @transform_1(%arg0: i32, %arg1: i32, %arg2: i32) -> (i32, i32) {
    %c0_i32 = arith.constant 0 : i32
    return %arg2, %arg1 : i32, i32
  }
  func.func @transform_2(%arg0: i32, %arg1: i32, %arg2: i32) -> (i32, i32) {
    %c0_i32 = arith.constant 0 : i32
    %c0_i32_0 = arith.constant 0 : i32
    return %c0_i32, %arg1 : i32, i32
  }
  func.func @transform_3(%arg0: i32, %arg1: i32, %arg2: i32) -> (i32, i32) {
    %c0_i32 = arith.constant 0 : i32
    return %arg0, %arg1 : i32, i32
  }
}

module attributes {stable_mosaic.version = 11 : i64} {
  func.func @_lsh_attn_kernel(%arg0: i32, %arg1: i32, %arg2: memref<1x8x16x8xbf16, #tpu.memory_space<vmem>>, %arg3: memref<1x1x16x8xbf16, #tpu.memory_space<vmem>>, %arg4: memref<1x1x16x8xbf16, #tpu.memory_space<vmem>>, %arg5: memref<1x8x16x32xbf16, #tpu.memory_space<vmem>>, %arg6: memref<1x1x16x32xbf16, #tpu.memory_space<vmem>>, %arg7: memref<1x1x16x32xbf16, #tpu.memory_space<vmem>>, %arg8: memref<1x8x16x32xbf16, #tpu.memory_space<vmem>>, %arg9: memref<1x1x16x32xbf16, #tpu.memory_space<vmem>>, %arg10: memref<1x1x16x32xbf16, #tpu.memory_space<vmem>>, %arg11: memref<32x16xbf16, #tpu.memory_space<vmem>>, %arg12: memref<1x16xf32, #tpu.memory_space<vmem>>, %arg13: memref<16x16xbf16, #tpu.memory_space<vmem>>, %arg14: memref<1x16xf32, #tpu.memory_space<vmem>>, %arg15: memref<1x8x16x32xbf16, #tpu.memory_space<vmem>>, %arg16: memref<1x8x16xf32, #tpu.memory_space<vmem>>) attributes {dimension_semantics = [#tpu.dimension_semantics<parallel>, #tpu.dimension_semantics<parallel>], iteration_bounds = array<i64: 4, 2>, scalar_prefetch = 0 : i64, scratch_operands = 0 : i64, tpu.core_type = #tpu.core_type<tc>, window_params = [{transform_indices = @transform_0, window_bounds = array<i64: 1, 8, 16, 8>}, {transform_indices = @transform_1, window_bounds = array<i64: 1, 1, 16, 8>}, {transform_indices = @transform_2, window_bounds = array<i64: 1, 1, 16, 8>}, {transform_indices = @transform_3, window_bounds = array<i64: 1, 8, 16, 32>}, {transform_indices = @transform_4, window_bounds = array<i64: 1, 1, 16, 32>}, {transform_indices = @transform_5, window_bounds = array<i64: 1, 1, 16, 32>}, {transform_indices = @transform_6, window_bounds = array<i64: 1, 8, 16, 32>}, {transform_indices = @transform_7, window_bounds = array<i64: 1, 1, 16, 32>}, {transform_indices = @transform_8, window_bounds = array<i64: 1, 1, 16, 32>}, {pipeline_mode = #tpu.pipeline_mode<synchronous>, transform_indices = @transform_9, window_bounds = array<i64: 32, 16>}, {pipeline_mode = #tpu.pipeline_mode<synchronous>, transform_indices = @transform_10, window_bounds = array<i64: 1, 16>}, {pipeline_mode = #tpu.pipeline_mode<synchronous>, transform_indices = @transform_11, window_bounds = array<i64: 16, 16>}, {pipeline_mode = #tpu.pipeline_mode<synchronous>, transform_indices = @transform_12, window_bounds = array<i64: 1, 16>}, {transform_indices = @transform_13, window_bounds = array<i64: 1, 8, 16, 32>}, {transform_indices = @transform_14, window_bounds = array<i64: 1, 8, 16>}]} {
    %c0 = arith.constant 0 : index
    %c0_0 = arith.constant 0 : index
    %c0_1 = arith.constant 0 : index
    %c0_2 = arith.constant 0 : index
    %0 = vector.load %arg2[%c0, %c0_0, %c0_1, %c0_2] : memref<1x8x16x8xbf16, #tpu.memory_space<vmem>>, vector<1x8x16x8xbf16>
    %1 = vector.shape_cast %0 : vector<1x8x16x8xbf16> to vector<8x16x8xbf16>
    %c0_3 = arith.constant 0 : index
    %c0_4 = arith.constant 0 : index
    %c0_5 = arith.constant 0 : index
    %c0_6 = arith.constant 0 : index
    %2 = vector.load %arg5[%c0_3, %c0_4, %c0_5, %c0_6] : memref<1x8x16x32xbf16, #tpu.memory_space<vmem>>, vector<1x8x16x32xbf16>
    %3 = vector.shape_cast %2 : vector<1x8x16x32xbf16> to vector<8x16x32xbf16>
    %c0_7 = arith.constant 0 : index
    %c0_8 = arith.constant 0 : index
    %c0_9 = arith.constant 0 : index
    %c0_10 = arith.constant 0 : index
    %4 = vector.load %arg8[%c0_7, %c0_8, %c0_9, %c0_10] : memref<1x8x16x32xbf16, #tpu.memory_space<vmem>>, vector<1x8x16x32xbf16>
    %5 = vector.shape_cast %4 : vector<1x8x16x32xbf16> to vector<8x16x32xbf16>
    %c0_11 = arith.constant 0 : index
    %c0_12 = arith.constant 0 : index
    %6 = vector.load %arg11[%c0_11, %c0_12] : memref<32x16xbf16, #tpu.memory_space<vmem>>, vector<32x16xbf16>
    %c0_13 = arith.constant 0 : index
    %c0_14 = arith.constant 0 : index
    %7 = vector.load %arg12[%c0_13, %c0_14] : memref<1x16xf32, #tpu.memory_space<vmem>>, vector<1x16xf32>
    %8 = arith.extf %1 : vector<8x16x8xbf16> to vector<8x16x8xf32>
    %9 = arith.mulf %8, %8 : vector<8x16x8xf32>
    %cst = arith.constant dense<0.000000e+00> : vector<8x16xf32>
    %10 = vector.multi_reduction <add>, %9, %cst [2] : vector<8x16x8xf32> to vector<8x16xf32>
    %11 = vector.shape_cast %10 : vector<8x16xf32> to vector<8x16x1xf32>
    %cst_15 = arith.constant 2.500000e-09 : f32
    %12 = vector.broadcast %cst_15 : f32 to vector<8x16x1xf32>
    %13 = arith.maximumf %11, %12 : vector<8x16x1xf32>
    %14 = math.rsqrt %13 : vector<8x16x1xf32>
    %15 = vector.broadcast %14 : vector<8x16x1xf32> to vector<8x16x8xf32>
    %16 = arith.mulf %8, %15 : vector<8x16x8xf32>
    %17 = arith.truncf %16 : vector<8x16x8xf32> to vector<8x16x8xbf16>
    %c0_16 = arith.constant 0 : index
    %c0_17 = arith.constant 0 : index
    %c0_18 = arith.constant 0 : index
    %c0_19 = arith.constant 0 : index
    %18 = vector.load %arg3[%c0_16, %c0_17, %c0_18, %c0_19] : memref<1x1x16x8xbf16, #tpu.memory_space<vmem>>, vector<1x1x16x8xbf16>
    %19 = vector.shape_cast %18 : vector<1x1x16x8xbf16> to vector<1x16x8xbf16>
    %20 = arith.extf %19 : vector<1x16x8xbf16> to vector<1x16x8xf32>
    %21 = arith.mulf %20, %20 : vector<1x16x8xf32>
    %cst_20 = arith.constant dense<0.000000e+00> : vector<1x16xf32>
    %22 = vector.multi_reduction <add>, %21, %cst_20 [2] : vector<1x16x8xf32> to vector<1x16xf32>
    %23 = vector.shape_cast %22 : vector<1x16xf32> to vector<1x16x1xf32>
    %cst_21 = arith.constant 2.500000e-09 : f32
    %24 = vector.broadcast %cst_21 : f32 to vector<1x16x1xf32>
    %25 = arith.maximumf %23, %24 : vector<1x16x1xf32>
    %26 = math.rsqrt %25 : vector<1x16x1xf32>
    %27 = vector.broadcast %26 : vector<1x16x1xf32> to vector<1x16x8xf32>
    %28 = arith.mulf %20, %27 : vector<1x16x8xf32>
    %29 = arith.truncf %28 : vector<1x16x8xf32> to vector<1x16x8xbf16>
    %c0_22 = arith.constant 0 : index
    %c0_23 = arith.constant 0 : index
    %c0_24 = arith.constant 0 : index
    %c0_25 = arith.constant 0 : index
    %30 = vector.load %arg4[%c0_22, %c0_23, %c0_24, %c0_25] : memref<1x1x16x8xbf16, #tpu.memory_space<vmem>>, vector<1x1x16x8xbf16>
    %31 = vector.shape_cast %30 : vector<1x1x16x8xbf16> to vector<1x16x8xbf16>
    %32 = arith.extf %31 : vector<1x16x8xbf16> to vector<1x16x8xf32>
    %33 = arith.mulf %32, %32 : vector<1x16x8xf32>
    %cst_26 = arith.constant dense<0.000000e+00> : vector<1x16xf32>
    %34 = vector.multi_reduction <add>, %33, %cst_26 [2] : vector<1x16x8xf32> to vector<1x16xf32>
    %35 = vector.shape_cast %34 : vector<1x16xf32> to vector<1x16x1xf32>
    %cst_27 = arith.constant 2.500000e-09 : f32
    %36 = vector.broadcast %cst_27 : f32 to vector<1x16x1xf32>
    %37 = arith.maximumf %35, %36 : vector<1x16x1xf32>
    %38 = math.rsqrt %37 : vector<1x16x1xf32>
    %39 = vector.broadcast %38 : vector<1x16x1xf32> to vector<1x16x8xf32>
    %40 = arith.mulf %32, %39 : vector<1x16x8xf32>
    %41 = arith.truncf %40 : vector<1x16x8xf32> to vector<1x16x8xbf16>
    %42 = vector.shape_cast %5 : vector<8x16x32xbf16> to vector<128x32xbf16>
    %cst_28 = arith.constant dense<0.000000e+00> : vector<128x16xf32>
    %43 = tpu.matmul %42, %6, %cst_28 {dimension_numbers = #tpu.dot_dimension_numbers<[1], [0], [0], [1], [0, 0, 1, 1], [], []>} : vector<128x32xbf16>, vector<32x16xbf16>, vector<128x16xf32> -> vector<128x16xf32>
    %44 = vector.broadcast %7 : vector<1x16xf32> to vector<128x16xf32>
    %45 = arith.addf %43, %44 : vector<128x16xf32>
    %cst_29 = arith.constant 0.000000e+00 : f32
    %46 = vector.broadcast %cst_29 : f32 to vector<128x16xf32>
    %47 = arith.maximumf %45, %46 : vector<128x16xf32>
    %48 = arith.truncf %47 : vector<128x16xf32> to vector<128x16xbf16>
    %49 = vector.shape_cast %48 : vector<128x16xbf16> to vector<8x16x16xbf16>
    %c0_30 = arith.constant 0 : index
    %c0_31 = arith.constant 0 : index
    %c0_32 = arith.constant 0 : index
    %c0_33 = arith.constant 0 : index
    %50 = vector.load %arg9[%c0_30, %c0_31, %c0_32, %c0_33] : memref<1x1x16x32xbf16, #tpu.memory_space<vmem>>, vector<1x1x16x32xbf16>
    %51 = vector.shape_cast %50 : vector<1x1x16x32xbf16> to vector<1x16x32xbf16>
    %52 = vector.shape_cast %51 : vector<1x16x32xbf16> to vector<16x32xbf16>
    %cst_34 = arith.constant dense<0.000000e+00> : vector<16x16xf32>
    %53 = tpu.matmul %52, %6, %cst_34 {dimension_numbers = #tpu.dot_dimension_numbers<[1], [0], [0], [1], [0, 0, 1, 1], [], []>} : vector<16x32xbf16>, vector<32x16xbf16>, vector<16x16xf32> -> vector<16x16xf32>
    %54 = vector.broadcast %7 : vector<1x16xf32> to vector<16x16xf32>
    %55 = arith.addf %53, %54 : vector<16x16xf32>
    %cst_35 = arith.constant 0.000000e+00 : f32
    %56 = vector.broadcast %cst_35 : f32 to vector<16x16xf32>
    %57 = arith.maximumf %55, %56 : vector<16x16xf32>
    %58 = arith.truncf %57 : vector<16x16xf32> to vector<16x16xbf16>
    %59 = vector.shape_cast %58 : vector<16x16xbf16> to vector<1x16x16xbf16>
    %c0_36 = arith.constant 0 : index
    %c0_37 = arith.constant 0 : index
    %c0_38 = arith.constant 0 : index
    %c0_39 = arith.constant 0 : index
    %60 = vector.load %arg10[%c0_36, %c0_37, %c0_38, %c0_39] : memref<1x1x16x32xbf16, #tpu.memory_space<vmem>>, vector<1x1x16x32xbf16>
    %61 = vector.shape_cast %60 : vector<1x1x16x32xbf16> to vector<1x16x32xbf16>
    %62 = vector.shape_cast %61 : vector<1x16x32xbf16> to vector<16x32xbf16>
    %cst_40 = arith.constant dense<0.000000e+00> : vector<16x16xf32>
    %63 = tpu.matmul %62, %6, %cst_40 {dimension_numbers = #tpu.dot_dimension_numbers<[1], [0], [0], [1], [0, 0, 1, 1], [], []>} : vector<16x32xbf16>, vector<32x16xbf16>, vector<16x16xf32> -> vector<16x16xf32>
    %64 = vector.broadcast %7 : vector<1x16xf32> to vector<16x16xf32>
    %65 = arith.addf %63, %64 : vector<16x16xf32>
    %cst_41 = arith.constant 0.000000e+00 : f32
    %66 = vector.broadcast %cst_41 : f32 to vector<16x16xf32>
    %67 = arith.maximumf %65, %66 : vector<16x16xf32>
    %68 = arith.truncf %67 : vector<16x16xf32> to vector<16x16xbf16>
    %69 = vector.shape_cast %68 : vector<16x16xbf16> to vector<1x16x16xbf16>
    %70 = vector.extract_strided_slice %17 {offsets = [0, 0, 0], sizes = [7, 16, 8], strides = [1, 1, 1]} : vector<8x16x8xbf16> to vector<7x16x8xbf16>
    %71 = tpu.concatenate %29, %70 in 0 : vector<1x16x8xbf16>, vector<7x16x8xbf16> -> vector<8x16x8xbf16>
    %72 = vector.extract_strided_slice %17 {offsets = [1, 0, 0], sizes = [7, 16, 8], strides = [1, 1, 1]} : vector<8x16x8xbf16> to vector<7x16x8xbf16>
    %73 = tpu.concatenate %72, %41 in 0 : vector<7x16x8xbf16>, vector<1x16x8xbf16> -> vector<8x16x8xbf16>
    %74 = vector.extract_strided_slice %49 {offsets = [0, 0, 0], sizes = [7, 16, 16], strides = [1, 1, 1]} : vector<8x16x16xbf16> to vector<7x16x16xbf16>
    %75 = tpu.concatenate %59, %74 in 0 : vector<1x16x16xbf16>, vector<7x16x16xbf16> -> vector<8x16x16xbf16>
    %76 = vector.extract_strided_slice %49 {offsets = [1, 0, 0], sizes = [7, 16, 16], strides = [1, 1, 1]} : vector<8x16x16xbf16> to vector<7x16x16xbf16>
    %77 = tpu.concatenate %76, %69 in 0 : vector<7x16x16xbf16>, vector<1x16x16xbf16> -> vector<8x16x16xbf16>
    %c0_42 = arith.constant 0 : index
    %c0_43 = arith.constant 0 : index
    %c0_44 = arith.constant 0 : index
    %c0_45 = arith.constant 0 : index
    %78 = vector.load %arg6[%c0_42, %c0_43, %c0_44, %c0_45] : memref<1x1x16x32xbf16, #tpu.memory_space<vmem>>, vector<1x1x16x32xbf16>
    %79 = vector.shape_cast %78 : vector<1x1x16x32xbf16> to vector<1x16x32xbf16>
    %80 = vector.extract_strided_slice %3 {offsets = [0, 0, 0], sizes = [7, 16, 32], strides = [1, 1, 1]} : vector<8x16x32xbf16> to vector<7x16x32xbf16>
    %81 = tpu.concatenate %79, %80 in 0 : vector<1x16x32xbf16>, vector<7x16x32xbf16> -> vector<8x16x32xbf16>
    %82 = vector.extract_strided_slice %3 {offsets = [1, 0, 0], sizes = [7, 16, 32], strides = [1, 1, 1]} : vector<8x16x32xbf16> to vector<7x16x32xbf16>
    %c0_46 = arith.constant 0 : index
    %c0_47 = arith.constant 0 : index
    %c0_48 = arith.constant 0 : index
    %c0_49 = arith.constant 0 : index
    %83 = vector.load %arg7[%c0_46, %c0_47, %c0_48, %c0_49] : memref<1x1x16x32xbf16, #tpu.memory_space<vmem>>, vector<1x1x16x32xbf16>
    %84 = vector.shape_cast %83 : vector<1x1x16x32xbf16> to vector<1x16x32xbf16>
    %85 = tpu.concatenate %82, %84 in 0 : vector<7x16x32xbf16>, vector<1x16x32xbf16> -> vector<8x16x32xbf16>
    %c0_50 = arith.constant 0 : index
    %c0_51 = arith.constant 0 : index
    %86 = vector.load %arg13[%c0_50, %c0_51] : memref<16x16xbf16, #tpu.memory_space<vmem>>, vector<16x16xbf16>
    %87 = vector.shape_cast %86 : vector<16x16xbf16> to vector<1x16x16xbf16>
    %88 = vector.shape_cast %87 : vector<1x16x16xbf16> to vector<1x16x16xbf16>
    %89 = vector.broadcast %88 : vector<1x16x16xbf16> to vector<8x16x16xbf16>
    "tpu.trace_start"() <{level = 10 : i32, message = "gic,gjc->gij"}> : () -> ()
    %cst_52 = arith.constant dense<0.000000e+00> : vector<8x16x16xf32>
    %90 = tpu.matmul %1, %17, %cst_52 {dimension_numbers = #tpu.dot_dimension_numbers<[2], [2], [1], [1], [0, 0, 0, 1, 1, 1], [0], [0]>} : vector<8x16x8xbf16>, vector<8x16x8xbf16>, vector<8x16x16xf32> -> vector<8x16x16xf32>
    "tpu.trace_stop"() : () -> ()
    "tpu.trace_start"() <{level = 10 : i32, message = "gim,gjm->gij"}> : () -> ()
    %cst_53 = arith.constant dense<0.000000e+00> : vector<8x16x16xf32>
    %91 = tpu.matmul %89, %49, %cst_53 {dimension_numbers = #tpu.dot_dimension_numbers<[2], [2], [1], [1], [0, 0, 0, 1, 1, 1], [0], [0]>} : vector<8x16x16xbf16>, vector<8x16x16xbf16>, vector<8x16x16xf32> -> vector<8x16x16xf32>
    "tpu.trace_stop"() : () -> ()
    %92 = arith.addf %90, %91 : vector<8x16x16xf32>
    "tpu.trace_start"() <{level = 10 : i32, message = "gic,gjc->gij"}> : () -> ()
    %cst_54 = arith.constant dense<0.000000e+00> : vector<8x16x16xf32>
    %93 = tpu.matmul %1, %71, %cst_54 {dimension_numbers = #tpu.dot_dimension_numbers<[2], [2], [1], [1], [0, 0, 0, 1, 1, 1], [0], [0]>} : vector<8x16x8xbf16>, vector<8x16x8xbf16>, vector<8x16x16xf32> -> vector<8x16x16xf32>
    "tpu.trace_stop"() : () -> ()
    "tpu.trace_start"() <{level = 10 : i32, message = "gim,gjm->gij"}> : () -> ()
    %cst_55 = arith.constant dense<0.000000e+00> : vector<8x16x16xf32>
    %94 = tpu.matmul %89, %75, %cst_55 {dimension_numbers = #tpu.dot_dimension_numbers<[2], [2], [1], [1], [0, 0, 0, 1, 1, 1], [0], [0]>} : vector<8x16x16xbf16>, vector<8x16x16xbf16>, vector<8x16x16xf32> -> vector<8x16x16xf32>
    "tpu.trace_stop"() : () -> ()
    %95 = arith.addf %93, %94 : vector<8x16x16xf32>
    "tpu.trace_start"() <{level = 10 : i32, message = "gic,gjc->gij"}> : () -> ()
    %cst_56 = arith.constant dense<0.000000e+00> : vector<8x16x16xf32>
    %96 = tpu.matmul %1, %73, %cst_56 {dimension_numbers = #tpu.dot_dimension_numbers<[2], [2], [1], [1], [0, 0, 0, 1, 1, 1], [0], [0]>} : vector<8x16x8xbf16>, vector<8x16x8xbf16>, vector<8x16x16xf32> -> vector<8x16x16xf32>
    "tpu.trace_stop"() : () -> ()
    "tpu.trace_start"() <{level = 10 : i32, message = "gim,gjm->gij"}> : () -> ()
    %cst_57 = arith.constant dense<0.000000e+00> : vector<8x16x16xf32>
    %97 = tpu.matmul %89, %77, %cst_57 {dimension_numbers = #tpu.dot_dimension_numbers<[2], [2], [1], [1], [0, 0, 0, 1, 1, 1], [0], [0]>} : vector<8x16x16xbf16>, vector<8x16x16xbf16>, vector<8x16x16xf32> -> vector<8x16x16xf32>
    "tpu.trace_stop"() : () -> ()
    %98 = arith.addf %96, %97 : vector<8x16x16xf32>
    %cst_58 = arith.constant dense<0xFF800000> : vector<8x16xf32>
    %99 = vector.multi_reduction <maximumf>, %92, %cst_58 [2] : vector<8x16x16xf32> to vector<8x16xf32>
    %100 = vector.shape_cast %99 : vector<8x16xf32> to vector<8x16x1xf32>
    %cst_59 = arith.constant dense<0xFF800000> : vector<8x16xf32>
    %101 = vector.multi_reduction <maximumf>, %95, %cst_59 [2] : vector<8x16x16xf32> to vector<8x16xf32>
    %102 = vector.shape_cast %101 : vector<8x16xf32> to vector<8x16x1xf32>
    %103 = arith.maximumf %100, %102 : vector<8x16x1xf32>
    %cst_60 = arith.constant dense<0xFF800000> : vector<8x16xf32>
    %104 = vector.multi_reduction <maximumf>, %98, %cst_60 [2] : vector<8x16x16xf32> to vector<8x16xf32>
    %105 = vector.shape_cast %104 : vector<8x16xf32> to vector<8x16x1xf32>
    %106 = arith.maximumf %103, %105 : vector<8x16x1xf32>
    %cst_61 = arith.constant 0.000000e+00 : f32
    %107 = vector.broadcast %cst_61 : f32 to vector<8x16x1xf32>
    %cst_62 = arith.constant 0.000000e+00 : f32
    %108 = vector.broadcast %cst_62 : f32 to vector<8x16x32xf32>
    %109 = vector.broadcast %106 : vector<8x16x1xf32> to vector<8x16x16xf32>
    %110 = arith.subf %92, %109 : vector<8x16x16xf32>
    %111 = math.exp %110 : vector<8x16x16xf32>
    %cst_63 = arith.constant dense<0.000000e+00> : vector<8x16xf32>
    %112 = vector.multi_reduction <add>, %111, %cst_63 [2] : vector<8x16x16xf32> to vector<8x16xf32>
    %113 = vector.shape_cast %112 : vector<8x16xf32> to vector<8x16x1xf32>
    %114 = arith.addf %107, %113 : vector<8x16x1xf32>
    %115 = arith.truncf %111 : vector<8x16x16xf32> to vector<8x16x16xbf16>
    "tpu.trace_start"() <{level = 10 : i32, message = "gij,gjd->gid"}> : () -> ()
    %cst_64 = arith.constant dense<0.000000e+00> : vector<8x16x32xf32>
    %116 = tpu.matmul %115, %3, %cst_64 {dimension_numbers = #tpu.dot_dimension_numbers<[2], [1], [1], [2], [0, 0, 0, 1, 1, 2], [0], [0]>} : vector<8x16x16xbf16>, vector<8x16x32xbf16>, vector<8x16x32xf32> -> vector<8x16x32xf32>
    "tpu.trace_stop"() : () -> ()
    %117 = arith.addf %108, %116 : vector<8x16x32xf32>
    %118 = vector.broadcast %106 : vector<8x16x1xf32> to vector<8x16x16xf32>
    %119 = arith.subf %95, %118 : vector<8x16x16xf32>
    %120 = math.exp %119 : vector<8x16x16xf32>
    %cst_65 = arith.constant dense<0.000000e+00> : vector<8x16xf32>
    %121 = vector.multi_reduction <add>, %120, %cst_65 [2] : vector<8x16x16xf32> to vector<8x16xf32>
    %122 = vector.shape_cast %121 : vector<8x16xf32> to vector<8x16x1xf32>
    %123 = arith.addf %114, %122 : vector<8x16x1xf32>
    %124 = arith.truncf %120 : vector<8x16x16xf32> to vector<8x16x16xbf16>
    "tpu.trace_start"() <{level = 10 : i32, message = "gij,gjd->gid"}> : () -> ()
    %cst_66 = arith.constant dense<0.000000e+00> : vector<8x16x32xf32>
    %125 = tpu.matmul %124, %81, %cst_66 {dimension_numbers = #tpu.dot_dimension_numbers<[2], [1], [1], [2], [0, 0, 0, 1, 1, 2], [0], [0]>} : vector<8x16x16xbf16>, vector<8x16x32xbf16>, vector<8x16x32xf32> -> vector<8x16x32xf32>
    "tpu.trace_stop"() : () -> ()
    %126 = arith.addf %117, %125 : vector<8x16x32xf32>
    %127 = vector.broadcast %106 : vector<8x16x1xf32> to vector<8x16x16xf32>
    %128 = arith.subf %98, %127 : vector<8x16x16xf32>
    %129 = math.exp %128 : vector<8x16x16xf32>
    %cst_67 = arith.constant dense<0.000000e+00> : vector<8x16xf32>
    %130 = vector.multi_reduction <add>, %129, %cst_67 [2] : vector<8x16x16xf32> to vector<8x16xf32>
    %131 = vector.shape_cast %130 : vector<8x16xf32> to vector<8x16x1xf32>
    %132 = arith.addf %123, %131 : vector<8x16x1xf32>
    %133 = arith.truncf %129 : vector<8x16x16xf32> to vector<8x16x16xbf16>
    "tpu.trace_start"() <{level = 10 : i32, message = "gij,gjd->gid"}> : () -> ()
    %cst_68 = arith.constant dense<0.000000e+00> : vector<8x16x32xf32>
    %134 = tpu.matmul %133, %85, %cst_68 {dimension_numbers = #tpu.dot_dimension_numbers<[2], [1], [1], [2], [0, 0, 0, 1, 1, 2], [0], [0]>} : vector<8x16x16xbf16>, vector<8x16x32xbf16>, vector<8x16x32xf32> -> vector<8x16x32xf32>
    "tpu.trace_stop"() : () -> ()
    %135 = arith.addf %126, %134 : vector<8x16x32xf32>
    %cst_69 = arith.constant 1.000000e+00 : f32
    %136 = vector.broadcast %cst_69 : f32 to vector<8x16x1xf32>
    %137 = arith.divf %136, %132 : vector<8x16x1xf32>
    %138 = vector.broadcast %137 : vector<8x16x1xf32> to vector<8x16x32xf32>
    %139 = arith.mulf %135, %138 : vector<8x16x32xf32>
    %140 = arith.truncf %139 : vector<8x16x32xf32> to vector<8x16x32xbf16>
    %c0_70 = arith.constant 0 : index
    %c0_71 = arith.constant 0 : index
    %c0_72 = arith.constant 0 : index
    %c0_73 = arith.constant 0 : index
    %141 = vector.load %arg15[%c0_70, %c0_71, %c0_72, %c0_73] : memref<1x8x16x32xbf16, #tpu.memory_space<vmem>>, vector<1x8x16x32xbf16>
    %142 = vector.shape_cast %141 : vector<1x8x16x32xbf16> to vector<8x16x32xbf16>
    %143 = vector.shape_cast %140 : vector<8x16x32xbf16> to vector<1x8x16x32xbf16>
    tpu.vector_store %arg15[%c0_70, %c0_71, %c0_72, %c0_73], %143 {strides = array<i32>} : memref<1x8x16x32xbf16, #tpu.memory_space<vmem>>, vector<1x8x16x32xbf16>,
    %144 = vector.shape_cast %106 : vector<8x16x1xf32> to vector<8x16xf32>
    %145 = vector.shape_cast %132 : vector<8x16x1xf32> to vector<8x16xf32>
    %146 = math.log %145 : vector<8x16xf32>
    %147 = arith.addf %144, %146 : vector<8x16xf32>
    %c0_74 = arith.constant 0 : index
    %c0_75 = arith.constant 0 : index
    %148 = vector.load %arg14[%c0_74, %c0_75] : memref<1x16xf32, #tpu.memory_space<vmem>>, vector<1x16xf32>
    %149 = vector.broadcast %148 : vector<1x16xf32> to vector<8x16xf32>
    %150 = arith.addf %147, %149 : vector<8x16xf32>
    %c0_76 = arith.constant 0 : index
    %c0_77 = arith.constant 0 : index
    %c0_78 = arith.constant 0 : index
    %151 = vector.load %arg16[%c0_76, %c0_77, %c0_78] : memref<1x8x16xf32, #tpu.memory_space<vmem>>, vector<1x8x16xf32>
    %152 = vector.shape_cast %151 : vector<1x8x16xf32> to vector<8x16xf32>
    %153 = vector.shape_cast %150 : vector<8x16xf32> to vector<1x8x16xf32>
    tpu.vector_store %arg16[%c0_76, %c0_77, %c0_78], %153 {strides = array<i32>} : memref<1x8x16xf32, #tpu.memory_space<vmem>>, vector<1x8x16xf32>,
    return
  }
  func.func @transform_0(%arg0: i32, %arg1: i32) -> (i32, i32, i32, i32) {
    %c0_i32 = arith.constant 0 : i32
    %c0_i32_0 = arith.constant 0 : i32
    %c0_i32_1 = arith.constant 0 : i32
    return %arg0, %arg1, %c0_i32, %c0_i32_0 : i32, i32, i32, i32
  }
  func.func @transform_1(%arg0: i32, %arg1: i32) -> (i32, i32, i32, i32) {
    %c8_i32 = arith.constant 8 : i32
    %0 = arith.muli %arg1, %c8_i32 : i32
    %c16_i32 = arith.constant 16 : i32
    %1 = arith.addi %0, %c16_i32 : i32
    %c1_i32 = arith.constant 1 : i32
    %2 = arith.subi %1, %c1_i32 : i32
    %c16_i32_0 = arith.constant 16 : i32
    %c0_i32 = arith.constant 0 : i32
    %3 = arith.cmpi eq, %c16_i32_0, %c0_i32 : i32
    %c1_i32_1 = arith.constant 1 : i32
    %4 = arith.select %3, %c1_i32_1, %c16_i32_0 : i32
    %5 = arith.remsi %2, %4 : i32
    %c0_i32_2 = arith.constant 0 : i32
    %6 = arith.cmpi ne, %5, %c0_i32_2 : i32
    %c0_i32_3 = arith.constant 0 : i32
    %7 = arith.cmpi slt, %5, %c0_i32_3 : i32
    %c0_i32_4 = arith.constant 0 : i32
    %8 = arith.cmpi slt, %4, %c0_i32_4 : i32
    %9 = arith.xori %7, %8 : i1
    %10 = arith.andi %9, %6 : i1
    %11 = arith.addi %5, %4 : i32
    %12 = arith.select %10, %11, %5 : i32
    %c0_i32_5 = arith.constant 0 : i32
    %c0_i32_6 = arith.constant 0 : i32
    %c0_i32_7 = arith.constant 0 : i32
    return %arg0, %12, %c0_i32_5, %c0_i32_6 : i32, i32, i32, i32
  }
  func.func @transform_2(%arg0: i32, %arg1: i32) -> (i32, i32, i32, i32) {
    %c8_i32 = arith.constant 8 : i32
    %0 = arith.muli %arg1, %c8_i32 : i32
    %c8_i32_0 = arith.constant 8 : i32
    %1 = arith.addi %0, %c8_i32_0 : i32
    %c16_i32 = arith.constant 16 : i32
    %c0_i32 = arith.constant 0 : i32
    %2 = arith.cmpi eq, %c16_i32, %c0_i32 : i32
    %c1_i32 = arith.constant 1 : i32
    %3 = arith.select %2, %c1_i32, %c16_i32 : i32
    %4 = arith.remsi %1, %3 : i32
    %c0_i32_1 = arith.constant 0 : i32
    %5 = arith.cmpi ne, %4, %c0_i32_1 : i32
    %c0_i32_2 = arith.constant 0 : i32
    %6 = arith.cmpi slt, %4, %c0_i32_2 : i32
    %c0_i32_3 = arith.constant 0 : i32
    %7 = arith.cmpi slt, %3, %c0_i32_3 : i32
    %8 = arith.xori %6, %7 : i1
    %9 = arith.andi %8, %5 : i1
    %10 = arith.addi %4, %3 : i32
    %11 = arith.select %9, %10, %4 : i32
    %c0_i32_4 = arith.constant 0 : i32
    %c0_i32_5 = arith.constant 0 : i32
    %c0_i32_6 = arith.constant 0 : i32
    return %arg0, %11, %c0_i32_4, %c0_i32_5 : i32, i32, i32, i32
  }
  func.func @transform_3(%arg0: i32, %arg1: i32) -> (i32, i32, i32, i32) {
    %c0_i32 = arith.constant 0 : i32
    %c0_i32_0 = arith.constant 0 : i32
    %c0_i32_1 = arith.constant 0 : i32
    return %arg0, %arg1, %c0_i32, %c0_i32_0 : i32, i32, i32, i32
  }
  func.func @transform_4(%arg0: i32, %arg1: i32) -> (i32, i32, i32, i32) {
    %c8_i32 = arith.constant 8 : i32
    %0 = arith.muli %arg1, %c8_i32 : i32
    %c16_i32 = arith.constant 16 : i32
    %1 = arith.addi %0, %c16_i32 : i32
    %c1_i32 = arith.constant 1 : i32
    %2 = arith.subi %1, %c1_i32 : i32
    %c16_i32_0 = arith.constant 16 : i32
    %c0_i32 = arith.constant 0 : i32
    %3 = arith.cmpi eq, %c16_i32_0, %c0_i32 : i32
    %c1_i32_1 = arith.constant 1 : i32
    %4 = arith.select %3, %c1_i32_1, %c16_i32_0 : i32
    %5 = arith.remsi %2, %4 : i32
    %c0_i32_2 = arith.constant 0 : i32
    %6 = arith.cmpi ne, %5, %c0_i32_2 : i32
    %c0_i32_3 = arith.constant 0 : i32
    %7 = arith.cmpi slt, %5, %c0_i32_3 : i32
    %c0_i32_4 = arith.constant 0 : i32
    %8 = arith.cmpi slt, %4, %c0_i32_4 : i32
    %9 = arith.xori %7, %8 : i1
    %10 = arith.andi %9, %6 : i1
    %11 = arith.addi %5, %4 : i32
    %12 = arith.select %10, %11, %5 : i32
    %c0_i32_5 = arith.constant 0 : i32
    %c0_i32_6 = arith.constant 0 : i32
    %c0_i32_7 = arith.constant 0 : i32
    return %arg0, %12, %c0_i32_5, %c0_i32_6 : i32, i32, i32, i32
  }
  func.func @transform_5(%arg0: i32, %arg1: i32) -> (i32, i32, i32, i32) {
    %c8_i32 = arith.constant 8 : i32
    %0 = arith.muli %arg1, %c8_i32 : i32
    %c8_i32_0 = arith.constant 8 : i32
    %1 = arith.addi %0, %c8_i32_0 : i32
    %c16_i32 = arith.constant 16 : i32
    %c0_i32 = arith.constant 0 : i32
    %2 = arith.cmpi eq, %c16_i32, %c0_i32 : i32
    %c1_i32 = arith.constant 1 : i32
    %3 = arith.select %2, %c1_i32, %c16_i32 : i32
    %4 = arith.remsi %1, %3 : i32
    %c0_i32_1 = arith.constant 0 : i32
    %5 = arith.cmpi ne, %4, %c0_i32_1 : i32
    %c0_i32_2 = arith.constant 0 : i32
    %6 = arith.cmpi slt, %4, %c0_i32_2 : i32
    %c0_i32_3 = arith.constant 0 : i32
    %7 = arith.cmpi slt, %3, %c0_i32_3 : i32
    %8 = arith.xori %6, %7 : i1
    %9 = arith.andi %8, %5 : i1
    %10 = arith.addi %4, %3 : i32
    %11 = arith.select %9, %10, %4 : i32
    %c0_i32_4 = arith.constant 0 : i32
    %c0_i32_5 = arith.constant 0 : i32
    %c0_i32_6 = arith.constant 0 : i32
    return %arg0, %11, %c0_i32_4, %c0_i32_5 : i32, i32, i32, i32
  }
  func.func @transform_6(%arg0: i32, %arg1: i32) -> (i32, i32, i32, i32) {
    %c0_i32 = arith.constant 0 : i32
    %c0_i32_0 = arith.constant 0 : i32
    %c0_i32_1 = arith.constant 0 : i32
    return %arg0, %arg1, %c0_i32, %c0_i32_0 : i32, i32, i32, i32
  }
  func.func @transform_7(%arg0: i32, %arg1: i32) -> (i32, i32, i32, i32) {
    %c8_i32 = arith.constant 8 : i32
    %0 = arith.muli %arg1, %c8_i32 : i32
    %c16_i32 = arith.constant 16 : i32
    %1 = arith.addi %0, %c16_i32 : i32
    %c1_i32 = arith.constant 1 : i32
    %2 = arith.subi %1, %c1_i32 : i32
    %c16_i32_0 = arith.constant 16 : i32
    %c0_i32 = arith.constant 0 : i32
    %3 = arith.cmpi eq, %c16_i32_0, %c0_i32 : i32
    %c1_i32_1 = arith.constant 1 : i32
    %4 = arith.select %3, %c1_i32_1, %c16_i32_0 : i32
    %5 = arith.remsi %2, %4 : i32
    %c0_i32_2 = arith.constant 0 : i32
    %6 = arith.cmpi ne, %5, %c0_i32_2 : i32
    %c0_i32_3 = arith.constant 0 : i32
    %7 = arith.cmpi slt, %5, %c0_i32_3 : i32
    %c0_i32_4 = arith.constant 0 : i32
    %8 = arith.cmpi slt, %4, %c0_i32_4 : i32
    %9 = arith.xori %7, %8 : i1
    %10 = arith.andi %9, %6 : i1
    %11 = arith.addi %5, %4 : i32
    %12 = arith.select %10, %11, %5 : i32
    %c0_i32_5 = arith.constant 0 : i32
    %c0_i32_6 = arith.constant 0 : i32
    %c0_i32_7 = arith.constant 0 : i32
    return %arg0, %12, %c0_i32_5, %c0_i32_6 : i32, i32, i32, i32
  }
  func.func @transform_8(%arg0: i32, %arg1: i32) -> (i32, i32, i32, i32) {
    %c8_i32 = arith.constant 8 : i32
    %0 = arith.muli %arg1, %c8_i32 : i32
    %c8_i32_0 = arith.constant 8 : i32
    %1 = arith.addi %0, %c8_i32_0 : i32
    %c16_i32 = arith.constant 16 : i32
    %c0_i32 = arith.constant 0 : i32
    %2 = arith.cmpi eq, %c16_i32, %c0_i32 : i32
    %c1_i32 = arith.constant 1 : i32
    %3 = arith.select %2, %c1_i32, %c16_i32 : i32
    %4 = arith.remsi %1, %3 : i32
    %c0_i32_1 = arith.constant 0 : i32
    %5 = arith.cmpi ne, %4, %c0_i32_1 : i32
    %c0_i32_2 = arith.constant 0 : i32
    %6 = arith.cmpi slt, %4, %c0_i32_2 : i32
    %c0_i32_3 = arith.constant 0 : i32
    %7 = arith.cmpi slt, %3, %c0_i32_3 : i32
    %8 = arith.xori %6, %7 : i1
    %9 = arith.andi %8, %5 : i1
    %10 = arith.addi %4, %3 : i32
    %11 = arith.select %9, %10, %4 : i32
    %c0_i32_4 = arith.constant 0 : i32
    %c0_i32_5 = arith.constant 0 : i32
    %c0_i32_6 = arith.constant 0 : i32
    return %arg0, %11, %c0_i32_4, %c0_i32_5 : i32, i32, i32, i32
  }
  func.func @transform_9(%arg0: i32, %arg1: i32) -> (i32, i32) {
    %c0_i32 = arith.constant 0 : i32
    %c0_i32_0 = arith.constant 0 : i32
    %c0_i32_1 = arith.constant 0 : i32
    return %c0_i32, %c0_i32_0 : i32, i32
  }
  func.func @transform_10(%arg0: i32, %arg1: i32) -> (i32, i32) {
    %c0_i32 = arith.constant 0 : i32
    %c0_i32_0 = arith.constant 0 : i32
    %c0_i32_1 = arith.constant 0 : i32
    return %c0_i32, %c0_i32_0 : i32, i32
  }
  func.func @transform_11(%arg0: i32, %arg1: i32) -> (i32, i32) {
    %c0_i32 = arith.constant 0 : i32
    %c0_i32_0 = arith.constant 0 : i32
    %c0_i32_1 = arith.constant 0 : i32
    return %c0_i32, %c0_i32_0 : i32, i32
  }
  func.func @transform_12(%arg0: i32, %arg1: i32) -> (i32, i32) {
    %c0_i32 = arith.constant 0 : i32
    %c0_i32_0 = arith.constant 0 : i32
    %c0_i32_1 = arith.constant 0 : i32
    return %c0_i32, %c0_i32_0 : i32, i32
  }
  func.func @transform_13(%arg0: i32, %arg1: i32) -> (i32, i32, i32, i32) {
    %c0_i32 = arith.constant 0 : i32
    %c0_i32_0 = arith.constant 0 : i32
    %c0_i32_1 = arith.constant 0 : i32
    return %arg0, %arg1, %c0_i32, %c0_i32_0 : i32, i32, i32, i32
  }
  func.func @transform_14(%arg0: i32, %arg1: i32) -> (i32, i32, i32) {
    %c0_i32 = arith.constant 0 : i32
    %c0_i32_0 = arith.constant 0 : i32
    return %arg0, %arg1, %c0_i32 : i32, i32, i32
  }
}

module attributes {stable_mosaic.version = 11 : i64} {
  func.func @_mm_kernel(%arg0: i32, %arg1: i32, %arg2: i32, %arg3: memref<8x128xbf16, #tpu.memory_space<vmem>>, %arg4: memref<128x128xbf16, #tpu.memory_space<vmem>>, %arg5: memref<1x128xf32, #tpu.memory_space<vmem>>, %arg6: memref<8x128xf32, #tpu.memory_space<vmem>>, %arg7: memref<8x128xf32, #tpu.memory_space<vmem>>) attributes {dimension_semantics = [#tpu.dimension_semantics<parallel>, #tpu.dimension_semantics<parallel>, #tpu.dimension_semantics<arbitrary>], iteration_bounds = array<i64: 1, 1, 1>, scalar_prefetch = 0 : i64, scratch_operands = 1 : i64, tpu.core_type = #tpu.core_type<tc>, window_params = [{transform_indices = @transform_0, window_bounds = array<i64: 8, 128>}, {transform_indices = @transform_1, window_bounds = array<i64: 128, 128>}, {transform_indices = @transform_2, window_bounds = array<i64: 1, 128>}, {transform_indices = @transform_3, window_bounds = array<i64: 8, 128>}]} {
    %c0_i32 = arith.constant 0 : i32
    %0 = arith.cmpi eq, %arg2, %c0_i32 : i32
    %1 = arith.extui %0 : i1 to i32
    %c0_i32_0 = arith.constant 0 : i32
    %2 = arith.cmpi ne, %1, %c0_i32_0 : i32
    scf.if %2 {
      %cst_10 = arith.constant 0.000000e+00 : f32
      %12 = vector.broadcast %cst_10 : f32 to vector<8x128xf32>
      %c0_11 = arith.constant 0 : index
      %c0_12 = arith.constant 0 : index
      %13 = vector.load %arg7[%c0_11, %c0_12] : memref<8x128xf32, #tpu.memory_space<vmem>>, vector<8x128xf32>
      tpu.vector_store %arg7[%c0_11, %c0_12], %12 {strides = array<i32>} : memref<8x128xf32, #tpu.memory_space<vmem>>, vector<8x128xf32>,
    } else {
    }
    %c0 = arith.constant 0 : index
    %c0_1 = arith.constant 0 : index
    %3 = vector.load %arg7[%c0, %c0_1] : memref<8x128xf32, #tpu.memory_space<vmem>>, vector<8x128xf32>
    %c0_2 = arith.constant 0 : index
    %c0_3 = arith.constant 0 : index
    %4 = vector.load %arg3[%c0_2, %c0_3] : memref<8x128xbf16, #tpu.memory_space<vmem>>, vector<8x128xbf16>
    %c0_4 = arith.constant 0 : index
    %c0_5 = arith.constant 0 : index
    %5 = vector.load %arg4[%c0_4, %c0_5] : memref<128x128xbf16, #tpu.memory_space<vmem>>, vector<128x128xbf16>
    %cst = arith.constant dense<0.000000e+00> : vector<8x128xf32>
    %6 = tpu.matmul %4, %5, %cst {dimension_numbers = #tpu.dot_dimension_numbers<[1], [0], [0], [1], [0, 0, 1, 1], [], []>} : vector<8x128xbf16>, vector<128x128xbf16>, vector<8x128xf32> -> vector<8x128xf32>
    %7 = arith.addf %3, %6 : vector<8x128xf32>
    %c0_6 = arith.constant 0 : index
    %c0_7 = arith.constant 0 : index
    %8 = vector.load %arg7[%c0_6, %c0_7] : memref<8x128xf32, #tpu.memory_space<vmem>>, vector<8x128xf32>
    tpu.vector_store %arg7[%c0_6, %c0_7], %7 {strides = array<i32>} : memref<8x128xf32, #tpu.memory_space<vmem>>, vector<8x128xf32>,
    %c0_i32_8 = arith.constant 0 : i32
    %9 = arith.cmpi eq, %arg2, %c0_i32_8 : i32
    %10 = arith.extui %9 : i1 to i32
    %c0_i32_9 = arith.constant 0 : i32
    %11 = arith.cmpi ne, %10, %c0_i32_9 : i32
    scf.if %11 {
      %c0_10 = arith.constant 0 : index
      %c0_11 = arith.constant 0 : index
      %12 = vector.load %arg7[%c0_10, %c0_11] : memref<8x128xf32, #tpu.memory_space<vmem>>, vector<8x128xf32>
      %c0_12 = arith.constant 0 : index
      %c0_13 = arith.constant 0 : index
      %13 = vector.load %arg5[%c0_12, %c0_13] : memref<1x128xf32, #tpu.memory_space<vmem>>, vector<1x128xf32>
      %14 = vector.broadcast %13 : vector<1x128xf32> to vector<8x128xf32>
      %15 = arith.addf %12, %14 : vector<8x128xf32>
      %cst_14 = arith.constant 0.000000e+00 : f32
      %16 = vector.broadcast %cst_14 : f32 to vector<8x128xf32>
      %17 = arith.maximumf %15, %16 : vector<8x128xf32>
      %c0_15 = arith.constant 0 : index
      %c0_16 = arith.constant 0 : index
      %18 = vector.load %arg6[%c0_15, %c0_16] : memref<8x128xf32, #tpu.memory_space<vmem>>, vector<8x128xf32>
      tpu.vector_store %arg6[%c0_15, %c0_16], %17 {strides = array<i32>} : memref<8x128xf32, #tpu.memory_space<vmem>>, vector<8x128xf32>,
    } else {
    }
    return
  }
  func.func @transform_0(%arg0: i32, %arg1: i32, %arg2: i32) -> (i32, i32) {
    %c0_i32 = arith.constant 0 : i32
    return %arg0, %arg2 : i32, i32
  }
  func.func @transform_1(%arg0: i32, %arg1: i32, %arg2: i32) -> (i32, i32) {
    %c0_i32 = arith.constant 0 : i32
    return %arg2, %arg1 : i32, i32
  }
  func.func @transform_2(%arg0: i32, %arg1: i32, %arg2: i32) -> (i32, i32) {
    %c0_i32 = arith.constant 0 : i32
    %c0_i32_0 = arith.constant 0 : i32
    return %c0_i32, %arg1 : i32, i32
  }
  func.func @transform_3(%arg0: i32, %arg1: i32, %arg2: i32) -> (i32, i32) {
    %c0_i32 = arith.constant 0 : i32
    return %arg0, %arg1 : i32, i32
  }
}

module attributes {stable_mosaic.version = 11 : i64} {
  func.func @_mm_kernel(%arg0: i32, %arg1: i32, %arg2: i32, %arg3: memref<8x128xbf16, #tpu.memory_space<vmem>>, %arg4: memref<128x128xbf16, #tpu.memory_space<vmem>>, %arg5: memref<1x128xf32, #tpu.memory_space<vmem>>, %arg6: memref<8x128xf32, #tpu.memory_space<vmem>>, %arg7: memref<8x128xf32, #tpu.memory_space<vmem>>) attributes {dimension_semantics = [#tpu.dimension_semantics<parallel>, #tpu.dimension_semantics<parallel>, #tpu.dimension_semantics<arbitrary>], iteration_bounds = array<i64: 1, 1, 1>, scalar_prefetch = 0 : i64, scratch_operands = 1 : i64, tpu.core_type = #tpu.core_type<tc>, window_params = [{transform_indices = @transform_0, window_bounds = array<i64: 8, 128>}, {transform_indices = @transform_1, window_bounds = array<i64: 128, 128>}, {transform_indices = @transform_2, window_bounds = array<i64: 1, 128>}, {transform_indices = @transform_3, window_bounds = array<i64: 8, 128>}]} {
    %c0_i32 = arith.constant 0 : i32
    %0 = arith.cmpi eq, %arg2, %c0_i32 : i32
    %1 = arith.extui %0 : i1 to i32
    %c0_i32_0 = arith.constant 0 : i32
    %2 = arith.cmpi ne, %1, %c0_i32_0 : i32
    scf.if %2 {
      %cst_10 = arith.constant 0.000000e+00 : f32
      %12 = vector.broadcast %cst_10 : f32 to vector<8x128xf32>
      %c0_11 = arith.constant 0 : index
      %c0_12 = arith.constant 0 : index
      %13 = vector.load %arg7[%c0_11, %c0_12] : memref<8x128xf32, #tpu.memory_space<vmem>>, vector<8x128xf32>
      tpu.vector_store %arg7[%c0_11, %c0_12], %12 {strides = array<i32>} : memref<8x128xf32, #tpu.memory_space<vmem>>, vector<8x128xf32>,
    } else {
    }
    %c0 = arith.constant 0 : index
    %c0_1 = arith.constant 0 : index
    %3 = vector.load %arg7[%c0, %c0_1] : memref<8x128xf32, #tpu.memory_space<vmem>>, vector<8x128xf32>
    %c0_2 = arith.constant 0 : index
    %c0_3 = arith.constant 0 : index
    %4 = vector.load %arg3[%c0_2, %c0_3] : memref<8x128xbf16, #tpu.memory_space<vmem>>, vector<8x128xbf16>
    %c0_4 = arith.constant 0 : index
    %c0_5 = arith.constant 0 : index
    %5 = vector.load %arg4[%c0_4, %c0_5] : memref<128x128xbf16, #tpu.memory_space<vmem>>, vector<128x128xbf16>
    %cst = arith.constant dense<0.000000e+00> : vector<8x128xf32>
    %6 = tpu.matmul %4, %5, %cst {dimension_numbers = #tpu.dot_dimension_numbers<[1], [0], [0], [1], [0, 0, 1, 1], [], []>} : vector<8x128xbf16>, vector<128x128xbf16>, vector<8x128xf32> -> vector<8x128xf32>
    %7 = arith.addf %3, %6 : vector<8x128xf32>
    %c0_6 = arith.constant 0 : index
    %c0_7 = arith.constant 0 : index
    %8 = vector.load %arg7[%c0_6, %c0_7] : memref<8x128xf32, #tpu.memory_space<vmem>>, vector<8x128xf32>
    tpu.vector_store %arg7[%c0_6, %c0_7], %7 {strides = array<i32>} : memref<8x128xf32, #tpu.memory_space<vmem>>, vector<8x128xf32>,
    %c0_i32_8 = arith.constant 0 : i32
    %9 = arith.cmpi eq, %arg2, %c0_i32_8 : i32
    %10 = arith.extui %9 : i1 to i32
    %c0_i32_9 = arith.constant 0 : i32
    %11 = arith.cmpi ne, %10, %c0_i32_9 : i32
    scf.if %11 {
      %c0_10 = arith.constant 0 : index
      %c0_11 = arith.constant 0 : index
      %12 = vector.load %arg7[%c0_10, %c0_11] : memref<8x128xf32, #tpu.memory_space<vmem>>, vector<8x128xf32>
      %c0_12 = arith.constant 0 : index
      %c0_13 = arith.constant 0 : index
      %13 = vector.load %arg5[%c0_12, %c0_13] : memref<1x128xf32, #tpu.memory_space<vmem>>, vector<1x128xf32>
      %14 = vector.broadcast %13 : vector<1x128xf32> to vector<8x128xf32>
      %15 = arith.addf %12, %14 : vector<8x128xf32>
      %16 = arith.negf %15 : vector<8x128xf32>
      %17 = math.exp %16 : vector<8x128xf32>
      %cst_14 = arith.constant 1.000000e+00 : f32
      %18 = vector.broadcast %cst_14 : f32 to vector<8x128xf32>
      %19 = arith.addf %18, %17 : vector<8x128xf32>
      %20 = arith.divf %18, %19 : vector<8x128xf32>
      %c0_15 = arith.constant 0 : index
      %c0_16 = arith.constant 0 : index
      %21 = vector.load %arg6[%c0_15, %c0_16] : memref<8x128xf32, #tpu.memory_space<vmem>>, vector<8x128xf32>
      tpu.vector_store %arg6[%c0_15, %c0_16], %20 {strides = array<i32>} : memref<8x128xf32, #tpu.memory_space<vmem>>, vector<8x128xf32>,
    } else {
    }
    return
  }
  func.func @transform_0(%arg0: i32, %arg1: i32, %arg2: i32) -> (i32, i32) {
    %c0_i32 = arith.constant 0 : i32
    return %arg0, %arg2 : i32, i32
  }
  func.func @transform_1(%arg0: i32, %arg1: i32, %arg2: i32) -> (i32, i32) {
    %c0_i32 = arith.constant 0 : i32
    return %arg2, %arg1 : i32, i32
  }
  func.func @transform_2(%arg0: i32, %arg1: i32, %arg2: i32) -> (i32, i32) {
    %c0_i32 = arith.constant 0 : i32
    %c0_i32_0 = arith.constant 0 : i32
    return %c0_i32, %arg1 : i32, i32
  }
  func.func @transform_3(%arg0: i32, %arg1: i32, %arg2: i32) -> (i32, i32) {
    %c0_i32 = arith.constant 0 : i32
    return %arg0, %arg1 : i32, i32
  }
}

module attributes {stable_mosaic.version = 11 : i64} {
  func.func @_mm_kernel(%arg0: i32, %arg1: i32, %arg2: i32, %arg3: memref<512x128xbf16, #tpu.memory_space<vmem>>, %arg4: memref<128x128xbf16, #tpu.memory_space<vmem>>, %arg5: memref<1x128xf32, #tpu.memory_space<vmem>>, %arg6: memref<512x128xf32, #tpu.memory_space<vmem>>, %arg7: memref<512x128xf32, #tpu.memory_space<vmem>>) attributes {dimension_semantics = [#tpu.dimension_semantics<parallel>, #tpu.dimension_semantics<parallel>, #tpu.dimension_semantics<arbitrary>], iteration_bounds = array<i64: 1, 1, 1>, scalar_prefetch = 0 : i64, scratch_operands = 1 : i64, tpu.core_type = #tpu.core_type<tc>, window_params = [{transform_indices = @transform_0, window_bounds = array<i64: 512, 128>}, {transform_indices = @transform_1, window_bounds = array<i64: 128, 128>}, {transform_indices = @transform_2, window_bounds = array<i64: 1, 128>}, {transform_indices = @transform_3, window_bounds = array<i64: 512, 128>}]} {
    %c0_i32 = arith.constant 0 : i32
    %0 = arith.cmpi eq, %arg2, %c0_i32 : i32
    %1 = arith.extui %0 : i1 to i32
    %c0_i32_0 = arith.constant 0 : i32
    %2 = arith.cmpi ne, %1, %c0_i32_0 : i32
    scf.if %2 {
      %cst_10 = arith.constant 0.000000e+00 : f32
      %12 = vector.broadcast %cst_10 : f32 to vector<512x128xf32>
      %c0_11 = arith.constant 0 : index
      %c0_12 = arith.constant 0 : index
      %13 = vector.load %arg7[%c0_11, %c0_12] : memref<512x128xf32, #tpu.memory_space<vmem>>, vector<512x128xf32>
      tpu.vector_store %arg7[%c0_11, %c0_12], %12 {strides = array<i32>} : memref<512x128xf32, #tpu.memory_space<vmem>>, vector<512x128xf32>,
    } else {
    }
    %c0 = arith.constant 0 : index
    %c0_1 = arith.constant 0 : index
    %3 = vector.load %arg7[%c0, %c0_1] : memref<512x128xf32, #tpu.memory_space<vmem>>, vector<512x128xf32>
    %c0_2 = arith.constant 0 : index
    %c0_3 = arith.constant 0 : index
    %4 = vector.load %arg3[%c0_2, %c0_3] : memref<512x128xbf16, #tpu.memory_space<vmem>>, vector<512x128xbf16>
    %c0_4 = arith.constant 0 : index
    %c0_5 = arith.constant 0 : index
    %5 = vector.load %arg4[%c0_4, %c0_5] : memref<128x128xbf16, #tpu.memory_space<vmem>>, vector<128x128xbf16>
    %cst = arith.constant dense<0.000000e+00> : vector<512x128xf32>
    %6 = tpu.matmul %4, %5, %cst {dimension_numbers = #tpu.dot_dimension_numbers<[1], [0], [0], [1], [0, 0, 1, 1], [], []>} : vector<512x128xbf16>, vector<128x128xbf16>, vector<512x128xf32> -> vector<512x128xf32>
    %7 = arith.addf %3, %6 : vector<512x128xf32>
    %c0_6 = arith.constant 0 : index
    %c0_7 = arith.constant 0 : index
    %8 = vector.load %arg7[%c0_6, %c0_7] : memref<512x128xf32, #tpu.memory_space<vmem>>, vector<512x128xf32>
    tpu.vector_store %arg7[%c0_6, %c0_7], %7 {strides = array<i32>} : memref<512x128xf32, #tpu.memory_space<vmem>>, vector<512x128xf32>,
    %c0_i32_8 = arith.constant 0 : i32
    %9 = arith.cmpi eq, %arg2, %c0_i32_8 : i32
    %10 = arith.extui %9 : i1 to i32
    %c0_i32_9 = arith.constant 0 : i32
    %11 = arith.cmpi ne, %10, %c0_i32_9 : i32
    scf.if %11 {
      %c0_10 = arith.constant 0 : index
      %c0_11 = arith.constant 0 : index
      %12 = vector.load %arg7[%c0_10, %c0_11] : memref<512x128xf32, #tpu.memory_space<vmem>>, vector<512x128xf32>
      %c0_12 = arith.constant 0 : index
      %c0_13 = arith.constant 0 : index
      %13 = vector.load %arg5[%c0_12, %c0_13] : memref<1x128xf32, #tpu.memory_space<vmem>>, vector<1x128xf32>
      %14 = vector.broadcast %13 : vector<1x128xf32> to vector<512x128xf32>
      %15 = arith.addf %12, %14 : vector<512x128xf32>
      %cst_14 = arith.constant 0.000000e+00 : f32
      %16 = vector.broadcast %cst_14 : f32 to vector<512x128xf32>
      %17 = arith.maximumf %15, %16 : vector<512x128xf32>
      %c0_15 = arith.constant 0 : index
      %c0_16 = arith.constant 0 : index
      %18 = vector.load %arg6[%c0_15, %c0_16] : memref<512x128xf32, #tpu.memory_space<vmem>>, vector<512x128xf32>
      tpu.vector_store %arg6[%c0_15, %c0_16], %17 {strides = array<i32>} : memref<512x128xf32, #tpu.memory_space<vmem>>, vector<512x128xf32>,
    } else {
    }
    return
  }
  func.func @transform_0(%arg0: i32, %arg1: i32, %arg2: i32) -> (i32, i32) {
    %c0_i32 = arith.constant 0 : i32
    return %arg0, %arg2 : i32, i32
  }
  func.func @transform_1(%arg0: i32, %arg1: i32, %arg2: i32) -> (i32, i32) {
    %c0_i32 = arith.constant 0 : i32
    return %arg2, %arg1 : i32, i32
  }
  func.func @transform_2(%arg0: i32, %arg1: i32, %arg2: i32) -> (i32, i32) {
    %c0_i32 = arith.constant 0 : i32
    %c0_i32_0 = arith.constant 0 : i32
    return %c0_i32, %arg1 : i32, i32
  }
  func.func @transform_3(%arg0: i32, %arg1: i32, %arg2: i32) -> (i32, i32) {
    %c0_i32 = arith.constant 0 : i32
    return %arg0, %arg1 : i32, i32
  }
}

module attributes {stable_mosaic.version = 11 : i64} {
  func.func @_mm_kernel(%arg0: i32, %arg1: i32, %arg2: i32, %arg3: memref<512x128xbf16, #tpu.memory_space<vmem>>, %arg4: memref<128x128xbf16, #tpu.memory_space<vmem>>, %arg5: memref<1x128xf32, #tpu.memory_space<vmem>>, %arg6: memref<512x128xf32, #tpu.memory_space<vmem>>, %arg7: memref<512x128xf32, #tpu.memory_space<vmem>>) attributes {dimension_semantics = [#tpu.dimension_semantics<parallel>, #tpu.dimension_semantics<parallel>, #tpu.dimension_semantics<arbitrary>], iteration_bounds = array<i64: 1, 1, 1>, scalar_prefetch = 0 : i64, scratch_operands = 1 : i64, tpu.core_type = #tpu.core_type<tc>, window_params = [{transform_indices = @transform_0, window_bounds = array<i64: 512, 128>}, {transform_indices = @transform_1, window_bounds = array<i64: 128, 128>}, {transform_indices = @transform_2, window_bounds = array<i64: 1, 128>}, {transform_indices = @transform_3, window_bounds = array<i64: 512, 128>}]} {
    %c0_i32 = arith.constant 0 : i32
    %0 = arith.cmpi eq, %arg2, %c0_i32 : i32
    %1 = arith.extui %0 : i1 to i32
    %c0_i32_0 = arith.constant 0 : i32
    %2 = arith.cmpi ne, %1, %c0_i32_0 : i32
    scf.if %2 {
      %cst_10 = arith.constant 0.000000e+00 : f32
      %12 = vector.broadcast %cst_10 : f32 to vector<512x128xf32>
      %c0_11 = arith.constant 0 : index
      %c0_12 = arith.constant 0 : index
      %13 = vector.load %arg7[%c0_11, %c0_12] : memref<512x128xf32, #tpu.memory_space<vmem>>, vector<512x128xf32>
      tpu.vector_store %arg7[%c0_11, %c0_12], %12 {strides = array<i32>} : memref<512x128xf32, #tpu.memory_space<vmem>>, vector<512x128xf32>,
    } else {
    }
    %c0 = arith.constant 0 : index
    %c0_1 = arith.constant 0 : index
    %3 = vector.load %arg7[%c0, %c0_1] : memref<512x128xf32, #tpu.memory_space<vmem>>, vector<512x128xf32>
    %c0_2 = arith.constant 0 : index
    %c0_3 = arith.constant 0 : index
    %4 = vector.load %arg3[%c0_2, %c0_3] : memref<512x128xbf16, #tpu.memory_space<vmem>>, vector<512x128xbf16>
    %c0_4 = arith.constant 0 : index
    %c0_5 = arith.constant 0 : index
    %5 = vector.load %arg4[%c0_4, %c0_5] : memref<128x128xbf16, #tpu.memory_space<vmem>>, vector<128x128xbf16>
    %cst = arith.constant dense<0.000000e+00> : vector<512x128xf32>
    %6 = tpu.matmul %4, %5, %cst {dimension_numbers = #tpu.dot_dimension_numbers<[1], [0], [0], [1], [0, 0, 1, 1], [], []>} : vector<512x128xbf16>, vector<128x128xbf16>, vector<512x128xf32> -> vector<512x128xf32>
    %7 = arith.addf %3, %6 : vector<512x128xf32>
    %c0_6 = arith.constant 0 : index
    %c0_7 = arith.constant 0 : index
    %8 = vector.load %arg7[%c0_6, %c0_7] : memref<512x128xf32, #tpu.memory_space<vmem>>, vector<512x128xf32>
    tpu.vector_store %arg7[%c0_6, %c0_7], %7 {strides = array<i32>} : memref<512x128xf32, #tpu.memory_space<vmem>>, vector<512x128xf32>,
    %c0_i32_8 = arith.constant 0 : i32
    %9 = arith.cmpi eq, %arg2, %c0_i32_8 : i32
    %10 = arith.extui %9 : i1 to i32
    %c0_i32_9 = arith.constant 0 : i32
    %11 = arith.cmpi ne, %10, %c0_i32_9 : i32
    scf.if %11 {
      %c0_10 = arith.constant 0 : index
      %c0_11 = arith.constant 0 : index
      %12 = vector.load %arg7[%c0_10, %c0_11] : memref<512x128xf32, #tpu.memory_space<vmem>>, vector<512x128xf32>
      %c0_12 = arith.constant 0 : index
      %c0_13 = arith.constant 0 : index
      %13 = vector.load %arg5[%c0_12, %c0_13] : memref<1x128xf32, #tpu.memory_space<vmem>>, vector<1x128xf32>
      %14 = vector.broadcast %13 : vector<1x128xf32> to vector<512x128xf32>
      %15 = arith.addf %12, %14 : vector<512x128xf32>
      %c0_14 = arith.constant 0 : index
      %c0_15 = arith.constant 0 : index
      %16 = vector.load %arg6[%c0_14, %c0_15] : memref<512x128xf32, #tpu.memory_space<vmem>>, vector<512x128xf32>
      tpu.vector_store %arg6[%c0_14, %c0_15], %15 {strides = array<i32>} : memref<512x128xf32, #tpu.memory_space<vmem>>, vector<512x128xf32>,
    } else {
    }
    return
  }
  func.func @transform_0(%arg0: i32, %arg1: i32, %arg2: i32) -> (i32, i32) {
    %c0_i32 = arith.constant 0 : i32
    return %arg0, %arg2 : i32, i32
  }
  func.func @transform_1(%arg0: i32, %arg1: i32, %arg2: i32) -> (i32, i32) {
    %c0_i32 = arith.constant 0 : i32
    return %arg2, %arg1 : i32, i32
  }
  func.func @transform_2(%arg0: i32, %arg1: i32, %arg2: i32) -> (i32, i32) {
    %c0_i32 = arith.constant 0 : i32
    %c0_i32_0 = arith.constant 0 : i32
    return %c0_i32, %arg1 : i32, i32
  }
  func.func @transform_3(%arg0: i32, %arg1: i32, %arg2: i32) -> (i32, i32) {
    %c0_i32 = arith.constant 0 : i32
    return %arg0, %arg1 : i32, i32
  }
}

</mosaic_0001>

<bundles_post_ra>
// kernel: custom-call.21
= control target key start
LH: loop header
LB: loop body
LE: loop exit
PB: predicated region body
PF: predicated region fallthrough
CT: control target
= control target key end

     0   :  { %v395_v2 = vmov 0.0   ;;  %s418_s13 = smov 0   ;;  %s502_s0 = inlined_call_operand.vmem [shape: f32[16,8], index: 0, kind: input, shape index: {}]   ;;  %s503_s1 = inlined_call_operand.vmem [shape: f32[16,8], index: 1, kind: output, shape index: {0}]   ;;  %s504_s2 = inlined_call_operand.vmem [shape: f32[8], index: 2, kind: output, shape index: {1}]  }
   0x1   :  { %v33_v0 = vld [vmem:[%s502_s0] sm:$0xff]  ;;  %v35_v1 = vld [vmem:[%s502_s0 + $0x8] sm:$0xff]  ;;  %46 = vst [vmem:[#allocation2] sm:$0x1] %v395_v2 }
   0x2   :  { %41 = vst [vmem:[#allocation1] sm:$0xff] %v33_v0  ;;  %45 = vst [vmem:[#allocation1 + $0x8] sm:$0xff] %v35_v1 }
   0x3 LB: > { %v54_v3 = vlaneseq  ;;  %v427_v6 = vstv %s393_s13  ;;  %s91_s0 = scalar_lea.vmem [#allocation1], %s393_s13  ;;  %s127_s14 = smov [#allocation1]  ;;  %s393_s13 = sphi %s418_s13, %s52_s13  }
   0x4   : > { %s167_s15 = scalar_lea.vmem [#allocation4], %s393_s13  ;;  %s183_s16 = smov [#allocation1] }
   0x5   : > { %v424_v5 = vshrl.u32 %v54_v3, 7  ;;  %v453_v54 = vand.u32 127, %v54_v3  ;;  %s184_s17 = smov [#allocation4] }
   0x7   : > { %vm58_vm0 = vcmp.gt.s32.totalorder %v424_v5, %v427_v6  ;;  %v65_v8 = vadd.s32 8, %v424_v5  ;;  %v130_v5 = vmov %v424_v5  ;;  %vm457_vm12 = vcmp.eq.s32.totalorder %v453_v54, %v427_v6 }
   0x8   : > { %v149_v50 = vadd.s32 8, %v130_v5  ;;  %vm134_vm10 = vcmp.gt.s32.totalorder %v130_v5, %v427_v6  ;;  %v187_v5 = vmov %v424_v5 }
   0x9   : > { %v53_v4 = vld [vmem:[#allocation1] sm:$0xff]  ;;  %v62_v7 = vld [vmem:[#allocation1 + $0x8] sm:$0xff]  ;;  %vm67_vm1 = vcmp.gt.s32.totalorder %v65_v8, %v427_v6 }
   0xa   : > { %v59_v9 = vsel %vm58_vm0, %v53_v4, 0.0  ;;  %v70_v11 = vsel %vm67_vm1, %v62_v7, 0.0  ;;  %v92_v20 = vld [vmem:[%s91_s0] ss:$0 sm:$0xff]  ;;  %vm151_vm8 = vcmp.gt.s32.totalorder %v149_v50, %v427_v6  ;;  %vm152_vm9 = vcmp.lt.s32.totalorder %v149_v50, 16  ;;  %v361_v53 = vld [vmem:[%s127_s14 + $0x8] sm:$0xff] }
   0xb   : > { %v60_v10 = vmul.f32 %v59_v9, %v59_v9  ;;  %v71_v12 = vmul.f32 %v70_v11, %v70_v11  ;;  %v93_v21 = vand.u32 2147483647, %v92_v20  ;;  %vm118_vm7 = vcmp.lt.f32.partialorder %v92_v20, 0.0  ;;  %v131_v52 = vld [vmem:[%s127_s14] sm:$0xff]  ;;  %vm153_vm11 = vmand %vm151_vm8, %vm152_vm9  ;;  %v180_v7 = vld [vmem:[#allocation2] ss:$0 sm:$0xff] }
   0xc   : > { %v135_v56 = vsel %vm134_vm10, %v131_v52, 0.0  ;;  %v154_v57 = vsel %vm153_vm11, %v361_v53, 0.0  ;;  %vm220_vm0 = vcmp.gt.s32.totalorder %v453_v54, %v427_v6 }
   0xd   : > { %v72_v13 = vadd.f32 %v71_v12, %v60_v10  ;;  %v94_v26 = vmax.f32 %v93_v21, 0.0  ;;  %v396_v12 = vmov 1.0  }
   0xf   : > { %v73_v14 = vrot.slane %v72_v13, 4 }
  0x11   : > { %v74_v15 = vadd.f32 %v73_v14, %v72_v13  ;;  %v192_v13 = vadd.s32 8, %v187_v5  ;;  %v190_v14 = vld [vmem:[%s183_s16] sm:$0xff]  ;;  %v211_v5 = vmov %v424_v5 }
  0x12   : > { %vm228_vm14 = vcmp.ge.s32.totalorder %v211_v5, %v427_v6 }
  0x13   : > { %v75_v16 = vrot.slane %v74_v15, 2  ;;  %vm198_vm13 = vcmp.lt.s32.totalorder %v192_v13, 16  ;;  %vm229_vm1 = vmand %vm457_vm12, %vm228_vm14 }
  0x15   : > { %v76_v17 = vadd.f32 %v75_v16, %v74_v15  ;;  %v363_v15 = vld [vmem:[%s183_s16 + $0x8] sm:$0xff]  ;;  %s207_s16 = smov %s183_s16 }
  0x16   : > { %s253_s18 = scalar_lea.vmem %s207_s16, %s393_s13  ;;  %s52_s13 = sadd.s32 1, %s393_s13  }
  0x17   : > { %v77_v18 = vrot.slane %v76_v17, 1  ;;  %p49_p0 = scmp.ge.s32.totalorder %s52_s13, 8  }
  0x19   : > { %v433_v19 = vadd.f32 %v77_v18, %v76_v17 }
  0x1b   : > { %377 = vrsqrt.f32 %v433_v19  ;;  %vm81_vm2 = vcmp.eq.f32.partialorder %v433_v19, inf  ;;  %v84_v23 = vand.u32 2147483648, %v433_v19  ;;  %vm83_vm3 = vcmp.eq.f32.partialorder %v433_v19, 0.0 }
  0x25   : > { %v378_v22 = vpop.eup %377 }
  0x26   : > { %v80_v24 = vmul.f32 %v378_v22, %v433_v19 }
  0x28   : > { %v82_v25 = vsel %vm81_vm2, %v433_v19, %v80_v24 }
  0x29   : > { %v85_v27 = vsel %vm83_vm3, %v84_v23, %v82_v25 }
  0x2a   : > { %v95_v28 = vand.u32 2147483647, %v85_v27  ;;  %v232_v27 = vadd.s32 8, %v211_v5 }
  0x2c   : > { %v96_v29 = vmax.f32 %v94_v26, %v95_v28  ;;  %vm249_vm15 = vcmp.ge.s32.totalorder %v232_v27, %v427_v6 }
  0x2d   : > { %vm250_vm2 = vmand %vm457_vm12, %vm249_vm15 }
  0x2e   : > { %379 = vrcp.f32 %v96_v29  ;;  %vm108_vm6 = vcmp.eq.f32.partialorder %v96_v29, 0.0 }
  0x38   : > { %v380_v30 = vpop.eup %379 }
  0x39   : > { %v98_v31 = vmul.f32 %v380_v30, %v93_v21  ;;  %v101_v32 = vmul.f32 0.0, %v380_v30  ;;  %v105_v33 = vmul.f32 %v380_v30, %v95_v28 }
  0x3b   : > { %v99_v34 = vmul.f32 %v98_v31, %v98_v31  ;;  %v102_v35 = vmul.f32 %v101_v32, %v101_v32  ;;  %v106_v36 = vmul.f32 %v105_v33, %v105_v33  ;;  %v365_v33 = vld [vmem:[%s207_s16 + $0x8] sm:$0xff] }
  0x3d   : > { %v103_v37 = vadd.f32 %v102_v35, %v99_v34 }
  0x3f   : > { %v107_v38 = vadd.f32 %v106_v36, %v103_v37 }
  0x41   : > { %381 = vrsqrt.f32 %v107_v38  ;;  %vm111_vm4 = vcmp.eq.f32.partialorder %v107_v38, inf  ;;  %v114_v40 = vand.u32 2147483648, %v107_v38  ;;  %vm113_vm5 = vcmp.eq.f32.partialorder %v107_v38, 0.0 }
  0x4b   : > { %v382_v39 = vpop.eup %381 }
  0x4c   : > { %v110_v41 = vmul.f32 %v382_v39, %v107_v38 }
  0x4e   : > { %v112_v42 = vsel %vm111_vm4, %v107_v38, %v110_v41 }
  0x4f   : > { %v115_v43 = vsel %vm113_vm5, %v114_v40, %v112_v42 }
  0x50   : > { %v116_v44 = vmul.f32 %v115_v43, %v96_v29  ;;  %v218_v29 = vld [vmem:[%s207_s16] sm:$0xff] }
  0x52   : > { %v117_v45 = vsel %vm108_vm6, 0.0, %v116_v44 }
  0x53   : > { %v119_v46 = vxor.u32 2147483648, %v117_v45 }
  0x55   : > { %v120_v47 = vsel %vm118_vm7, %v117_v45, %v119_v46 }
  0x56   : > { %v447_v48 = vsel %vm83_vm3, %v92_v20, %v120_v47  ;;  %383 = vrcp.f32 %v120_v47  ;;  %v121_v51 = vsub.f32 %v120_v47, %v92_v20 }
  0x57   : > { %v126_v49 = vsub.f32 %v92_v20, %v447_v48 }
  0x59   : > { %385 = vrcp.f32 %v126_v49 }
  0x60   : > { %v384_v55 = vpop.eup %383 }
  0x61   : > { %v123_v58 = vmul.f32 %v384_v55, %v121_v51 }
  0x63   : > { %v386_v59 = vpop.eup %385  ;;  %v125_v61 = vsel %vm83_vm3, 0.0, %v123_v58 }
  0x64   : > { %v137_v62 = vmul.f32 %v386_v59, %v135_v56  ;;  %v156_v63 = vmul.f32 %v386_v59, %v154_v57  ;;  %v173_v0 = vsel %vm457_vm12, %v125_v61, 0.0 }
  0x65   : > { %174 = vadd.xlane.f32.xlu1 %v173_v0 }
  0x66   : > { %v138_v1 = vsel %vm83_vm3, 0.0, %v137_v62  ;;  %v157_v2 = vsel %vm83_vm3, 0.0, %v156_v63 }
  0x67   : > { %v143_v3 = vsel %vm457_vm12, %v138_v1, 0.0  ;;  %v162_v4 = vsel %vm457_vm12, %v157_v2, 0.0 }
  0x68   : > { %144 = vadd.xlane.f32.xlu0 %v143_v3 }
  0x6c   : > { %163 = vadd.xlane.f32.xlu0 %v162_v4 }
  0xf2   : > { %v175_v8 = vpop.xlane.xlu1 %174 }
  0xf3   : > { %v181_v9 = vsel %vm457_vm12, %v175_v8, %v180_v7 }
  0xf4   : > { %182 = vst [vmem:[#allocation2] sm:$0x1] %v181_v9 }
  0xf5   : > { %v145_v10 = vpop.xlane.xlu0 %144 }
  0xf6   : > { %146 = vst [vmem:[#allocation4] sm:$0xff] %v145_v10 }
  0xf9   : > { %v164_v11 = vpop.xlane.xlu0 %163 }
  0xfa   : > { %166 = vst [vmem:[#allocation4 + $0x8] sm:$0xff] %v164_v11 }
  0xfb   : > { %168 = vst [vmem:[%s167_s15] sm:$0x1] %v396_v12  ;;  %v264_v42 = vld [vmem:[#allocation2] sm:$0x1] (%p49_p0) }
  0xfc   :  { %266 = vst [vmem:[#allocation3] sm:$0x1] (%p49_p0), %v264_v42 }
 0x102   : > { %v189_v16 = vld [vmem:[%s184_s17] sm:$0xff]  ;;  %v362_v17 = vld [vmem:[%s184_s17 + $0x8] sm:$0xff]  ;;  %s208_s17 = smov %s184_s17 }
 0x103   : > { %v191_v18 = vmul.f32 %v190_v14, %v189_v16  ;;  %v197_v19 = vmul.f32 %v363_v15, %v362_v17  ;;  %v216_v31 = vld [vmem:[%s208_s17] sm:$0xff]  ;;  %v364_v32 = vld [vmem:[%s208_s17 + $0x8] sm:$0xff]  ;;  %v320_v45 = vld [vmem:[#allocation3] sm:$0x1] (%p49_p0) }
 0x104   :  { %321 = vst [vmem:[%s504_s2] sm:$0x1] (%p49_p0), %v320_v45 }
 0x105   : > { %v199_v20 = vsel %vm198_vm13, %v197_v19, 0.0 }
 0x106   : > { %v200_v21 = vadd.f32 %v199_v20, %v191_v18 }
 0x108   : > { %v201_v22 = vrot.slane %v200_v21, 4 }
 0x10a   : > { %v202_v23 = vadd.f32 %v201_v22, %v200_v21 }
 0x10c   : > { %v203_v24 = vrot.slane %v202_v23, 2 }
 0x10e   : > { %v204_v25 = vadd.f32 %v203_v24, %v202_v23 }
 0x110   : > { %v205_v26 = vrot.slane %v204_v25, 1 }
 0x112   : > { %v206_v28 = vadd.f32 %v205_v26, %v204_v25 }
 0x114   : > { %v212_v30 = vmul.f32 %v206_v28, %v175_v8 }
 0x116   : > { %v217_v34 = vmul.f32 %v216_v31, %v212_v30  ;;  %v237_v35 = vmul.f32 %v364_v32, %v212_v30 }
 0x118   : > { %v221_v36 = vsub.f32 %v218_v29, %v217_v34  ;;  %v242_v5 = vsub.f32 %v365_v33, %v237_v35 }
 0x11a   : > { %v222_v37 = vsel %vm220_vm0, %v221_v36, %v218_v29  ;;  %v243_v38 = vsel %vm220_vm0, %v242_v5, %v365_v33 }
 0x11b   : > { %v230_v39 = vsel %vm229_vm1, %v216_v31, %v222_v37  ;;  %v251_v40 = vsel %vm250_vm2, %v364_v32, %v243_v38 }
 0x11c   : > { %231 = vst [vmem:[%s207_s16] sm:$0xff] %v230_v39  ;;  %366 = vst [vmem:[%s207_s16 + $0x8] sm:$0xff] %v251_v40 }
 0x11f   :  { %51 = sbr.rel (!%p49_p0) target bundleno = 3 (0x3), region = 148 }
 0x123   : > { %v254_v41 = vld [vmem:[%s253_s18] ss:$0 sm:$0xff] }
 0x124   : > { %v259_v6 = vsel %vm457_vm12, %v447_v48, %v254_v41 }
 0x125   : > { %260 = vst [vmem:[%s253_s18] sm:$0x1] %v259_v6 }
 0x12c   :  { %v296_v43 = vld [vmem:[#allocation1] sm:$0xff]  ;;  %v298_v44 = vld [vmem:[#allocation1 + $0x8] sm:$0xff] }
 0x12d   :  { %297 = vst [vmem:[%s503_s1] sm:$0xff] %v296_v43  ;;  %299 = vst [vmem:[%s503_s1 + $0x8] sm:$0xff] %v298_v44 }

// kernel: custom-call.22
= control target key start
LH: loop header
LB: loop body
LE: loop exit
PB: predicated region body
PF: predicated region fallthrough
CT: control target
= control target key end

     0   :  { %s437_s6 = smov [#allocation0]   ;;  %s479_s0 = inlined_call_operand.vmem [shape: f32[8,8], index: 0, kind: input, shape index: {}]   ;;  %s480_s1 = inlined_call_operand.vmem [shape: f32[8,8], index: 1, kind: output, shape index: {}]  }
   0x1   :  { %s441_s9 = smov %s479_s0  }
   0x2 LB: > { %v49_v0 = vld [vmem:[%s443_s9] sm:$0xff]  ;;  %s51_s9 = scalar_lea.vmem %s443_s9, 8   ;;  %s443_s9 = sphi %s441_s9, %s51_s9   ;;  %s439_s6 = sphi %s437_s6, %s52_s6  }
   0x3   : > { %50 = vst [vmem:[%s439_s6] sm:$0xff] %v49_v0  ;;  %s52_s6 = scalar_lea.vmem %s439_s6, 8   ;;  %p46_p0 = scmp.gt.s32.totalorder %s51_s9, %s479_s0 }
   0x4   :  { %v64_v1 = vlaneseq (%p46_p0)  ;;  %vm78_vm0 = vcmask (%p46_p0), 64512   ;;  %s445_s13 = smov (%p46_p0), %s480_s1   ;;  %s449_s14 = smov (%p46_p0), [#allocation1]  }
   0x5   :  { %48 = sbr.rel (!%p46_p0) target bundleno = 2 (0x2), region = 87 }
   0x6   :  { %v65_v3 = vand.u32 (%p46_p0), 127, %v64_v1  ;;  %v67_v4 = vshrl.u32 (%p46_p0), %v64_v1, 7 }
   0x8   :  { %vm69_vm1 = vcmp.eq.s32.totalorder (%p46_p0), %v65_v3, %v67_v4  ;;  %vm73_vm2 = vcmp.eq.s32.totalorder (%p46_p0), %v65_v3, 0  ;;  %vm82_vm3 = vcmp.eq.s32.totalorder (%p46_p0), %v65_v3, 1  ;;  %vm93_vm4 = vcmp.eq.s32.totalorder (%p46_p0), %v65_v3, 2 }
   0x9   :  { %vm104_vm5 = vcmp.eq.s32.totalorder (%p46_p0), %v65_v3, 3  ;;  %vm115_vm6 = vcmp.eq.s32.totalorder (%p46_p0), %v65_v3, 4  ;;  %vm126_vm7 = vcmp.eq.s32.totalorder (%p46_p0), %v65_v3, 5  ;;  %vm137_vm8 = vcmp.eq.s32.totalorder (%p46_p0), %v65_v3, 6 }
   0xa   :  { %v77_v2 = vld [vmem:[#allocation0 + $0x1] ss:$0 sm:$0xff] (%p46_p0)  ;;  %v88_v10 = vld [vmem:[#allocation0 + $0x2] ss:$0 sm:$0xff] (%p46_p0)  ;;  %v99_v15 = vld [vmem:[#allocation0 + $0x3] ss:$0 sm:$0xff] (%p46_p0) }
   0xb   :  { %v70_v5 = vld [vmem:[#allocation0] sm:$0xff] (%p46_p0)  ;;  %v79_v6 = vsel (%p46_p0), %vm78_vm0, %v77_v2, 0.0  ;;  %v90_v11 = vsel (%p46_p0), %vm78_vm0, %v88_v10, 0.0  ;;  %v101_v16 = vsel (%p46_p0), %vm78_vm0, %v99_v15, 0.0  ;;  %vm148_vm9 = vcmp.eq.s32.totalorder (%p46_p0), %v65_v3, 7 }
   0xc   :  { %v74_v7 = vsel %vm73_vm2, %v70_v5, 1.0  ;;  %v110_v20 = vld [vmem:[#allocation0 + $0x4] ss:$0 sm:$0xff]  ;;  %v121_v25 = vld [vmem:[#allocation0 + $0x5] ss:$0 sm:$0xff] }
   0xd   :  { %v75_v8 = vsel %vm69_vm1, %v74_v7, 0.0  ;;  %v112_v21 = vsel %vm78_vm0, %v110_v20, 0.0  ;;  %v123_v26 = vsel %vm78_vm0, %v121_v25, 0.0  ;;  %v132_v30 = vld [vmem:[#allocation0 + $0x6] ss:$0 sm:$0xff] }
   0xe   :  { %v83_v9 = vmul.f32 %v79_v6, %v75_v8  ;;  %v134_v31 = vsel %vm78_vm0, %v132_v30, 0.0  ;;  %v143_v35 = vld [vmem:[#allocation0 + $0x7] ss:$0 sm:$0xff] }
   0xf   :  { %v145_v36 = vsel %vm78_vm0, %v143_v35, 0.0 }
  0x10   :  { %84 = vadd.xlane.f32.xlu0 %v83_v9 }
  0x9d   :  { %v85_v12 = vpop.xlane.xlu0 %84 }
  0x9e   :  { %v86_v13 = vsel %vm82_vm3, %v85_v12, %v75_v8 }
  0x9f   :  { %v94_v14 = vmul.f32 %v90_v11, %v86_v13 }
  0xa1   :  { %95 = vadd.xlane.f32.xlu0 %v94_v14 }
 0x12e   :  { %v96_v17 = vpop.xlane.xlu0 %95 }
 0x12f   :  { %v97_v18 = vsel %vm93_vm4, %v96_v17, %v86_v13 }
 0x130   :  { %v105_v19 = vmul.f32 %v101_v16, %v97_v18 }
 0x132   :  { %106 = vadd.xlane.f32.xlu1 %v105_v19 }
 0x1bf   :  { %v107_v22 = vpop.xlane.xlu1 %106 }
 0x1c0   :  { %v108_v23 = vsel %vm104_vm5, %v107_v22, %v97_v18 }
 0x1c1   :  { %v116_v24 = vmul.f32 %v112_v21, %v108_v23 }
 0x1c3   :  { %117 = vadd.xlane.f32.xlu1 %v116_v24 }
 0x250   :  { %v118_v27 = vpop.xlane.xlu1 %117 }
 0x251   :  { %v119_v28 = vsel %vm115_vm6, %v118_v27, %v108_v23 }
 0x252   :  { %v127_v29 = vmul.f32 %v123_v26, %v119_v28 }
 0x254   :  { %128 = vadd.xlane.f32.xlu0 %v127_v29 }
 0x2e1   :  { %v129_v32 = vpop.xlane.xlu0 %128 }
 0x2e2   :  { %v130_v33 = vsel %vm126_vm7, %v129_v32, %v119_v28 }
 0x2e3   :  { %v138_v34 = vmul.f32 %v134_v31, %v130_v33 }
 0x2e5   :  { %139 = vadd.xlane.f32.xlu1 %v138_v34 }
 0x372   :  { %v140_v37 = vpop.xlane.xlu1 %139 }
 0x373   :  { %v141_v38 = vsel %vm137_vm8, %v140_v37, %v130_v33 }
 0x374   :  { %v149_v39 = vmul.f32 %v145_v36, %v141_v38 }
 0x376   :  { %150 = vadd.xlane.f32.xlu0 %v149_v39 }
 0x403   :  { %v151_v40 = vpop.xlane.xlu0 %150 }
 0x404   :  { %v152_v41 = vsel %vm148_vm9, %v151_v40, %v141_v38  }
 0x405   :  { %153 = vst [vmem:[#allocation1] sm:$0xff] %v152_v41 }
 0x406 LB:  { %s451_s14 = sphi %s449_s14, %s203_s14   ;;  %s447_s13 = sphi %s445_s13, %s204_s13  }
 0x40c   : > { %v201_v42 = vld [vmem:[%s451_s14] sm:$0xff]  ;;  %s203_s14 = scalar_lea.vmem %s451_s14, 8  }
 0x40d   : > { %202 = vst [vmem:[%s447_s13] sm:$0xff] %v201_v42  ;;  %s204_s13 = scalar_lea.vmem %s447_s13, 8   ;;  %p198_p1 = scmp.gt.s32.totalorder %s203_s14, [#allocation1] }
 0x40f   :  { %200 = sbr.rel (!%p198_p1) target bundleno = 1030 (0x406), region = 109 }

// kernel: dnlf_forward.13
= control target key start
LH: loop header
LB: loop body
LE: loop exit
PB: predicated region body
PF: predicated region fallthrough
CT: control target
= control target key end

     0   :  { %v2381_v0 = vmov 0   ;;  %s3088_s1 = inlined_call_operand.vmem [shape: bf16[384,128], index: 1, kind: input, shape index: {}]   ;;  %s3089_s0 = inlined_call_operand.vmem [shape: bf16[512,384], index: 0, kind: input, shape index: {}]   ;;  %s3090_s2 = inlined_call_operand.vmem [shape: f32[1,128], index: 2, kind: input, shape index: {}]   ;;  %s3091_s3 = inlined_call_operand.vmem [shape: bf16[512,128], index: 3, kind: output, shape index: {}]  }
   0x1   :  { %979 = vmatprep.subr.bf16.mxu0 %v2381_v0  ;;  %2196 = vmatprep.subr.bf16.mxu1 %v2381_v0  ;;  %v2229_v1 = vld [vmem:[%s3088_s1] sm:$0xff]   ;;  %v2230_v2 = vld [vmem:[%s3088_s1 + $0x8] sm:$0xff]   ;;  %v2231_v3 = vld [vmem:[%s3088_s1 + $0x10] sm:$0xff]  }
   0x2   :  { %980 = vmatpush1.bf16.msra.mxu0 %v2229_v1  ;;  %2212 = vmatpush1.bf16.msra.mxu1 %v2229_v1  ;;  %v2232_v4 = vld [vmem:[%s3088_s1 + $0x18] sm:$0xff]   ;;  %v2233_v5 = vld [vmem:[%s3088_s1 + $0x20] sm:$0xff]   ;;  %v2234_v7 = vld [vmem:[%s3088_s1 + $0x28] sm:$0xff]  }
   0x3   :  { %981 = vmatprep.subr.bf16.mxu0 %v2381_v0  ;;  %2197 = vmatprep.subr.bf16.mxu1 %v2381_v0  ;;  %v2247_v6 = vld [vmem:[%s3089_s0 + $0x4] ss:$12 sps:$4 sm:$0xff]   ;;  %v2236_v10 = vld [vmem:[%s3088_s1 + $0x38] sm:$0xff]   ;;  %v2238_v12 = vld [vmem:[%s3088_s1 + $0x48] sm:$0xff]  }
   0x4   :  { %v2250_v8 = vld [vmem:[%s3089_s0 + $0x244] ss:$12 sps:$4 sm:$0xff]   ;;  %1011 = vmatprep.mubr.bf16.mxu0 %v2247_v6  ;;  %v2240_v14 = vld [vmem:[%s3088_s1 + $0x58] sm:$0xff]   ;;  %v2242_v16 = vld [vmem:[%s3088_s1 + $0x68] sm:$0xff]  }
   0x5   :  { %1203 = vmatprep.mubr.bf16.mxu1 %v2250_v8  ;;  %v2235_v9 = vld [vmem:[%s3088_s1 + $0x30] sm:$0xff]   ;;  %v2237_v11 = vld [vmem:[%s3088_s1 + $0x40] sm:$0xff]   ;;  %v2244_v18 = vld [vmem:[%s3088_s1 + $0x78] sm:$0xff]  }
   0x6   :  { %982 = vmatpush1.bf16.msra.mxu0 %v2230_v2  ;;  %2213 = vmatpush1.bf16.msra.mxu1 %v2230_v2  ;;  %v2239_v13 = vld [vmem:[%s3088_s1 + $0x50] sm:$0xff]   ;;  %v2241_v15 = vld [vmem:[%s3088_s1 + $0x60] sm:$0xff]   ;;  %v2252_v22 = vld [vmem:[%s3089_s0 + $0x1c] ss:$12 sps:$4 sm:$0xff]  }
   0x7   :  { %983 = vmatprep.subr.bf16.mxu0 %v2381_v0  ;;  %2198 = vmatprep.subr.bf16.mxu1 %v2381_v0  ;;  %v2243_v17 = vld [vmem:[%s3088_s1 + $0x70] sm:$0xff]   ;;  %v2251_v19 = vld [vmem:[%s3088_s1 + $0x80] sm:$0xff]   ;;  %v2254_v23 = vld [vmem:[%s3089_s0 + $0x25c] ss:$12 sps:$4 sm:$0xff]  }
   0x8   :  { %v2245_v20 = vld [vmem:[%s3089_s0] ss:$12 sps:$4 sm:$0xff]   ;;  %v2265_v25 = vld [vmem:[%s3088_s1 + $0x90] sm:$0xff]   ;;  %v2256_v26 = vld [vmem:[%s3089_s0 + $0x18] ss:$12 sps:$4 sm:$0xff]  }
   0x9   :  { %v2248_v21 = vld [vmem:[%s3089_s0 + $0x240] ss:$12 sps:$4 sm:$0xff]   ;;  %v2257_v27 = vld [vmem:[%s3089_s0 + $0x258] ss:$12 sps:$4 sm:$0xff]   ;;  %v2263_v31 = vld [vmem:[%s3089_s0 + $0x30] ss:$12 sps:$4 sm:$0xff]  }
   0xa   :  { %984 = vmatpush1.bf16.msra.mxu0 %v2231_v3  ;;  %2214 = vmatpush1.bf16.msra.mxu1 %v2231_v3  ;;  %v2258_v24 = vld [vmem:[%s3088_s1 + $0x88] sm:$0xff]   ;;  %v2259_v28 = vld [vmem:[%s3089_s0 + $0x34] ss:$12 sps:$4 sm:$0xff]   ;;  %v2272_v30 = vld [vmem:[%s3088_s1 + $0x98] sm:$0xff]  }
   0xb   :  { %985 = vmatprep.subr.bf16.mxu0 %v2381_v0  ;;  %2199 = vmatprep.subr.bf16.mxu1 %v2381_v0  ;;  %v2261_v29 = vld [vmem:[%s3089_s0 + $0x274] ss:$12 sps:$4 sm:$0xff]   ;;  %v2264_v33 = vld [vmem:[%s3089_s0 + $0x270] ss:$12 sps:$4 sm:$0xff]   ;;  %v2266_v34 = vld [vmem:[%s3089_s0 + $0x4c] ss:$12 sps:$4 sm:$0xff]  }
   0xc   :  { %v2279_v32 = vld [vmem:[%s3088_s1 + $0xa0] sm:$0xff]   ;;  %v2268_v35 = vld [vmem:[%s3089_s0 + $0x28c] ss:$12 sps:$4 sm:$0xff]   ;;  %v2270_v37 = vld [vmem:[%s3089_s0 + $0x48] ss:$12 sps:$4 sm:$0xff]  }
   0xd   :  { %v2286_v36 = vld [vmem:[%s3088_s1 + $0xa8] sm:$0xff]   ;;  %v2273_v39 = vld [vmem:[%s3089_s0 + $0x64] ss:$12 sps:$4 sm:$0xff]   ;;  %v2300_v42 = vld [vmem:[%s3088_s1 + $0xb8] sm:$0xff]  }
   0xe   :  { %986 = vmatpush1.bf16.msra.mxu0 %v2232_v4  ;;  %2215 = vmatpush1.bf16.msra.mxu1 %v2232_v4  ;;  %v2271_v38 = vld [vmem:[%s3089_s0 + $0x288] ss:$12 sps:$4 sm:$0xff]   ;;  %v2275_v40 = vld [vmem:[%s3089_s0 + $0x2a4] ss:$12 sps:$4 sm:$0xff]   ;;  %v2277_v43 = vld [vmem:[%s3089_s0 + $0x60] ss:$12 sps:$4 sm:$0xff]  }
   0xf   :  { %987 = vmatprep.subr.bf16.mxu0 %v2381_v0  ;;  %2200 = vmatprep.subr.bf16.mxu1 %v2381_v0  ;;  %v2293_v41 = vld [vmem:[%s3088_s1 + $0xb0] sm:$0xff]   ;;  %v2278_v44 = vld [vmem:[%s3089_s0 + $0x2a0] ss:$12 sps:$4 sm:$0xff]   ;;  %v2280_v45 = vld [vmem:[%s3089_s0 + $0x7c] ss:$12 sps:$4 sm:$0xff]  }
  0x10   :  { %v2282_v46 = vld [vmem:[%s3089_s0 + $0x2bc] ss:$12 sps:$4 sm:$0xff]   ;;  %v2284_v47 = vld [vmem:[%s3089_s0 + $0x78] ss:$12 sps:$4 sm:$0xff]   ;;  %v2287_v49 = vld [vmem:[%s3089_s0 + $0x94] ss:$12 sps:$4 sm:$0xff]  }
  0x11   :  { %v2285_v48 = vld [vmem:[%s3089_s0 + $0x2b8] ss:$12 sps:$4 sm:$0xff]   ;;  %v2289_v50 = vld [vmem:[%s3089_s0 + $0x2d4] ss:$12 sps:$4 sm:$0xff]   ;;  %v2291_v51 = vld [vmem:[%s3089_s0 + $0x90] ss:$12 sps:$4 sm:$0xff]  }
  0x12   :  { %988 = vmatpush1.bf16.msra.mxu0 %v2233_v5  ;;  %2216 = vmatpush1.bf16.msra.mxu1 %v2233_v5  ;;  %v2292_v52 = vld [vmem:[%s3089_s0 + $0x2d0] ss:$12 sps:$4 sm:$0xff]   ;;  %v2294_v53 = vld [vmem:[%s3089_s0 + $0xac] ss:$12 sps:$4 sm:$0xff]   ;;  %v2298_v55 = vld [vmem:[%s3089_s0 + $0xa8] ss:$12 sps:$4 sm:$0xff]  }
  0x13   :  { %989 = vmatprep.subr.bf16.mxu0 %v2381_v0  ;;  %2201 = vmatprep.subr.bf16.mxu1 %v2381_v0  ;;  %v2296_v54 = vld [vmem:[%s3089_s0 + $0x2ec] ss:$12 sps:$4 sm:$0xff]   ;;  %v2299_v56 = vld [vmem:[%s3089_s0 + $0x2e8] ss:$12 sps:$4 sm:$0xff]   ;;  %v2301_v57 = vld [vmem:[%s3089_s0 + $0xc4] ss:$12 sps:$4 sm:$0xff]  }
  0x14   :  { %v2303_v58 = vld [vmem:[%s3089_s0 + $0x8] ss:$12 sps:$4 sm:$0xff]   ;;  %v2304_v59 = vld [vmem:[%s3089_s0 + $0xc0] ss:$12 sps:$4 sm:$0xff]   ;;  %v2308_v62 = vld [vmem:[%s3089_s0 + $0x38] ss:$12 sps:$4 sm:$0xff]  }
  0x15   :  { %v2305_v60 = vld [vmem:[%s3089_s0 + $0x20] ss:$12 sps:$4 sm:$0xff]   ;;  %v2306_v61 = vld [vmem:[%s3089_s0 + $0xdc] ss:$12 sps:$4 sm:$0xff]   ;;  %v2309_v63 = vld [vmem:[%s3089_s0 + $0xd8] ss:$12 sps:$4 sm:$0xff]  }
  0x16   :  { %990 = vmatpush1.bf16.msra.mxu0 %v2234_v7  ;;  %2217 = vmatpush1.bf16.msra.mxu1 %v2234_v7  ;;  %v2311_v1 = vld [vmem:[%s3089_s0 + $0xf4] ss:$12 sps:$4 sm:$0xff]   ;;  %v2314_v3 = vld [vmem:[%s3089_s0 + $0xf0] ss:$12 sps:$4 sm:$0xff]   ;;  %v2316_v5 = vld [vmem:[%s3089_s0 + $0x10c] ss:$12 sps:$4 sm:$0xff]  }
  0x17   :  { %991 = vmatprep.subr.bf16.mxu0 %v2381_v0  ;;  %2202 = vmatprep.subr.bf16.mxu1 %v2381_v0  ;;  %v2313_v2 = vld [vmem:[%s3089_s0 + $0x68] ss:$12 sps:$4 sm:$0xff]   ;;  %v2315_v4 = vld [vmem:[%s3089_s0 + $0x80] ss:$12 sps:$4 sm:$0xff]   ;;  %v2318_v6 = vld [vmem:[%s3089_s0 + $0x98] ss:$12 sps:$4 sm:$0xff]  }
  0x18   :  { %v2319_v7 = vld [vmem:[%s3089_s0 + $0x108] ss:$12 sps:$4 sm:$0xff]   ;;  %v2320_v8 = vld [vmem:[%s3089_s0 + $0xb0] ss:$12 sps:$4 sm:$0xff]  }
  0x1a   :  { %992 = vmatpush1.bf16.msra.mxu0 %v2235_v9  ;;  %2218 = vmatpush1.bf16.msra.mxu1 %v2235_v9  ;;  %v2321_v9 = vld [vmem:[%s3089_s0 + $0x124] ss:$12 sps:$4 sm:$0xff]  }
  0x1b   :  { %993 = vmatprep.subr.bf16.mxu0 %v2381_v0  ;;  %2203 = vmatprep.subr.bf16.mxu1 %v2381_v0 }
  0x1e   :  { %994 = vmatpush1.bf16.msra.mxu0 %v2236_v10  ;;  %2219 = vmatpush1.bf16.msra.mxu1 %v2236_v10  ;;  %v2323_v10 = vld [vmem:[%s3089_s0 + $0xc8] ss:$12 sps:$4 sm:$0xff]  }
  0x1f   :  { %995 = vmatprep.subr.bf16.mxu0 %v2381_v0  ;;  %2204 = vmatprep.subr.bf16.mxu1 %v2381_v0 }
  0x22   :  { %996 = vmatpush1.bf16.msra.mxu0 %v2237_v11  ;;  %2220 = vmatpush1.bf16.msra.mxu1 %v2237_v11  ;;  %v2324_v11 = vld [vmem:[%s3089_s0 + $0x120] ss:$12 sps:$4 sm:$0xff]  }
  0x23   :  { %997 = vmatprep.subr.bf16.mxu0 %v2381_v0  ;;  %2205 = vmatprep.subr.bf16.mxu1 %v2381_v0 }
  0x26   :  { %998 = vmatpush1.bf16.msra.mxu0 %v2238_v12  ;;  %2221 = vmatpush1.bf16.msra.mxu1 %v2238_v12  ;;  %v2325_v12 = vld [vmem:[%s3089_s0 + $0xe0] ss:$12 sps:$4 sm:$0xff]  }
  0x27   :  { %999 = vmatprep.subr.bf16.mxu0 %v2381_v0  ;;  %2206 = vmatprep.subr.bf16.mxu1 %v2381_v0 }
  0x2a   :  { %1000 = vmatpush1.bf16.msra.mxu0 %v2239_v13  ;;  %2222 = vmatpush1.bf16.msra.mxu1 %v2239_v13  ;;  %v2326_v13 = vld [vmem:[%s3089_s0 + $0x13c] ss:$12 sps:$4 sm:$0xff]  }
  0x2b   :  { %1001 = vmatprep.subr.bf16.mxu0 %v2381_v0  ;;  %2207 = vmatprep.subr.bf16.mxu1 %v2381_v0 }
  0x2e   :  { %1002 = vmatpush1.bf16.msra.mxu0 %v2240_v14  ;;  %2223 = vmatpush1.bf16.msra.mxu1 %v2240_v14  ;;  %v2328_v14 = vld [vmem:[%s3089_s0 + $0xf8] ss:$12 sps:$4 sm:$0xff]  }
  0x2f   :  { %1003 = vmatprep.subr.bf16.mxu0 %v2381_v0  ;;  %2208 = vmatprep.subr.bf16.mxu1 %v2381_v0 }
  0x32   :  { %1004 = vmatpush1.bf16.msra.mxu0 %v2241_v15  ;;  %2224 = vmatpush1.bf16.msra.mxu1 %v2241_v15  ;;  %v2329_v15 = vld [vmem:[%s3089_s0 + $0x138] ss:$12 sps:$4 sm:$0xff]  }
  0x33   :  { %1005 = vmatprep.subr.bf16.mxu0 %v2381_v0  ;;  %2209 = vmatprep.subr.bf16.mxu1 %v2381_v0 }
  0x36   :  { %1006 = vmatpush1.bf16.msra.mxu0 %v2242_v16  ;;  %2225 = vmatpush1.bf16.msra.mxu1 %v2242_v16  ;;  %v2330_v16 = vld [vmem:[%s3089_s0 + $0x110] ss:$12 sps:$4 sm:$0xff]  }
  0x37   :  { %1007 = vmatprep.subr.bf16.mxu0 %v2381_v0  ;;  %2210 = vmatprep.subr.bf16.mxu1 %v2381_v0 }
  0x3a   :  { %1008 = vmatpush1.bf16.msra.mxu0 %v2243_v17  ;;  %2226 = vmatpush1.bf16.msra.mxu1 %v2243_v17  ;;  %v2331_v17 = vld [vmem:[%s3089_s0 + $0x154] ss:$12 sps:$4 sm:$0xff]  }
  0x3b   :  { %1009 = vmatprep.subr.bf16.mxu0 %v2381_v0  ;;  %2211 = vmatprep.subr.bf16.mxu1 %v2381_v0  ;;  %v2310_v0 = vld [vmem:[%s3089_s0 + $0x50] ss:$12 sps:$4 sm:$0xff]  }
  0x3e   :  { %1010 = vmatpush1.bf16.msra.mxu0 %v2244_v18  ;;  %2227 = vmatpush1.bf16.msra.mxu1 %v2244_v18  ;;  %v2333_v18 = vld [vmem:[%s3089_s0 + $0x128] ss:$12 sps:$4 sm:$0xff]  }
  0x3f   :  { %2116 = vmatprep.subr.bf16.mxu1 %v2251_v19 }
  0x41   :  { %1012 = vmatmul.mubr.bf16.vlgmr.msra.gmra.mrb[0].mxu0 %v2245_v20  ;;  %1204 = vmatmul.mubr.bf16.vlgmr.msra.gmra.mrb[0].mxu1 %v2248_v21  ;;  %v2335_v20 = vld [vmem:[%s3089_s0 + $0x140] ss:$12 sps:$4 sm:$0xff]  }
  0x42   :  { %2117 = vmatpush3.bf16.msra.mxu1 %v2251_v19  ;;  %1019 = vmatprep.mubr.bf16.mxu0 %v2252_v22  ;;  %v2334_v19 = vld [vmem:[%s3089_s0 + $0x150] ss:$12 sps:$4 sm:$0xff]   ;;  %v2336_v21 = vld [vmem:[%s3089_s0 + $0x16c] ss:$12 sps:$4 sm:$0xff]  }
  0x43   :  { %1211 = vmatprep.mubr.bf16.mxu1 %v2254_v23  ;;  %2118 = vmatprep.subr.bf16.mxu1 %v2258_v24  ;;  %v2338_v22 = vld [vmem:[%s3089_s0 + $0x158] ss:$12 sps:$4 sm:$0xff]   ;;  %v2339_v23 = vld [vmem:[%s3089_s0 + $0x168] ss:$12 sps:$4 sm:$0xff]  }
  0x46   :  { %2119 = vmatpush3.bf16.msra.mxu1 %v2258_v24  ;;  %v2340_v24 = vld [vmem:[%s3089_s0 + $0x170] ss:$12 sps:$4 sm:$0xff]  }
  0x47   :  { %2120 = vmatprep.subr.bf16.mxu1 %v2265_v25 }
  0x49   :  { %1020 = vmatmul.mubr.bf16.gmra.mrb[4].mxu0 %v2256_v26  ;;  %1212 = vmatmul.mubr.bf16.gmra.mrb[4].mxu1 %v2257_v27  ;;  %v2343_v26 = vld [vmem:[%s3089_s0 + $0x188] ss:$12 sps:$4 sm:$0xff]   ;;  %v2344_v27 = vld [vmem:[%s3089_s0 + $0x180] ss:$12 sps:$4 sm:$0xff]  }
  0x4a   :  { %1027 = vmatprep.mubr.bf16.mxu0 %v2259_v28  ;;  %1219 = vmatprep.mubr.bf16.mxu1 %v2261_v29  ;;  %v2345_v28 = vld [vmem:[%s3089_s0 + $0x1a0] ss:$12 sps:$4 sm:$0xff]   ;;  %v2346_v29 = vld [vmem:[%s3089_s0 + $0x19c] ss:$12 sps:$4 sm:$0xff]  }
  0x4b   :  { %2121 = vmatpush3.bf16.msra.mxu1 %v2265_v25  ;;  %v2341_v25 = vld [vmem:[%s3089_s0 + $0x184] ss:$12 sps:$4 sm:$0xff]  }
  0x4c   :  { %2122 = vmatprep.subr.bf16.mxu1 %v2272_v30 }
  0x4f   :  { %2123 = vmatpush3.bf16.msra.mxu1 %v2272_v30  ;;  %v2348_v30 = vld [vmem:[%s3089_s0 + $0x1b8] ss:$12 sps:$4 sm:$0xff]  }
  0x50   :  { %2124 = vmatprep.subr.bf16.mxu1 %v2279_v32 }
  0x51   :  { %1028 = vmatmul.mubr.bf16.gmra.mrb[8].mxu0 %v2263_v31  ;;  %1220 = vmatmul.mubr.bf16.gmra.mrb[8].mxu1 %v2264_v33  ;;  %v2349_v31 = vld [vmem:[%s3089_s0 + $0x198] ss:$12 sps:$4 sm:$0xff]   ;;  %v2351_v33 = vld [vmem:[%s3089_s0 + $0x1b4] ss:$12 sps:$4 sm:$0xff]  }
  0x52   :  { %1035 = vmatprep.mubr.bf16.mxu0 %v2266_v34  ;;  %1227 = vmatprep.mubr.bf16.mxu1 %v2268_v35  ;;  %v2353_v34 = vld [vmem:[%s3089_s0 + $0x1e8] ss:$12 sps:$4 sm:$0xff]   ;;  %v2354_v35 = vld [vmem:[%s3089_s0 + $0x1b0] ss:$12 sps:$4 sm:$0xff]  }
  0x53   :  { %2125 = vmatpush3.bf16.msra.mxu1 %v2279_v32  ;;  %v2350_v32 = vld [vmem:[%s3089_s0 + $0x1d0] ss:$12 sps:$4 sm:$0xff]  }
  0x54   :  { %2126 = vmatprep.subr.bf16.mxu1 %v2286_v36 }
  0x57   :  { %2127 = vmatpush3.bf16.msra.mxu1 %v2286_v36  ;;  %v2355_v36 = vld [vmem:[%s3089_s0 + $0x200] ss:$12 sps:$4 sm:$0xff]  }
  0x58   :  { %2128 = vmatprep.subr.bf16.mxu1 %v2293_v41 }
  0x59   :  { %1036 = vmatmul.mubr.bf16.gmra.mrb[12].mxu0 %v2270_v37  ;;  %1228 = vmatmul.mubr.bf16.gmra.mrb[12].mxu1 %v2271_v38  ;;  %v2356_v37 = vld [vmem:[%s3089_s0 + $0x1cc] ss:$12 sps:$4 sm:$0xff]  }
  0x5a   :  { %1043 = vmatprep.mubr.bf16.mxu0 %v2273_v39  ;;  %1235 = vmatprep.mubr.bf16.mxu1 %v2275_v40  ;;  %v2358_v38 = vld [vmem:[%s3089_s0 + $0x218] ss:$12 sps:$4 sm:$0xff]   ;;  %v2359_v39 = vld [vmem:[%s3089_s0 + $0x1c8] ss:$12 sps:$4 sm:$0xff]   ;;  %v2360_v40 = vld [vmem:[%s3089_s0 + $0x230] ss:$12 sps:$4 sm:$0xff]  }
  0x5b   :  { %2129 = vmatpush3.bf16.msra.mxu1 %v2293_v41  ;;  %v2361_v41 = vld [vmem:[%s3089_s0 + $0x1e4] ss:$12 sps:$4 sm:$0xff]  }
  0x5c   :  { %2130 = vmatprep.subr.bf16.mxu1 %v2300_v42 }
  0x5f   :  { %2131 = vmatpush3.bf16.msra.mxu1 %v2300_v42  ;;  %v2363_v42 = vld [vmem:[%s3089_s0 + $0x248] ss:$12 sps:$4 sm:$0xff]  }
  0x61   :  { %1044 = vmatmul.mubr.bf16.gmra.mrb[16].mxu0 %v2277_v43  ;;  %1236 = vmatmul.mubr.bf16.gmra.mrb[16].mxu1 %v2278_v44  ;;  %v2364_v43 = vld [vmem:[%s3089_s0 + $0x1e0] ss:$12 sps:$4 sm:$0xff]  }
  0x62   :  { %1051 = vmatprep.mubr.bf16.mxu0 %v2280_v45  ;;  %1243 = vmatprep.mubr.bf16.mxu1 %v2282_v46  ;;  %v2365_v44 = vld [vmem:[%s3089_s0 + $0x260] ss:$12 sps:$4 sm:$0xff]   ;;  %v2366_v45 = vld [vmem:[%s3089_s0 + $0x1fc] ss:$12 sps:$4 sm:$0xff]   ;;  %v2368_v46 = vld [vmem:[%s3089_s0 + $0x278] ss:$12 sps:$4 sm:$0xff]  }
  0x69   :  { %1052 = vmatmul.mubr.bf16.gmra.mrb[20].mxu0 %v2284_v47  ;;  %1244 = vmatmul.mubr.bf16.gmra.mrb[20].mxu1 %v2285_v48  ;;  %v2369_v47 = vld [vmem:[%s3089_s0 + $0x1f8] ss:$12 sps:$4 sm:$0xff]   ;;  %v2370_v48 = vld [vmem:[%s3089_s0 + $0x290] ss:$12 sps:$4 sm:$0xff]  }
  0x6a   :  { %1059 = vmatprep.mubr.bf16.mxu0 %v2287_v49  ;;  %1251 = vmatprep.mubr.bf16.mxu1 %v2289_v50  ;;  %v2371_v49 = vld [vmem:[%s3089_s0 + $0x214] ss:$12 sps:$4 sm:$0xff]  }
  0x6b   :  { %v2373_v50 = vld [vmem:[%s3089_s0 + $0x2a8] ss:$12 sps:$4 sm:$0xff]  }
  0x71   :  { %1060 = vmatmul.mubr.bf16.gmra.mrb[24].mxu0 %v2291_v51  ;;  %1252 = vmatmul.mubr.bf16.gmra.mrb[24].mxu1 %v2292_v52  ;;  %v2374_v51 = vld [vmem:[%s3089_s0 + $0x210] ss:$12 sps:$4 sm:$0xff]   ;;  %v2375_v52 = vld [vmem:[%s3089_s0 + $0x2c0] ss:$12 sps:$4 sm:$0xff]  }
  0x72   :  { %1067 = vmatprep.mubr.bf16.mxu0 %v2294_v53  ;;  %1259 = vmatprep.mubr.bf16.mxu1 %v2296_v54  ;;  %v2376_v53 = vld [vmem:[%s3089_s0 + $0x22c] ss:$12 sps:$4 sm:$0xff]  }
  0x73   :  { %v2378_v54 = vld [vmem:[%s3089_s0 + $0x2d8] ss:$12 sps:$4 sm:$0xff]  }
  0x79   :  { %1068 = vmatmul.mubr.bf16.gmra.mrb[28].mxu0 %v2298_v55  ;;  %1260 = vmatmul.mubr.bf16.gmra.mrb[28].mxu1 %v2299_v56  ;;  %v2379_v55 = vld [vmem:[%s3089_s0 + $0x228] ss:$12 sps:$4 sm:$0xff]   ;;  %v2380_v56 = vld [vmem:[%s3089_s0 + $0x2f0] ss:$12 sps:$4 sm:$0xff]  }
  0x7a   :  { %1075 = vmatprep.mubr.bf16.mxu0 %v2301_v57  ;;  %2132 = vmatprep.mubr.bf16.mxu1 %v2303_v58 }
  0x81   :  { %1076 = vmatmul.mubr.bf16.gmra.mrb[32].mxu0 %v2304_v59  ;;  %2133 = vmatmul.mubr.bf16.vlgmr.msra.gmra.mrb[32].mxu1 %v2305_v60 }
  0x82   :  { %1083 = vmatprep.mubr.bf16.mxu0 %v2306_v61  ;;  %2136 = vmatprep.mubr.bf16.mxu1 %v2308_v62 }
  0x89   :  { %1084 = vmatmul.mubr.bf16.gmra.mrb[36].mxu0 %v2309_v63  ;;  %2137 = vmatmul.mubr.bf16.gmra.mrb[36].mxu1 %v2310_v0 }
  0x8a   :  { %1091 = vmatprep.mubr.bf16.mxu0 %v2311_v1  ;;  %2140 = vmatprep.mubr.bf16.mxu1 %v2313_v2 }
  0x91   :  { %1092 = vmatmul.mubr.bf16.gmra.mrb[40].mxu0 %v2314_v3  ;;  %2141 = vmatmul.mubr.bf16.gmra.mrb[40].mxu1 %v2315_v4 }
  0x92   :  { %1099 = vmatprep.mubr.bf16.mxu0 %v2316_v5  ;;  %2144 = vmatprep.mubr.bf16.mxu1 %v2318_v6 }
  0x99   :  { %1100 = vmatmul.mubr.bf16.gmra.mrb[44].mxu0 %v2319_v7  ;;  %2145 = vmatmul.mubr.bf16.gmra.mrb[44].mxu1 %v2320_v8 }
  0x9a   :  { %1107 = vmatprep.mubr.bf16.mxu0 %v2321_v9  ;;  %2148 = vmatprep.mubr.bf16.mxu1 %v2323_v10 }
  0xa1   :  { %1108 = vmatmul.mubr.bf16.gmra.mrb[48].mxu0 %v2324_v11  ;;  %2149 = vmatmul.mubr.bf16.gmra.mrb[48].mxu1 %v2325_v12 }
  0xa2   :  { %1115 = vmatprep.mubr.bf16.mxu0 %v2326_v13  ;;  %2152 = vmatprep.mubr.bf16.mxu1 %v2328_v14 }
  0xa9   :  { %1116 = vmatmul.mubr.bf16.gmra.mrb[52].mxu0 %v2329_v15  ;;  %2153 = vmatmul.mubr.bf16.gmra.mrb[52].mxu1 %v2330_v16 }
  0xaa   :  { %1123 = vmatprep.mubr.bf16.mxu0 %v2331_v17  ;;  %2156 = vmatprep.mubr.bf16.mxu1 %v2333_v18 }
  0xb1   :  { %1124 = vmatmul.mubr.bf16.gmra.mrb[56].mxu0 %v2334_v19  ;;  %2157 = vmatmul.mubr.bf16.gmra.mrb[56].mxu1 %v2335_v20 }
  0xb2   :  { %1131 = vmatprep.mubr.bf16.mxu0 %v2336_v21  ;;  %2160 = vmatprep.mubr.bf16.mxu1 %v2338_v22 }
  0xb9   :  { %1132 = vmatmul.mubr.bf16.gmra.mrb[60].mxu0 %v2339_v23  ;;  %2161 = vmatmul.mubr.bf16.gmra.mrb[60].mxu1 %v2340_v24 }
  0xba   :  { %1139 = vmatprep.mubr.bf16.mxu0 %v2341_v25  ;;  %2164 = vmatprep.mubr.bf16.mxu1 %v2343_v26 }
  0xc1   :  { %1140 = vmatmul.mubr.bf16.gmra.mrb[64].mxu0 %v2344_v27  ;;  %2165 = vmatmul.mubr.bf16.gmra.mrb[64].mxu1 %v2345_v28 }
  0xc2   :  { %1147 = vmatprep.mubr.bf16.mxu0 %v2346_v29  ;;  %2168 = vmatprep.mubr.bf16.mxu1 %v2348_v30 }
  0xc9   :  { %1148 = vmatmul.mubr.bf16.gmra.mrb[68].mxu0 %v2349_v31  ;;  %2169 = vmatmul.mubr.bf16.gmra.mrb[68].mxu1 %v2350_v32 }
  0xca   :  { %1155 = vmatprep.mubr.bf16.mxu0 %v2351_v33  ;;  %2172 = vmatprep.mubr.bf16.mxu1 %v2353_v34 }
  0xd1   :  { %1156 = vmatmul.mubr.bf16.gmra.mrb[72].mxu0 %v2354_v35  ;;  %2173 = vmatmul.mubr.bf16.gmra.mrb[72].mxu1 %v2355_v36 }
  0xd2   :  { %1163 = vmatprep.mubr.bf16.mxu0 %v2356_v37  ;;  %2176 = vmatprep.mubr.bf16.mxu1 %v2358_v38 }
  0xd9   :  { %1164 = vmatmul.mubr.bf16.gmra.mrb[76].mxu0 %v2359_v39  ;;  %2177 = vmatmul.mubr.bf16.gmra.mrb[76].mxu1 %v2360_v40 }
  0xda   :  { %1171 = vmatprep.mubr.bf16.mxu0 %v2361_v41  ;;  %2180 = vmatprep.mubr.bf16.mxu1 %v2363_v42 }
  0xe1   :  { %1172 = vmatmul.mubr.bf16.gmra.mrb[80].mxu0 %v2364_v43  ;;  %2181 = vmatmul.mubr.bf16.gmra.mrb[80].mxu1 %v2365_v44 }
  0xe2   :  { %1179 = vmatprep.mubr.bf16.mxu0 %v2366_v45  ;;  %2184 = vmatprep.mubr.bf16.mxu1 %v2368_v46 }
  0xe9   :  { %1180 = vmatmul.mubr.bf16.gmra.mrb[84].mxu0 %v2369_v47  ;;  %2185 = vmatmul.mubr.bf16.gmra.mrb[84].mxu1 %v2370_v48 }
  0xea   :  { %1187 = vmatprep.mubr.bf16.mxu0 %v2371_v49  ;;  %2188 = vmatprep.mubr.bf16.mxu1 %v2373_v50 }
  0xf1   :  { %1188 = vmatmul.mubr.bf16.gmra.mrb[88].mxu0 %v2374_v51  ;;  %2189 = vmatmul.mubr.bf16.gmra.mrb[88].mxu1 %v2375_v52 }
  0xf2   :  { %1195 = vmatprep.mubr.bf16.mxu0 %v2376_v53  ;;  %2192 = vmatprep.mubr.bf16.mxu1 %v2378_v54 }
  0xf9   :  { %1196 = vmatmul.mubr.bf16.gmra.mrb[92].mxu0 %v2379_v55  ;;  %2193 = vmatmul.mubr.bf16.gmra.mrb[92].mxu1 %v2380_v56 }
 0x114   :  { %v2794_v57 = vpop.f32.mrb[0].mxu0  ;;  %v2796_v58 = vpop.f32.mrb[0].mxu1 }
 0x115   :  { %v1015_v59 = vpop.f32.mrb[1].mxu0  ;;  %v1207_v60 = vpop.f32.mrb[1].mxu1 }
 0x116   :  { %v2798_v61 = vpop.f32.mrb[2].mxu0  ;;  %v2800_v62 = vpop.f32.mrb[2].mxu1 }
 0x117   :  { %v1018_v63 = vpop.f32.mrb[3].mxu0  ;;  %v1210_v0 = vpop.f32.mrb[3].mxu1 }
 0x118   :  { %v2861_v63 = vld [vmem:[%s3090_s2] ss:$0 sm:$0xff] }
 0x11c   :  { %v1021_v1 = vpop.f32.mrb[4].mxu0  ;;  %v2802_v2 = vpop.f32.mrb[4].mxu1 }
 0x11d   :  { %v1023_v3 = vpop.f32.mrb[5].mxu0  ;;  %v1215_v4 = vpop.f32.mrb[5].mxu1 }
 0x11e   :  { %v2804_v5 = vpop.f32.mrb[6].mxu0  ;;  %v2806_v6 = vpop.f32.mrb[6].mxu1 }
 0x11f   :  { %v1026_v7 = vpop.f32.mrb[7].mxu0  ;;  %v1218_v8 = vpop.f32.mrb[7].mxu1 }
 0x124   :  { %v2808_v9 = vpop.f32.mrb[8].mxu0  ;;  %v2810_v10 = vpop.f32.mrb[8].mxu1 }
 0x125   :  { %v1031_v11 = vpop.f32.mrb[9].mxu0  ;;  %v1223_v12 = vpop.f32.mrb[9].mxu1 }
 0x126   :  { %v2812_v13 = vpop.f32.mrb[10].mxu0  ;;  %v2814_v14 = vpop.f32.mrb[10].mxu1 }
 0x127   :  { %v1034_v15 = vpop.f32.mrb[11].mxu0  ;;  %v1226_v16 = vpop.f32.mrb[11].mxu1 }
 0x12c   :  { %v2816_v17 = vpop.f32.mrb[12].mxu0  ;;  %v2818_v18 = vpop.f32.mrb[12].mxu1 }
 0x12d   :  { %v1039_v19 = vpop.f32.mrb[13].mxu0  ;;  %v1231_v20 = vpop.f32.mrb[13].mxu1 }
 0x12e   :  { %v2820_v21 = vpop.f32.mrb[14].mxu0  ;;  %v2822_v22 = vpop.f32.mrb[14].mxu1 }
 0x12f   :  { %v1042_v23 = vpop.f32.mrb[15].mxu0  ;;  %v1234_v24 = vpop.f32.mrb[15].mxu1 }
 0x134   :  { %v2824_v25 = vpop.f32.mrb[16].mxu0  ;;  %v2826_v26 = vpop.f32.mrb[16].mxu1 }
 0x135   :  { %v1047_v27 = vpop.f32.mrb[17].mxu0  ;;  %v1239_v28 = vpop.f32.mrb[17].mxu1 }
 0x136   :  { %v2828_v29 = vpop.f32.mrb[18].mxu0  ;;  %v2830_v30 = vpop.f32.mrb[18].mxu1 }
 0x137   :  { %v1050_v31 = vpop.f32.mrb[19].mxu0  ;;  %v1242_v32 = vpop.f32.mrb[19].mxu1 }
 0x13c   :  { %v2832_v33 = vpop.f32.mrb[20].mxu0  ;;  %v2834_v34 = vpop.f32.mrb[20].mxu1 }
 0x13d   :  { %v1055_v35 = vpop.f32.mrb[21].mxu0  ;;  %v1247_v36 = vpop.f32.mrb[21].mxu1 }
 0x13e   :  { %v2836_v37 = vpop.f32.mrb[22].mxu0  ;;  %v2838_v38 = vpop.f32.mrb[22].mxu1 }
 0x13f   :  { %v1058_v39 = vpop.f32.mrb[23].mxu0  ;;  %v1250_v40 = vpop.f32.mrb[23].mxu1 }
 0x144   :  { %v2840_v41 = vpop.f32.mrb[24].mxu0  ;;  %v2842_v42 = vpop.f32.mrb[24].mxu1 }
 0x145   :  { %v1063_v43 = vpop.f32.mrb[25].mxu0  ;;  %v1255_v44 = vpop.f32.mrb[25].mxu1 }
 0x146   :  { %v2844_v45 = vpop.f32.mrb[26].mxu0  ;;  %v2846_v46 = vpop.f32.mrb[26].mxu1 }
 0x147   :  { %v1066_v47 = vpop.f32.mrb[27].mxu0  ;;  %v1258_v48 = vpop.f32.mrb[27].mxu1 }
 0x14c   :  { %v2848_v49 = vpop.f32.mrb[28].mxu0  ;;  %v2850_v50 = vpop.f32.mrb[28].mxu1 }
 0x14d   :  { %v1071_v51 = vpop.f32.mrb[29].mxu0  ;;  %v1263_v52 = vpop.f32.mrb[29].mxu1 }
 0x14e   :  { %v2852_v53 = vpop.f32.mrb[30].mxu0  ;;  %v2854_v54 = vpop.f32.mrb[30].mxu1 }
 0x14f   :  { %v1074_v55 = vpop.f32.mrb[31].mxu0  ;;  %v1266_v56 = vpop.f32.mrb[31].mxu1 }
 0x154   :  { %v2856_v59 = vpop.f32.mrb[32].mxu0  ;;  %v2134_v60 = vpop.f32.mrb[32].mxu1 }
 0x155   :  { %v1311_v0 = vadd.f32 %v2134_v60, %v1021_v1  ;;  %v1079_v3 = vpop.f32.mrb[33].mxu0  ;;  %v1302_v4 = vpop.f32.mrb[33].mxu1 }
 0x156   :  { %v1303_v7 = vadd.f32 %v1302_v4, %v2794_v57  ;;  %v2864_v8 = vpop.f32.mrb[34].mxu0  ;;  %v2135_v11 = vpop.f32.mrb[34].mxu1 }
 0x157   :  { %v1761_v12 = vadd.f32 %v2861_v63, %v1311_v0  ;;  %v1314_v15 = vadd.f32 %v2135_v11, %v2804_v5  ;;  %v1082_v16 = vpop.f32.mrb[35].mxu0  ;;  %v1305_v19 = vpop.f32.mrb[35].mxu1 }
 0x158   :  { %v1759_v20 = vadd.f32 %v2861_v63, %v1303_v7  ;;  %v1306_v23 = vadd.f32 %v1305_v19, %v2798_v61 }
 0x159   :  { %v1762_v24 = vadd.f32 %v2861_v63, %v1314_v15  ;;  %v1825_v27 = vmax.f32 %v1761_v12, 0.0 }
 0x15a   :  { %v1760_v1 = vadd.f32 %v2861_v63, %v1306_v23  ;;  %v1823_v57 = vmax.f32 %v1759_v20, 0.0 }
 0x15b   :  { %v1826_v28 = vmax.f32 %v1762_v24, 0.0 }
 0x15c   :  { %v1824_v31 = vmax.f32 %v1760_v1, 0.0  ;;  %v2872_v32 = vpop.f32.mrb[36].mxu0  ;;  %v2138_v35 = vpop.f32.mrb[36].mxu1 }
 0x15d   :  { %v1888_v36 = vpack.c.bf16 %v1826_v28, %v1825_v27  ;;  %v1327_v5 = vadd.f32 %v2138_v35, %v2816_v17  ;;  %v1087_v39 = vpop.f32.mrb[37].mxu0  ;;  %v1318_v40 = vpop.f32.mrb[37].mxu1 }
 0x15e   :  { %v1887_v43 = vpack.c.bf16 %v1824_v31, %v1823_v57  ;;  %v1319_v44 = vadd.f32 %v1318_v40, %v2808_v9  ;;  %v2876_v61 = vpop.f32.mrb[38].mxu0  ;;  %v2139_v47 = vpop.f32.mrb[38].mxu1 }
 0x15f   :  { %1920 = vst [vmem:[%s3091_s3 + $0x8] sm:$0xff] %v1888_v36  ;;  %v1765_v48 = vadd.f32 %v2861_v63, %v1327_v5  ;;  %v1330_v51 = vadd.f32 %v2139_v47, %v2820_v21  ;;  %v1090_v52 = vpop.f32.mrb[39].mxu0  ;;  %v1321_v55 = vpop.f32.mrb[39].mxu1 }
 0x160   :  { %1919 = vst [vmem:[%s3091_s3] sm:$0xff] %v1887_v43  ;;  %v1763_v17 = vadd.f32 %v2861_v63, %v1319_v44  ;;  %v1322_v9 = vadd.f32 %v1321_v55, %v2812_v13 }
 0x161   :  { %v1766_v56 = vadd.f32 %v2861_v63, %v1330_v51  ;;  %v1829_v0 = vmax.f32 %v1765_v48, 0.0 }
 0x162   :  { %v1764_v60 = vadd.f32 %v2861_v63, %v1322_v9  ;;  %v1827_v4 = vmax.f32 %v1763_v17, 0.0 }
 0x163   :  { %v1830_v3 = vmax.f32 %v1766_v56, 0.0 }
 0x164   :  { %v1828_v7 = vmax.f32 %v1764_v60, 0.0  ;;  %v2890_v11 = vpop.f32.mrb[40].mxu0  ;;  %v2142_v21 = vpop.f32.mrb[40].mxu1 }
 0x165   :  { %v1890_v12 = vpack.c.bf16 %v1830_v3, %v1829_v0  ;;  %v1343_v15 = vadd.f32 %v2142_v21, %v2832_v33  ;;  %v1095_v16 = vpop.f32.mrb[41].mxu0  ;;  %v1334_v19 = vpop.f32.mrb[41].mxu1 }
 0x166   :  { %v1889_v20 = vpack.c.bf16 %v1828_v7, %v1827_v4  ;;  %v1335_v23 = vadd.f32 %v1334_v19, %v2824_v25  ;;  %v2894_v13 = vpop.f32.mrb[42].mxu0  ;;  %v2143_v24 = vpop.f32.mrb[42].mxu1 }
 0x167   :  { %1922 = vst [vmem:[%s3091_s3 + $0x18] sm:$0xff] %v1890_v12  ;;  %v1769_v1 = vadd.f32 %v2861_v63, %v1343_v15  ;;  %v1346_v27 = vadd.f32 %v2143_v24, %v2836_v37  ;;  %v1098_v28 = vpop.f32.mrb[43].mxu0  ;;  %v1337_v57 = vpop.f32.mrb[43].mxu1 }
 0x168   :  { %1921 = vst [vmem:[%s3091_s3 + $0x10] sm:$0xff] %v1889_v20  ;;  %v1767_v33 = vadd.f32 %v2861_v63, %v1335_v23  ;;  %v1338_v25 = vadd.f32 %v1337_v57, %v2828_v29 }
 0x169   :  { %v1770_v31 = vadd.f32 %v2861_v63, %v1346_v27  ;;  %v1833_v36 = vmax.f32 %v1769_v1, 0.0 }
 0x16a   :  { %v1768_v35 = vadd.f32 %v2861_v63, %v1338_v25  ;;  %v1831_v39 = vmax.f32 %v1767_v33, 0.0 }
 0x16b   :  { %v1834_v5 = vmax.f32 %v1770_v31, 0.0 }
 0x16c   :  { %v1832_v40 = vmax.f32 %v1768_v35, 0.0  ;;  %v1101_v43 = vpop.f32.mrb[44].mxu0  ;;  %v2146_v37 = vpop.f32.mrb[44].mxu1 }
 0x16d   :  { %v1892_v44 = vpack.c.bf16 %v1834_v5, %v1833_v36  ;;  %v1359_v47 = vadd.f32 %v2146_v37, %v2848_v49  ;;  %v1103_v48 = vpop.f32.mrb[45].mxu0  ;;  %v1350_v51 = vpop.f32.mrb[45].mxu1 }
 0x16e   :  { %v1891_v52 = vpack.c.bf16 %v1832_v40, %v1831_v39  ;;  %v1351_v55 = vadd.f32 %v1350_v51, %v2840_v41  ;;  %v1104_v17 = vpop.f32.mrb[46].mxu0  ;;  %v2147_v29 = vpop.f32.mrb[46].mxu1 }
 0x16f   :  { %1924 = vst [vmem:[%s3091_s3 + $0x28] sm:$0xff] %v1892_v44  ;;  %v1773_v9 = vadd.f32 %v2861_v63, %v1359_v47  ;;  %v1362_v56 = vadd.f32 %v2147_v29, %v2852_v53  ;;  %v1106_v60 = vpop.f32.mrb[47].mxu0  ;;  %v1353_v0 = vpop.f32.mrb[47].mxu1 }
 0x170   :  { %1923 = vst [vmem:[%s3091_s3 + $0x20] sm:$0xff] %v1891_v52  ;;  %v1771_v49 = vadd.f32 %v2861_v63, %v1351_v55  ;;  %v1354_v41 = vadd.f32 %v1353_v0, %v2844_v45 }
 0x171   :  { %v1774_v3 = vadd.f32 %v2861_v63, %v1362_v56  ;;  %v1837_v7 = vmax.f32 %v1773_v9, 0.0 }
 0x172   :  { %v1772_v4 = vadd.f32 %v2861_v63, %v1354_v41  ;;  %v1835_v12 = vmax.f32 %v1771_v49, 0.0 }
 0x173   :  { %v1838_v21 = vmax.f32 %v1774_v3, 0.0 }
 0x174   :  { %v1836_v15 = vmax.f32 %v1772_v4, 0.0  ;;  %v1109_v16 = vpop.f32.mrb[48].mxu0  ;;  %v2150_v53 = vpop.f32.mrb[48].mxu1 }
 0x175   :  { %v1894_v19 = vpack.c.bf16 %v1838_v21, %v1837_v7  ;;  %v1375_v20 = vadd.f32 %v2150_v53, %v2872_v32  ;;  %v1111_v23 = vpop.f32.mrb[49].mxu0  ;;  %v1366_v24 = vpop.f32.mrb[49].mxu1 }
 0x176   :  { %v1893_v1 = vpack.c.bf16 %v1836_v15, %v1835_v12  ;;  %v1367_v27 = vadd.f32 %v1366_v24, %v2856_v59  ;;  %v1112_v28 = vpop.f32.mrb[50].mxu0  ;;  %v2151_v45 = vpop.f32.mrb[50].mxu1 }
 0x177   :  { %1926 = vst [vmem:[%s3091_s3 + $0x38] sm:$0xff] %v1894_v19  ;;  %v1777_v57 = vadd.f32 %v2861_v63, %v1375_v20  ;;  %v1378_v33 = vadd.f32 %v2151_v45, %v2876_v61  ;;  %v1114_v25 = vpop.f32.mrb[51].mxu0  ;;  %v1369_v31 = vpop.f32.mrb[51].mxu1 }
 0x178   :  { %1925 = vst [vmem:[%s3091_s3 + $0x30] sm:$0xff] %v1893_v1  ;;  %v1775_v32 = vadd.f32 %v2861_v63, %v1367_v27  ;;  %v1370_v59 = vadd.f32 %v1369_v31, %v2864_v8 }
 0x179   :  { %v1778_v35 = vadd.f32 %v2861_v63, %v1378_v33  ;;  %v1841_v5 = vmax.f32 %v1777_v57, 0.0 }
 0x17a   :  { %v1776_v36 = vadd.f32 %v2861_v63, %v1370_v59  ;;  %v1839_v40 = vmax.f32 %v1775_v32, 0.0 }
 0x17b   :  { %v1842_v39 = vmax.f32 %v1778_v35, 0.0 }
 0x17c   :  { %v1840_v37 = vmax.f32 %v1776_v36, 0.0  ;;  %v1117_v44 = vpop.f32.mrb[52].mxu0  ;;  %v2154_v61 = vpop.f32.mrb[52].mxu1 }
 0x17d   :  { %v1896_v47 = vpack.c.bf16 %v1842_v39, %v1841_v5  ;;  %v1391_v48 = vadd.f32 %v2154_v61, %v1101_v43  ;;  %v1119_v51 = vpop.f32.mrb[53].mxu0  ;;  %v1382_v52 = vpop.f32.mrb[53].mxu1 }
 0x17e   :  { %v1895_v55 = vpack.c.bf16 %v1840_v37, %v1839_v40  ;;  %v1383_v29 = vadd.f32 %v1382_v52, %v2890_v11  ;;  %v1120_v9 = vpop.f32.mrb[54].mxu0  ;;  %v2155_v56 = vpop.f32.mrb[54].mxu1 }
 0x17f   :  { %1928 = vst [vmem:[%s3091_s3 + $0x48] sm:$0xff] %v1896_v47  ;;  %v1781_v8 = vadd.f32 %v2861_v63, %v1391_v48  ;;  %v1394_v60 = vadd.f32 %v2155_v56, %v1104_v17  ;;  %v1122_v0 = vpop.f32.mrb[55].mxu0  ;;  %v1385_v49 = vpop.f32.mrb[55].mxu1 }
 0x180   :  { %1927 = vst [vmem:[%s3091_s3 + $0x40] sm:$0xff] %v1895_v55  ;;  %v1779_v43 = vadd.f32 %v2861_v63, %v1383_v29  ;;  %v1386_v41 = vadd.f32 %v1385_v49, %v2894_v13 }
 0x181   :  { %v1782_v11 = vadd.f32 %v2861_v63, %v1394_v60  ;;  %v1845_v4 = vmax.f32 %v1781_v8, 0.0 }
 0x182   :  { %v1780_v3 = vadd.f32 %v2861_v63, %v1386_v41  ;;  %v1843_v21 = vmax.f32 %v1779_v43, 0.0 }
 0x183   :  { %v1846_v7 = vmax.f32 %v1782_v11, 0.0 }
 0x184   :  { %v1844_v12 = vmax.f32 %v1780_v3, 0.0  ;;  %v1125_v15 = vpop.f32.mrb[56].mxu0  ;;  %v2158_v17 = vpop.f32.mrb[56].mxu1 }
 0x185   :  { %v1898_v53 = vpack.c.bf16 %v1846_v7, %v1845_v4  ;;  %v1407_v19 = vadd.f32 %v2158_v17, %v1117_v44  ;;  %v1127_v20 = vpop.f32.mrb[57].mxu0  ;;  %v1398_v23 = vpop.f32.mrb[57].mxu1 }
 0x186   :  { %v1897_v24 = vpack.c.bf16 %v1844_v12, %v1843_v21  ;;  %v1399_v1 = vadd.f32 %v1398_v23, %v1109_v16  ;;  %v1128_v27 = vpop.f32.mrb[58].mxu0  ;;  %v2159_v45 = vpop.f32.mrb[58].mxu1 }
 0x187   :  { %1930 = vst [vmem:[%s3091_s3 + $0x58] sm:$0xff] %v1898_v53  ;;  %v1785_v13 = vadd.f32 %v2861_v63, %v1407_v19  ;;  %v1410_v57 = vadd.f32 %v2159_v45, %v1120_v9  ;;  %v1130_v33 = vpop.f32.mrb[59].mxu0  ;;  %v1401_v25 = vpop.f32.mrb[59].mxu1 }
 0x188   :  { %1929 = vst [vmem:[%s3091_s3 + $0x50] sm:$0xff] %v1897_v24  ;;  %v1783_v31 = vadd.f32 %v2861_v63, %v1399_v1  ;;  %v1402_v32 = vadd.f32 %v1401_v25, %v1112_v28 }
 0x189   :  { %v1786_v16 = vadd.f32 %v2861_v63, %v1410_v57  ;;  %v1849_v35 = vmax.f32 %v1785_v13, 0.0 }
 0x18a   :  { %v1784_v59 = vadd.f32 %v2861_v63, %v1402_v32  ;;  %v1847_v5 = vmax.f32 %v1783_v31, 0.0 }
 0x18b   :  { %v1850_v36 = vmax.f32 %v1786_v16, 0.0 }
 0x18c   :  { %v1848_v39 = vmax.f32 %v1784_v59, 0.0  ;;  %v1133_v40 = vpop.f32.mrb[60].mxu0  ;;  %v2162_v37 = vpop.f32.mrb[60].mxu1 }
 0x18d   :  { %v1900_v44 = vpack.c.bf16 %v1850_v36, %v1849_v35  ;;  %v1423_v61 = vadd.f32 %v2162_v37, %v1133_v40  ;;  %v1135_v47 = vpop.f32.mrb[61].mxu0  ;;  %v1414_v48 = vpop.f32.mrb[61].mxu1 }
 0x18e   :  { %v1899_v51 = vpack.c.bf16 %v1848_v39, %v1847_v5  ;;  %v1415_v52 = vadd.f32 %v1414_v48, %v1125_v15  ;;  %v1136_v55 = vpop.f32.mrb[62].mxu0  ;;  %v2163_v29 = vpop.f32.mrb[62].mxu1 }
 0x18f   :  { %1932 = vst [vmem:[%s3091_s3 + $0x68] sm:$0xff] %v1900_v44  ;;  %v1789_v28 = vadd.f32 %v2861_v63, %v1423_v61  ;;  %v1426_v9 = vadd.f32 %v2163_v29, %v1136_v55  ;;  %v1138_v56 = vpop.f32.mrb[63].mxu0  ;;  %v1417_v8 = vpop.f32.mrb[63].mxu1 }
 0x190   :  { %1931 = vst [vmem:[%s3091_s3 + $0x60] sm:$0xff] %v1899_v51  ;;  %v1787_v60 = vadd.f32 %v2861_v63, %v1415_v52  ;;  %v1418_v0 = vadd.f32 %v1417_v8, %v1128_v27 }
 0x191   :  { %v1790_v49 = vadd.f32 %v2861_v63, %v1426_v9  ;;  %v1853_v41 = vmax.f32 %v1789_v28, 0.0 }
 0x192   :  { %v1788_v43 = vadd.f32 %v2861_v63, %v1418_v0  ;;  %v1851_v3 = vmax.f32 %v1787_v60, 0.0 }
 0x193   :  { %v1854_v11 = vmax.f32 %v1790_v49, 0.0 }
 0x194   :  { %v1852_v4 = vmax.f32 %v1788_v43, 0.0  ;;  %v1141_v7 = vpop.f32.mrb[64].mxu0  ;;  %v2166_v21 = vpop.f32.mrb[64].mxu1 }
 0x195   :  { %v1902_v12 = vpack.c.bf16 %v1854_v11, %v1853_v41  ;;  %v1143_v15 = vpop.f32.mrb[65].mxu0  ;;  %v1430_v17 = vpop.f32.mrb[65].mxu1 }
 0x196   :  { %v1901_v53 = vpack.c.bf16 %v1852_v4, %v1851_v3  ;;  %v1431_v19 = vadd.f32 %v1430_v17, %v1141_v7  ;;  %v1144_v20 = vpop.f32.mrb[66].mxu0  ;;  %v2167_v23 = vpop.f32.mrb[66].mxu1 }
 0x197   :  { %1934 = vst [vmem:[%s3091_s3 + $0x78] sm:$0xff] %v1902_v12  ;;  %v1146_v24 = vpop.f32.mrb[67].mxu0  ;;  %v1433_v1 = vpop.f32.mrb[67].mxu1 }
 0x198   :  { %1933 = vst [vmem:[%s3091_s3 + $0x70] sm:$0xff] %v1901_v53  ;;  %v1791_v27 = vadd.f32 %v2861_v63, %v1431_v19  ;;  %v1434_v45 = vadd.f32 %v1433_v1, %v1144_v20 }
 0x19a   :  { %v1792_v13 = vadd.f32 %v2861_v63, %v1434_v45  ;;  %v1855_v57 = vmax.f32 %v1791_v27, 0.0 }
 0x19c   :  { %v1856_v33 = vmax.f32 %v1792_v13, 0.0  ;;  %v1149_v25 = vpop.f32.mrb[68].mxu0  ;;  %v2170_v31 = vpop.f32.mrb[68].mxu1 }
 0x19d   :  { %v1439_v32 = vadd.f32 %v2166_v21, %v1149_v25  ;;  %v1151_v16 = vpop.f32.mrb[69].mxu0  ;;  %v1446_v59 = vpop.f32.mrb[69].mxu1 }
 0x19e   :  { %v1903_v35 = vpack.c.bf16 %v1856_v33, %v1855_v57  ;;  %v1152_v36 = vpop.f32.mrb[70].mxu0  ;;  %v2171_v5 = vpop.f32.mrb[70].mxu1 }
 0x19f   :  { %v1793_v39 = vadd.f32 %v2861_v63, %v1439_v32  ;;  %v1442_v40 = vadd.f32 %v2167_v23, %v1152_v36  ;;  %v1154_v37 = vpop.f32.mrb[71].mxu0  ;;  %v1449_v44 = vpop.f32.mrb[71].mxu1 }
 0x1a0   :  { %1935 = vst [vmem:[%s3091_s3 + $0x80] sm:$0xff] %v1903_v35 }
 0x1a1   :  { %v1794_v61 = vadd.f32 %v2861_v63, %v1442_v40  ;;  %v1857_v47 = vmax.f32 %v1793_v39, 0.0 }
 0x1a3   :  { %v1858_v48 = vmax.f32 %v1794_v61, 0.0 }
 0x1a4   :  { %v1157_v51 = vpop.f32.mrb[72].mxu0  ;;  %v2981_v52 = vpop.f32.mrb[72].mxu1 }
 0x1a5   :  { %v1904_v55 = vpack.c.bf16 %v1858_v48, %v1857_v47  ;;  %v1447_v29 = vadd.f32 %v1446_v59, %v1157_v51  ;;  %v1159_v28 = vpop.f32.mrb[73].mxu0  ;;  %v1462_v9 = vpop.f32.mrb[73].mxu1 }
 0x1a6   :  { %v1160_v56 = vpop.f32.mrb[74].mxu0  ;;  %v2983_v8 = vpop.f32.mrb[74].mxu1 }
 0x1a7   :  { %1936 = vst [vmem:[%s3091_s3 + $0x88] sm:$0xff] %v1904_v55  ;;  %v1795_v60 = vadd.f32 %v2861_v63, %v1447_v29  ;;  %v1450_v0 = vadd.f32 %v1449_v44, %v1160_v56  ;;  %v1162_v49 = vpop.f32.mrb[75].mxu0  ;;  %v1465_v43 = vpop.f32.mrb[75].mxu1 }
 0x1a9   :  { %v1796_v41 = vadd.f32 %v2861_v63, %v1450_v0  ;;  %v1859_v11 = vmax.f32 %v1795_v60, 0.0 }
 0x1ab   :  { %v1860_v3 = vmax.f32 %v1796_v41, 0.0 }
 0x1ac   :  { %v1165_v4 = vpop.f32.mrb[76].mxu0  ;;  %v2990_v7 = vpop.f32.mrb[76].mxu1 }
 0x1ad   :  { %v1905_v21 = vpack.c.bf16 %v1860_v3, %v1859_v11  ;;  %v1455_v12 = vadd.f32 %v2170_v31, %v1165_v4  ;;  %v1167_v15 = vpop.f32.mrb[77].mxu0  ;;  %v2992_v17 = vpop.f32.mrb[77].mxu1 }
 0x1ae   :  { %v1168_v53 = vpop.f32.mrb[78].mxu0  ;;  %v2994_v19 = vpop.f32.mrb[78].mxu1 }
 0x1af   :  { %1937 = vst [vmem:[%s3091_s3 + $0x90] sm:$0xff] %v1905_v21  ;;  %v1797_v20 = vadd.f32 %v2861_v63, %v1455_v12  ;;  %v1458_v23 = vadd.f32 %v2171_v5, %v1168_v53  ;;  %v1170_v24 = vpop.f32.mrb[79].mxu0  ;;  %v3000_v1 = vpop.f32.mrb[79].mxu1 }
 0x1b1   :  { %v1798_v27 = vadd.f32 %v2861_v63, %v1458_v23  ;;  %v1861_v45 = vmax.f32 %v1797_v20, 0.0 }
 0x1b3   :  { %v1862_v13 = vmax.f32 %v1798_v27, 0.0 }
 0x1b4   :  { %v1173_v57 = vpop.f32.mrb[80].mxu0  ;;  %v2182_v33 = vpop.f32.mrb[80].mxu1 }
 0x1b5   :  { %v1906_v25 = vpack.c.bf16 %v1862_v13, %v1861_v45  ;;  %v1463_v31 = vadd.f32 %v1462_v9, %v1173_v57  ;;  %v1503_v32 = vadd.f32 %v2182_v33, %v2802_v2  ;;  %v1175_v16 = vpop.f32.mrb[81].mxu0  ;;  %v1494_v59 = vpop.f32.mrb[81].mxu1 }
 0x1b6   :  { %v1495_v35 = vadd.f32 %v1494_v59, %v2796_v58  ;;  %v1176_v36 = vpop.f32.mrb[82].mxu0  ;;  %v2183_v39 = vpop.f32.mrb[82].mxu1 }
 0x1b7   :  { %1938 = vst [vmem:[%s3091_s3 + $0x98] sm:$0xff] %v1906_v25  ;;  %v1799_v5 = vadd.f32 %v2861_v63, %v1463_v31  ;;  %v1809_v40 = vadd.f32 %v2861_v63, %v1503_v32  ;;  %v1466_v37 = vadd.f32 %v1465_v43, %v1176_v36  ;;  %v1506_v44 = vadd.f32 %v2183_v39, %v2806_v6  ;;  %v1178_v61 = vpop.f32.mrb[83].mxu0  ;;  %v1497_v47 = vpop.f32.mrb[83].mxu1 }
 0x1b8   :  { %v1807_v2 = vadd.f32 %v2861_v63, %v1495_v35  ;;  %v1498_v48 = vadd.f32 %v1497_v47, %v2800_v62 }
 0x1b9   :  { %v1800_v58 = vadd.f32 %v2861_v63, %v1466_v37  ;;  %v1810_v51 = vadd.f32 %v2861_v63, %v1506_v44  ;;  %v1863_v29 = vmax.f32 %v1799_v5, 0.0  ;;  %v1873_v28 = vmax.f32 %v1809_v40, 0.0 }
 0x1ba   :  { %v1808_v55 = vadd.f32 %v2861_v63, %v1498_v48  ;;  %v1871_v60 = vmax.f32 %v1807_v2, 0.0 }
 0x1bb   :  { %v1864_v9 = vmax.f32 %v1800_v58, 0.0  ;;  %v1874_v56 = vmax.f32 %v1810_v51, 0.0 }
 0x1bc   :  { %v1872_v0 = vmax.f32 %v1808_v55, 0.0  ;;  %v1181_v49 = vpop.f32.mrb[84].mxu0  ;;  %v2186_v6 = vpop.f32.mrb[84].mxu1 }
 0x1bd   :  { %v1907_v43 = vpack.c.bf16 %v1864_v9, %v1863_v29  ;;  %v1912_v41 = vpack.c.bf16 %v1874_v56, %v1873_v28  ;;  %v1471_v11 = vadd.f32 %v2981_v52, %v1181_v49  ;;  %v1519_v62 = vadd.f32 %v2186_v6, %v2818_v18  ;;  %v1183_v3 = vpop.f32.mrb[85].mxu0  ;;  %v1510_v4 = vpop.f32.mrb[85].mxu1 }
 0x1be   :  { %v1911_v21 = vpack.c.bf16 %v1872_v0, %v1871_v60  ;;  %v1511_v12 = vadd.f32 %v1510_v4, %v2810_v10  ;;  %v1184_v15 = vpop.f32.mrb[86].mxu0  ;;  %v2187_v53 = vpop.f32.mrb[86].mxu1 }
 0x1bf   :  { %1939 = vst [vmem:[%s3091_s3 + $0xa0] sm:$0xff] %v1907_v43  ;;  %1944 = vst [vmem:[%s3091_s3 + $0xc8] sm:$0xff] %v1912_v41  ;;  %v1801_v20 = vadd.f32 %v2861_v63, %v1471_v11  ;;  %v1813_v52 = vadd.f32 %v2861_v63, %v1519_v62  ;;  %v1474_v18 = vadd.f32 %v2983_v8, %v1184_v15  ;;  %v1186_v24 = vpop.f32.mrb[87].mxu0  ;;  %v1513_v10 = vpop.f32.mrb[87].mxu1 }
 0x1c0   :  { %v1522_v23 = vadd.f32 %v2187_v53, %v2822_v22  ;;  %1943 = vst [vmem:[%s3091_s3 + $0xc0] sm:$0xff] %v1911_v21  ;;  %v1811_v27 = vadd.f32 %v2861_v63, %v1511_v12  ;;  %v1514_v45 = vadd.f32 %v1513_v10, %v2814_v14 }
 0x1c1   :  { %v1802_v13 = vadd.f32 %v2861_v63, %v1474_v18  ;;  %v1865_v25 = vmax.f32 %v1801_v20, 0.0  ;;  %v1877_v8 = vmax.f32 %v1813_v52, 0.0 }
 0x1c2   :  { %v1814_v57 = vadd.f32 %v2861_v63, %v1522_v23  ;;  %v1812_v33 = vadd.f32 %v2861_v63, %v1514_v45  ;;  %v1875_v32 = vmax.f32 %v1811_v27, 0.0 }
 0x1c3   :  { %v1866_v31 = vmax.f32 %v1802_v13, 0.0 }
 0x1c4   :  { %v1878_v22 = vmax.f32 %v1814_v57, 0.0  ;;  %v1876_v16 = vmax.f32 %v1812_v33, 0.0  ;;  %v1189_v59 = vpop.f32.mrb[88].mxu0  ;;  %v2190_v35 = vpop.f32.mrb[88].mxu1 }
 0x1c5   :  { %v1908_v36 = vpack.c.bf16 %v1866_v31, %v1865_v25  ;;  %v1479_v5 = vadd.f32 %v2992_v17, %v1189_v59  ;;  %v1535_v14 = vadd.f32 %v2190_v35, %v2834_v34  ;;  %v1191_v40 = vpop.f32.mrb[89].mxu0  ;;  %v1526_v37 = vpop.f32.mrb[89].mxu1 }
 0x1c6   :  { %v1914_v39 = vpack.c.bf16 %v1878_v22, %v1877_v8  ;;  %v1913_v44 = vpack.c.bf16 %v1876_v16, %v1875_v32  ;;  %v1527_v61 = vadd.f32 %v1526_v37, %v2826_v26  ;;  %v1192_v47 = vpop.f32.mrb[90].mxu0  ;;  %v2191_v2 = vpop.f32.mrb[90].mxu1 }
 0x1c7   :  { %1940 = vst [vmem:[%s3091_s3 + $0xa8] sm:$0xff] %v1908_v36  ;;  %v1803_v48 = vadd.f32 %v2861_v63, %v1479_v5  ;;  %v1817_v17 = vadd.f32 %v2861_v63, %v1535_v14  ;;  %v1482_v34 = vadd.f32 %v3000_v1, %v1192_v47  ;;  %v1538_v58 = vadd.f32 %v2191_v2, %v2838_v38  ;;  %v1194_v51 = vpop.f32.mrb[91].mxu0  ;;  %v1529_v26 = vpop.f32.mrb[91].mxu1 }
 0x1c8   :  { %1946 = vst [vmem:[%s3091_s3 + $0xd8] sm:$0xff] %v1914_v39  ;;  %1945 = vst [vmem:[%s3091_s3 + $0xd0] sm:$0xff] %v1913_v44  ;;  %v1815_v55 = vadd.f32 %v2861_v63, %v1527_v61  ;;  %v1530_v29 = vadd.f32 %v1529_v26, %v2830_v30 }
 0x1c9   :  { %v1804_v28 = vadd.f32 %v2861_v63, %v1482_v34  ;;  %v1818_v9 = vadd.f32 %v2861_v63, %v1538_v58  ;;  %v1867_v60 = vmax.f32 %v1803_v48, 0.0  ;;  %v1881_v1 = vmax.f32 %v1817_v17, 0.0 }
 0x1ca   :  { %v1816_v56 = vadd.f32 %v2861_v63, %v1530_v29  ;;  %v1879_v49 = vmax.f32 %v1815_v55, 0.0 }
 0x1cb   :  { %v1868_v0 = vmax.f32 %v1804_v28, 0.0  ;;  %v1882_v38 = vmax.f32 %v1818_v9, 0.0 }
 0x1cc   :  { %v1880_v6 = vmax.f32 %v1816_v56, 0.0  ;;  %v1197_v43 = vpop.f32.mrb[92].mxu0  ;;  %v2194_v41 = vpop.f32.mrb[92].mxu1 }
 0x1cd   :  { %v1909_v11 = vpack.c.bf16 %v1868_v0, %v1867_v60  ;;  %v1916_v62 = vpack.c.bf16 %v1882_v38, %v1881_v1  ;;  %v1487_v3 = vadd.f32 %v2990_v7, %v1197_v43  ;;  %v1551_v30 = vadd.f32 %v2194_v41, %v2850_v50  ;;  %v1199_v4 = vpop.f32.mrb[93].mxu0  ;;  %v1542_v21 = vpop.f32.mrb[93].mxu1 }
 0x1ce   :  { %v1915_v12 = vpack.c.bf16 %v1880_v6, %v1879_v49  ;;  %v1543_v15 = vadd.f32 %v1542_v21, %v2842_v42  ;;  %v1200_v53 = vpop.f32.mrb[94].mxu0  ;;  %v2195_v20 = vpop.f32.mrb[94].mxu1 }
 0x1cf   :  { %1941 = vst [vmem:[%s3091_s3 + $0xb0] sm:$0xff] %v1909_v11  ;;  %1948 = vst [vmem:[%s3091_s3 + $0xe8] sm:$0xff] %v1916_v62  ;;  %v1805_v52 = vadd.f32 %v2861_v63, %v1487_v3  ;;  %v1821_v7 = vadd.f32 %v2861_v63, %v1551_v30  ;;  %v1490_v50 = vadd.f32 %v2994_v19, %v1200_v53  ;;  %v1202_v23 = vpop.f32.mrb[95].mxu0  ;;  %v1545_v42 = vpop.f32.mrb[95].mxu1 }
 0x1d0   :  { %v1554_v18 = vadd.f32 %v2195_v20, %v2854_v54  ;;  %1947 = vst [vmem:[%s3091_s3 + $0xe0] sm:$0xff] %v1915_v12  ;;  %v1819_v24 = vadd.f32 %v2861_v63, %v1543_v15  ;;  %v1546_v10 = vadd.f32 %v1545_v42, %v2846_v46 }
 0x1d1   :  { %v1806_v27 = vadd.f32 %v2861_v63, %v1490_v50  ;;  %v1869_v57 = vmax.f32 %v1805_v52, 0.0  ;;  %v1885_v19 = vmax.f32 %v1821_v7, 0.0 }
 0x1d2   :  { %v1822_v45 = vadd.f32 %v2861_v63, %v1554_v18  ;;  %v1820_v13 = vadd.f32 %v2861_v63, %v1546_v10  ;;  %v1883_v25 = vmax.f32 %v1819_v24, 0.0 }
 0x1d3   :  { %v1870_v33 = vmax.f32 %v1806_v27, 0.0 }
 0x1d4   :  { %v1886_v54 = vmax.f32 %v1822_v45, 0.0  ;;  %v1884_v8 = vmax.f32 %v1820_v13, 0.0 }
 0x1d5   :  { %v1910_v31 = vpack.c.bf16 %v1870_v33, %v1869_v57 }
 0x1d6   :  { %v1918_v22 = vpack.c.bf16 %v1886_v54, %v1885_v19  ;;  %v1917_v32 = vpack.c.bf16 %v1884_v8, %v1883_v25 }
 0x1d7   :  { %1942 = vst [vmem:[%s3091_s3 + $0xb8] sm:$0xff] %v1910_v31 }
 0x1d8   :  { %1950 = vst [vmem:[%s3091_s3 + $0xf8] sm:$0xff] %v1918_v22  ;;  %1949 = vst [vmem:[%s3091_s3 + $0xf0] sm:$0xff] %v1917_v32 }

// kernel: dnlf_forward.15
= control target key start
LH: loop header
LB: loop body
LE: loop exit
PB: predicated region body
PF: predicated region fallthrough
CT: control target
= control target key end

     0   :  { %v2956_v0 = vmov 0   ;;  %s3663_s1 = inlined_call_operand.vmem [shape: bf16[384,128], index: 1, kind: input, shape index: {}]   ;;  %s3664_s0 = inlined_call_operand.vmem [shape: bf16[512,384], index: 0, kind: input, shape index: {}]   ;;  %s3665_s2 = inlined_call_operand.vmem [shape: f32[1,128], index: 2, kind: input, shape index: {}]   ;;  %s3666_s3 = inlined_call_operand.vmem [shape: bf16[512,128], index: 3, kind: output, shape index: {}]  }
   0x1   :  { %979 = vmatprep.subr.bf16.mxu0 %v2956_v0  ;;  %2771 = vmatprep.subr.bf16.mxu1 %v2956_v0  ;;  %v2804_v1 = vld [vmem:[%s3663_s1] sm:$0xff]   ;;  %v2805_v2 = vld [vmem:[%s3663_s1 + $0x8] sm:$0xff]   ;;  %v2806_v3 = vld [vmem:[%s3663_s1 + $0x10] sm:$0xff]  }
   0x2   :  { %980 = vmatpush1.bf16.msra.mxu0 %v2804_v1  ;;  %2787 = vmatpush1.bf16.msra.mxu1 %v2804_v1  ;;  %v2807_v4 = vld [vmem:[%s3663_s1 + $0x18] sm:$0xff]   ;;  %v2808_v5 = vld [vmem:[%s3663_s1 + $0x20] sm:$0xff]   ;;  %v2809_v7 = vld [vmem:[%s3663_s1 + $0x28] sm:$0xff]  }
   0x3   :  { %981 = vmatprep.subr.bf16.mxu0 %v2956_v0  ;;  %2772 = vmatprep.subr.bf16.mxu1 %v2956_v0  ;;  %v2822_v6 = vld [vmem:[%s3664_s0 + $0x4] ss:$12 sps:$4 sm:$0xff]   ;;  %v2811_v10 = vld [vmem:[%s3663_s1 + $0x38] sm:$0xff]   ;;  %v2813_v12 = vld [vmem:[%s3663_s1 + $0x48] sm:$0xff]  }
   0x4   :  { %v2825_v8 = vld [vmem:[%s3664_s0 + $0x244] ss:$12 sps:$4 sm:$0xff]   ;;  %1011 = vmatprep.mubr.bf16.mxu0 %v2822_v6  ;;  %v2815_v14 = vld [vmem:[%s3663_s1 + $0x58] sm:$0xff]   ;;  %v2817_v16 = vld [vmem:[%s3663_s1 + $0x68] sm:$0xff]  }
   0x5   :  { %1203 = vmatprep.mubr.bf16.mxu1 %v2825_v8  ;;  %v2810_v9 = vld [vmem:[%s3663_s1 + $0x30] sm:$0xff]   ;;  %v2812_v11 = vld [vmem:[%s3663_s1 + $0x40] sm:$0xff]   ;;  %v2819_v18 = vld [vmem:[%s3663_s1 + $0x78] sm:$0xff]  }
   0x6   :  { %982 = vmatpush1.bf16.msra.mxu0 %v2805_v2  ;;  %2788 = vmatpush1.bf16.msra.mxu1 %v2805_v2  ;;  %v2814_v13 = vld [vmem:[%s3663_s1 + $0x50] sm:$0xff]   ;;  %v2816_v15 = vld [vmem:[%s3663_s1 + $0x60] sm:$0xff]   ;;  %v2827_v22 = vld [vmem:[%s3664_s0 + $0x1c] ss:$12 sps:$4 sm:$0xff]  }
   0x7   :  { %983 = vmatprep.subr.bf16.mxu0 %v2956_v0  ;;  %2773 = vmatprep.subr.bf16.mxu1 %v2956_v0  ;;  %v2818_v17 = vld [vmem:[%s3663_s1 + $0x70] sm:$0xff]   ;;  %v2826_v19 = vld [vmem:[%s3663_s1 + $0x80] sm:$0xff]   ;;  %v2829_v23 = vld [vmem:[%s3664_s0 + $0x25c] ss:$12 sps:$4 sm:$0xff]  }
   0x8   :  { %v2820_v20 = vld [vmem:[%s3664_s0] ss:$12 sps:$4 sm:$0xff]   ;;  %v2840_v25 = vld [vmem:[%s3663_s1 + $0x90] sm:$0xff]   ;;  %v2831_v26 = vld [vmem:[%s3664_s0 + $0x18] ss:$12 sps:$4 sm:$0xff]  }
   0x9   :  { %v2823_v21 = vld [vmem:[%s3664_s0 + $0x240] ss:$12 sps:$4 sm:$0xff]   ;;  %v2832_v27 = vld [vmem:[%s3664_s0 + $0x258] ss:$12 sps:$4 sm:$0xff]   ;;  %v2838_v31 = vld [vmem:[%s3664_s0 + $0x30] ss:$12 sps:$4 sm:$0xff]  }
   0xa   :  { %984 = vmatpush1.bf16.msra.mxu0 %v2806_v3  ;;  %2789 = vmatpush1.bf16.msra.mxu1 %v2806_v3  ;;  %v2833_v24 = vld [vmem:[%s3663_s1 + $0x88] sm:$0xff]   ;;  %v2834_v28 = vld [vmem:[%s3664_s0 + $0x34] ss:$12 sps:$4 sm:$0xff]   ;;  %v2847_v30 = vld [vmem:[%s3663_s1 + $0x98] sm:$0xff]  }
   0xb   :  { %985 = vmatprep.subr.bf16.mxu0 %v2956_v0  ;;  %2774 = vmatprep.subr.bf16.mxu1 %v2956_v0  ;;  %v2836_v29 = vld [vmem:[%s3664_s0 + $0x274] ss:$12 sps:$4 sm:$0xff]   ;;  %v2839_v33 = vld [vmem:[%s3664_s0 + $0x270] ss:$12 sps:$4 sm:$0xff]   ;;  %v2841_v34 = vld [vmem:[%s3664_s0 + $0x4c] ss:$12 sps:$4 sm:$0xff]  }
   0xc   :  { %v2854_v32 = vld [vmem:[%s3663_s1 + $0xa0] sm:$0xff]   ;;  %v2843_v35 = vld [vmem:[%s3664_s0 + $0x28c] ss:$12 sps:$4 sm:$0xff]   ;;  %v2845_v37 = vld [vmem:[%s3664_s0 + $0x48] ss:$12 sps:$4 sm:$0xff]  }
   0xd   :  { %v2861_v36 = vld [vmem:[%s3663_s1 + $0xa8] sm:$0xff]   ;;  %v2848_v39 = vld [vmem:[%s3664_s0 + $0x64] ss:$12 sps:$4 sm:$0xff]   ;;  %v2875_v42 = vld [vmem:[%s3663_s1 + $0xb8] sm:$0xff]  }
   0xe   :  { %986 = vmatpush1.bf16.msra.mxu0 %v2807_v4  ;;  %2790 = vmatpush1.bf16.msra.mxu1 %v2807_v4  ;;  %v2846_v38 = vld [vmem:[%s3664_s0 + $0x288] ss:$12 sps:$4 sm:$0xff]   ;;  %v2850_v40 = vld [vmem:[%s3664_s0 + $0x2a4] ss:$12 sps:$4 sm:$0xff]   ;;  %v2852_v43 = vld [vmem:[%s3664_s0 + $0x60] ss:$12 sps:$4 sm:$0xff]  }
   0xf   :  { %987 = vmatprep.subr.bf16.mxu0 %v2956_v0  ;;  %2775 = vmatprep.subr.bf16.mxu1 %v2956_v0  ;;  %v2868_v41 = vld [vmem:[%s3663_s1 + $0xb0] sm:$0xff]   ;;  %v2853_v44 = vld [vmem:[%s3664_s0 + $0x2a0] ss:$12 sps:$4 sm:$0xff]   ;;  %v2855_v45 = vld [vmem:[%s3664_s0 + $0x7c] ss:$12 sps:$4 sm:$0xff]  }
  0x10   :  { %v2857_v46 = vld [vmem:[%s3664_s0 + $0x2bc] ss:$12 sps:$4 sm:$0xff]   ;;  %v2859_v47 = vld [vmem:[%s3664_s0 + $0x78] ss:$12 sps:$4 sm:$0xff]   ;;  %v2862_v49 = vld [vmem:[%s3664_s0 + $0x94] ss:$12 sps:$4 sm:$0xff]  }
  0x11   :  { %v2860_v48 = vld [vmem:[%s3664_s0 + $0x2b8] ss:$12 sps:$4 sm:$0xff]   ;;  %v2864_v50 = vld [vmem:[%s3664_s0 + $0x2d4] ss:$12 sps:$4 sm:$0xff]   ;;  %v2866_v51 = vld [vmem:[%s3664_s0 + $0x90] ss:$12 sps:$4 sm:$0xff]  }
  0x12   :  { %988 = vmatpush1.bf16.msra.mxu0 %v2808_v5  ;;  %2791 = vmatpush1.bf16.msra.mxu1 %v2808_v5  ;;  %v2867_v52 = vld [vmem:[%s3664_s0 + $0x2d0] ss:$12 sps:$4 sm:$0xff]   ;;  %v2869_v53 = vld [vmem:[%s3664_s0 + $0xac] ss:$12 sps:$4 sm:$0xff]   ;;  %v2873_v55 = vld [vmem:[%s3664_s0 + $0xa8] ss:$12 sps:$4 sm:$0xff]  }
  0x13   :  { %989 = vmatprep.subr.bf16.mxu0 %v2956_v0  ;;  %2776 = vmatprep.subr.bf16.mxu1 %v2956_v0  ;;  %v2871_v54 = vld [vmem:[%s3664_s0 + $0x2ec] ss:$12 sps:$4 sm:$0xff]   ;;  %v2874_v56 = vld [vmem:[%s3664_s0 + $0x2e8] ss:$12 sps:$4 sm:$0xff]   ;;  %v2876_v57 = vld [vmem:[%s3664_s0 + $0xc4] ss:$12 sps:$4 sm:$0xff]  }
  0x14   :  { %v2878_v58 = vld [vmem:[%s3664_s0 + $0x8] ss:$12 sps:$4 sm:$0xff]   ;;  %v2879_v59 = vld [vmem:[%s3664_s0 + $0xc0] ss:$12 sps:$4 sm:$0xff]   ;;  %v2883_v62 = vld [vmem:[%s3664_s0 + $0x38] ss:$12 sps:$4 sm:$0xff]  }
  0x15   :  { %v2880_v60 = vld [vmem:[%s3664_s0 + $0x20] ss:$12 sps:$4 sm:$0xff]   ;;  %v2881_v61 = vld [vmem:[%s3664_s0 + $0xdc] ss:$12 sps:$4 sm:$0xff]   ;;  %v2884_v63 = vld [vmem:[%s3664_s0 + $0xd8] ss:$12 sps:$4 sm:$0xff]  }
  0x16   :  { %990 = vmatpush1.bf16.msra.mxu0 %v2809_v7  ;;  %2792 = vmatpush1.bf16.msra.mxu1 %v2809_v7  ;;  %v2886_v1 = vld [vmem:[%s3664_s0 + $0xf4] ss:$12 sps:$4 sm:$0xff]   ;;  %v2889_v3 = vld [vmem:[%s3664_s0 + $0xf0] ss:$12 sps:$4 sm:$0xff]   ;;  %v2891_v5 = vld [vmem:[%s3664_s0 + $0x10c] ss:$12 sps:$4 sm:$0xff]  }
  0x17   :  { %991 = vmatprep.subr.bf16.mxu0 %v2956_v0  ;;  %2777 = vmatprep.subr.bf16.mxu1 %v2956_v0  ;;  %v2888_v2 = vld [vmem:[%s3664_s0 + $0x68] ss:$12 sps:$4 sm:$0xff]   ;;  %v2890_v4 = vld [vmem:[%s3664_s0 + $0x80] ss:$12 sps:$4 sm:$0xff]   ;;  %v2893_v6 = vld [vmem:[%s3664_s0 + $0x98] ss:$12 sps:$4 sm:$0xff]  }
  0x18   :  { %v2894_v7 = vld [vmem:[%s3664_s0 + $0x108] ss:$12 sps:$4 sm:$0xff]   ;;  %v2895_v8 = vld [vmem:[%s3664_s0 + $0xb0] ss:$12 sps:$4 sm:$0xff]  }
  0x1a   :  { %992 = vmatpush1.bf16.msra.mxu0 %v2810_v9  ;;  %2793 = vmatpush1.bf16.msra.mxu1 %v2810_v9  ;;  %v2896_v9 = vld [vmem:[%s3664_s0 + $0x124] ss:$12 sps:$4 sm:$0xff]  }
  0x1b   :  { %993 = vmatprep.subr.bf16.mxu0 %v2956_v0  ;;  %2778 = vmatprep.subr.bf16.mxu1 %v2956_v0 }
  0x1e   :  { %994 = vmatpush1.bf16.msra.mxu0 %v2811_v10  ;;  %2794 = vmatpush1.bf16.msra.mxu1 %v2811_v10  ;;  %v2898_v10 = vld [vmem:[%s3664_s0 + $0xc8] ss:$12 sps:$4 sm:$0xff]  }
  0x1f   :  { %995 = vmatprep.subr.bf16.mxu0 %v2956_v0  ;;  %2779 = vmatprep.subr.bf16.mxu1 %v2956_v0 }
  0x22   :  { %996 = vmatpush1.bf16.msra.mxu0 %v2812_v11  ;;  %2795 = vmatpush1.bf16.msra.mxu1 %v2812_v11  ;;  %v2899_v11 = vld [vmem:[%s3664_s0 + $0x120] ss:$12 sps:$4 sm:$0xff]  }
  0x23   :  { %997 = vmatprep.subr.bf16.mxu0 %v2956_v0  ;;  %2780 = vmatprep.subr.bf16.mxu1 %v2956_v0 }
  0x26   :  { %998 = vmatpush1.bf16.msra.mxu0 %v2813_v12  ;;  %2796 = vmatpush1.bf16.msra.mxu1 %v2813_v12  ;;  %v2900_v12 = vld [vmem:[%s3664_s0 + $0xe0] ss:$12 sps:$4 sm:$0xff]  }
  0x27   :  { %999 = vmatprep.subr.bf16.mxu0 %v2956_v0  ;;  %2781 = vmatprep.subr.bf16.mxu1 %v2956_v0 }
  0x2a   :  { %1000 = vmatpush1.bf16.msra.mxu0 %v2814_v13  ;;  %2797 = vmatpush1.bf16.msra.mxu1 %v2814_v13  ;;  %v2901_v13 = vld [vmem:[%s3664_s0 + $0x13c] ss:$12 sps:$4 sm:$0xff]  }
  0x2b   :  { %1001 = vmatprep.subr.bf16.mxu0 %v2956_v0  ;;  %2782 = vmatprep.subr.bf16.mxu1 %v2956_v0 }
  0x2e   :  { %1002 = vmatpush1.bf16.msra.mxu0 %v2815_v14  ;;  %2798 = vmatpush1.bf16.msra.mxu1 %v2815_v14  ;;  %v2903_v14 = vld [vmem:[%s3664_s0 + $0xf8] ss:$12 sps:$4 sm:$0xff]  }
  0x2f   :  { %1003 = vmatprep.subr.bf16.mxu0 %v2956_v0  ;;  %2783 = vmatprep.subr.bf16.mxu1 %v2956_v0 }
  0x32   :  { %1004 = vmatpush1.bf16.msra.mxu0 %v2816_v15  ;;  %2799 = vmatpush1.bf16.msra.mxu1 %v2816_v15  ;;  %v2904_v15 = vld [vmem:[%s3664_s0 + $0x138] ss:$12 sps:$4 sm:$0xff]  }
  0x33   :  { %1005 = vmatprep.subr.bf16.mxu0 %v2956_v0  ;;  %2784 = vmatprep.subr.bf16.mxu1 %v2956_v0 }
  0x36   :  { %1006 = vmatpush1.bf16.msra.mxu0 %v2817_v16  ;;  %2800 = vmatpush1.bf16.msra.mxu1 %v2817_v16  ;;  %v2905_v16 = vld [vmem:[%s3664_s0 + $0x110] ss:$12 sps:$4 sm:$0xff]  }
  0x37   :  { %1007 = vmatprep.subr.bf16.mxu0 %v2956_v0  ;;  %2785 = vmatprep.subr.bf16.mxu1 %v2956_v0 }
  0x3a   :  { %1008 = vmatpush1.bf16.msra.mxu0 %v2818_v17  ;;  %2801 = vmatpush1.bf16.msra.mxu1 %v2818_v17  ;;  %v2906_v17 = vld [vmem:[%s3664_s0 + $0x154] ss:$12 sps:$4 sm:$0xff]  }
  0x3b   :  { %1009 = vmatprep.subr.bf16.mxu0 %v2956_v0  ;;  %2786 = vmatprep.subr.bf16.mxu1 %v2956_v0  ;;  %v2885_v0 = vld [vmem:[%s3664_s0 + $0x50] ss:$12 sps:$4 sm:$0xff]  }
  0x3e   :  { %1010 = vmatpush1.bf16.msra.mxu0 %v2819_v18  ;;  %2802 = vmatpush1.bf16.msra.mxu1 %v2819_v18  ;;  %v2908_v18 = vld [vmem:[%s3664_s0 + $0x128] ss:$12 sps:$4 sm:$0xff]  }
  0x3f   :  { %2691 = vmatprep.subr.bf16.mxu1 %v2826_v19 }
  0x41   :  { %1012 = vmatmul.mubr.bf16.vlgmr.msra.gmra.mrb[0].mxu0 %v2820_v20  ;;  %1204 = vmatmul.mubr.bf16.vlgmr.msra.gmra.mrb[0].mxu1 %v2823_v21  ;;  %v2910_v20 = vld [vmem:[%s3664_s0 + $0x140] ss:$12 sps:$4 sm:$0xff]  }
  0x42   :  { %2692 = vmatpush3.bf16.msra.mxu1 %v2826_v19  ;;  %1019 = vmatprep.mubr.bf16.mxu0 %v2827_v22  ;;  %v2909_v19 = vld [vmem:[%s3664_s0 + $0x150] ss:$12 sps:$4 sm:$0xff]   ;;  %v2911_v21 = vld [vmem:[%s3664_s0 + $0x16c] ss:$12 sps:$4 sm:$0xff]  }
  0x43   :  { %1211 = vmatprep.mubr.bf16.mxu1 %v2829_v23  ;;  %2693 = vmatprep.subr.bf16.mxu1 %v2833_v24  ;;  %v2913_v22 = vld [vmem:[%s3664_s0 + $0x158] ss:$12 sps:$4 sm:$0xff]   ;;  %v2914_v23 = vld [vmem:[%s3664_s0 + $0x168] ss:$12 sps:$4 sm:$0xff]  }
  0x46   :  { %2694 = vmatpush3.bf16.msra.mxu1 %v2833_v24  ;;  %v2915_v24 = vld [vmem:[%s3664_s0 + $0x170] ss:$12 sps:$4 sm:$0xff]  }
  0x47   :  { %2695 = vmatprep.subr.bf16.mxu1 %v2840_v25 }
  0x49   :  { %1020 = vmatmul.mubr.bf16.gmra.mrb[4].mxu0 %v2831_v26  ;;  %1212 = vmatmul.mubr.bf16.gmra.mrb[4].mxu1 %v2832_v27  ;;  %v2918_v26 = vld [vmem:[%s3664_s0 + $0x188] ss:$12 sps:$4 sm:$0xff]   ;;  %v2919_v27 = vld [vmem:[%s3664_s0 + $0x180] ss:$12 sps:$4 sm:$0xff]  }
  0x4a   :  { %1027 = vmatprep.mubr.bf16.mxu0 %v2834_v28  ;;  %1219 = vmatprep.mubr.bf16.mxu1 %v2836_v29  ;;  %v2920_v28 = vld [vmem:[%s3664_s0 + $0x1a0] ss:$12 sps:$4 sm:$0xff]   ;;  %v2921_v29 = vld [vmem:[%s3664_s0 + $0x19c] ss:$12 sps:$4 sm:$0xff]  }
  0x4b   :  { %2696 = vmatpush3.bf16.msra.mxu1 %v2840_v25  ;;  %v2916_v25 = vld [vmem:[%s3664_s0 + $0x184] ss:$12 sps:$4 sm:$0xff]  }
  0x4c   :  { %2697 = vmatprep.subr.bf16.mxu1 %v2847_v30 }
  0x4f   :  { %2698 = vmatpush3.bf16.msra.mxu1 %v2847_v30  ;;  %v2923_v30 = vld [vmem:[%s3664_s0 + $0x1b8] ss:$12 sps:$4 sm:$0xff]  }
  0x50   :  { %2699 = vmatprep.subr.bf16.mxu1 %v2854_v32 }
  0x51   :  { %1028 = vmatmul.mubr.bf16.gmra.mrb[8].mxu0 %v2838_v31  ;;  %1220 = vmatmul.mubr.bf16.gmra.mrb[8].mxu1 %v2839_v33  ;;  %v2924_v31 = vld [vmem:[%s3664_s0 + $0x198] ss:$12 sps:$4 sm:$0xff]   ;;  %v2926_v33 = vld [vmem:[%s3664_s0 + $0x1b4] ss:$12 sps:$4 sm:$0xff]  }
  0x52   :  { %1035 = vmatprep.mubr.bf16.mxu0 %v2841_v34  ;;  %1227 = vmatprep.mubr.bf16.mxu1 %v2843_v35  ;;  %v2928_v34 = vld [vmem:[%s3664_s0 + $0x1e8] ss:$12 sps:$4 sm:$0xff]   ;;  %v2929_v35 = vld [vmem:[%s3664_s0 + $0x1b0] ss:$12 sps:$4 sm:$0xff]  }
  0x53   :  { %2700 = vmatpush3.bf16.msra.mxu1 %v2854_v32  ;;  %v2925_v32 = vld [vmem:[%s3664_s0 + $0x1d0] ss:$12 sps:$4 sm:$0xff]  }
  0x54   :  { %2701 = vmatprep.subr.bf16.mxu1 %v2861_v36 }
  0x57   :  { %2702 = vmatpush3.bf16.msra.mxu1 %v2861_v36  ;;  %v2930_v36 = vld [vmem:[%s3664_s0 + $0x200] ss:$12 sps:$4 sm:$0xff]  }
  0x58   :  { %2703 = vmatprep.subr.bf16.mxu1 %v2868_v41 }
  0x59   :  { %1036 = vmatmul.mubr.bf16.gmra.mrb[12].mxu0 %v2845_v37  ;;  %1228 = vmatmul.mubr.bf16.gmra.mrb[12].mxu1 %v2846_v38  ;;  %v2931_v37 = vld [vmem:[%s3664_s0 + $0x1cc] ss:$12 sps:$4 sm:$0xff]  }
  0x5a   :  { %1043 = vmatprep.mubr.bf16.mxu0 %v2848_v39  ;;  %1235 = vmatprep.mubr.bf16.mxu1 %v2850_v40  ;;  %v2933_v38 = vld [vmem:[%s3664_s0 + $0x218] ss:$12 sps:$4 sm:$0xff]   ;;  %v2934_v39 = vld [vmem:[%s3664_s0 + $0x1c8] ss:$12 sps:$4 sm:$0xff]   ;;  %v2935_v40 = vld [vmem:[%s3664_s0 + $0x230] ss:$12 sps:$4 sm:$0xff]  }
  0x5b   :  { %2704 = vmatpush3.bf16.msra.mxu1 %v2868_v41  ;;  %v2936_v41 = vld [vmem:[%s3664_s0 + $0x1e4] ss:$12 sps:$4 sm:$0xff]  }
  0x5c   :  { %2705 = vmatprep.subr.bf16.mxu1 %v2875_v42 }
  0x5f   :  { %2706 = vmatpush3.bf16.msra.mxu1 %v2875_v42  ;;  %v2938_v42 = vld [vmem:[%s3664_s0 + $0x248] ss:$12 sps:$4 sm:$0xff]  }
  0x61   :  { %1044 = vmatmul.mubr.bf16.gmra.mrb[16].mxu0 %v2852_v43  ;;  %1236 = vmatmul.mubr.bf16.gmra.mrb[16].mxu1 %v2853_v44  ;;  %v2939_v43 = vld [vmem:[%s3664_s0 + $0x1e0] ss:$12 sps:$4 sm:$0xff]  }
  0x62   :  { %1051 = vmatprep.mubr.bf16.mxu0 %v2855_v45  ;;  %1243 = vmatprep.mubr.bf16.mxu1 %v2857_v46  ;;  %v2940_v44 = vld [vmem:[%s3664_s0 + $0x260] ss:$12 sps:$4 sm:$0xff]   ;;  %v2941_v45 = vld [vmem:[%s3664_s0 + $0x1fc] ss:$12 sps:$4 sm:$0xff]   ;;  %v2943_v46 = vld [vmem:[%s3664_s0 + $0x278] ss:$12 sps:$4 sm:$0xff]  }
  0x69   :  { %1052 = vmatmul.mubr.bf16.gmra.mrb[20].mxu0 %v2859_v47  ;;  %1244 = vmatmul.mubr.bf16.gmra.mrb[20].mxu1 %v2860_v48  ;;  %v2944_v47 = vld [vmem:[%s3664_s0 + $0x1f8] ss:$12 sps:$4 sm:$0xff]   ;;  %v2945_v48 = vld [vmem:[%s3664_s0 + $0x290] ss:$12 sps:$4 sm:$0xff]  }
  0x6a   :  { %1059 = vmatprep.mubr.bf16.mxu0 %v2862_v49  ;;  %1251 = vmatprep.mubr.bf16.mxu1 %v2864_v50  ;;  %v2946_v49 = vld [vmem:[%s3664_s0 + $0x214] ss:$12 sps:$4 sm:$0xff]  }
  0x6b   :  { %v2948_v50 = vld [vmem:[%s3664_s0 + $0x2a8] ss:$12 sps:$4 sm:$0xff]  }
  0x71   :  { %1060 = vmatmul.mubr.bf16.gmra.mrb[24].mxu0 %v2866_v51  ;;  %1252 = vmatmul.mubr.bf16.gmra.mrb[24].mxu1 %v2867_v52  ;;  %v2949_v51 = vld [vmem:[%s3664_s0 + $0x210] ss:$12 sps:$4 sm:$0xff]   ;;  %v2950_v52 = vld [vmem:[%s3664_s0 + $0x2c0] ss:$12 sps:$4 sm:$0xff]  }
  0x72   :  { %1067 = vmatprep.mubr.bf16.mxu0 %v2869_v53  ;;  %1259 = vmatprep.mubr.bf16.mxu1 %v2871_v54  ;;  %v2951_v53 = vld [vmem:[%s3664_s0 + $0x22c] ss:$12 sps:$4 sm:$0xff]  }
  0x73   :  { %v2953_v54 = vld [vmem:[%s3664_s0 + $0x2d8] ss:$12 sps:$4 sm:$0xff]  }
  0x79   :  { %1068 = vmatmul.mubr.bf16.gmra.mrb[28].mxu0 %v2873_v55  ;;  %1260 = vmatmul.mubr.bf16.gmra.mrb[28].mxu1 %v2874_v56  ;;  %v2954_v55 = vld [vmem:[%s3664_s0 + $0x228] ss:$12 sps:$4 sm:$0xff]   ;;  %v2955_v56 = vld [vmem:[%s3664_s0 + $0x2f0] ss:$12 sps:$4 sm:$0xff]  }
  0x7a   :  { %1075 = vmatprep.mubr.bf16.mxu0 %v2876_v57  ;;  %2707 = vmatprep.mubr.bf16.mxu1 %v2878_v58 }
  0x81   :  { %1076 = vmatmul.mubr.bf16.gmra.mrb[32].mxu0 %v2879_v59  ;;  %2708 = vmatmul.mubr.bf16.vlgmr.msra.gmra.mrb[32].mxu1 %v2880_v60 }
  0x82   :  { %1083 = vmatprep.mubr.bf16.mxu0 %v2881_v61  ;;  %2711 = vmatprep.mubr.bf16.mxu1 %v2883_v62 }
  0x89   :  { %1084 = vmatmul.mubr.bf16.gmra.mrb[36].mxu0 %v2884_v63  ;;  %2712 = vmatmul.mubr.bf16.gmra.mrb[36].mxu1 %v2885_v0 }
  0x8a   :  { %1091 = vmatprep.mubr.bf16.mxu0 %v2886_v1  ;;  %2715 = vmatprep.mubr.bf16.mxu1 %v2888_v2 }
  0x91   :  { %1092 = vmatmul.mubr.bf16.gmra.mrb[40].mxu0 %v2889_v3  ;;  %2716 = vmatmul.mubr.bf16.gmra.mrb[40].mxu1 %v2890_v4 }
  0x92   :  { %1099 = vmatprep.mubr.bf16.mxu0 %v2891_v5  ;;  %2719 = vmatprep.mubr.bf16.mxu1 %v2893_v6 }
  0x99   :  { %1100 = vmatmul.mubr.bf16.gmra.mrb[44].mxu0 %v2894_v7  ;;  %2720 = vmatmul.mubr.bf16.gmra.mrb[44].mxu1 %v2895_v8 }
  0x9a   :  { %1107 = vmatprep.mubr.bf16.mxu0 %v2896_v9  ;;  %2723 = vmatprep.mubr.bf16.mxu1 %v2898_v10 }
  0xa1   :  { %1108 = vmatmul.mubr.bf16.gmra.mrb[48].mxu0 %v2899_v11  ;;  %2724 = vmatmul.mubr.bf16.gmra.mrb[48].mxu1 %v2900_v12 }
  0xa2   :  { %1115 = vmatprep.mubr.bf16.mxu0 %v2901_v13  ;;  %2727 = vmatprep.mubr.bf16.mxu1 %v2903_v14 }
  0xa9   :  { %1116 = vmatmul.mubr.bf16.gmra.mrb[52].mxu0 %v2904_v15  ;;  %2728 = vmatmul.mubr.bf16.gmra.mrb[52].mxu1 %v2905_v16 }
  0xaa   :  { %1123 = vmatprep.mubr.bf16.mxu0 %v2906_v17  ;;  %2731 = vmatprep.mubr.bf16.mxu1 %v2908_v18 }
  0xb1   :  { %1124 = vmatmul.mubr.bf16.gmra.mrb[56].mxu0 %v2909_v19  ;;  %2732 = vmatmul.mubr.bf16.gmra.mrb[56].mxu1 %v2910_v20 }
  0xb2   :  { %1131 = vmatprep.mubr.bf16.mxu0 %v2911_v21  ;;  %2735 = vmatprep.mubr.bf16.mxu1 %v2913_v22 }
  0xb9   :  { %1132 = vmatmul.mubr.bf16.gmra.mrb[60].mxu0 %v2914_v23  ;;  %2736 = vmatmul.mubr.bf16.gmra.mrb[60].mxu1 %v2915_v24 }
  0xba   :  { %1139 = vmatprep.mubr.bf16.mxu0 %v2916_v25  ;;  %2739 = vmatprep.mubr.bf16.mxu1 %v2918_v26 }
  0xc1   :  { %1140 = vmatmul.mubr.bf16.gmra.mrb[64].mxu0 %v2919_v27  ;;  %2740 = vmatmul.mubr.bf16.gmra.mrb[64].mxu1 %v2920_v28 }
  0xc2   :  { %1147 = vmatprep.mubr.bf16.mxu0 %v2921_v29  ;;  %2743 = vmatprep.mubr.bf16.mxu1 %v2923_v30 }
  0xc9   :  { %1148 = vmatmul.mubr.bf16.gmra.mrb[68].mxu0 %v2924_v31  ;;  %2744 = vmatmul.mubr.bf16.gmra.mrb[68].mxu1 %v2925_v32 }
  0xca   :  { %1155 = vmatprep.mubr.bf16.mxu0 %v2926_v33  ;;  %2747 = vmatprep.mubr.bf16.mxu1 %v2928_v34 }
  0xd1   :  { %1156 = vmatmul.mubr.bf16.gmra.mrb[72].mxu0 %v2929_v35  ;;  %2748 = vmatmul.mubr.bf16.gmra.mrb[72].mxu1 %v2930_v36 }
  0xd2   :  { %1163 = vmatprep.mubr.bf16.mxu0 %v2931_v37  ;;  %2751 = vmatprep.mubr.bf16.mxu1 %v2933_v38 }
  0xd9   :  { %1164 = vmatmul.mubr.bf16.gmra.mrb[76].mxu0 %v2934_v39  ;;  %2752 = vmatmul.mubr.bf16.gmra.mrb[76].mxu1 %v2935_v40 }
  0xda   :  { %1171 = vmatprep.mubr.bf16.mxu0 %v2936_v41  ;;  %2755 = vmatprep.mubr.bf16.mxu1 %v2938_v42 }
  0xe1   :  { %1172 = vmatmul.mubr.bf16.gmra.mrb[80].mxu0 %v2939_v43  ;;  %2756 = vmatmul.mubr.bf16.gmra.mrb[80].mxu1 %v2940_v44 }
  0xe2   :  { %1179 = vmatprep.mubr.bf16.mxu0 %v2941_v45  ;;  %2759 = vmatprep.mubr.bf16.mxu1 %v2943_v46 }
  0xe9   :  { %1180 = vmatmul.mubr.bf16.gmra.mrb[84].mxu0 %v2944_v47  ;;  %2760 = vmatmul.mubr.bf16.gmra.mrb[84].mxu1 %v2945_v48 }
  0xea   :  { %1187 = vmatprep.mubr.bf16.mxu0 %v2946_v49  ;;  %2763 = vmatprep.mubr.bf16.mxu1 %v2948_v50 }
  0xf1   :  { %1188 = vmatmul.mubr.bf16.gmra.mrb[88].mxu0 %v2949_v51  ;;  %2764 = vmatmul.mubr.bf16.gmra.mrb[88].mxu1 %v2950_v52 }
  0xf2   :  { %1195 = vmatprep.mubr.bf16.mxu0 %v2951_v53  ;;  %2767 = vmatprep.mubr.bf16.mxu1 %v2953_v54 }
  0xf9   :  { %1196 = vmatmul.mubr.bf16.gmra.mrb[92].mxu0 %v2954_v55  ;;  %2768 = vmatmul.mubr.bf16.gmra.mrb[92].mxu1 %v2955_v56 }
 0x114   :  { %v3369_v57 = vpop.f32.mrb[0].mxu0  ;;  %v3371_v58 = vpop.f32.mrb[0].mxu1 }
 0x115   :  { %v1015_v59 = vpop.f32.mrb[1].mxu0  ;;  %v1207_v60 = vpop.f32.mrb[1].mxu1 }
 0x116   :  { %v3373_v61 = vpop.f32.mrb[2].mxu0  ;;  %v3375_v62 = vpop.f32.mrb[2].mxu1 }
 0x117   :  { %v1018_v63 = vpop.f32.mrb[3].mxu0  ;;  %v1210_v0 = vpop.f32.mrb[3].mxu1 }
 0x118   :  { %v3436_v63 = vld [vmem:[%s3665_s2] ss:$0 sm:$0xff] }
 0x11c   :  { %v1021_v1 = vpop.f32.mrb[4].mxu0  ;;  %v3377_v2 = vpop.f32.mrb[4].mxu1 }
 0x11d   :  { %v1023_v3 = vpop.f32.mrb[5].mxu0  ;;  %v1215_v4 = vpop.f32.mrb[5].mxu1 }
 0x11e   :  { %v3379_v5 = vpop.f32.mrb[6].mxu0  ;;  %v3381_v6 = vpop.f32.mrb[6].mxu1 }
 0x11f   :  { %v1026_v7 = vpop.f32.mrb[7].mxu0  ;;  %v1218_v8 = vpop.f32.mrb[7].mxu1 }
 0x124   :  { %v3383_v9 = vpop.f32.mrb[8].mxu0  ;;  %v3385_v10 = vpop.f32.mrb[8].mxu1 }
 0x125   :  { %v1031_v11 = vpop.f32.mrb[9].mxu0  ;;  %v1223_v12 = vpop.f32.mrb[9].mxu1 }
 0x126   :  { %v3387_v13 = vpop.f32.mrb[10].mxu0  ;;  %v3389_v14 = vpop.f32.mrb[10].mxu1 }
 0x127   :  { %v1034_v15 = vpop.f32.mrb[11].mxu0  ;;  %v1226_v16 = vpop.f32.mrb[11].mxu1 }
 0x12c   :  { %v3391_v17 = vpop.f32.mrb[12].mxu0  ;;  %v3393_v18 = vpop.f32.mrb[12].mxu1 }
 0x12d   :  { %v1039_v19 = vpop.f32.mrb[13].mxu0  ;;  %v1231_v20 = vpop.f32.mrb[13].mxu1 }
 0x12e   :  { %v3395_v21 = vpop.f32.mrb[14].mxu0  ;;  %v3397_v22 = vpop.f32.mrb[14].mxu1 }
 0x12f   :  { %v1042_v23 = vpop.f32.mrb[15].mxu0  ;;  %v1234_v24 = vpop.f32.mrb[15].mxu1 }
 0x134   :  { %v3399_v25 = vpop.f32.mrb[16].mxu0  ;;  %v3401_v26 = vpop.f32.mrb[16].mxu1 }
 0x135   :  { %v1047_v27 = vpop.f32.mrb[17].mxu0  ;;  %v1239_v28 = vpop.f32.mrb[17].mxu1 }
 0x136   :  { %v3403_v29 = vpop.f32.mrb[18].mxu0  ;;  %v3405_v30 = vpop.f32.mrb[18].mxu1 }
 0x137   :  { %v1050_v31 = vpop.f32.mrb[19].mxu0  ;;  %v1242_v32 = vpop.f32.mrb[19].mxu1 }
 0x13c   :  { %v3407_v33 = vpop.f32.mrb[20].mxu0  ;;  %v3409_v34 = vpop.f32.mrb[20].mxu1 }
 0x13d   :  { %v1055_v35 = vpop.f32.mrb[21].mxu0  ;;  %v1247_v36 = vpop.f32.mrb[21].mxu1 }
 0x13e   :  { %v3411_v37 = vpop.f32.mrb[22].mxu0  ;;  %v3413_v38 = vpop.f32.mrb[22].mxu1 }
 0x13f   :  { %v1058_v39 = vpop.f32.mrb[23].mxu0  ;;  %v1250_v40 = vpop.f32.mrb[23].mxu1 }
 0x144   :  { %v3415_v41 = vpop.f32.mrb[24].mxu0  ;;  %v3417_v42 = vpop.f32.mrb[24].mxu1 }
 0x145   :  { %v1063_v43 = vpop.f32.mrb[25].mxu0  ;;  %v1255_v44 = vpop.f32.mrb[25].mxu1 }
 0x146   :  { %v3419_v45 = vpop.f32.mrb[26].mxu0  ;;  %v3421_v46 = vpop.f32.mrb[26].mxu1 }
 0x147   :  { %v1066_v47 = vpop.f32.mrb[27].mxu0  ;;  %v1258_v48 = vpop.f32.mrb[27].mxu1 }
 0x14c   :  { %v3423_v49 = vpop.f32.mrb[28].mxu0  ;;  %v3425_v50 = vpop.f32.mrb[28].mxu1 }
 0x14d   :  { %v1071_v51 = vpop.f32.mrb[29].mxu0  ;;  %v1263_v52 = vpop.f32.mrb[29].mxu1 }
 0x14e   :  { %v3427_v53 = vpop.f32.mrb[30].mxu0  ;;  %v3429_v54 = vpop.f32.mrb[30].mxu1 }
 0x14f   :  { %v1074_v55 = vpop.f32.mrb[31].mxu0  ;;  %v1266_v56 = vpop.f32.mrb[31].mxu1 }
 0x154   :  { %v3431_v59 = vpop.f32.mrb[32].mxu0  ;;  %v2709_v60 = vpop.f32.mrb[32].mxu1 }
 0x155   :  { %v1311_v0 = vadd.f32 %v2709_v60, %v1021_v1  ;;  %v1079_v3 = vpop.f32.mrb[33].mxu0  ;;  %v1302_v4 = vpop.f32.mrb[33].mxu1 }
 0x156   :  { %v1303_v7 = vadd.f32 %v1302_v4, %v3369_v57  ;;  %v3439_v8 = vpop.f32.mrb[34].mxu0  ;;  %v2710_v11 = vpop.f32.mrb[34].mxu1 }
 0x157   :  { %v1761_v12 = vadd.f32 %v3436_v63, %v1311_v0  ;;  %v1314_v15 = vadd.f32 %v2710_v11, %v3379_v5  ;;  %v1082_v16 = vpop.f32.mrb[35].mxu0  ;;  %v1305_v19 = vpop.f32.mrb[35].mxu1 }
 0x158   :  { %v1759_v20 = vadd.f32 %v3436_v63, %v1303_v7  ;;  %v1306_v23 = vadd.f32 %v1305_v19, %v3373_v61 }
 0x159   :  { %v1762_v24 = vadd.f32 %v3436_v63, %v1314_v15  ;;  %v1825_v27 = vmax.f32 %v1761_v12, 0.0 }
 0x15a   :  { %v1760_v1 = vadd.f32 %v3436_v63, %v1306_v23  ;;  %v1823_v57 = vmax.f32 %v1759_v20, 0.0 }
 0x15b   :  { %v1826_v28 = vmax.f32 %v1762_v24, 0.0 }
 0x15c   :  { %v1824_v31 = vmax.f32 %v1760_v1, 0.0  ;;  %v3447_v32 = vpop.f32.mrb[36].mxu0  ;;  %v2713_v35 = vpop.f32.mrb[36].mxu1 }
 0x15d   :  { %v2468_v36 = vpack.c.bf16 %v1826_v28, %v1825_v27  ;;  %v1327_v5 = vadd.f32 %v2713_v35, %v3391_v17  ;;  %v1087_v39 = vpop.f32.mrb[37].mxu0  ;;  %v1318_v40 = vpop.f32.mrb[37].mxu1 }
 0x15e   :  { %v2463_v43 = vpack.c.bf16 %v1824_v31, %v1823_v57  ;;  %v1319_v44 = vadd.f32 %v1318_v40, %v3383_v9  ;;  %v3451_v61 = vpop.f32.mrb[38].mxu0  ;;  %v2714_v47 = vpop.f32.mrb[38].mxu1 }
 0x15f   :  { %2620 = vst [vmem:[%s3666_s3 + $0x8] sm:$0xff] %v2468_v36   ;;  %v1765_v48 = vadd.f32 %v3436_v63, %v1327_v5  ;;  %v1330_v51 = vadd.f32 %v2714_v47, %v3395_v21  ;;  %v1090_v52 = vpop.f32.mrb[39].mxu0  ;;  %v1321_v55 = vpop.f32.mrb[39].mxu1 }
 0x160   :  { %2464 = vst [vmem:[%s3666_s3] sm:$0xff] %v2463_v43   ;;  %v1763_v17 = vadd.f32 %v3436_v63, %v1319_v44  ;;  %v1322_v9 = vadd.f32 %v1321_v55, %v3387_v13 }
 0x161   :  { %v1766_v56 = vadd.f32 %v3436_v63, %v1330_v51  ;;  %v1829_v0 = vmax.f32 %v1765_v48, 0.0 }
 0x162   :  { %v1764_v60 = vadd.f32 %v3436_v63, %v1322_v9  ;;  %v1827_v4 = vmax.f32 %v1763_v17, 0.0 }
 0x163   :  { %v1830_v3 = vmax.f32 %v1766_v56, 0.0 }
 0x164   :  { %v1828_v7 = vmax.f32 %v1764_v60, 0.0  ;;  %v3465_v11 = vpop.f32.mrb[40].mxu0  ;;  %v2717_v21 = vpop.f32.mrb[40].mxu1 }
 0x165   :  { %v2478_v12 = vpack.c.bf16 %v1830_v3, %v1829_v0  ;;  %v1343_v15 = vadd.f32 %v2717_v21, %v3407_v33  ;;  %v1095_v16 = vpop.f32.mrb[41].mxu0  ;;  %v1334_v19 = vpop.f32.mrb[41].mxu1 }
 0x166   :  { %v2473_v20 = vpack.c.bf16 %v1828_v7, %v1827_v4  ;;  %v1335_v23 = vadd.f32 %v1334_v19, %v3399_v25  ;;  %v3469_v13 = vpop.f32.mrb[42].mxu0  ;;  %v2718_v24 = vpop.f32.mrb[42].mxu1 }
 0x167   :  { %2622 = vst [vmem:[%s3666_s3 + $0x18] sm:$0xff] %v2478_v12   ;;  %v1769_v1 = vadd.f32 %v3436_v63, %v1343_v15  ;;  %v1346_v27 = vadd.f32 %v2718_v24, %v3411_v37  ;;  %v1098_v28 = vpop.f32.mrb[43].mxu0  ;;  %v1337_v57 = vpop.f32.mrb[43].mxu1 }
 0x168   :  { %2621 = vst [vmem:[%s3666_s3 + $0x10] sm:$0xff] %v2473_v20   ;;  %v1767_v33 = vadd.f32 %v3436_v63, %v1335_v23  ;;  %v1338_v25 = vadd.f32 %v1337_v57, %v3403_v29 }
 0x169   :  { %v1770_v31 = vadd.f32 %v3436_v63, %v1346_v27  ;;  %v1833_v36 = vmax.f32 %v1769_v1, 0.0 }
 0x16a   :  { %v1768_v35 = vadd.f32 %v3436_v63, %v1338_v25  ;;  %v1831_v39 = vmax.f32 %v1767_v33, 0.0 }
 0x16b   :  { %v1834_v5 = vmax.f32 %v1770_v31, 0.0 }
 0x16c   :  { %v1832_v40 = vmax.f32 %v1768_v35, 0.0  ;;  %v1101_v43 = vpop.f32.mrb[44].mxu0  ;;  %v2721_v37 = vpop.f32.mrb[44].mxu1 }
 0x16d   :  { %v2488_v44 = vpack.c.bf16 %v1834_v5, %v1833_v36  ;;  %v1359_v47 = vadd.f32 %v2721_v37, %v3423_v49  ;;  %v1103_v48 = vpop.f32.mrb[45].mxu0  ;;  %v1350_v51 = vpop.f32.mrb[45].mxu1 }
 0x16e   :  { %v2483_v52 = vpack.c.bf16 %v1832_v40, %v1831_v39  ;;  %v1351_v55 = vadd.f32 %v1350_v51, %v3415_v41  ;;  %v1104_v17 = vpop.f32.mrb[46].mxu0  ;;  %v2722_v29 = vpop.f32.mrb[46].mxu1 }
 0x16f   :  { %2624 = vst [vmem:[%s3666_s3 + $0x28] sm:$0xff] %v2488_v44   ;;  %v1773_v9 = vadd.f32 %v3436_v63, %v1359_v47  ;;  %v1362_v56 = vadd.f32 %v2722_v29, %v3427_v53  ;;  %v1106_v60 = vpop.f32.mrb[47].mxu0  ;;  %v1353_v0 = vpop.f32.mrb[47].mxu1 }
 0x170   :  { %2623 = vst [vmem:[%s3666_s3 + $0x20] sm:$0xff] %v2483_v52   ;;  %v1771_v49 = vadd.f32 %v3436_v63, %v1351_v55  ;;  %v1354_v41 = vadd.f32 %v1353_v0, %v3419_v45 }
 0x171   :  { %v1774_v3 = vadd.f32 %v3436_v63, %v1362_v56  ;;  %v1837_v7 = vmax.f32 %v1773_v9, 0.0 }
 0x172   :  { %v1772_v4 = vadd.f32 %v3436_v63, %v1354_v41  ;;  %v1835_v12 = vmax.f32 %v1771_v49, 0.0 }
 0x173   :  { %v1838_v21 = vmax.f32 %v1774_v3, 0.0 }
 0x174   :  { %v1836_v15 = vmax.f32 %v1772_v4, 0.0  ;;  %v1109_v16 = vpop.f32.mrb[48].mxu0  ;;  %v2725_v53 = vpop.f32.mrb[48].mxu1 }
 0x175   :  { %v2498_v19 = vpack.c.bf16 %v1838_v21, %v1837_v7  ;;  %v1375_v20 = vadd.f32 %v2725_v53, %v3447_v32  ;;  %v1111_v23 = vpop.f32.mrb[49].mxu0  ;;  %v1366_v24 = vpop.f32.mrb[49].mxu1 }
 0x176   :  { %v2493_v1 = vpack.c.bf16 %v1836_v15, %v1835_v12  ;;  %v1367_v27 = vadd.f32 %v1366_v24, %v3431_v59  ;;  %v1112_v28 = vpop.f32.mrb[50].mxu0  ;;  %v2726_v45 = vpop.f32.mrb[50].mxu1 }
 0x177   :  { %2626 = vst [vmem:[%s3666_s3 + $0x38] sm:$0xff] %v2498_v19   ;;  %v1777_v57 = vadd.f32 %v3436_v63, %v1375_v20  ;;  %v1378_v33 = vadd.f32 %v2726_v45, %v3451_v61  ;;  %v1114_v25 = vpop.f32.mrb[51].mxu0  ;;  %v1369_v31 = vpop.f32.mrb[51].mxu1 }
 0x178   :  { %2625 = vst [vmem:[%s3666_s3 + $0x30] sm:$0xff] %v2493_v1   ;;  %v1775_v32 = vadd.f32 %v3436_v63, %v1367_v27  ;;  %v1370_v59 = vadd.f32 %v1369_v31, %v3439_v8 }
 0x179   :  { %v1778_v35 = vadd.f32 %v3436_v63, %v1378_v33  ;;  %v1841_v5 = vmax.f32 %v1777_v57, 0.0 }
 0x17a   :  { %v1776_v36 = vadd.f32 %v3436_v63, %v1370_v59  ;;  %v1839_v40 = vmax.f32 %v1775_v32, 0.0 }
 0x17b   :  { %v1842_v39 = vmax.f32 %v1778_v35, 0.0 }
 0x17c   :  { %v1840_v37 = vmax.f32 %v1776_v36, 0.0  ;;  %v1117_v44 = vpop.f32.mrb[52].mxu0  ;;  %v2729_v61 = vpop.f32.mrb[52].mxu1 }
 0x17d   :  { %v2508_v47 = vpack.c.bf16 %v1842_v39, %v1841_v5  ;;  %v1391_v48 = vadd.f32 %v2729_v61, %v1101_v43  ;;  %v1119_v51 = vpop.f32.mrb[53].mxu0  ;;  %v1382_v52 = vpop.f32.mrb[53].mxu1 }
 0x17e   :  { %v2503_v55 = vpack.c.bf16 %v1840_v37, %v1839_v40  ;;  %v1383_v29 = vadd.f32 %v1382_v52, %v3465_v11  ;;  %v1120_v9 = vpop.f32.mrb[54].mxu0  ;;  %v2730_v56 = vpop.f32.mrb[54].mxu1 }
 0x17f   :  { %2628 = vst [vmem:[%s3666_s3 + $0x48] sm:$0xff] %v2508_v47   ;;  %v1781_v8 = vadd.f32 %v3436_v63, %v1391_v48  ;;  %v1394_v60 = vadd.f32 %v2730_v56, %v1104_v17  ;;  %v1122_v0 = vpop.f32.mrb[55].mxu0  ;;  %v1385_v49 = vpop.f32.mrb[55].mxu1 }
 0x180   :  { %2627 = vst [vmem:[%s3666_s3 + $0x40] sm:$0xff] %v2503_v55   ;;  %v1779_v43 = vadd.f32 %v3436_v63, %v1383_v29  ;;  %v1386_v41 = vadd.f32 %v1385_v49, %v3469_v13 }
 0x181   :  { %v1782_v11 = vadd.f32 %v3436_v63, %v1394_v60  ;;  %v1845_v4 = vmax.f32 %v1781_v8, 0.0 }
 0x182   :  { %v1780_v3 = vadd.f32 %v3436_v63, %v1386_v41  ;;  %v1843_v21 = vmax.f32 %v1779_v43, 0.0 }
 0x183   :  { %v1846_v7 = vmax.f32 %v1782_v11, 0.0 }
 0x184   :  { %v1844_v12 = vmax.f32 %v1780_v3, 0.0  ;;  %v1125_v15 = vpop.f32.mrb[56].mxu0  ;;  %v2733_v17 = vpop.f32.mrb[56].mxu1 }
 0x185   :  { %v2518_v53 = vpack.c.bf16 %v1846_v7, %v1845_v4  ;;  %v1407_v19 = vadd.f32 %v2733_v17, %v1117_v44  ;;  %v1127_v20 = vpop.f32.mrb[57].mxu0  ;;  %v1398_v23 = vpop.f32.mrb[57].mxu1 }
 0x186   :  { %v2513_v24 = vpack.c.bf16 %v1844_v12, %v1843_v21  ;;  %v1399_v1 = vadd.f32 %v1398_v23, %v1109_v16  ;;  %v1128_v27 = vpop.f32.mrb[58].mxu0  ;;  %v2734_v45 = vpop.f32.mrb[58].mxu1 }
 0x187   :  { %2630 = vst [vmem:[%s3666_s3 + $0x58] sm:$0xff] %v2518_v53   ;;  %v1785_v13 = vadd.f32 %v3436_v63, %v1407_v19  ;;  %v1410_v57 = vadd.f32 %v2734_v45, %v1120_v9  ;;  %v1130_v33 = vpop.f32.mrb[59].mxu0  ;;  %v1401_v25 = vpop.f32.mrb[59].mxu1 }
 0x188   :  { %2629 = vst [vmem:[%s3666_s3 + $0x50] sm:$0xff] %v2513_v24   ;;  %v1783_v31 = vadd.f32 %v3436_v63, %v1399_v1  ;;  %v1402_v32 = vadd.f32 %v1401_v25, %v1112_v28 }
 0x189   :  { %v1786_v16 = vadd.f32 %v3436_v63, %v1410_v57  ;;  %v1849_v35 = vmax.f32 %v1785_v13, 0.0 }
 0x18a   :  { %v1784_v59 = vadd.f32 %v3436_v63, %v1402_v32  ;;  %v1847_v5 = vmax.f32 %v1783_v31, 0.0 }
 0x18b   :  { %v1850_v36 = vmax.f32 %v1786_v16, 0.0 }
 0x18c   :  { %v1848_v39 = vmax.f32 %v1784_v59, 0.0  ;;  %v1133_v40 = vpop.f32.mrb[60].mxu0  ;;  %v2737_v37 = vpop.f32.mrb[60].mxu1 }
 0x18d   :  { %v2528_v44 = vpack.c.bf16 %v1850_v36, %v1849_v35  ;;  %v1423_v61 = vadd.f32 %v2737_v37, %v1133_v40  ;;  %v1135_v47 = vpop.f32.mrb[61].mxu0  ;;  %v1414_v48 = vpop.f32.mrb[61].mxu1 }
 0x18e   :  { %v2523_v51 = vpack.c.bf16 %v1848_v39, %v1847_v5  ;;  %v1415_v52 = vadd.f32 %v1414_v48, %v1125_v15  ;;  %v1136_v55 = vpop.f32.mrb[62].mxu0  ;;  %v2738_v29 = vpop.f32.mrb[62].mxu1 }
 0x18f   :  { %2632 = vst [vmem:[%s3666_s3 + $0x68] sm:$0xff] %v2528_v44   ;;  %v1789_v28 = vadd.f32 %v3436_v63, %v1423_v61  ;;  %v1426_v9 = vadd.f32 %v2738_v29, %v1136_v55  ;;  %v1138_v56 = vpop.f32.mrb[63].mxu0  ;;  %v1417_v8 = vpop.f32.mrb[63].mxu1 }
 0x190   :  { %2631 = vst [vmem:[%s3666_s3 + $0x60] sm:$0xff] %v2523_v51   ;;  %v1787_v60 = vadd.f32 %v3436_v63, %v1415_v52  ;;  %v1418_v0 = vadd.f32 %v1417_v8, %v1128_v27 }
 0x191   :  { %v1790_v49 = vadd.f32 %v3436_v63, %v1426_v9  ;;  %v1853_v41 = vmax.f32 %v1789_v28, 0.0 }
 0x192   :  { %v1788_v43 = vadd.f32 %v3436_v63, %v1418_v0  ;;  %v1851_v3 = vmax.f32 %v1787_v60, 0.0 }
 0x193   :  { %v1854_v11 = vmax.f32 %v1790_v49, 0.0 }
 0x194   :  { %v1852_v4 = vmax.f32 %v1788_v43, 0.0  ;;  %v1141_v7 = vpop.f32.mrb[64].mxu0  ;;  %v2741_v21 = vpop.f32.mrb[64].mxu1 }
 0x195   :  { %v2538_v12 = vpack.c.bf16 %v1854_v11, %v1853_v41  ;;  %v1143_v15 = vpop.f32.mrb[65].mxu0  ;;  %v1430_v17 = vpop.f32.mrb[65].mxu1 }
 0x196   :  { %v2533_v53 = vpack.c.bf16 %v1852_v4, %v1851_v3  ;;  %v1431_v19 = vadd.f32 %v1430_v17, %v1141_v7  ;;  %v1144_v20 = vpop.f32.mrb[66].mxu0  ;;  %v2742_v23 = vpop.f32.mrb[66].mxu1 }
 0x197   :  { %2634 = vst [vmem:[%s3666_s3 + $0x78] sm:$0xff] %v2538_v12   ;;  %v1146_v24 = vpop.f32.mrb[67].mxu0  ;;  %v1433_v1 = vpop.f32.mrb[67].mxu1 }
 0x198   :  { %2633 = vst [vmem:[%s3666_s3 + $0x70] sm:$0xff] %v2533_v53   ;;  %v1791_v27 = vadd.f32 %v3436_v63, %v1431_v19  ;;  %v1434_v45 = vadd.f32 %v1433_v1, %v1144_v20 }
 0x19a   :  { %v1792_v13 = vadd.f32 %v3436_v63, %v1434_v45  ;;  %v1855_v57 = vmax.f32 %v1791_v27, 0.0 }
 0x19c   :  { %v1856_v33 = vmax.f32 %v1792_v13, 0.0  ;;  %v1149_v25 = vpop.f32.mrb[68].mxu0  ;;  %v2745_v31 = vpop.f32.mrb[68].mxu1 }
 0x19d   :  { %v1439_v32 = vadd.f32 %v2741_v21, %v1149_v25  ;;  %v1151_v16 = vpop.f32.mrb[69].mxu0  ;;  %v1446_v59 = vpop.f32.mrb[69].mxu1 }
 0x19e   :  { %v2543_v35 = vpack.c.bf16 %v1856_v33, %v1855_v57  ;;  %v1152_v36 = vpop.f32.mrb[70].mxu0  ;;  %v2746_v5 = vpop.f32.mrb[70].mxu1 }
 0x19f   :  { %v1793_v39 = vadd.f32 %v3436_v63, %v1439_v32  ;;  %v1442_v40 = vadd.f32 %v2742_v23, %v1152_v36  ;;  %v1154_v37 = vpop.f32.mrb[71].mxu0  ;;  %v1449_v44 = vpop.f32.mrb[71].mxu1 }
 0x1a0   :  { %2635 = vst [vmem:[%s3666_s3 + $0x80] sm:$0xff] %v2543_v35  }
 0x1a1   :  { %v1794_v61 = vadd.f32 %v3436_v63, %v1442_v40  ;;  %v1857_v47 = vmax.f32 %v1793_v39, 0.0 }
 0x1a3   :  { %v1858_v48 = vmax.f32 %v1794_v61, 0.0 }
 0x1a4   :  { %v1157_v51 = vpop.f32.mrb[72].mxu0  ;;  %v3556_v52 = vpop.f32.mrb[72].mxu1 }
 0x1a5   :  { %v2548_v55 = vpack.c.bf16 %v1858_v48, %v1857_v47  ;;  %v1447_v29 = vadd.f32 %v1446_v59, %v1157_v51  ;;  %v1159_v28 = vpop.f32.mrb[73].mxu0  ;;  %v1462_v9 = vpop.f32.mrb[73].mxu1 }
 0x1a6   :  { %v1160_v56 = vpop.f32.mrb[74].mxu0  ;;  %v3558_v8 = vpop.f32.mrb[74].mxu1 }
 0x1a7   :  { %2636 = vst [vmem:[%s3666_s3 + $0x88] sm:$0xff] %v2548_v55   ;;  %v1795_v60 = vadd.f32 %v3436_v63, %v1447_v29  ;;  %v1450_v0 = vadd.f32 %v1449_v44, %v1160_v56  ;;  %v1162_v49 = vpop.f32.mrb[75].mxu0  ;;  %v1465_v43 = vpop.f32.mrb[75].mxu1 }
 0x1a9   :  { %v1796_v41 = vadd.f32 %v3436_v63, %v1450_v0  ;;  %v1859_v11 = vmax.f32 %v1795_v60, 0.0 }
 0x1ab   :  { %v1860_v3 = vmax.f32 %v1796_v41, 0.0 }
 0x1ac   :  { %v1165_v4 = vpop.f32.mrb[76].mxu0  ;;  %v3565_v7 = vpop.f32.mrb[76].mxu1 }
 0x1ad   :  { %v2553_v21 = vpack.c.bf16 %v1860_v3, %v1859_v11  ;;  %v1455_v12 = vadd.f32 %v2745_v31, %v1165_v4  ;;  %v1167_v15 = vpop.f32.mrb[77].mxu0  ;;  %v3567_v17 = vpop.f32.mrb[77].mxu1 }
 0x1ae   :  { %v1168_v53 = vpop.f32.mrb[78].mxu0  ;;  %v3569_v19 = vpop.f32.mrb[78].mxu1 }
 0x1af   :  { %2637 = vst [vmem:[%s3666_s3 + $0x90] sm:$0xff] %v2553_v21   ;;  %v1797_v20 = vadd.f32 %v3436_v63, %v1455_v12  ;;  %v1458_v23 = vadd.f32 %v2746_v5, %v1168_v53  ;;  %v1170_v24 = vpop.f32.mrb[79].mxu0  ;;  %v3575_v1 = vpop.f32.mrb[79].mxu1 }
 0x1b1   :  { %v1798_v27 = vadd.f32 %v3436_v63, %v1458_v23  ;;  %v1861_v45 = vmax.f32 %v1797_v20, 0.0 }
 0x1b3   :  { %v1862_v13 = vmax.f32 %v1798_v27, 0.0 }
 0x1b4   :  { %v1173_v57 = vpop.f32.mrb[80].mxu0  ;;  %v2757_v33 = vpop.f32.mrb[80].mxu1 }
 0x1b5   :  { %v2558_v25 = vpack.c.bf16 %v1862_v13, %v1861_v45  ;;  %v1463_v31 = vadd.f32 %v1462_v9, %v1173_v57  ;;  %v1503_v32 = vadd.f32 %v2757_v33, %v3377_v2  ;;  %v1175_v16 = vpop.f32.mrb[81].mxu0  ;;  %v1494_v59 = vpop.f32.mrb[81].mxu1 }
 0x1b6   :  { %v1495_v35 = vadd.f32 %v1494_v59, %v3371_v58  ;;  %v1176_v36 = vpop.f32.mrb[82].mxu0  ;;  %v2758_v39 = vpop.f32.mrb[82].mxu1 }
 0x1b7   :  { %2638 = vst [vmem:[%s3666_s3 + $0x98] sm:$0xff] %v2558_v25   ;;  %v1799_v5 = vadd.f32 %v3436_v63, %v1463_v31  ;;  %v1809_v40 = vadd.f32 %v3436_v63, %v1503_v32  ;;  %v1466_v37 = vadd.f32 %v1465_v43, %v1176_v36  ;;  %v1506_v44 = vadd.f32 %v2758_v39, %v3381_v6  ;;  %v1178_v61 = vpop.f32.mrb[83].mxu0  ;;  %v1497_v47 = vpop.f32.mrb[83].mxu1 }
 0x1b8   :  { %v1807_v2 = vadd.f32 %v3436_v63, %v1495_v35  ;;  %v1498_v48 = vadd.f32 %v1497_v47, %v3375_v62 }
 0x1b9   :  { %v1800_v58 = vadd.f32 %v3436_v63, %v1466_v37  ;;  %v1810_v51 = vadd.f32 %v3436_v63, %v1506_v44  ;;  %v1863_v29 = vmax.f32 %v1799_v5, 0.0  ;;  %v1873_v28 = vmax.f32 %v1809_v40, 0.0 }
 0x1ba   :  { %v1808_v55 = vadd.f32 %v3436_v63, %v1498_v48  ;;  %v1871_v60 = vmax.f32 %v1807_v2, 0.0 }
 0x1bb   :  { %v1864_v9 = vmax.f32 %v1800_v58, 0.0  ;;  %v1874_v56 = vmax.f32 %v1810_v51, 0.0 }
 0x1bc   :  { %v1872_v0 = vmax.f32 %v1808_v55, 0.0  ;;  %v1181_v49 = vpop.f32.mrb[84].mxu0  ;;  %v2761_v6 = vpop.f32.mrb[84].mxu1 }
 0x1bd   :  { %v2563_v43 = vpack.c.bf16 %v1864_v9, %v1863_v29  ;;  %v2588_v41 = vpack.c.bf16 %v1874_v56, %v1873_v28  ;;  %v1471_v11 = vadd.f32 %v3556_v52, %v1181_v49  ;;  %v1519_v62 = vadd.f32 %v2761_v6, %v3393_v18  ;;  %v1183_v3 = vpop.f32.mrb[85].mxu0  ;;  %v1510_v4 = vpop.f32.mrb[85].mxu1 }
 0x1be   :  { %v2583_v21 = vpack.c.bf16 %v1872_v0, %v1871_v60  ;;  %v1511_v12 = vadd.f32 %v1510_v4, %v3385_v10  ;;  %v1184_v15 = vpop.f32.mrb[86].mxu0  ;;  %v2762_v53 = vpop.f32.mrb[86].mxu1 }
 0x1bf   :  { %2639 = vst [vmem:[%s3666_s3 + $0xa0] sm:$0xff] %v2563_v43   ;;  %2644 = vst [vmem:[%s3666_s3 + $0xc8] sm:$0xff] %v2588_v41   ;;  %v1801_v20 = vadd.f32 %v3436_v63, %v1471_v11  ;;  %v1813_v52 = vadd.f32 %v3436_v63, %v1519_v62  ;;  %v1474_v18 = vadd.f32 %v3558_v8, %v1184_v15  ;;  %v1186_v24 = vpop.f32.mrb[87].mxu0  ;;  %v1513_v10 = vpop.f32.mrb[87].mxu1 }
 0x1c0   :  { %v1522_v23 = vadd.f32 %v2762_v53, %v3397_v22  ;;  %2643 = vst [vmem:[%s3666_s3 + $0xc0] sm:$0xff] %v2583_v21   ;;  %v1811_v27 = vadd.f32 %v3436_v63, %v1511_v12  ;;  %v1514_v45 = vadd.f32 %v1513_v10, %v3389_v14 }
 0x1c1   :  { %v1802_v13 = vadd.f32 %v3436_v63, %v1474_v18  ;;  %v1865_v25 = vmax.f32 %v1801_v20, 0.0  ;;  %v1877_v8 = vmax.f32 %v1813_v52, 0.0 }
 0x1c2   :  { %v1814_v57 = vadd.f32 %v3436_v63, %v1522_v23  ;;  %v1812_v33 = vadd.f32 %v3436_v63, %v1514_v45  ;;  %v1875_v32 = vmax.f32 %v1811_v27, 0.0 }
 0x1c3   :  { %v1866_v31 = vmax.f32 %v1802_v13, 0.0 }
 0x1c4   :  { %v1878_v22 = vmax.f32 %v1814_v57, 0.0  ;;  %v1876_v16 = vmax.f32 %v1812_v33, 0.0  ;;  %v1189_v59 = vpop.f32.mrb[88].mxu0  ;;  %v2765_v35 = vpop.f32.mrb[88].mxu1 }
 0x1c5   :  { %v2568_v36 = vpack.c.bf16 %v1866_v31, %v1865_v25  ;;  %v1479_v5 = vadd.f32 %v3567_v17, %v1189_v59  ;;  %v1535_v14 = vadd.f32 %v2765_v35, %v3409_v34  ;;  %v1191_v40 = vpop.f32.mrb[89].mxu0  ;;  %v1526_v37 = vpop.f32.mrb[89].mxu1 }
 0x1c6   :  { %v2598_v39 = vpack.c.bf16 %v1878_v22, %v1877_v8  ;;  %v2593_v44 = vpack.c.bf16 %v1876_v16, %v1875_v32  ;;  %v1527_v61 = vadd.f32 %v1526_v37, %v3401_v26  ;;  %v1192_v47 = vpop.f32.mrb[90].mxu0  ;;  %v2766_v2 = vpop.f32.mrb[90].mxu1 }
 0x1c7   :  { %2640 = vst [vmem:[%s3666_s3 + $0xa8] sm:$0xff] %v2568_v36   ;;  %v1803_v48 = vadd.f32 %v3436_v63, %v1479_v5  ;;  %v1817_v17 = vadd.f32 %v3436_v63, %v1535_v14  ;;  %v1482_v34 = vadd.f32 %v3575_v1, %v1192_v47  ;;  %v1538_v58 = vadd.f32 %v2766_v2, %v3413_v38  ;;  %v1194_v51 = vpop.f32.mrb[91].mxu0  ;;  %v1529_v26 = vpop.f32.mrb[91].mxu1 }
 0x1c8   :  { %2646 = vst [vmem:[%s3666_s3 + $0xd8] sm:$0xff] %v2598_v39   ;;  %2645 = vst [vmem:[%s3666_s3 + $0xd0] sm:$0xff] %v2593_v44   ;;  %v1815_v55 = vadd.f32 %v3436_v63, %v1527_v61  ;;  %v1530_v29 = vadd.f32 %v1529_v26, %v3405_v30 }
 0x1c9   :  { %v1804_v28 = vadd.f32 %v3436_v63, %v1482_v34  ;;  %v1818_v9 = vadd.f32 %v3436_v63, %v1538_v58  ;;  %v1867_v60 = vmax.f32 %v1803_v48, 0.0  ;;  %v1881_v1 = vmax.f32 %v1817_v17, 0.0 }
 0x1ca   :  { %v1816_v56 = vadd.f32 %v3436_v63, %v1530_v29  ;;  %v1879_v49 = vmax.f32 %v1815_v55, 0.0 }
 0x1cb   :  { %v1868_v0 = vmax.f32 %v1804_v28, 0.0  ;;  %v1882_v38 = vmax.f32 %v1818_v9, 0.0 }
 0x1cc   :  { %v1880_v6 = vmax.f32 %v1816_v56, 0.0  ;;  %v1197_v43 = vpop.f32.mrb[92].mxu0  ;;  %v2769_v41 = vpop.f32.mrb[92].mxu1 }
 0x1cd   :  { %v2573_v11 = vpack.c.bf16 %v1868_v0, %v1867_v60  ;;  %v2608_v62 = vpack.c.bf16 %v1882_v38, %v1881_v1  ;;  %v1487_v3 = vadd.f32 %v3565_v7, %v1197_v43  ;;  %v1551_v30 = vadd.f32 %v2769_v41, %v3425_v50  ;;  %v1199_v4 = vpop.f32.mrb[93].mxu0  ;;  %v1542_v21 = vpop.f32.mrb[93].mxu1 }
 0x1ce   :  { %v2603_v12 = vpack.c.bf16 %v1880_v6, %v1879_v49  ;;  %v1543_v15 = vadd.f32 %v1542_v21, %v3417_v42  ;;  %v1200_v53 = vpop.f32.mrb[94].mxu0  ;;  %v2770_v20 = vpop.f32.mrb[94].mxu1 }
 0x1cf   :  { %2641 = vst [vmem:[%s3666_s3 + $0xb0] sm:$0xff] %v2573_v11   ;;  %2648 = vst [vmem:[%s3666_s3 + $0xe8] sm:$0xff] %v2608_v62   ;;  %v1805_v52 = vadd.f32 %v3436_v63, %v1487_v3  ;;  %v1821_v7 = vadd.f32 %v3436_v63, %v1551_v30  ;;  %v1490_v50 = vadd.f32 %v3569_v19, %v1200_v53  ;;  %v1202_v23 = vpop.f32.mrb[95].mxu0  ;;  %v1545_v42 = vpop.f32.mrb[95].mxu1 }
 0x1d0   :  { %v1554_v18 = vadd.f32 %v2770_v20, %v3429_v54  ;;  %2647 = vst [vmem:[%s3666_s3 + $0xe0] sm:$0xff] %v2603_v12   ;;  %v1819_v24 = vadd.f32 %v3436_v63, %v1543_v15  ;;  %v1546_v10 = vadd.f32 %v1545_v42, %v3421_v46 }
 0x1d1   :  { %v1806_v27 = vadd.f32 %v3436_v63, %v1490_v50  ;;  %v1869_v57 = vmax.f32 %v1805_v52, 0.0  ;;  %v1885_v19 = vmax.f32 %v1821_v7, 0.0 }
 0x1d2   :  { %v1822_v45 = vadd.f32 %v3436_v63, %v1554_v18  ;;  %v1820_v13 = vadd.f32 %v3436_v63, %v1546_v10  ;;  %v1883_v25 = vmax.f32 %v1819_v24, 0.0 }
 0x1d3   :  { %v1870_v33 = vmax.f32 %v1806_v27, 0.0 }
 0x1d4   :  { %v1886_v54 = vmax.f32 %v1822_v45, 0.0  ;;  %v1884_v8 = vmax.f32 %v1820_v13, 0.0 }
 0x1d5   :  { %v2578_v31 = vpack.c.bf16 %v1870_v33, %v1869_v57 }
 0x1d6   :  { %v2618_v22 = vpack.c.bf16 %v1886_v54, %v1885_v19  ;;  %v2613_v32 = vpack.c.bf16 %v1884_v8, %v1883_v25 }
 0x1d7   :  { %2642 = vst [vmem:[%s3666_s3 + $0xb8] sm:$0xff] %v2578_v31  }
 0x1d8   :  { %2650 = vst [vmem:[%s3666_s3 + $0xf8] sm:$0xff] %v2618_v22   ;;  %2649 = vst [vmem:[%s3666_s3 + $0xf0] sm:$0xff] %v2613_v32  }

// kernel: dnlf_forward.14
= control target key start
LH: loop header
LB: loop body
LE: loop exit
PB: predicated region body
PF: predicated region fallthrough
CT: control target
= control target key end

     0   :  { %v2892_v0 = vmov 0   ;;  %s3587_s1 = inlined_call_operand.vmem [shape: bf16[384,128], index: 1, kind: input, shape index: {}]   ;;  %s3588_s0 = inlined_call_operand.vmem [shape: bf16[512,384], index: 0, kind: input, shape index: {}]   ;;  %s3589_s2 = inlined_call_operand.vmem [shape: f32[1,128], index: 2, kind: input, shape index: {}]   ;;  %s3590_s3 = inlined_call_operand.vmem [shape: bf16[512,128], index: 3, kind: output, shape index: {}]  }
   0x1   :  { %979 = vmatprep.subr.bf16.mxu0 %v2892_v0  ;;  %2707 = vmatprep.subr.bf16.mxu1 %v2892_v0  ;;  %v2740_v1 = vld [vmem:[%s3587_s1] sm:$0xff]   ;;  %v2741_v2 = vld [vmem:[%s3587_s1 + $0x8] sm:$0xff]   ;;  %v2742_v3 = vld [vmem:[%s3587_s1 + $0x10] sm:$0xff]  }
   0x2   :  { %980 = vmatpush1.bf16.msra.mxu0 %v2740_v1  ;;  %2723 = vmatpush1.bf16.msra.mxu1 %v2740_v1  ;;  %v2743_v4 = vld [vmem:[%s3587_s1 + $0x18] sm:$0xff]   ;;  %v2744_v5 = vld [vmem:[%s3587_s1 + $0x20] sm:$0xff]   ;;  %v2745_v7 = vld [vmem:[%s3587_s1 + $0x28] sm:$0xff]  }
   0x3   :  { %981 = vmatprep.subr.bf16.mxu0 %v2892_v0  ;;  %2708 = vmatprep.subr.bf16.mxu1 %v2892_v0  ;;  %v2758_v6 = vld [vmem:[%s3588_s0 + $0x4] ss:$12 sps:$4 sm:$0xff]   ;;  %v2747_v10 = vld [vmem:[%s3587_s1 + $0x38] sm:$0xff]   ;;  %v2749_v12 = vld [vmem:[%s3587_s1 + $0x48] sm:$0xff]  }
   0x4   :  { %v2761_v8 = vld [vmem:[%s3588_s0 + $0x244] ss:$12 sps:$4 sm:$0xff]   ;;  %1011 = vmatprep.mubr.bf16.mxu0 %v2758_v6  ;;  %v2751_v14 = vld [vmem:[%s3587_s1 + $0x58] sm:$0xff]   ;;  %v2753_v16 = vld [vmem:[%s3587_s1 + $0x68] sm:$0xff]  }
   0x5   :  { %1203 = vmatprep.mubr.bf16.mxu1 %v2761_v8  ;;  %v2746_v9 = vld [vmem:[%s3587_s1 + $0x30] sm:$0xff]   ;;  %v2748_v11 = vld [vmem:[%s3587_s1 + $0x40] sm:$0xff]   ;;  %v2755_v18 = vld [vmem:[%s3587_s1 + $0x78] sm:$0xff]  }
   0x6   :  { %982 = vmatpush1.bf16.msra.mxu0 %v2741_v2  ;;  %2724 = vmatpush1.bf16.msra.mxu1 %v2741_v2  ;;  %v2750_v13 = vld [vmem:[%s3587_s1 + $0x50] sm:$0xff]   ;;  %v2752_v15 = vld [vmem:[%s3587_s1 + $0x60] sm:$0xff]   ;;  %v2763_v22 = vld [vmem:[%s3588_s0 + $0x1c] ss:$12 sps:$4 sm:$0xff]  }
   0x7   :  { %983 = vmatprep.subr.bf16.mxu0 %v2892_v0  ;;  %2709 = vmatprep.subr.bf16.mxu1 %v2892_v0  ;;  %v2754_v17 = vld [vmem:[%s3587_s1 + $0x70] sm:$0xff]   ;;  %v2762_v19 = vld [vmem:[%s3587_s1 + $0x80] sm:$0xff]   ;;  %v2765_v23 = vld [vmem:[%s3588_s0 + $0x25c] ss:$12 sps:$4 sm:$0xff]  }
   0x8   :  { %v2756_v20 = vld [vmem:[%s3588_s0] ss:$12 sps:$4 sm:$0xff]   ;;  %v2776_v25 = vld [vmem:[%s3587_s1 + $0x90] sm:$0xff]   ;;  %v2767_v26 = vld [vmem:[%s3588_s0 + $0x18] ss:$12 sps:$4 sm:$0xff]  }
   0x9   :  { %v2759_v21 = vld [vmem:[%s3588_s0 + $0x240] ss:$12 sps:$4 sm:$0xff]   ;;  %v2768_v27 = vld [vmem:[%s3588_s0 + $0x258] ss:$12 sps:$4 sm:$0xff]   ;;  %v2774_v31 = vld [vmem:[%s3588_s0 + $0x30] ss:$12 sps:$4 sm:$0xff]  }
   0xa   :  { %984 = vmatpush1.bf16.msra.mxu0 %v2742_v3  ;;  %2725 = vmatpush1.bf16.msra.mxu1 %v2742_v3  ;;  %v2769_v24 = vld [vmem:[%s3587_s1 + $0x88] sm:$0xff]   ;;  %v2770_v28 = vld [vmem:[%s3588_s0 + $0x34] ss:$12 sps:$4 sm:$0xff]   ;;  %v2783_v30 = vld [vmem:[%s3587_s1 + $0x98] sm:$0xff]  }
   0xb   :  { %985 = vmatprep.subr.bf16.mxu0 %v2892_v0  ;;  %2710 = vmatprep.subr.bf16.mxu1 %v2892_v0  ;;  %v2772_v29 = vld [vmem:[%s3588_s0 + $0x274] ss:$12 sps:$4 sm:$0xff]   ;;  %v2775_v33 = vld [vmem:[%s3588_s0 + $0x270] ss:$12 sps:$4 sm:$0xff]   ;;  %v2777_v34 = vld [vmem:[%s3588_s0 + $0x4c] ss:$12 sps:$4 sm:$0xff]  }
   0xc   :  { %v2790_v32 = vld [vmem:[%s3587_s1 + $0xa0] sm:$0xff]   ;;  %v2779_v35 = vld [vmem:[%s3588_s0 + $0x28c] ss:$12 sps:$4 sm:$0xff]   ;;  %v2781_v37 = vld [vmem:[%s3588_s0 + $0x48] ss:$12 sps:$4 sm:$0xff]  }
   0xd   :  { %v2797_v36 = vld [vmem:[%s3587_s1 + $0xa8] sm:$0xff]   ;;  %v2784_v39 = vld [vmem:[%s3588_s0 + $0x64] ss:$12 sps:$4 sm:$0xff]   ;;  %v2811_v42 = vld [vmem:[%s3587_s1 + $0xb8] sm:$0xff]  }
   0xe   :  { %986 = vmatpush1.bf16.msra.mxu0 %v2743_v4  ;;  %2726 = vmatpush1.bf16.msra.mxu1 %v2743_v4  ;;  %v2782_v38 = vld [vmem:[%s3588_s0 + $0x288] ss:$12 sps:$4 sm:$0xff]   ;;  %v2786_v40 = vld [vmem:[%s3588_s0 + $0x2a4] ss:$12 sps:$4 sm:$0xff]   ;;  %v2788_v43 = vld [vmem:[%s3588_s0 + $0x60] ss:$12 sps:$4 sm:$0xff]  }
   0xf   :  { %987 = vmatprep.subr.bf16.mxu0 %v2892_v0  ;;  %2711 = vmatprep.subr.bf16.mxu1 %v2892_v0  ;;  %v2804_v41 = vld [vmem:[%s3587_s1 + $0xb0] sm:$0xff]   ;;  %v2789_v44 = vld [vmem:[%s3588_s0 + $0x2a0] ss:$12 sps:$4 sm:$0xff]   ;;  %v2791_v45 = vld [vmem:[%s3588_s0 + $0x7c] ss:$12 sps:$4 sm:$0xff]  }
  0x10   :  { %v2793_v46 = vld [vmem:[%s3588_s0 + $0x2bc] ss:$12 sps:$4 sm:$0xff]   ;;  %v2795_v47 = vld [vmem:[%s3588_s0 + $0x78] ss:$12 sps:$4 sm:$0xff]   ;;  %v2798_v49 = vld [vmem:[%s3588_s0 + $0x94] ss:$12 sps:$4 sm:$0xff]  }
  0x11   :  { %v2796_v48 = vld [vmem:[%s3588_s0 + $0x2b8] ss:$12 sps:$4 sm:$0xff]   ;;  %v2800_v50 = vld [vmem:[%s3588_s0 + $0x2d4] ss:$12 sps:$4 sm:$0xff]   ;;  %v2802_v51 = vld [vmem:[%s3588_s0 + $0x90] ss:$12 sps:$4 sm:$0xff]  }
  0x12   :  { %988 = vmatpush1.bf16.msra.mxu0 %v2744_v5  ;;  %2727 = vmatpush1.bf16.msra.mxu1 %v2744_v5  ;;  %v2803_v52 = vld [vmem:[%s3588_s0 + $0x2d0] ss:$12 sps:$4 sm:$0xff]   ;;  %v2805_v53 = vld [vmem:[%s3588_s0 + $0xac] ss:$12 sps:$4 sm:$0xff]   ;;  %v2809_v55 = vld [vmem:[%s3588_s0 + $0xa8] ss:$12 sps:$4 sm:$0xff]  }
  0x13   :  { %989 = vmatprep.subr.bf16.mxu0 %v2892_v0  ;;  %2712 = vmatprep.subr.bf16.mxu1 %v2892_v0  ;;  %v2807_v54 = vld [vmem:[%s3588_s0 + $0x2ec] ss:$12 sps:$4 sm:$0xff]   ;;  %v2810_v56 = vld [vmem:[%s3588_s0 + $0x2e8] ss:$12 sps:$4 sm:$0xff]   ;;  %v2812_v57 = vld [vmem:[%s3588_s0 + $0xc4] ss:$12 sps:$4 sm:$0xff]  }
  0x14   :  { %v2814_v58 = vld [vmem:[%s3588_s0 + $0x8] ss:$12 sps:$4 sm:$0xff]   ;;  %v2815_v59 = vld [vmem:[%s3588_s0 + $0xc0] ss:$12 sps:$4 sm:$0xff]   ;;  %v2819_v62 = vld [vmem:[%s3588_s0 + $0x38] ss:$12 sps:$4 sm:$0xff]  }
  0x15   :  { %v2816_v60 = vld [vmem:[%s3588_s0 + $0x20] ss:$12 sps:$4 sm:$0xff]   ;;  %v2817_v61 = vld [vmem:[%s3588_s0 + $0xdc] ss:$12 sps:$4 sm:$0xff]   ;;  %v2820_v63 = vld [vmem:[%s3588_s0 + $0xd8] ss:$12 sps:$4 sm:$0xff]  }
  0x16   :  { %990 = vmatpush1.bf16.msra.mxu0 %v2745_v7  ;;  %2728 = vmatpush1.bf16.msra.mxu1 %v2745_v7  ;;  %v2822_v1 = vld [vmem:[%s3588_s0 + $0xf4] ss:$12 sps:$4 sm:$0xff]   ;;  %v2825_v3 = vld [vmem:[%s3588_s0 + $0xf0] ss:$12 sps:$4 sm:$0xff]   ;;  %v2827_v5 = vld [vmem:[%s3588_s0 + $0x10c] ss:$12 sps:$4 sm:$0xff]  }
  0x17   :  { %991 = vmatprep.subr.bf16.mxu0 %v2892_v0  ;;  %2713 = vmatprep.subr.bf16.mxu1 %v2892_v0  ;;  %v2824_v2 = vld [vmem:[%s3588_s0 + $0x68] ss:$12 sps:$4 sm:$0xff]   ;;  %v2826_v4 = vld [vmem:[%s3588_s0 + $0x80] ss:$12 sps:$4 sm:$0xff]   ;;  %v2829_v6 = vld [vmem:[%s3588_s0 + $0x98] ss:$12 sps:$4 sm:$0xff]  }
  0x18   :  { %v2830_v7 = vld [vmem:[%s3588_s0 + $0x108] ss:$12 sps:$4 sm:$0xff]   ;;  %v2831_v8 = vld [vmem:[%s3588_s0 + $0xb0] ss:$12 sps:$4 sm:$0xff]  }
  0x1a   :  { %992 = vmatpush1.bf16.msra.mxu0 %v2746_v9  ;;  %2729 = vmatpush1.bf16.msra.mxu1 %v2746_v9  ;;  %v2832_v9 = vld [vmem:[%s3588_s0 + $0x124] ss:$12 sps:$4 sm:$0xff]  }
  0x1b   :  { %993 = vmatprep.subr.bf16.mxu0 %v2892_v0  ;;  %2714 = vmatprep.subr.bf16.mxu1 %v2892_v0 }
  0x1e   :  { %994 = vmatpush1.bf16.msra.mxu0 %v2747_v10  ;;  %2730 = vmatpush1.bf16.msra.mxu1 %v2747_v10  ;;  %v2834_v10 = vld [vmem:[%s3588_s0 + $0xc8] ss:$12 sps:$4 sm:$0xff]  }
  0x1f   :  { %995 = vmatprep.subr.bf16.mxu0 %v2892_v0  ;;  %2715 = vmatprep.subr.bf16.mxu1 %v2892_v0 }
  0x22   :  { %996 = vmatpush1.bf16.msra.mxu0 %v2748_v11  ;;  %2731 = vmatpush1.bf16.msra.mxu1 %v2748_v11  ;;  %v2835_v11 = vld [vmem:[%s3588_s0 + $0x120] ss:$12 sps:$4 sm:$0xff]  }
  0x23   :  { %997 = vmatprep.subr.bf16.mxu0 %v2892_v0  ;;  %2716 = vmatprep.subr.bf16.mxu1 %v2892_v0 }
  0x26   :  { %998 = vmatpush1.bf16.msra.mxu0 %v2749_v12  ;;  %2732 = vmatpush1.bf16.msra.mxu1 %v2749_v12  ;;  %v2836_v12 = vld [vmem:[%s3588_s0 + $0xe0] ss:$12 sps:$4 sm:$0xff]  }
  0x27   :  { %999 = vmatprep.subr.bf16.mxu0 %v2892_v0  ;;  %2717 = vmatprep.subr.bf16.mxu1 %v2892_v0 }
  0x2a   :  { %1000 = vmatpush1.bf16.msra.mxu0 %v2750_v13  ;;  %2733 = vmatpush1.bf16.msra.mxu1 %v2750_v13  ;;  %v2837_v13 = vld [vmem:[%s3588_s0 + $0x13c] ss:$12 sps:$4 sm:$0xff]  }
  0x2b   :  { %1001 = vmatprep.subr.bf16.mxu0 %v2892_v0  ;;  %2718 = vmatprep.subr.bf16.mxu1 %v2892_v0 }
  0x2e   :  { %1002 = vmatpush1.bf16.msra.mxu0 %v2751_v14  ;;  %2734 = vmatpush1.bf16.msra.mxu1 %v2751_v14  ;;  %v2839_v14 = vld [vmem:[%s3588_s0 + $0xf8] ss:$12 sps:$4 sm:$0xff]  }
  0x2f   :  { %1003 = vmatprep.subr.bf16.mxu0 %v2892_v0  ;;  %2719 = vmatprep.subr.bf16.mxu1 %v2892_v0 }
  0x32   :  { %1004 = vmatpush1.bf16.msra.mxu0 %v2752_v15  ;;  %2735 = vmatpush1.bf16.msra.mxu1 %v2752_v15  ;;  %v2840_v15 = vld [vmem:[%s3588_s0 + $0x138] ss:$12 sps:$4 sm:$0xff]  }
  0x33   :  { %1005 = vmatprep.subr.bf16.mxu0 %v2892_v0  ;;  %2720 = vmatprep.subr.bf16.mxu1 %v2892_v0 }
  0x36   :  { %1006 = vmatpush1.bf16.msra.mxu0 %v2753_v16  ;;  %2736 = vmatpush1.bf16.msra.mxu1 %v2753_v16  ;;  %v2841_v16 = vld [vmem:[%s3588_s0 + $0x110] ss:$12 sps:$4 sm:$0xff]  }
  0x37   :  { %1007 = vmatprep.subr.bf16.mxu0 %v2892_v0  ;;  %2721 = vmatprep.subr.bf16.mxu1 %v2892_v0 }
  0x3a   :  { %1008 = vmatpush1.bf16.msra.mxu0 %v2754_v17  ;;  %2737 = vmatpush1.bf16.msra.mxu1 %v2754_v17  ;;  %v2842_v17 = vld [vmem:[%s3588_s0 + $0x154] ss:$12 sps:$4 sm:$0xff]  }
  0x3b   :  { %1009 = vmatprep.subr.bf16.mxu0 %v2892_v0  ;;  %2722 = vmatprep.subr.bf16.mxu1 %v2892_v0  ;;  %v2821_v0 = vld [vmem:[%s3588_s0 + $0x50] ss:$12 sps:$4 sm:$0xff]  }
  0x3e   :  { %1010 = vmatpush1.bf16.msra.mxu0 %v2755_v18  ;;  %2738 = vmatpush1.bf16.msra.mxu1 %v2755_v18  ;;  %v2844_v18 = vld [vmem:[%s3588_s0 + $0x128] ss:$12 sps:$4 sm:$0xff]  }
  0x3f   :  { %2627 = vmatprep.subr.bf16.mxu1 %v2762_v19 }
  0x41   :  { %1012 = vmatmul.mubr.bf16.vlgmr.msra.gmra.mrb[0].mxu0 %v2756_v20  ;;  %1204 = vmatmul.mubr.bf16.vlgmr.msra.gmra.mrb[0].mxu1 %v2759_v21  ;;  %v2846_v20 = vld [vmem:[%s3588_s0 + $0x140] ss:$12 sps:$4 sm:$0xff]  }
  0x42   :  { %2628 = vmatpush3.bf16.msra.mxu1 %v2762_v19  ;;  %1019 = vmatprep.mubr.bf16.mxu0 %v2763_v22  ;;  %v2845_v19 = vld [vmem:[%s3588_s0 + $0x150] ss:$12 sps:$4 sm:$0xff]   ;;  %v2847_v21 = vld [vmem:[%s3588_s0 + $0x16c] ss:$12 sps:$4 sm:$0xff]  }
  0x43   :  { %1211 = vmatprep.mubr.bf16.mxu1 %v2765_v23  ;;  %2629 = vmatprep.subr.bf16.mxu1 %v2769_v24  ;;  %v2849_v22 = vld [vmem:[%s3588_s0 + $0x158] ss:$12 sps:$4 sm:$0xff]   ;;  %v2850_v23 = vld [vmem:[%s3588_s0 + $0x168] ss:$12 sps:$4 sm:$0xff]  }
  0x46   :  { %2630 = vmatpush3.bf16.msra.mxu1 %v2769_v24  ;;  %v2851_v24 = vld [vmem:[%s3588_s0 + $0x170] ss:$12 sps:$4 sm:$0xff]  }
  0x47   :  { %2631 = vmatprep.subr.bf16.mxu1 %v2776_v25 }
  0x49   :  { %1020 = vmatmul.mubr.bf16.gmra.mrb[4].mxu0 %v2767_v26  ;;  %1212 = vmatmul.mubr.bf16.gmra.mrb[4].mxu1 %v2768_v27  ;;  %v2854_v26 = vld [vmem:[%s3588_s0 + $0x188] ss:$12 sps:$4 sm:$0xff]   ;;  %v2855_v27 = vld [vmem:[%s3588_s0 + $0x180] ss:$12 sps:$4 sm:$0xff]  }
  0x4a   :  { %1027 = vmatprep.mubr.bf16.mxu0 %v2770_v28  ;;  %1219 = vmatprep.mubr.bf16.mxu1 %v2772_v29  ;;  %v2856_v28 = vld [vmem:[%s3588_s0 + $0x1a0] ss:$12 sps:$4 sm:$0xff]   ;;  %v2857_v29 = vld [vmem:[%s3588_s0 + $0x19c] ss:$12 sps:$4 sm:$0xff]  }
  0x4b   :  { %2632 = vmatpush3.bf16.msra.mxu1 %v2776_v25  ;;  %v2852_v25 = vld [vmem:[%s3588_s0 + $0x184] ss:$12 sps:$4 sm:$0xff]  }
  0x4c   :  { %2633 = vmatprep.subr.bf16.mxu1 %v2783_v30 }
  0x4f   :  { %2634 = vmatpush3.bf16.msra.mxu1 %v2783_v30  ;;  %v2859_v30 = vld [vmem:[%s3588_s0 + $0x1b8] ss:$12 sps:$4 sm:$0xff]  }
  0x50   :  { %2635 = vmatprep.subr.bf16.mxu1 %v2790_v32 }
  0x51   :  { %1028 = vmatmul.mubr.bf16.gmra.mrb[8].mxu0 %v2774_v31  ;;  %1220 = vmatmul.mubr.bf16.gmra.mrb[8].mxu1 %v2775_v33  ;;  %v2860_v31 = vld [vmem:[%s3588_s0 + $0x198] ss:$12 sps:$4 sm:$0xff]   ;;  %v2862_v33 = vld [vmem:[%s3588_s0 + $0x1b4] ss:$12 sps:$4 sm:$0xff]  }
  0x52   :  { %1035 = vmatprep.mubr.bf16.mxu0 %v2777_v34  ;;  %1227 = vmatprep.mubr.bf16.mxu1 %v2779_v35  ;;  %v2864_v34 = vld [vmem:[%s3588_s0 + $0x1e8] ss:$12 sps:$4 sm:$0xff]   ;;  %v2865_v35 = vld [vmem:[%s3588_s0 + $0x1b0] ss:$12 sps:$4 sm:$0xff]  }
  0x53   :  { %2636 = vmatpush3.bf16.msra.mxu1 %v2790_v32  ;;  %v2861_v32 = vld [vmem:[%s3588_s0 + $0x1d0] ss:$12 sps:$4 sm:$0xff]  }
  0x54   :  { %2637 = vmatprep.subr.bf16.mxu1 %v2797_v36 }
  0x57   :  { %2638 = vmatpush3.bf16.msra.mxu1 %v2797_v36  ;;  %v2866_v36 = vld [vmem:[%s3588_s0 + $0x200] ss:$12 sps:$4 sm:$0xff]  }
  0x58   :  { %2639 = vmatprep.subr.bf16.mxu1 %v2804_v41 }
  0x59   :  { %1036 = vmatmul.mubr.bf16.gmra.mrb[12].mxu0 %v2781_v37  ;;  %1228 = vmatmul.mubr.bf16.gmra.mrb[12].mxu1 %v2782_v38  ;;  %v2867_v37 = vld [vmem:[%s3588_s0 + $0x1cc] ss:$12 sps:$4 sm:$0xff]  }
  0x5a   :  { %1043 = vmatprep.mubr.bf16.mxu0 %v2784_v39  ;;  %1235 = vmatprep.mubr.bf16.mxu1 %v2786_v40  ;;  %v2869_v38 = vld [vmem:[%s3588_s0 + $0x218] ss:$12 sps:$4 sm:$0xff]   ;;  %v2870_v39 = vld [vmem:[%s3588_s0 + $0x1c8] ss:$12 sps:$4 sm:$0xff]   ;;  %v2871_v40 = vld [vmem:[%s3588_s0 + $0x230] ss:$12 sps:$4 sm:$0xff]  }
  0x5b   :  { %2640 = vmatpush3.bf16.msra.mxu1 %v2804_v41  ;;  %v2872_v41 = vld [vmem:[%s3588_s0 + $0x1e4] ss:$12 sps:$4 sm:$0xff]  }
  0x5c   :  { %2641 = vmatprep.subr.bf16.mxu1 %v2811_v42 }
  0x5f   :  { %2642 = vmatpush3.bf16.msra.mxu1 %v2811_v42  ;;  %v2874_v42 = vld [vmem:[%s3588_s0 + $0x248] ss:$12 sps:$4 sm:$0xff]  }
  0x61   :  { %1044 = vmatmul.mubr.bf16.gmra.mrb[16].mxu0 %v2788_v43  ;;  %1236 = vmatmul.mubr.bf16.gmra.mrb[16].mxu1 %v2789_v44  ;;  %v2875_v43 = vld [vmem:[%s3588_s0 + $0x1e0] ss:$12 sps:$4 sm:$0xff]  }
  0x62   :  { %1051 = vmatprep.mubr.bf16.mxu0 %v2791_v45  ;;  %1243 = vmatprep.mubr.bf16.mxu1 %v2793_v46  ;;  %v2876_v44 = vld [vmem:[%s3588_s0 + $0x260] ss:$12 sps:$4 sm:$0xff]   ;;  %v2877_v45 = vld [vmem:[%s3588_s0 + $0x1fc] ss:$12 sps:$4 sm:$0xff]   ;;  %v2879_v46 = vld [vmem:[%s3588_s0 + $0x278] ss:$12 sps:$4 sm:$0xff]  }
  0x69   :  { %1052 = vmatmul.mubr.bf16.gmra.mrb[20].mxu0 %v2795_v47  ;;  %1244 = vmatmul.mubr.bf16.gmra.mrb[20].mxu1 %v2796_v48  ;;  %v2880_v47 = vld [vmem:[%s3588_s0 + $0x1f8] ss:$12 sps:$4 sm:$0xff]   ;;  %v2881_v48 = vld [vmem:[%s3588_s0 + $0x290] ss:$12 sps:$4 sm:$0xff]  }
  0x6a   :  { %1059 = vmatprep.mubr.bf16.mxu0 %v2798_v49  ;;  %1251 = vmatprep.mubr.bf16.mxu1 %v2800_v50  ;;  %v2882_v49 = vld [vmem:[%s3588_s0 + $0x214] ss:$12 sps:$4 sm:$0xff]  }
  0x6b   :  { %v2884_v50 = vld [vmem:[%s3588_s0 + $0x2a8] ss:$12 sps:$4 sm:$0xff]  }
  0x71   :  { %1060 = vmatmul.mubr.bf16.gmra.mrb[24].mxu0 %v2802_v51  ;;  %1252 = vmatmul.mubr.bf16.gmra.mrb[24].mxu1 %v2803_v52  ;;  %v2885_v51 = vld [vmem:[%s3588_s0 + $0x210] ss:$12 sps:$4 sm:$0xff]   ;;  %v2886_v52 = vld [vmem:[%s3588_s0 + $0x2c0] ss:$12 sps:$4 sm:$0xff]  }
  0x72   :  { %1067 = vmatprep.mubr.bf16.mxu0 %v2805_v53  ;;  %1259 = vmatprep.mubr.bf16.mxu1 %v2807_v54  ;;  %v2887_v53 = vld [vmem:[%s3588_s0 + $0x22c] ss:$12 sps:$4 sm:$0xff]  }
  0x73   :  { %v2889_v54 = vld [vmem:[%s3588_s0 + $0x2d8] ss:$12 sps:$4 sm:$0xff]  }
  0x79   :  { %1068 = vmatmul.mubr.bf16.gmra.mrb[28].mxu0 %v2809_v55  ;;  %1260 = vmatmul.mubr.bf16.gmra.mrb[28].mxu1 %v2810_v56  ;;  %v2890_v55 = vld [vmem:[%s3588_s0 + $0x228] ss:$12 sps:$4 sm:$0xff]   ;;  %v2891_v56 = vld [vmem:[%s3588_s0 + $0x2f0] ss:$12 sps:$4 sm:$0xff]  }
  0x7a   :  { %1075 = vmatprep.mubr.bf16.mxu0 %v2812_v57  ;;  %2643 = vmatprep.mubr.bf16.mxu1 %v2814_v58 }
  0x81   :  { %1076 = vmatmul.mubr.bf16.gmra.mrb[32].mxu0 %v2815_v59  ;;  %2644 = vmatmul.mubr.bf16.vlgmr.msra.gmra.mrb[32].mxu1 %v2816_v60 }
  0x82   :  { %1083 = vmatprep.mubr.bf16.mxu0 %v2817_v61  ;;  %2647 = vmatprep.mubr.bf16.mxu1 %v2819_v62 }
  0x89   :  { %1084 = vmatmul.mubr.bf16.gmra.mrb[36].mxu0 %v2820_v63  ;;  %2648 = vmatmul.mubr.bf16.gmra.mrb[36].mxu1 %v2821_v0 }
  0x8a   :  { %1091 = vmatprep.mubr.bf16.mxu0 %v2822_v1  ;;  %2651 = vmatprep.mubr.bf16.mxu1 %v2824_v2 }
  0x91   :  { %1092 = vmatmul.mubr.bf16.gmra.mrb[40].mxu0 %v2825_v3  ;;  %2652 = vmatmul.mubr.bf16.gmra.mrb[40].mxu1 %v2826_v4 }
  0x92   :  { %1099 = vmatprep.mubr.bf16.mxu0 %v2827_v5  ;;  %2655 = vmatprep.mubr.bf16.mxu1 %v2829_v6 }
  0x99   :  { %1100 = vmatmul.mubr.bf16.gmra.mrb[44].mxu0 %v2830_v7  ;;  %2656 = vmatmul.mubr.bf16.gmra.mrb[44].mxu1 %v2831_v8 }
  0x9a   :  { %1107 = vmatprep.mubr.bf16.mxu0 %v2832_v9  ;;  %2659 = vmatprep.mubr.bf16.mxu1 %v2834_v10 }
  0xa1   :  { %1108 = vmatmul.mubr.bf16.gmra.mrb[48].mxu0 %v2835_v11  ;;  %2660 = vmatmul.mubr.bf16.gmra.mrb[48].mxu1 %v2836_v12 }
  0xa2   :  { %1115 = vmatprep.mubr.bf16.mxu0 %v2837_v13  ;;  %2663 = vmatprep.mubr.bf16.mxu1 %v2839_v14 }
  0xa9   :  { %1116 = vmatmul.mubr.bf16.gmra.mrb[52].mxu0 %v2840_v15  ;;  %2664 = vmatmul.mubr.bf16.gmra.mrb[52].mxu1 %v2841_v16 }
  0xaa   :  { %1123 = vmatprep.mubr.bf16.mxu0 %v2842_v17  ;;  %2667 = vmatprep.mubr.bf16.mxu1 %v2844_v18 }
  0xb1   :  { %1124 = vmatmul.mubr.bf16.gmra.mrb[56].mxu0 %v2845_v19  ;;  %2668 = vmatmul.mubr.bf16.gmra.mrb[56].mxu1 %v2846_v20 }
  0xb2   :  { %1131 = vmatprep.mubr.bf16.mxu0 %v2847_v21  ;;  %2671 = vmatprep.mubr.bf16.mxu1 %v2849_v22 }
  0xb9   :  { %1132 = vmatmul.mubr.bf16.gmra.mrb[60].mxu0 %v2850_v23  ;;  %2672 = vmatmul.mubr.bf16.gmra.mrb[60].mxu1 %v2851_v24 }
  0xba   :  { %1139 = vmatprep.mubr.bf16.mxu0 %v2852_v25  ;;  %2675 = vmatprep.mubr.bf16.mxu1 %v2854_v26 }
  0xc1   :  { %1140 = vmatmul.mubr.bf16.gmra.mrb[64].mxu0 %v2855_v27  ;;  %2676 = vmatmul.mubr.bf16.gmra.mrb[64].mxu1 %v2856_v28 }
  0xc2   :  { %1147 = vmatprep.mubr.bf16.mxu0 %v2857_v29  ;;  %2679 = vmatprep.mubr.bf16.mxu1 %v2859_v30 }
  0xc9   :  { %1148 = vmatmul.mubr.bf16.gmra.mrb[68].mxu0 %v2860_v31  ;;  %2680 = vmatmul.mubr.bf16.gmra.mrb[68].mxu1 %v2861_v32 }
  0xca   :  { %1155 = vmatprep.mubr.bf16.mxu0 %v2862_v33  ;;  %2683 = vmatprep.mubr.bf16.mxu1 %v2864_v34 }
  0xd1   :  { %1156 = vmatmul.mubr.bf16.gmra.mrb[72].mxu0 %v2865_v35  ;;  %2684 = vmatmul.mubr.bf16.gmra.mrb[72].mxu1 %v2866_v36 }
  0xd2   :  { %1163 = vmatprep.mubr.bf16.mxu0 %v2867_v37  ;;  %2687 = vmatprep.mubr.bf16.mxu1 %v2869_v38 }
  0xd9   :  { %1164 = vmatmul.mubr.bf16.gmra.mrb[76].mxu0 %v2870_v39  ;;  %2688 = vmatmul.mubr.bf16.gmra.mrb[76].mxu1 %v2871_v40 }
  0xda   :  { %1171 = vmatprep.mubr.bf16.mxu0 %v2872_v41  ;;  %2691 = vmatprep.mubr.bf16.mxu1 %v2874_v42 }
  0xe1   :  { %1172 = vmatmul.mubr.bf16.gmra.mrb[80].mxu0 %v2875_v43  ;;  %2692 = vmatmul.mubr.bf16.gmra.mrb[80].mxu1 %v2876_v44 }
  0xe2   :  { %1179 = vmatprep.mubr.bf16.mxu0 %v2877_v45  ;;  %2695 = vmatprep.mubr.bf16.mxu1 %v2879_v46 }
  0xe9   :  { %1180 = vmatmul.mubr.bf16.gmra.mrb[84].mxu0 %v2880_v47  ;;  %2696 = vmatmul.mubr.bf16.gmra.mrb[84].mxu1 %v2881_v48 }
  0xea   :  { %1187 = vmatprep.mubr.bf16.mxu0 %v2882_v49  ;;  %2699 = vmatprep.mubr.bf16.mxu1 %v2884_v50 }
  0xf1   :  { %1188 = vmatmul.mubr.bf16.gmra.mrb[88].mxu0 %v2885_v51  ;;  %2700 = vmatmul.mubr.bf16.gmra.mrb[88].mxu1 %v2886_v52 }
  0xf2   :  { %1195 = vmatprep.mubr.bf16.mxu0 %v2887_v53  ;;  %2703 = vmatprep.mubr.bf16.mxu1 %v2889_v54 }
  0xf9   :  { %1196 = vmatmul.mubr.bf16.gmra.mrb[92].mxu0 %v2890_v55  ;;  %2704 = vmatmul.mubr.bf16.gmra.mrb[92].mxu1 %v2891_v56 }
 0x114   :  { %v3305_v57 = vpop.f32.mrb[0].mxu0  ;;  %v3307_v58 = vpop.f32.mrb[0].mxu1 }
 0x115   :  { %v1015_v59 = vpop.f32.mrb[1].mxu0  ;;  %v1207_v60 = vpop.f32.mrb[1].mxu1 }
 0x116   :  { %v3309_v61 = vpop.f32.mrb[2].mxu0  ;;  %v3311_v62 = vpop.f32.mrb[2].mxu1 }
 0x117   :  { %v1018_v63 = vpop.f32.mrb[3].mxu0  ;;  %v1210_v0 = vpop.f32.mrb[3].mxu1 }
 0x11c   :  { %v1021_v1 = vpop.f32.mrb[4].mxu0  ;;  %v3313_v2 = vpop.f32.mrb[4].mxu1 }
 0x11d   :  { %v1023_v3 = vpop.f32.mrb[5].mxu0  ;;  %v1215_v4 = vpop.f32.mrb[5].mxu1 }
 0x11e   :  { %v1024_v5 = vpop.f32.mrb[6].mxu0  ;;  %v3315_v6 = vpop.f32.mrb[6].mxu1  ;;  %v3370_v4 = vld [vmem:[%s3589_s2] ss:$0 sm:$0xff] }
 0x11f   :  { %v1026_v7 = vpop.f32.mrb[7].mxu0  ;;  %v1218_v8 = vpop.f32.mrb[7].mxu1 }
 0x124   :  { %v3317_v9 = vpop.f32.mrb[8].mxu0  ;;  %v3319_v10 = vpop.f32.mrb[8].mxu1 }
 0x125   :  { %v1031_v11 = vpop.f32.mrb[9].mxu0  ;;  %v1223_v12 = vpop.f32.mrb[9].mxu1 }
 0x126   :  { %v3321_v13 = vpop.f32.mrb[10].mxu0  ;;  %v3323_v14 = vpop.f32.mrb[10].mxu1 }
 0x127   :  { %v1034_v15 = vpop.f32.mrb[11].mxu0  ;;  %v1226_v16 = vpop.f32.mrb[11].mxu1 }
 0x12c   :  { %v3325_v17 = vpop.f32.mrb[12].mxu0  ;;  %v3327_v18 = vpop.f32.mrb[12].mxu1 }
 0x12d   :  { %v1039_v19 = vpop.f32.mrb[13].mxu0  ;;  %v1231_v20 = vpop.f32.mrb[13].mxu1 }
 0x12e   :  { %v3329_v21 = vpop.f32.mrb[14].mxu0  ;;  %v3331_v22 = vpop.f32.mrb[14].mxu1 }
 0x12f   :  { %v1042_v23 = vpop.f32.mrb[15].mxu0  ;;  %v1234_v24 = vpop.f32.mrb[15].mxu1 }
 0x134   :  { %v3333_v25 = vpop.f32.mrb[16].mxu0  ;;  %v3335_v26 = vpop.f32.mrb[16].mxu1 }
 0x135   :  { %v1047_v27 = vpop.f32.mrb[17].mxu0  ;;  %v1239_v28 = vpop.f32.mrb[17].mxu1 }
 0x136   :  { %v3337_v29 = vpop.f32.mrb[18].mxu0  ;;  %v3339_v30 = vpop.f32.mrb[18].mxu1 }
 0x137   :  { %v1050_v31 = vpop.f32.mrb[19].mxu0  ;;  %v1242_v32 = vpop.f32.mrb[19].mxu1 }
 0x13c   :  { %v3341_v33 = vpop.f32.mrb[20].mxu0  ;;  %v3343_v34 = vpop.f32.mrb[20].mxu1 }
 0x13d   :  { %v1055_v35 = vpop.f32.mrb[21].mxu0  ;;  %v1247_v36 = vpop.f32.mrb[21].mxu1 }
 0x13e   :  { %v3345_v37 = vpop.f32.mrb[22].mxu0  ;;  %v3347_v38 = vpop.f32.mrb[22].mxu1 }
 0x13f   :  { %v1058_v39 = vpop.f32.mrb[23].mxu0  ;;  %v1250_v40 = vpop.f32.mrb[23].mxu1 }
 0x144   :  { %v3349_v41 = vpop.f32.mrb[24].mxu0  ;;  %v3351_v42 = vpop.f32.mrb[24].mxu1 }
 0x145   :  { %v1063_v43 = vpop.f32.mrb[25].mxu0  ;;  %v1255_v44 = vpop.f32.mrb[25].mxu1 }
 0x146   :  { %v3353_v45 = vpop.f32.mrb[26].mxu0  ;;  %v3355_v46 = vpop.f32.mrb[26].mxu1 }
 0x147   :  { %v1066_v47 = vpop.f32.mrb[27].mxu0  ;;  %v1258_v48 = vpop.f32.mrb[27].mxu1 }
 0x14c   :  { %v3357_v49 = vpop.f32.mrb[28].mxu0  ;;  %v3359_v50 = vpop.f32.mrb[28].mxu1 }
 0x14d   :  { %v1071_v51 = vpop.f32.mrb[29].mxu0  ;;  %v1263_v52 = vpop.f32.mrb[29].mxu1 }
 0x14e   :  { %v3361_v53 = vpop.f32.mrb[30].mxu0  ;;  %v3363_v54 = vpop.f32.mrb[30].mxu1 }
 0x14f   :  { %v1074_v55 = vpop.f32.mrb[31].mxu0  ;;  %v1266_v56 = vpop.f32.mrb[31].mxu1 }
 0x154   :  { %v3365_v59 = vpop.f32.mrb[32].mxu0  ;;  %v2645_v60 = vpop.f32.mrb[32].mxu1 }
 0x155   :  { %v1311_v63 = vadd.f32 %v2645_v60, %v1021_v1  ;;  %v1079_v0 = vpop.f32.mrb[33].mxu0  ;;  %v1302_v3 = vpop.f32.mrb[33].mxu1 }
 0x156   :  { %v1303_v7 = vadd.f32 %v1302_v3, %v3305_v57  ;;  %v3373_v8 = vpop.f32.mrb[34].mxu0  ;;  %v2646_v11 = vpop.f32.mrb[34].mxu1 }
 0x157   :  { %v1314_v12 = vadd.f32 %v2646_v11, %v1024_v5  ;;  %v1082_v15 = vpop.f32.mrb[35].mxu0  ;;  %v1305_v16 = vpop.f32.mrb[35].mxu1  ;;  %v1761_v20 = vadd.f32 %v3370_v4, %v1311_v63 }
 0x158   :  { %v1306_v19 = vadd.f32 %v1305_v16, %v3309_v61  ;;  %v1759_v23 = vadd.f32 %v3370_v4, %v1303_v7 }
 0x159   :  { %v1762_v1 = vadd.f32 %v3370_v4, %v1314_v12 }
 0x15a   :  { %v1760_v24 = vadd.f32 %v3370_v4, %v1306_v19 }
 0x15b   :  { %v2404_v27 = vpack.c.bf16 %v1762_v1, %v1761_v20 }
 0x15c   :  { %v2399_v28 = vpack.c.bf16 %v1760_v24, %v1759_v23  ;;  %v3380_v31 = vpop.f32.mrb[36].mxu0  ;;  %v2649_v57 = vpop.f32.mrb[36].mxu1 }
 0x15d   :  { %2556 = vst [vmem:[%s3590_s3 + $0x8] sm:$0xff] %v2404_v27   ;;  %v1327_v5 = vadd.f32 %v2649_v57, %v3325_v17  ;;  %v1087_v61 = vpop.f32.mrb[37].mxu0  ;;  %v1318_v32 = vpop.f32.mrb[37].mxu1 }
 0x15e   :  { %2400 = vst [vmem:[%s3590_s3] sm:$0xff] %v2399_v28   ;;  %v1319_v35 = vadd.f32 %v1318_v32, %v3317_v9  ;;  %v1088_v36 = vpop.f32.mrb[38].mxu0  ;;  %v2650_v39 = vpop.f32.mrb[38].mxu1 }
 0x15f   :  { %v1330_v40 = vadd.f32 %v2650_v39, %v3329_v21  ;;  %v1090_v43 = vpop.f32.mrb[39].mxu0  ;;  %v1321_v44 = vpop.f32.mrb[39].mxu1  ;;  %v1765_v48 = vadd.f32 %v3370_v4, %v1327_v5 }
 0x160   :  { %v1322_v47 = vadd.f32 %v1321_v44, %v3321_v13  ;;  %v1763_v51 = vadd.f32 %v3370_v4, %v1319_v35 }
 0x161   :  { %v1766_v17 = vadd.f32 %v3370_v4, %v1330_v40 }
 0x162   :  { %v1764_v52 = vadd.f32 %v3370_v4, %v1322_v47 }
 0x163   :  { %v2414_v55 = vpack.c.bf16 %v1766_v17, %v1765_v48 }
 0x164   :  { %v2409_v56 = vpack.c.bf16 %v1764_v52, %v1763_v51  ;;  %v3396_v60 = vpop.f32.mrb[40].mxu0  ;;  %v2653_v9 = vpop.f32.mrb[40].mxu1 }
 0x165   :  { %2558 = vst [vmem:[%s3590_s3 + $0x18] sm:$0xff] %v2414_v55   ;;  %v1343_v21 = vadd.f32 %v2653_v9, %v3341_v33  ;;  %v1095_v13 = vpop.f32.mrb[41].mxu0  ;;  %v1334_v63 = vpop.f32.mrb[41].mxu1 }
 0x166   :  { %2557 = vst [vmem:[%s3590_s3 + $0x10] sm:$0xff] %v2409_v56   ;;  %v1335_v0 = vadd.f32 %v1334_v63, %v3333_v25  ;;  %v3406_v3 = vpop.f32.mrb[42].mxu0  ;;  %v2654_v7 = vpop.f32.mrb[42].mxu1 }
 0x167   :  { %v1346_v11 = vadd.f32 %v2654_v7, %v3345_v37  ;;  %v1098_v12 = vpop.f32.mrb[43].mxu0  ;;  %v1337_v15 = vpop.f32.mrb[43].mxu1  ;;  %v1769_v19 = vadd.f32 %v3370_v4, %v1343_v21 }
 0x168   :  { %v1338_v16 = vadd.f32 %v1337_v15, %v3337_v29  ;;  %v1767_v20 = vadd.f32 %v3370_v4, %v1335_v0 }
 0x169   :  { %v1770_v33 = vadd.f32 %v3370_v4, %v1346_v11 }
 0x16a   :  { %v1768_v1 = vadd.f32 %v3370_v4, %v1338_v16 }
 0x16b   :  { %v2424_v23 = vpack.c.bf16 %v1770_v33, %v1769_v19 }
 0x16c   :  { %v2419_v24 = vpack.c.bf16 %v1768_v1, %v1767_v20  ;;  %v1101_v25 = vpop.f32.mrb[44].mxu0  ;;  %v2657_v27 = vpop.f32.mrb[44].mxu1 }
 0x16d   :  { %2560 = vst [vmem:[%s3590_s3 + $0x28] sm:$0xff] %v2424_v23   ;;  %v1359_v37 = vadd.f32 %v2657_v27, %v3357_v49  ;;  %v1103_v28 = vpop.f32.mrb[45].mxu0  ;;  %v1350_v29 = vpop.f32.mrb[45].mxu1 }
 0x16e   :  { %2559 = vst [vmem:[%s3590_s3 + $0x20] sm:$0xff] %v2419_v24   ;;  %v1351_v57 = vadd.f32 %v1350_v29, %v3349_v41  ;;  %v1104_v5 = vpop.f32.mrb[46].mxu0  ;;  %v2658_v61 = vpop.f32.mrb[46].mxu1 }
 0x16f   :  { %v1362_v32 = vadd.f32 %v2658_v61, %v3361_v53  ;;  %v1106_v35 = vpop.f32.mrb[47].mxu0  ;;  %v1353_v39 = vpop.f32.mrb[47].mxu1  ;;  %v1773_v43 = vadd.f32 %v3370_v4, %v1359_v37 }
 0x170   :  { %v1354_v40 = vadd.f32 %v1353_v39, %v3353_v45  ;;  %v1771_v44 = vadd.f32 %v3370_v4, %v1351_v57 }
 0x171   :  { %v1774_v49 = vadd.f32 %v3370_v4, %v1362_v32 }
 0x172   :  { %v1772_v47 = vadd.f32 %v3370_v4, %v1354_v40 }
 0x173   :  { %v2434_v48 = vpack.c.bf16 %v1774_v49, %v1773_v43 }
 0x174   :  { %v2429_v17 = vpack.c.bf16 %v1772_v47, %v1771_v44  ;;  %v1109_v51 = vpop.f32.mrb[48].mxu0  ;;  %v2661_v41 = vpop.f32.mrb[48].mxu1 }
 0x175   :  { %2562 = vst [vmem:[%s3590_s3 + $0x38] sm:$0xff] %v2434_v48   ;;  %v1375_v53 = vadd.f32 %v2661_v41, %v3380_v31  ;;  %v1111_v52 = vpop.f32.mrb[49].mxu0  ;;  %v1366_v45 = vpop.f32.mrb[49].mxu1 }
 0x176   :  { %2561 = vst [vmem:[%s3590_s3 + $0x30] sm:$0xff] %v2429_v17   ;;  %v1367_v55 = vadd.f32 %v1366_v45, %v3365_v59  ;;  %v1112_v56 = vpop.f32.mrb[50].mxu0  ;;  %v2662_v9 = vpop.f32.mrb[50].mxu1 }
 0x177   :  { %v1378_v21 = vadd.f32 %v2662_v9, %v1088_v36  ;;  %v1114_v13 = vpop.f32.mrb[51].mxu0  ;;  %v1369_v63 = vpop.f32.mrb[51].mxu1  ;;  %v1777_v7 = vadd.f32 %v3370_v4, %v1375_v53 }
 0x178   :  { %v1370_v0 = vadd.f32 %v1369_v63, %v3373_v8  ;;  %v1775_v31 = vadd.f32 %v3370_v4, %v1367_v55 }
 0x179   :  { %v1778_v11 = vadd.f32 %v3370_v4, %v1378_v21 }
 0x17a   :  { %v1776_v12 = vadd.f32 %v3370_v4, %v1370_v0 }
 0x17b   :  { %v2444_v15 = vpack.c.bf16 %v1778_v11, %v1777_v7 }
 0x17c   :  { %v2439_v16 = vpack.c.bf16 %v1776_v12, %v1775_v31  ;;  %v1117_v19 = vpop.f32.mrb[52].mxu0  ;;  %v2665_v33 = vpop.f32.mrb[52].mxu1 }
 0x17d   :  { %2564 = vst [vmem:[%s3590_s3 + $0x48] sm:$0xff] %v2444_v15   ;;  %v1391_v59 = vadd.f32 %v2665_v33, %v1101_v25  ;;  %v1119_v36 = vpop.f32.mrb[53].mxu0  ;;  %v1382_v20 = vpop.f32.mrb[53].mxu1 }
 0x17e   :  { %2563 = vst [vmem:[%s3590_s3 + $0x40] sm:$0xff] %v2439_v16   ;;  %v1383_v8 = vadd.f32 %v1382_v20, %v3396_v60  ;;  %v1120_v1 = vpop.f32.mrb[54].mxu0  ;;  %v2666_v23 = vpop.f32.mrb[54].mxu1 }
 0x17f   :  { %v1394_v24 = vadd.f32 %v2666_v23, %v1104_v5  ;;  %v1122_v27 = vpop.f32.mrb[55].mxu0  ;;  %v1385_v37 = vpop.f32.mrb[55].mxu1  ;;  %v1781_v29 = vadd.f32 %v3370_v4, %v1391_v59 }
 0x180   :  { %v1386_v28 = vadd.f32 %v1385_v37, %v3406_v3  ;;  %v1779_v25 = vadd.f32 %v3370_v4, %v1383_v8 }
 0x181   :  { %v1782_v57 = vadd.f32 %v3370_v4, %v1394_v24 }
 0x182   :  { %v1780_v61 = vadd.f32 %v3370_v4, %v1386_v28 }
 0x183   :  { %v2454_v32 = vpack.c.bf16 %v1782_v57, %v1781_v29 }
 0x184   :  { %v2449_v35 = vpack.c.bf16 %v1780_v61, %v1779_v25  ;;  %v1125_v39 = vpop.f32.mrb[56].mxu0  ;;  %v2669_v40 = vpop.f32.mrb[56].mxu1 }
 0x185   :  { %2566 = vst [vmem:[%s3590_s3 + $0x58] sm:$0xff] %v2454_v32   ;;  %v1407_v60 = vadd.f32 %v2669_v40, %v1117_v19  ;;  %v1127_v5 = vpop.f32.mrb[57].mxu0  ;;  %v1398_v43 = vpop.f32.mrb[57].mxu1 }
 0x186   :  { %2565 = vst [vmem:[%s3590_s3 + $0x50] sm:$0xff] %v2449_v35   ;;  %v1399_v3 = vadd.f32 %v1398_v43, %v1109_v51  ;;  %v1128_v49 = vpop.f32.mrb[58].mxu0  ;;  %v2670_v44 = vpop.f32.mrb[58].mxu1 }
 0x187   :  { %v1410_v47 = vadd.f32 %v2670_v44, %v1120_v1  ;;  %v1130_v48 = vpop.f32.mrb[59].mxu0  ;;  %v1401_v17 = vpop.f32.mrb[59].mxu1  ;;  %v1785_v53 = vadd.f32 %v3370_v4, %v1407_v60 }
 0x188   :  { %v1402_v41 = vadd.f32 %v1401_v17, %v1112_v56  ;;  %v1783_v45 = vadd.f32 %v3370_v4, %v1399_v3 }
 0x189   :  { %v1786_v52 = vadd.f32 %v3370_v4, %v1410_v47 }
 0x18a   :  { %v1784_v55 = vadd.f32 %v3370_v4, %v1402_v41 }
 0x18b   :  { %v2464_v9 = vpack.c.bf16 %v1786_v52, %v1785_v53 }
 0x18c   :  { %v2459_v21 = vpack.c.bf16 %v1784_v55, %v1783_v45  ;;  %v1133_v13 = vpop.f32.mrb[60].mxu0  ;;  %v2673_v63 = vpop.f32.mrb[60].mxu1 }
 0x18d   :  { %2568 = vst [vmem:[%s3590_s3 + $0x68] sm:$0xff] %v2464_v9   ;;  %v1423_v51 = vadd.f32 %v2673_v63, %v1133_v13  ;;  %v1135_v0 = vpop.f32.mrb[61].mxu0  ;;  %v1414_v7 = vpop.f32.mrb[61].mxu1 }
 0x18e   :  { %2567 = vst [vmem:[%s3590_s3 + $0x60] sm:$0xff] %v2459_v21   ;;  %v1415_v56 = vadd.f32 %v1414_v7, %v1125_v39  ;;  %v1136_v11 = vpop.f32.mrb[62].mxu0  ;;  %v2674_v31 = vpop.f32.mrb[62].mxu1 }
 0x18f   :  { %v1426_v12 = vadd.f32 %v2674_v31, %v1136_v11  ;;  %v1138_v15 = vpop.f32.mrb[63].mxu0  ;;  %v1417_v16 = vpop.f32.mrb[63].mxu1  ;;  %v1789_v33 = vadd.f32 %v3370_v4, %v1423_v51 }
 0x190   :  { %v1418_v19 = vadd.f32 %v1417_v16, %v1128_v49  ;;  %v1787_v36 = vadd.f32 %v3370_v4, %v1415_v56 }
 0x191   :  { %v1790_v59 = vadd.f32 %v3370_v4, %v1426_v12 }
 0x192   :  { %v1788_v20 = vadd.f32 %v3370_v4, %v1418_v19 }
 0x193   :  { %v2474_v8 = vpack.c.bf16 %v1790_v59, %v1789_v33 }
 0x194   :  { %v2469_v1 = vpack.c.bf16 %v1788_v20, %v1787_v36  ;;  %v1141_v23 = vpop.f32.mrb[64].mxu0  ;;  %v2677_v24 = vpop.f32.mrb[64].mxu1 }
 0x195   :  { %2570 = vst [vmem:[%s3590_s3 + $0x78] sm:$0xff] %v2474_v8   ;;  %v1143_v27 = vpop.f32.mrb[65].mxu0  ;;  %v1430_v37 = vpop.f32.mrb[65].mxu1 }
 0x196   :  { %2569 = vst [vmem:[%s3590_s3 + $0x70] sm:$0xff] %v2469_v1   ;;  %v1431_v28 = vadd.f32 %v1430_v37, %v1141_v23  ;;  %v1144_v29 = vpop.f32.mrb[66].mxu0  ;;  %v2678_v57 = vpop.f32.mrb[66].mxu1 }
 0x197   :  { %v1146_v25 = vpop.f32.mrb[67].mxu0  ;;  %v1433_v61 = vpop.f32.mrb[67].mxu1 }
 0x198   :  { %v1434_v32 = vadd.f32 %v1433_v61, %v1144_v29  ;;  %v1791_v35 = vadd.f32 %v3370_v4, %v1431_v28 }
 0x19a   :  { %v1792_v39 = vadd.f32 %v3370_v4, %v1434_v32 }
 0x19c   :  { %v2479_v40 = vpack.c.bf16 %v1792_v39, %v1791_v35  ;;  %v1149_v60 = vpop.f32.mrb[68].mxu0  ;;  %v2681_v5 = vpop.f32.mrb[68].mxu1 }
 0x19d   :  { %v1439_v43 = vadd.f32 %v2677_v24, %v1149_v60  ;;  %v1151_v3 = vpop.f32.mrb[69].mxu0  ;;  %v1446_v49 = vpop.f32.mrb[69].mxu1 }
 0x19e   :  { %2571 = vst [vmem:[%s3590_s3 + $0x80] sm:$0xff] %v2479_v40   ;;  %v1152_v44 = vpop.f32.mrb[70].mxu0  ;;  %v2682_v47 = vpop.f32.mrb[70].mxu1 }
 0x19f   :  { %v1442_v48 = vadd.f32 %v2678_v57, %v1152_v44  ;;  %v1154_v17 = vpop.f32.mrb[71].mxu0  ;;  %v1449_v41 = vpop.f32.mrb[71].mxu1  ;;  %v1793_v53 = vadd.f32 %v3370_v4, %v1439_v43 }
 0x1a1   :  { %v1794_v52 = vadd.f32 %v3370_v4, %v1442_v48 }
 0x1a3   :  { %v2484_v45 = vpack.c.bf16 %v1794_v52, %v1793_v53 }
 0x1a4   :  { %v1157_v55 = vpop.f32.mrb[72].mxu0  ;;  %v2685_v9 = vpop.f32.mrb[72].mxu1 }
 0x1a5   :  { %2572 = vst [vmem:[%s3590_s3 + $0x88] sm:$0xff] %v2484_v45   ;;  %v1447_v21 = vadd.f32 %v1446_v49, %v1157_v55  ;;  %v1159_v13 = vpop.f32.mrb[73].mxu0  ;;  %v1462_v63 = vpop.f32.mrb[73].mxu1 }
 0x1a6   :  { %v1160_v51 = vpop.f32.mrb[74].mxu0  ;;  %v2686_v0 = vpop.f32.mrb[74].mxu1 }
 0x1a7   :  { %v1450_v7 = vadd.f32 %v1449_v41, %v1160_v51  ;;  %v1162_v56 = vpop.f32.mrb[75].mxu0  ;;  %v1465_v11 = vpop.f32.mrb[75].mxu1  ;;  %v1795_v31 = vadd.f32 %v3370_v4, %v1447_v21 }
 0x1a9   :  { %v1796_v12 = vadd.f32 %v3370_v4, %v1450_v7 }
 0x1ab   :  { %v2489_v15 = vpack.c.bf16 %v1796_v12, %v1795_v31 }
 0x1ac   :  { %v1165_v16 = vpop.f32.mrb[76].mxu0  ;;  %v3491_v19 = vpop.f32.mrb[76].mxu1 }
 0x1ad   :  { %2573 = vst [vmem:[%s3590_s3 + $0x90] sm:$0xff] %v2489_v15   ;;  %v1455_v33 = vadd.f32 %v2681_v5, %v1165_v16  ;;  %v1167_v59 = vpop.f32.mrb[77].mxu0  ;;  %v3496_v36 = vpop.f32.mrb[77].mxu1 }
 0x1ae   :  { %v1168_v20 = vpop.f32.mrb[78].mxu0  ;;  %v3498_v8 = vpop.f32.mrb[78].mxu1 }
 0x1af   :  { %v1458_v1 = vadd.f32 %v2682_v47, %v1168_v20  ;;  %v1170_v23 = vpop.f32.mrb[79].mxu0  ;;  %v3500_v24 = vpop.f32.mrb[79].mxu1  ;;  %v1797_v27 = vadd.f32 %v3370_v4, %v1455_v33 }
 0x1b1   :  { %v1798_v37 = vadd.f32 %v3370_v4, %v1458_v1 }
 0x1b3   :  { %v2494_v28 = vpack.c.bf16 %v1798_v37, %v1797_v27 }
 0x1b4   :  { %v1173_v29 = vpop.f32.mrb[80].mxu0  ;;  %v2693_v57 = vpop.f32.mrb[80].mxu1 }
 0x1b5   :  { %2574 = vst [vmem:[%s3590_s3 + $0x98] sm:$0xff] %v2494_v28   ;;  %v1463_v25 = vadd.f32 %v1462_v63, %v1173_v29  ;;  %v1503_v61 = vadd.f32 %v2693_v57, %v3313_v2  ;;  %v1175_v32 = vpop.f32.mrb[81].mxu0  ;;  %v1494_v35 = vpop.f32.mrb[81].mxu1 }
 0x1b6   :  { %v1495_v39 = vadd.f32 %v1494_v35, %v3307_v58  ;;  %v1176_v40 = vpop.f32.mrb[82].mxu0  ;;  %v2694_v60 = vpop.f32.mrb[82].mxu1 }
 0x1b7   :  { %v1466_v5 = vadd.f32 %v1465_v11, %v1176_v40  ;;  %v1506_v43 = vadd.f32 %v2694_v60, %v3315_v6  ;;  %v1178_v3 = vpop.f32.mrb[83].mxu0  ;;  %v1497_v49 = vpop.f32.mrb[83].mxu1  ;;  %v1799_v47 = vadd.f32 %v3370_v4, %v1463_v25  ;;  %v1809_v48 = vadd.f32 %v3370_v4, %v1503_v61 }
 0x1b8   :  { %v1498_v44 = vadd.f32 %v1497_v49, %v3311_v62  ;;  %v1807_v41 = vadd.f32 %v3370_v4, %v1495_v39 }
 0x1b9   :  { %v1800_v17 = vadd.f32 %v3370_v4, %v1466_v5  ;;  %v1810_v2 = vadd.f32 %v3370_v4, %v1506_v43 }
 0x1ba   :  { %v1808_v58 = vadd.f32 %v3370_v4, %v1498_v44 }
 0x1bb   :  { %v2499_v53 = vpack.c.bf16 %v1800_v17, %v1799_v47  ;;  %v2524_v52 = vpack.c.bf16 %v1810_v2, %v1809_v48 }
 0x1bc   :  { %v2519_v45 = vpack.c.bf16 %v1808_v58, %v1807_v41  ;;  %v1181_v6 = vpop.f32.mrb[84].mxu0  ;;  %v2697_v55 = vpop.f32.mrb[84].mxu1 }
 0x1bd   :  { %2575 = vst [vmem:[%s3590_s3 + $0xa0] sm:$0xff] %v2499_v53   ;;  %2580 = vst [vmem:[%s3590_s3 + $0xc8] sm:$0xff] %v2524_v52   ;;  %v1471_v62 = vadd.f32 %v2685_v9, %v1181_v6  ;;  %v1519_v21 = vadd.f32 %v2697_v55, %v3327_v18  ;;  %v1183_v13 = vpop.f32.mrb[85].mxu0  ;;  %v1510_v63 = vpop.f32.mrb[85].mxu1 }
 0x1be   :  { %2579 = vst [vmem:[%s3590_s3 + $0xc0] sm:$0xff] %v2519_v45   ;;  %v1511_v51 = vadd.f32 %v1510_v63, %v3319_v10  ;;  %v1184_v7 = vpop.f32.mrb[86].mxu0  ;;  %v2698_v56 = vpop.f32.mrb[86].mxu1 }
 0x1bf   :  { %v1474_v11 = vadd.f32 %v2686_v0, %v1184_v7  ;;  %v1522_v31 = vadd.f32 %v2698_v56, %v3331_v22  ;;  %v1186_v12 = vpop.f32.mrb[87].mxu0  ;;  %v1513_v15 = vpop.f32.mrb[87].mxu1  ;;  %v1801_v9 = vadd.f32 %v3370_v4, %v1471_v62  ;;  %v1813_v18 = vadd.f32 %v3370_v4, %v1519_v21 }
 0x1c0   :  { %v1514_v16 = vadd.f32 %v1513_v15, %v3323_v14  ;;  %v1811_v20 = vadd.f32 %v3370_v4, %v1511_v51 }
 0x1c1   :  { %v1802_v33 = vadd.f32 %v3370_v4, %v1474_v11  ;;  %v1814_v59 = vadd.f32 %v3370_v4, %v1522_v31 }
 0x1c2   :  { %v1812_v10 = vadd.f32 %v3370_v4, %v1514_v16 }
 0x1c3   :  { %v2504_v1 = vpack.c.bf16 %v1802_v33, %v1801_v9  ;;  %v2534_v0 = vpack.c.bf16 %v1814_v59, %v1813_v18 }
 0x1c4   :  { %v2529_v23 = vpack.c.bf16 %v1812_v10, %v1811_v20  ;;  %v1189_v22 = vpop.f32.mrb[88].mxu0  ;;  %v2701_v27 = vpop.f32.mrb[88].mxu1 }
 0x1c5   :  { %2576 = vst [vmem:[%s3590_s3 + $0xa8] sm:$0xff] %v2504_v1   ;;  %2582 = vst [vmem:[%s3590_s3 + $0xd8] sm:$0xff] %v2534_v0   ;;  %v1479_v14 = vadd.f32 %v3496_v36, %v1189_v22  ;;  %v1535_v37 = vadd.f32 %v2701_v27, %v3343_v34  ;;  %v1191_v28 = vpop.f32.mrb[89].mxu0  ;;  %v1526_v29 = vpop.f32.mrb[89].mxu1 }
 0x1c6   :  { %2581 = vst [vmem:[%s3590_s3 + $0xd0] sm:$0xff] %v2529_v23   ;;  %v1527_v57 = vadd.f32 %v1526_v29, %v3335_v26  ;;  %v1192_v25 = vpop.f32.mrb[90].mxu0  ;;  %v2702_v61 = vpop.f32.mrb[90].mxu1 }
 0x1c7   :  { %v1482_v32 = vadd.f32 %v3500_v24, %v1192_v25  ;;  %v1538_v35 = vadd.f32 %v2702_v61, %v3347_v38  ;;  %v1194_v39 = vpop.f32.mrb[91].mxu0  ;;  %v1529_v40 = vpop.f32.mrb[91].mxu1  ;;  %v1803_v34 = vadd.f32 %v3370_v4, %v1479_v14  ;;  %v1817_v60 = vadd.f32 %v3370_v4, %v1535_v37 }
 0x1c8   :  { %v1530_v36 = vadd.f32 %v1529_v40, %v3339_v30  ;;  %v1815_v26 = vadd.f32 %v3370_v4, %v1527_v57 }
 0x1c9   :  { %v1804_v5 = vadd.f32 %v3370_v4, %v1482_v32  ;;  %v1818_v43 = vadd.f32 %v3370_v4, %v1538_v35 }
 0x1ca   :  { %v1816_v3 = vadd.f32 %v3370_v4, %v1530_v36 }
 0x1cb   :  { %v2509_v49 = vpack.c.bf16 %v1804_v5, %v1803_v34  ;;  %v2544_v24 = vpack.c.bf16 %v1818_v43, %v1817_v60 }
 0x1cc   :  { %v2539_v44 = vpack.c.bf16 %v1816_v3, %v1815_v26  ;;  %v1197_v38 = vpop.f32.mrb[92].mxu0  ;;  %v2705_v47 = vpop.f32.mrb[92].mxu1 }
 0x1cd   :  { %2577 = vst [vmem:[%s3590_s3 + $0xb0] sm:$0xff] %v2509_v49   ;;  %2584 = vst [vmem:[%s3590_s3 + $0xe8] sm:$0xff] %v2544_v24   ;;  %v1487_v30 = vadd.f32 %v3491_v19, %v1197_v38  ;;  %v1551_v48 = vadd.f32 %v2705_v47, %v3359_v50  ;;  %v1199_v17 = vpop.f32.mrb[93].mxu0  ;;  %v1542_v2 = vpop.f32.mrb[93].mxu1 }
 0x1ce   :  { %2583 = vst [vmem:[%s3590_s3 + $0xe0] sm:$0xff] %v2539_v44   ;;  %v1543_v41 = vadd.f32 %v1542_v2, %v3351_v42  ;;  %v1200_v58 = vpop.f32.mrb[94].mxu0  ;;  %v2706_v53 = vpop.f32.mrb[94].mxu1 }
 0x1cf   :  { %v1490_v52 = vadd.f32 %v3498_v8, %v1200_v58  ;;  %v1554_v45 = vadd.f32 %v2706_v53, %v3363_v54  ;;  %v1202_v6 = vpop.f32.mrb[95].mxu0  ;;  %v1545_v55 = vpop.f32.mrb[95].mxu1  ;;  %v1805_v50 = vadd.f32 %v3370_v4, %v1487_v30  ;;  %v1821_v62 = vadd.f32 %v3370_v4, %v1551_v48 }
 0x1d0   :  { %v1546_v19 = vadd.f32 %v1545_v55, %v3355_v46  ;;  %v1819_v42 = vadd.f32 %v3370_v4, %v1543_v41 }
 0x1d1   :  { %v1806_v21 = vadd.f32 %v3370_v4, %v1490_v52  ;;  %v1822_v13 = vadd.f32 %v3370_v4, %v1554_v45 }
 0x1d2   :  { %v1820_v63 = vadd.f32 %v3370_v4, %v1546_v19 }
 0x1d3   :  { %v2514_v51 = vpack.c.bf16 %v1806_v21, %v1805_v50  ;;  %v2554_v8 = vpack.c.bf16 %v1822_v13, %v1821_v62 }
 0x1d4   :  { %v2549_v7 = vpack.c.bf16 %v1820_v63, %v1819_v42 }
 0x1d5   :  { %2578 = vst [vmem:[%s3590_s3 + $0xb8] sm:$0xff] %v2514_v51   ;;  %2586 = vst [vmem:[%s3590_s3 + $0xf8] sm:$0xff] %v2554_v8  }
 0x1d6   :  { %2585 = vst [vmem:[%s3590_s3 + $0xf0] sm:$0xff] %v2549_v7  }

// kernel: dnlf_forward.16
= control target key start
LH: loop header
LB: loop body
LE: loop exit
PB: predicated region body
PF: predicated region fallthrough
CT: control target
= control target key end

     0   :  { %s8867_s0 = inlined_call_operand.vmem [shape: bf16[4,16,16,8], index: 0, kind: input, shape index: {}, may-alias: {0,1,2}]   ;;  %s8868_s1 = inlined_call_operand.vmem [shape: bf16[4,16,16,8], index: 1, kind: input, shape index: {}, may-alias: {0,1,2}]   ;;  %s8869_s2 = inlined_call_operand.vmem [shape: bf16[4,16,16,8], index: 2, kind: input, shape index: {}, may-alias: {0,1,2}]   ;;  %s8870_s3 = inlined_call_operand.vmem [shape: bf16[4,16,16,32], index: 3, kind: input, shape index: {}, may-alias: {3,4,5}]   ;;  %s8871_s4 = inlined_call_operand.vmem [shape: bf16[4,16,16,32], index: 4, kind: input, shape index: {}, may-alias: {3,4,5}]   ;;  %s8872_s5 = inlined_call_operand.vmem [shape: bf16[4,16,16,32], index: 5, kind: input, shape index: {}, may-alias: {3,4,5}]   ;;  %s8873_s6 = inlined_call_operand.vmem [shape: bf16[4,16,16,32], index: 6, kind: input, shape index: {}, may-alias: {6,7,8}]   ;;  %s8874_s7 = inlined_call_operand.vmem [shape: bf16[4,16,16,32], index: 7, kind: input, shape index: {}, may-alias: {6,7,8}]   ;;  %s8875_s8 = inlined_call_operand.vmem [shape: bf16[4,16,16,32], index: 8, kind: input, shape index: {}, may-alias: {6,7,8}]   ;;  %s8876_s9 = inlined_call_operand.vmem [shape: bf16[32,16], index: 9, kind: input, shape index: {}]   ;;  %s8877_s10 = inlined_call_operand.vmem [shape: f32[1,16], index: 10, kind: input, shape index: {}]   ;;  %s8878_s11 = inlined_call_operand.vmem [shape: bf16[16,16], index: 11, kind: input, shape index: {}]   ;;  %s8879_s12 = inlined_call_operand.vmem [shape: f32[1,16], index: 12, kind: input, shape index: {}]   ;;  %s8880_s13 = inlined_call_operand.hbm [shape: bf16[4,16,16,32], index: 13, kind: output, shape index: {0}]   ;;  %s8881_s14 = inlined_call_operand.hbm [shape: f32[4,16,16], index: 14, kind: output, shape index: {1}]  }
   0x1   :  { %8921 = sst [smem:[#allocation48_spill]] %s8876_s9 }
   0x2   :  { %8922 = sst [smem:[#allocation49_spill]] %s8881_s14 }
   0x3   :  { %20 = vsyncpa [#allocation3], 0 }
   0x4   :  { %22 = vsyncpa [#allocation3 + $0x1], 0 }
   0x5   :  { %23 = vsyncpa [#allocation5], 0 }
   0x6   :  { %25 = vsyncpa [#allocation5 + $0x1], 0  ;;  %s7194_s29 = smov 0   ;;  %s7196_s30 = smov 0  }
   0x7   :  { %s7198_s15 = smov 0   ;;  %s7200_s16 = smov 0  }
   0x8   :  { %s7202_s17 = smov 0   ;;  %s7204_s18 = smov 0  }
   0x9   :  { %s7206_s19 = smov 0   ;;  %s7208_s20 = smov 0  }
   0xa LB: > { %8923 = sst [smem:[#allocation8_spill]] %s7082_s29  ;;  %s5813_s21 = sadd.s32 4294967295, %s7110_s20   ;;  %s7110_s20 = sphi %s7208_s20, %s31_s20   ;;  %s7106_s19 = sphi %s7206_s19, %s9007_s19   ;;  %s7102_s18 = sphi %s7204_s18, %s9006_s18   ;;  %s7098_s17 = sphi %s7202_s17, %s9005_s17   ;;  %s7094_s16 = sphi %s7200_s16, %s9004_s16   ;;  %s7090_s15 = sphi %s7198_s15, %s9010_s15   ;;  %s7086_s30 = sphi %s7196_s30, %s9009_s30   ;;  %s7082_s29 = sphi %s7194_s29, %s9008_s29  }
   0xb   : > { %8924 = sst [smem:[#allocation9_spill]] %s7102_s18  ;;  %s5814_s22 = sadd.s32 4294967294, %s7110_s20  }
   0xc   : > { %8925 = sst [smem:[#allocation10_spill]] %s7106_s19  ;;  %s40_s23 = sadd.s32 1, %s7102_s18 }
   0xd   : > { %8926 = sst [smem:[#allocation11_spill]] %s7110_s20  ;;  %p41_p0 = scmp.ge.s32.totalorder %s40_s23, 2 }
   0xe   : > { %s43_s24 = sadd.s32 1, %s7106_s19  ;;  %p566_p1 = scmp.ne.s32.totalorder %s7090_s15, %s7086_s30 }
   0xf   : > { %p567_p2 = scmp.eq.s32.totalorder %s5813_s21, 7  ;;  %s9012_s23 = smov (%p41_p0, %s40_s23), 0 }
  0x10   : > { %8927 = sst [smem:[#allocation12_spill]] %s9012_s23  ;;  %s9014_s24 = smov (!%p41_p0, %s43_s24), %s7106_s19 }
  0x11   : > { %s552_s25 = ssub.s32 %s7102_s18, %s9012_s23  ;;  %p7245_p3 = por %p567_p2, %p566_p1 }
  0x12   : > { %p45_p4 = scmp.ge.s32.totalorder %s9014_s24, 4  ;;  %p572_p5 = scmp.ne.s32.totalorder %s7086_s30, %s7082_s29 }
  0x13   : > { %p573_p6 = scmp.eq.s32.totalorder %s5814_s22, 7  ;;  %p5865_p7 = scmp.ge.s32.totalorder %s7110_s20, 1 }
  0x14   : > { %s9016_s24 = smov (%p45_p4, %s9014_s24), 0  ;;  %p913_p9 = scmp.lt.s32.totalorder %s7110_s20, 9 }
  0x15   : > { %8929 = sst [smem:[#allocation13_spill]] %s9016_s24  ;;  %p7254_p8 = por %p573_p6, %p572_p5 }
  0x16   : > { %s551_s28 = ssub.s32 %s7106_s19, %s9016_s24  ;;  %s556_s21 = sadd.s32 1, %s7090_s15 }
  0x17   : > { %s8930_s27 = scalar_select %p7254_p8, 1, 0 }
  0x18   : > { %s553_s14 = sor.u32 %s552_s25, %s551_s28  ;;  %p914_p10 = pnand %p5865_p7, %p913_p9 }
  0x19   : > { %8931 = sst [smem:[#allocation14_spill]] %s8930_s27  ;;  %p554_p11 = scmp.eq.s32.totalorder %s553_s14, 0 }
  0x1a   : > { %917 = sbr.rel (%p914_p10) target bundleno = 1182 (0x49e), region = 72 }
  0x1b   : > { %s7263_s23 = scalar_select %p554_p11, %s7090_s15, %s556_s21  }
  0x1d   : > { %8932 = sst [smem:[#allocation15_spill]] %s7263_s23 }
  0x21   : > { %s8933_s9 = sld [smem:[#allocation48_spill]]  ;;  %s7271_s22 = sshll.u32 %s7094_s16, 3  ;;  %v8891_v2 = vmov 0.0   ;;  %vm7113_vm0 = vmmov 0   ;;  %vm1670_vm1 = vcmask 261120   ;;  %vm1469_vm2 = vcmask 64512  }
  0x22   : > { %p1128_p12 = scmp.lt.s32.totalorder %s7098_s17, 3  ;;  %p1130_p13 = scmp.lt.s32.totalorder %s7271_s22, 15  ;;  %6226 = vmatprep.subr.bf16.mxu1 %v8891_v2  ;;  %6230 = vmatprep.mubr.msk.bf16.mxu1 %vm7113_vm0, %v8891_v2  ;;  %vm1935_vm3 = vcmask 130048   ;;  %vm5237_vm4 = vcmask 257024  }
  0x23   : > { %s7282_s14 = sadd.s32 15, %s7271_s22 }
  0x24   : > { %s1129_s29 = scalar_select %p1128_p12, %s7098_s17, 3 }
  0x25   : > { %s1131_s18 = scalar_select %p1130_p13, %s7271_s22, 15 }
  0x26   : > { %s7290_s20 = sshll.u32 %s1129_s29, 5  ;;  %p1140_p0 = scmp.lt.s32.totalorder %s7282_s14, 0 }
  0x27   : > { %v7268_v0 = vld [vmem:[%s8933_s9] sm:$0xff]   ;;  %v7276_v1 = vld [vmem:[%s8933_s9 + $0x8] sm:$0xff]   ;;  %s5869_s25 = sshll.u32 %s1131_s18, 1  ;;  %s1141_s27 = ssub.s32 0, %s7282_s14 }
  0x28   : > { %6206 = vmatprep.subr.bf16.mxu0 %v7268_v0  ;;  %6227 = vmatpush3.bf16.msra.mxu1 %v7268_v0  ;;  %s1134_s28 = sadd.s32 %s7290_s20, %s5869_s25  ;;  %s5873_s21 = smin.u32 %s1141_s27, %s7282_s14 }
  0x29   : > { %6207 = vmatpush3.bf16.msra.mxu0 %v7268_v0  ;;  %6228 = vmatprep.subr.bf16.mxu1 %v8891_v2  ;;  %s5871_s9 = sshll.u32 %s1134_s28, 2  ;;  %s1143_s29 = sand.u32 15, %s5873_s21  }
  0x2a   : > { %6208 = vmatprep.subr.bf16.mxu0 %v7276_v1  ;;  %s7305_s23 = scalar_lea.vmem %s8873_s6, %s5871_s9  ;;  %s1144_s18 = ssub.s32 0, %s1143_s29 }
  0x2b   : > { %v6747_v3 = vld [vmem:[%s7305_s23] sm:$0xff]   ;;  %v6748_v4 = vld [vmem:[%s7305_s23 + $0x8] sm:$0xff]   ;;  %s9018_s18 = smov (!%p1140_p0, %s1144_s18), %s1143_s29  ;;  %v6749_v5 = vld [vmem:[%s7305_s23 + $0x10] sm:$0xff]   ;;  %s7318_s25 = scalar_lea.vmem %s8867_s0, %s5871_s9 }
  0x2c   : > { %6229 = vmatpush3.bf16.msra.mxu1 %v7276_v1  ;;  %6210 = vmatprep.mubr.msk.bf16.mxu0 %vm1670_vm1, %v6747_v3  ;;  %p5875_p1 = scmp.lt.s32.totalorder %s9018_s18, 0  ;;  %s1150_s27 = sadd.s32 16, %s9018_s18  ;;  %v6750_v6 = vld [vmem:[%s7305_s23 + $0x18] sm:$0xff]   ;;  %v6751_v7 = vld [vmem:[%s7305_s23 + $0x20] sm:$0xff]   ;;  %v7335_v9 = vld [vmem:[%s7318_s25 + $0x8] sm:$0xff]  }
  0x2d   : > { %6209 = vmatpush3.bf16.msra.mxu0 %v7276_v1  ;;  %6234 = vmatprep.subr.bf16.mxu1 %v8891_v2  ;;  %s7322_s28 = sadd.s32 8, %s7271_s22  ;;  %s7329_s29 = scalar_lea.vmem %s8870_s3, %s5871_s9  ;;  %v7332_v8 = vld [vmem:[%s7318_s25] sm:$0xff]   ;;  %v7338_v10 = vld [vmem:[%s7318_s25 + $0x10] sm:$0xff]   ;;  %v7345_v12 = vunpack.c.l.bf16 %v7335_v9  ;;  %v7351_v14 = vunpack.c.h.bf16 %v7335_v9  ;;  %v7373_v21 = vld [vmem:[%s7318_s25 + $0x18] sm:$0xff]  }
  0x2e   : > { %6254 = vmatprep.subr.bf16.mxu0 %v8891_v2  ;;  %s9020_s27 = smov (!%p5875_p1, %s1150_s27), %s9018_s18  ;;  %s1178_s22 = ssub.s32 0, %s7322_s28  ;;  %v7342_v11 = vunpack.c.l.bf16 %v7332_v8  ;;  %v7348_v13 = vunpack.c.h.bf16 %v7332_v8  ;;  %v7363_v18 = vunpack.c.l.bf16 %v7338_v10  ;;  %v7370_v20 = vunpack.c.h.bf16 %v7338_v10  ;;  %v6752_v24 = vld [vmem:[%s7305_s23 + $0x28] sm:$0xff]   ;;  %v6753_v25 = vld [vmem:[%s7305_s23 + $0x30] sm:$0xff]   ;;  %v7400_v33 = vld [vmem:[%s7318_s25 + $0x20] sm:$0xff]  }
  0x2f   : > { %p1154_p2 = scmp.lt.s32.totalorder %s9020_s27, 15  ;;  %p1177_p4 = scmp.lt.s32.totalorder %s7322_s28, 0  ;;  %v1455_v16 = vmul.f32 %v7345_v12, %v7345_v12  ;;  %v1456_v19 = vmul.f32 %v7351_v14, %v7351_v14  ;;  %v7391_v29 = vunpack.c.l.bf16 %v7373_v21  ;;  %v7397_v32 = vunpack.c.h.bf16 %v7373_v21  ;;  %v7420_v40 = vld [vmem:[%s7318_s25 + $0x28] sm:$0xff]   ;;  %v6754_v41 = vld [vmem:[%s7305_s23 + $0x38] sm:$0xff]   ;;  %v7440_v48 = vld [vmem:[%s7318_s25 + $0x30] sm:$0xff]  }
  0x30   : > { %6211 = vmatmul.mubr.msk.bf16.vlgmr.msra.gmra.mrb[0].mxu0 %vm1670_vm1, %v6748_v4  ;;  %s5880_s9 = smin.u32 %s1178_s22, %s7322_s28  ;;  %v1453_v15 = vmul.f32 %v7342_v11, %v7342_v11  ;;  %v1454_v17 = vmul.f32 %v7348_v13, %v7348_v13  ;;  %v1457_v28 = vmul.f32 %v7363_v18, %v7363_v18  ;;  %v1458_v31 = vmul.f32 %v7370_v20, %v7370_v20  ;;  %v7463_v55 = vld [vmem:[%s7318_s25 + $0x38] sm:$0xff]   ;;  %s6043_s22 = sshll.u32 %s7098_s17, 5 }
  0x31   : > { %6214 = vmatprep.mubr.msk.bf16.mxu0 %vm1670_vm1, %v6749_v5  ;;  %s9022_s27 = smov (!%p1154_p2, %s9020_s27), 15  ;;  %s1180_s19 = sand.u32 15, %s5880_s9   ;;  %v1476_v23 = vsel %vm1469_vm2, %v1455_v16, 0.0  ;;  %v1479_v30 = vsel %vm1469_vm2, %v1456_v19, 0.0  ;;  %v1459_v35 = vmul.f32 %v7391_v29, %v7391_v29  ;;  %v7409_v36 = vunpack.c.l.bf16 %v7400_v33 }
  0x32   : > { %s5876_s18 = sshll.u32 %s9022_s27, 1  ;;  %s1181_s27 = ssub.s32 0, %s1180_s19  ;;  %v1470_v22 = vsel %vm1469_vm2, %v1453_v15, 0.0  ;;  %1477 = vadd.xlane.f32.xlu1 %v1476_v23  ;;  %v1473_v27 = vsel %vm1469_vm2, %v1454_v17, 0.0  ;;  %v1482_v34 = vsel %vm1469_vm2, %v1457_v28, 0.0  ;;  %v1485_v37 = vsel %vm1469_vm2, %v1458_v31, 0.0 }
  0x33   : > { %s1158_s24 = sadd.s32 %s5876_s18, %s7290_s20  ;;  %1471 = vadd.xlane.f32.xlu0 %v1470_v22  ;;  %s9024_s27 = smov (!%p1177_p4, %s1181_s27), %s1180_s19  ;;  %v1460_v38 = vmul.f32 %v7397_v32, %v7397_v32  ;;  %v7417_v39 = vunpack.c.h.bf16 %v7400_v33  ;;  %v1488_v42 = vsel %vm1469_vm2, %v1459_v35, 0.0  ;;  %v1461_v43 = vmul.f32 %v7409_v36, %v7409_v36  ;;  %v7521_v31 = vld [vmem:[%s8877_s10] ss:$0 sm:$0xff] }
  0x34   : > { %s7375_s14 = sshll.u32 %s1158_s24, 2  ;;  %p5882_p5 = scmp.lt.s32.totalorder %s9024_s27, 0  ;;  %v7430_v44 = vunpack.c.l.bf16 %v7420_v40  ;;  %v7437_v47 = vunpack.c.h.bf16 %v7420_v40  ;;  %v7450_v51 = vunpack.c.l.bf16 %v7440_v48  ;;  %v7460_v54 = vunpack.c.h.bf16 %v7440_v48 }
  0x35   : > { %s1330_s9 = scalar_lea.vmem %s8874_s7, %s7375_s14  ;;  %s1187_s18 = sadd.s32 16, %s9024_s27  ;;  %v1491_v45 = vsel %vm1469_vm2, %v1460_v38, 0.0  ;;  %v1462_v46 = vmul.f32 %v7417_v39, %v7417_v39  ;;  %v1494_v49 = vsel %vm1469_vm2, %v1461_v43, 0.0  ;;  %v7476_v59 = vunpack.c.l.bf16 %v7463_v55 }
  0x36   : > { %v6755_v26 = vld [vmem:[%s1330_s9] sm:$0xff]   ;;  %1480 = vadd.xlane.f32.xlu1 %v1479_v30  ;;  %s9026_s18 = smov (!%p5882_p5, %s1187_s18), %s9024_s27  ;;  %v1463_v50 = vmul.f32 %v7430_v44, %v7430_v44  ;;  %v1464_v53 = vmul.f32 %v7437_v47, %v7437_v47  ;;  %s1160_s9 = scalar_lea.vmem %s8868_s1, %s7375_s14  ;;  %v1465_v58 = vmul.f32 %v7450_v51, %v7450_v51  ;;  %v1466_v61 = vmul.f32 %v7460_v54, %v7460_v54 }
  0x37   : > { %6231 = vmatmul.mubr.msk.bf16.vlgmr.msra.gmra.mrb[0].mxu1 %vm1670_vm1, %v6755_v26  ;;  %1474 = vadd.xlane.f32.xlu0 %v1473_v27  ;;  %p1191_p6 = scmp.lt.s32.totalorder %s9026_s18, 15  ;;  %v1497_v52 = vsel %vm1469_vm2, %v1462_v46, 0.0  ;;  %v7482_v62 = vunpack.c.h.bf16 %v7463_v55  ;;  %v6067_v63 = vld [vmem:[%s1160_s9] sm:$0xff]   ;;  %s1245_s9 = scalar_lea.vmem %s8871_s4, %s7375_s14 }
  0x38   : > { %6215 = vmatmul.mubr.msk.bf16.gmra.mrb[4].mxu0 %vm1670_vm1, %v6750_v6  ;;  %6235 = vmatpush3.bf16.msra.mxu1 %v7268_v0  ;;  %v1500_v57 = vsel %vm1469_vm2, %v1463_v50, 0.0  ;;  %v1503_v60 = vsel %vm1469_vm2, %v1464_v53, 0.0  ;;  %v1506_v0 = vsel %vm1469_vm2, %v1465_v58, 0.0  ;;  %v7493_v3 = vunpack.c.l.bf16 %v6067_v63  ;;  %s8713_s24 = sand.u32 1, %s7086_s30  }
  0x39   : > { %6218 = vmatprep.mubr.msk.bf16.mxu0 %vm1670_vm1, %v6751_v7  ;;  %6236 = vmatprep.subr.bf16.mxu1 %v8891_v2  ;;  %s9028_s18 = smov (!%p1191_p6, %s9026_s18), 15  ;;  %v1509_v4 = vsel %vm1469_vm2, %v1466_v61, 0.0  ;;  %v1468_v5 = vmul.f32 %v7482_v62, %v7482_v62  ;;  %v7498_v6 = vunpack.c.h.bf16 %v6067_v63  ;;  %s5866_s27 = sshll.u32 %s8713_s24, 6 }
  0x3a   : > { %6238 = vmatprep.mubr.msk.bf16.mxu1 %vm7113_vm0, %v8891_v2  ;;  %1486 = vadd.xlane.f32.xlu1 %v1485_v37  ;;  %s5883_s23 = sshll.u32 %s9028_s18, 1  ;;  %v1578_v16 = vmul.f32 %v7493_v3, %v7493_v3 }
  0x3b   : > { %1483 = vadd.xlane.f32.xlu0 %v1482_v34  ;;  %s1195_s28 = sadd.s32 %s5883_s23, %s7290_s20  ;;  %v1515_v19 = vsel %vm1469_vm2, %v1468_v5, 0.0  ;;  %v1579_v22 = vmul.f32 %v7498_v6, %v7498_v6  ;;  %s6065_s20 = sshll.u32 %s7094_s16, 4 }
  0x3c   : > { %6237 = vmatpush3.bf16.msra.mxu1 %v7276_v1  ;;  %s7444_s19 = sshll.u32 %s1195_s28, 2  ;;  %v1467_v1 = vmul.f32 %v7476_v59, %v7476_v59 }
  0x3d   : > { %6242 = vmatprep.subr.bf16.mxu1 %v8891_v2  ;;  %s1367_s21 = scalar_lea.vmem %s8875_s8, %s7444_s19  ;;  %s1197_s23 = scalar_lea.vmem %s8869_s2, %s7444_s19  ;;  %v1583_v26 = vsel %vm1469_vm2, %v1579_v22, 0.0 }
  0x3e   : > { %1492 = vadd.xlane.f32.xlu1 %v1491_v45  ;;  %v6759_v56 = vld [vmem:[%s1367_s21] sm:$0xff]   ;;  %v1512_v15 = vsel %vm1469_vm2, %v1467_v1, 0.0  ;;  %s1282_s18 = scalar_lea.vmem %s8872_s5, %s7444_s19  ;;  %s8721_s21 = scalar_lea.vmem [#allocation2], %s5866_s27 }
  0x3f   : > { %1489 = vadd.xlane.f32.xlu0 %v1488_v42  ;;  %6239 = vmatmul.mubr.msk.bf16.vlgmr.msra.gmra.mrb[4].mxu1 %vm1670_vm1, %v6759_v56  ;;  %v6071_v7 = vld [vmem:[%s1197_s23] sm:$0xff]   ;;  %s5511_s25 = sshll.u32 %s8721_s21, 4  ;;  %s5490_s19 = scalar_lea.sflag [#allocation3], %s8713_s24  ;;  %s8767_s25 = int_to_ptr.vmem [resolvable:$true] %s5511_s25 }
  0x40   : > { %6219 = vmatmul.mubr.msk.bf16.gmra.mrb[8].mxu0 %vm1670_vm1, %v6752_v24  ;;  %6244 = vmatprep.mubr.msk.bf16.mxu1 %vm7113_vm0, %v8891_v2  ;;  %v7503_v17 = vunpack.c.l.bf16 %v6071_v7  ;;  %v7508_v23 = vunpack.c.h.bf16 %v6071_v7  ;;  %v1580_v24 = vsel %vm1469_vm2, %v1578_v16, 0.0  ;;  %s6984_s28 = scalar_lea.vmem %s8767_s25, 1024  ;;  %s7115_s27 = smov [#allocation2]  }
  0x41   : > { %6222 = vmatprep.mubr.msk.bf16.mxu0 %vm1670_vm1, %v6753_v25  ;;  %p6985_p7 = scmp.ne.s32.totalorder %s8767_s25, %s6984_s28 }
  0x42   : > { %1498 = vadd.xlane.f32.xlu1 %v1497_v52  ;;  %v1597_v25 = vmul.f32 %v7503_v17, %v7503_v17  ;;  %v1598_v27 = vmul.f32 %v7508_v23, %v7508_v23 }
  0x43   : > { %1495 = vadd.xlane.f32.xlu0 %v1494_v49  ;;  %p6986_p9 = pnand %p6985_p7, %p7245_p3 }
  0x44   : > { %v1599_v28 = vsel %vm1469_vm2, %v1597_v25, 0.0  ;;  %v1602_v30 = vsel %vm1469_vm2, %v1598_v27, 0.0 }
  0x45   : > { %p6987_p10 = pneg %p6986_p9 }
  0x46   : > { %1504 = vadd.xlane.f32.xlu1 %v1503_v60 }
  0x47   : > { %1501 = vadd.xlane.f32.xlu0 %v1500_v57 }
  0x48   : > { %6223 = vmatmul.mubr.msk.bf16.gmra.mrb[12].mxu0 %vm1670_vm1, %v6754_v41 }
  0x49   : > { %6256 = vmatprep.mubr.msk.bf16.mxu0 %vm7113_vm0, %v8891_v2 }
  0x4a   : > { %1510 = vadd.xlane.f32.xlu1 %v1509_v4 }
  0x4b   : > { %1507 = vadd.xlane.f32.xlu0 %v1506_v0 }
  0x4e   : > { %1516 = vadd.xlane.f32.xlu1 %v1515_v19 }
  0x4f   : > { %1513 = vadd.xlane.f32.xlu0 %v1512_v15 }
  0x52   : > { %1584 = vadd.xlane.f32.xlu1 %v1583_v26 }
  0x53   : > { %1581 = vadd.xlane.f32.xlu0 %v1580_v24 }
  0x56   : > { %1603 = vadd.xlane.f32.xlu1 %v1602_v30  ;;  %v7546_v30 = vld [vmem:[%s8878_s11] sm:$0xff]  }
  0x57   : > { %1600 = vadd.xlane.f32.xlu0 %v1599_v28 }
  0xbf   : > { %v7527_v43 = vpop.xlane.xlu1 %1477 }
  0xc0   : > { %v7523_v34 = vpop.xlane.xlu0 %1471 }
  0xc3   : > { %v7531_v63 = vpop.xlane.xlu1 %1480 }
  0xc4   : > { %v1475_v53 = vpop.xlane.xlu0 %1474 }
  0xc7   : > { %v7541_v24 = vpop.xlane.xlu1 %1486 }
  0xc8   : > { %v7534_v4 = vpop.xlane.xlu0 %1483 }
 0x103   : > { %v6212_v35 = vpop.f32.mrb[0].mxu0 }
 0x104   : > { %v1738_v37 = vadd.f32 %v6212_v35, %v7521_v31  ;;  %v1729_v38 = vpop.f32.mrb[1].mxu0 }
 0x105   : > { %v1730_v41 = vadd.f32 %v7521_v31, %v1729_v38  ;;  %v6213_v42 = vpop.f32.mrb[2].mxu0  ;;  %v7548_v38 = vpop.xlane.xlu0 %1489 }
 0x106   : > { %v1741_v45 = vadd.f32 %v6213_v42, %v7521_v31  ;;  %v1732_v46 = vpop.f32.mrb[3].mxu0  ;;  %v1794_v50 = vmax.f32 %v1738_v37, 0.0 }
 0x107   : > { %v1733_v49 = vadd.f32 %v7521_v31, %v1732_v46  ;;  %v1792_v56 = vmax.f32 %v1730_v41, 0.0 }
 0x108   : > { %v1795_v52 = vmax.f32 %v1741_v45, 0.0 }
 0x109   : > { %v1793_v57 = vmax.f32 %v1733_v49, 0.0  ;;  %v1518_v49 = vmax.f32 %v7523_v34, 2.5e-09  ;;  %v7559_v34 = vpop.xlane.xlu1 %1492 }
 0x10a   : > { %v1809_v58 = vpack.c.bf16 %v1795_v52, %v1794_v50  ;;  %v1860_v35 = vpop.f32.mrb[0].mxu1 }
 0x10b   : > { %v1808_v60 = vpack.c.bf16 %v1793_v57, %v1792_v56  ;;  %v6216_v61 = vpop.f32.mrb[4].mxu0  ;;  %v1861_v41 = vadd.f32 %v7521_v31, %v1860_v35  ;;  %v6232_v42 = vpop.f32.mrb[1].mxu1  ;;  %v1519_v57 = vmax.f32 %v1475_v53, 2.5e-09  ;;  %6784 = vrsqrt.f32 %v1518_v49 }
 0x10c   : > { %v1754_v0 = vadd.f32 %v6216_v61, %v7521_v31  ;;  %v1745_v1 = vpop.f32.mrb[5].mxu0  ;;  %v1863_v50 = vpop.f32.mrb[2].mxu1  ;;  %v1522_v35 = vmax.f32 %v7534_v4, 2.5e-09  ;;  %v1523_v42 = vmax.f32 %v7541_v24, 2.5e-09 }
 0x10d   : > { %v1746_v5 = vadd.f32 %v7521_v31, %v1745_v1  ;;  %v6217_v7 = vpop.f32.mrb[6].mxu0  ;;  %v1940_v15 = vsel %vm1935_vm3, %v1808_v60, 0  ;;  %v1867_v60 = vmax.f32 %v1861_v41, 0.0  ;;  %v1864_v61 = vadd.f32 %v7521_v31, %v1863_v50 }
 0x10e   : > { %v1757_v16 = vadd.f32 %v6217_v7, %v7521_v31  ;;  %v1748_v19 = vpop.f32.mrb[7].mxu0  ;;  %6243 = vmatpush3.bf16.xpose.msra.mxu1 %v1940_v15  ;;  %v1798_v25 = vmax.f32 %v1754_v0, 0.0  ;;  %v6233_v0 = vpop.f32.mrb[3].mxu1  ;;  %v1984_v7 = vsel %vm1935_vm3, %v1809_v58, 0  ;;  %6786 = vrsqrt.f32 %v1519_v57 }
 0x10f   : > { %v1749_v22 = vadd.f32 %v7521_v31, %v1748_v19  ;;  %6248 = vmatprep.subr.bf16.mxu1 %v8891_v2  ;;  %v1796_v27 = vmax.f32 %v1746_v5, 0.0  ;;  %v1868_v53 = vmax.f32 %v1864_v61, 0.0  ;;  %v1520_v50 = vmax.f32 %v7527_v43, 2.5e-09 }
 0x110   : > { %v1799_v26 = vmax.f32 %v1757_v16, 0.0  ;;  %v1521_v61 = vmax.f32 %v7531_v63, 2.5e-09  ;;  %6788 = vrsqrt.f32 %v1522_v35 }
 0x111   : > { %v1797_v28 = vmax.f32 %v1749_v22, 0.0  ;;  %6790 = vrsqrt.f32 %v1523_v42 }
 0x112   : > { %v1811_v37 = vpack.c.bf16 %v1799_v26, %v1798_v25  ;;  %v7567_v26 = vpack.c.bf16 %v1868_v53, %v1867_v60  ;;  %6792 = vrsqrt.f32 %v1520_v50 }
 0x113   : > { %v1810_v45 = vpack.c.bf16 %v1797_v28, %v1796_v27  ;;  %v6220_v46 = vpop.f32.mrb[8].mxu0  ;;  %6794 = vrsqrt.f32 %v1521_v61  ;;  %v1524_v61 = vmax.f32 %v7548_v38, 2.5e-09 }
 0x114   : > { %v1770_v52 = vadd.f32 %v6220_v46, %v7521_v31  ;;  %v1761_v56 = vpop.f32.mrb[9].mxu0  ;;  %v2072_v4 = vsel %vm1935_vm3, %v1811_v37, 0 }
 0x115   : > { %v1762_v1 = vadd.f32 %v7521_v31, %v1761_v56  ;;  %v6221_v5 = vpop.f32.mrb[10].mxu0  ;;  %6245 = vmatmul.mubr.msk.bf16.vlgmr.msra.gmra.mrb[8].mxu1 %vm1935_vm3, %v7546_v30  ;;  %v2028_v15 = vsel %vm1935_vm3, %v1810_v45, 0  ;;  %v1496_v45 = vpop.xlane.xlu0 %1495 }
 0x116   : > { %v1773_v16 = vadd.f32 %v6221_v5, %v7521_v31  ;;  %v1764_v19 = vpop.f32.mrb[11].mxu0  ;;  %6249 = vmatpush3.bf16.xpose.msra.mxu1 %v1984_v7  ;;  %6255 = vmatpush3.bf16.xpose.msra.mxu0 %v2028_v15  ;;  %v1802_v25 = vmax.f32 %v1770_v52, 0.0  ;;  %v1499_v56 = vpop.xlane.xlu1 %1498 }
 0x117   : > { %v1765_v22 = vadd.f32 %v7521_v31, %v1764_v19  ;;  %6250 = vmatprep.mubr.msk.bf16.mxu1 %vm7113_vm0, %v8891_v2  ;;  %6260 = vmatprep.subr.bf16.mxu1 %v8891_v2  ;;  %v1800_v27 = vmax.f32 %v1762_v1, 0.0  ;;  %v1914_v5 = vpop.f32.mrb[4].mxu1  ;;  %v6785_v53 = vpop.eup %6784 }
 0x118   : > { %v1803_v58 = vmax.f32 %v1773_v16, 0.0  ;;  %6266 = vmatprep.subr.bf16.mxu0 %v8891_v2  ;;  %v1915_v16 = vadd.f32 %v7521_v31, %v1914_v5  ;;  %v6240_v19 = vpop.f32.mrb[5].mxu1  ;;  %v6787_v35 = vpop.eup %6786 }
 0x119   : > { %v1801_v28 = vmax.f32 %v1765_v22, 0.0  ;;  %v1502_v15 = vpop.xlane.xlu0 %1501 }
 0x11a   : > { %v1813_v41 = vpack.c.bf16 %v1803_v58, %v1802_v25  ;;  %v1526_v58 = vmax.f32 %v1496_v45, 2.5e-09 }
 0x11b   : > { %v1812_v46 = vpack.c.bf16 %v1801_v28, %v1800_v27  ;;  %v6224_v49 = vpop.f32.mrb[12].mxu0  ;;  %v1505_v27 = vpop.xlane.xlu1 %1504 }
 0x11c   : > { %v1786_v52 = vadd.f32 %v6224_v49, %v7521_v31  ;;  %v1777_v57 = vpop.f32.mrb[13].mxu0  ;;  %v1917_v28 = vpop.f32.mrb[6].mxu1  ;;  %v1921_v49 = vmax.f32 %v1915_v16, 0.0  ;;  %v2160_v45 = vsel %vm1935_vm3, %v1813_v41, 0  ;;  %6796 = vrsqrt.f32 %v1526_v58 }
 0x11d   : > { %v1778_v60 = vadd.f32 %v7521_v31, %v1777_v57  ;;  %v6225_v0 = vpop.f32.mrb[14].mxu0  ;;  %6251 = vmatmul.mubr.msk.bf16.vlgmr.msra.gmra.mrb[12].mxu1 %vm1935_vm3, %v7546_v30  ;;  %6257 = vmatmul.mubr.msk.bf16.vlgmr.msra.gmra.mrb[16].mxu0 %vm1935_vm3, %v7546_v30  ;;  %v2116_v24 = vsel %vm1935_vm3, %v1812_v46, 0  ;;  %v1527_v46 = vmax.f32 %v1499_v56, 2.5e-09  ;;  %v1918_v50 = vadd.f32 %v7521_v31, %v1917_v28  ;;  %v1508_v38 = vpop.xlane.xlu0 %1507 }
 0x11e   : > { %v1789_v43 = vadd.f32 %v6225_v0, %v7521_v31  ;;  %v1780_v1 = vpop.f32.mrb[15].mxu0  ;;  %6261 = vmatpush3.bf16.xpose.msra.mxu1 %v2072_v4  ;;  %6267 = vmatpush3.bf16.xpose.msra.mxu0 %v2116_v24  ;;  %v1806_v37 = vmax.f32 %v1786_v52, 0.0  ;;  %v6241_v52 = vpop.f32.mrb[7].mxu1  ;;  %v1525_v0 = vmax.f32 %v7559_v34, 2.5e-09  ;;  %v1550_v4 = vmul.f32 %v6785_v53, %v7342_v11 }
 0x11f   : > { %v1781_v63 = vadd.f32 %v7521_v31, %v1780_v1  ;;  %6262 = vmatprep.mubr.msk.bf16.mxu1 %vm7113_vm0, %v8891_v2  ;;  %6268 = vmatprep.mubr.msk.bf16.mxu0 %vm7113_vm0, %v8891_v2  ;;  %v1804_v22 = vmax.f32 %v1778_v60, 0.0  ;;  %v1922_v24 = vmax.f32 %v1918_v50, 0.0  ;;  %v1551_v31 = vmul.f32 %v6787_v35, %v7348_v13  ;;  %v6789_v11 = vpop.eup %6788  ;;  %v1511_v41 = vpop.xlane.xlu1 %1510 }
 0x120   : > { %v1807_v7 = vmax.f32 %v1789_v43, 0.0  ;;  %6272 = vmatprep.subr.bf16.mxu1 %v8891_v2  ;;  %6278 = vmatprep.subr.bf16.mxu0 %v8891_v2  ;;  %6798 = vrsqrt.f32 %v1527_v46  ;;  %v6791_v60 = vpop.eup %6790  ;;  %v1530_v1 = vmax.f32 %v1508_v38, 2.5e-09  ;;  %v1531_v5 = vmax.f32 %v1511_v41, 2.5e-09 }
 0x121   : > { %v1805_v25 = vmax.f32 %v1781_v63, 0.0  ;;  %v7601_v34 = vpack.c.bf16 %v1922_v24, %v1921_v49  ;;  %6800 = vrsqrt.f32 %v1524_v61  ;;  %v6793_v13 = vpop.eup %6792  ;;  %v1566_v43 = vpack.c.bf16 %v1551_v31, %v1550_v4 }
 0x122   : > { %v1815_v42 = vpack.c.bf16 %v1807_v7, %v1806_v37  ;;  %6802 = vrsqrt.f32 %v1525_v0  ;;  %v6795_v63 = vpop.eup %6794  ;;  %v1528_v37 = vmax.f32 %v1502_v15, 2.5e-09  ;;  %v1554_v7 = vmul.f32 %v6789_v11, %v7363_v18  ;;  %v1514_v18 = vpop.xlane.xlu0 %1513 }
 0x123   : > { %v1814_v57 = vpack.c.bf16 %v1805_v25, %v1804_v22  ;;  %v1555_v16 = vmul.f32 %v6791_v60, %v7370_v20  ;;  %v1529_v19 = vmax.f32 %v1505_v27, 2.5e-09  ;;  %v1552_v53 = vmul.f32 %v6793_v13, %v7345_v12  ;;  %v1517_v58 = vpop.xlane.xlu1 %1516 }
 0x124   : > { %v2248_v22 = vsel %vm1935_vm3, %v1815_v42, 0  ;;  %v7618_v25 = vsel %vm1469_vm2, %v1566_v43, 0  ;;  %6804 = vrsqrt.f32 %v1530_v1  ;;  %v1553_v15 = vmul.f32 %v6795_v63, %v7351_v14 }
 0x125   : > { %6263 = vmatmul.mubr.msk.bf16.vlgmr.msra.gmra.mrb[16].mxu1 %vm1935_vm3, %v7546_v30  ;;  %6269 = vmatmul.mubr.msk.bf16.vlgmr.msra.gmra.mrb[20].mxu0 %vm1935_vm3, %v7546_v30  ;;  %v2204_v56 = vsel %vm1935_vm3, %v1814_v57, 0  ;;  %6806 = vrsqrt.f32 %v1531_v5  ;;  %v1568_v20 = vpack.c.bf16 %v1555_v16, %v1554_v7  ;;  %v1532_v35 = vmax.f32 %v1514_v18, 2.5e-09 }
 0x126   : > { %6273 = vmatpush3.bf16.xpose.msra.mxu1 %v2160_v45  ;;  %6279 = vmatpush3.bf16.xpose.msra.mxu0 %v2204_v56  ;;  %v6797_v12 = vpop.eup %6796  ;;  %6808 = vrsqrt.f32 %v1528_v37  ;;  %v1567_v28 = vpack.c.bf16 %v1553_v15, %v1552_v53  ;;  %v1533_v46 = vmax.f32 %v1517_v58, 2.5e-09  ;;  %v2708_v15 = vsel %vm1935_vm3, %v7567_v26, 0 }
 0x127   : > { %6274 = vmatprep.mubr.msk.bf16.mxu1 %vm7113_vm0, %v8891_v2  ;;  %6280 = vmatprep.mubr.msk.bf16.mxu0 %vm7113_vm0, %v8891_v2  ;;  %6810 = vrsqrt.f32 %v1529_v19  ;;  %v7629_v49 = vsel %vm1469_vm2, %v1568_v20, 0  ;;  %v1558_v50 = vmul.f32 %v6797_v12, %v7409_v36  ;;  %v1582_v36 = vpop.xlane.xlu0 %1581  ;;  %v1585_v24 = vpop.xlane.xlu1 %1584  ;;  %v3083_v26 = vsel %vm1935_vm3, %v7601_v34, 0 }
 0x128   : > { %6284 = vmatprep.subr.bf16.mxu1 %v8891_v2  ;;  %6290 = vmatprep.subr.bf16.mxu0 %v8891_v2  ;;  %v7638_v57 = vsel %vm1469_vm2, %v1567_v28, 0  ;;  %6812 = vrsqrt.f32 %v1532_v35  ;;  %v1586_v56 = vmax.f32 %v1582_v36, 2.5e-09  ;;  %v1587_v38 = vmax.f32 %v1585_v24, 2.5e-09 }
 0x129   : > { %6814 = vrsqrt.f32 %v1533_v46 }
 0x12a   : > { %v6799_v27 = vpop.eup %6798  ;;  %6816 = vrsqrt.f32 %v1586_v56 }
 0x12b   : > { %v6801_v14 = vpop.eup %6800  ;;  %v1559_v52 = vmul.f32 %v6799_v27, %v7417_v39  ;;  %6818 = vrsqrt.f32 %v1587_v38  ;;  %v1601_v18 = vpop.xlane.xlu0 %1600 }
 0x12c   : > { %v6803_v42 = vpop.eup %6802  ;;  %v1556_v61 = vmul.f32 %v6801_v14, %v7391_v29  ;;  %v1605_v34 = vmax.f32 %v1601_v18, 2.5e-09 }
 0x12d   : > { %6275 = vmatmul.mubr.msk.bf16.vlgmr.msra.gmra.mrb[20].mxu1 %vm1935_vm3, %v7546_v30  ;;  %6281 = vmatmul.mubr.msk.bf16.vlgmr.msra.gmra.mrb[24].mxu0 %vm1935_vm3, %v7546_v30  ;;  %v1557_v0 = vmul.f32 %v6803_v42, %v7397_v32  ;;  %v1570_v4 = vpack.c.bf16 %v1559_v52, %v1558_v50 }
 0x12e   : > { %6285 = vmatpush3.bf16.xpose.msra.mxu1 %v2248_v22  ;;  %6291 = vmatpush3.bf16.xpose.msra.mxu0 %v7618_v25  ;;  %v6805_v39 = vpop.eup %6804 }
 0x12f   : > { %6286 = vmatprep.mubr.msk.bf16.mxu1 %vm7113_vm0, %v8891_v2  ;;  %6292 = vmatprep.mubr.msk.bf16.mxu0 %vm7113_vm0, %v8891_v2  ;;  %v6807_v45 = vpop.eup %6806  ;;  %v1569_v32 = vpack.c.bf16 %v1557_v0, %v1556_v61  ;;  %v7651_v11 = vsel %vm1469_vm2, %v1570_v4, 0  ;;  %v1562_v41 = vmul.f32 %v6805_v39, %v7450_v51 }
 0x130   : > { %6296 = vmatprep.subr.bf16.mxu1 %v8891_v2  ;;  %6302 = vmatprep.subr.bf16.mxu0 %v8891_v2  ;;  %v6809_v29 = vpop.eup %6808  ;;  %v1563_v60 = vmul.f32 %v6807_v45, %v7460_v54 }
 0x131   : > { %v6811_v31 = vpop.eup %6810  ;;  %v7660_v13 = vsel %vm1469_vm2, %v1569_v32, 0  ;;  %v1560_v43 = vmul.f32 %v6809_v29, %v7430_v44 }
 0x132   : > { %v1561_v1 = vmul.f32 %v6811_v31, %v7437_v47  ;;  %v6813_v51 = vpop.eup %6812  ;;  %v1572_v54 = vpack.c.bf16 %v1563_v60, %v1562_v41 }
 0x133   : > { %v6815_v63 = vpop.eup %6814  ;;  %v1564_v5 = vmul.f32 %v6813_v51, %v7476_v59 }
 0x134   : > { %v1571_v44 = vpack.c.bf16 %v1561_v1, %v1560_v43  ;;  %v7673_v47 = vsel %vm1469_vm2, %v1572_v54, 0  ;;  %v1565_v37 = vmul.f32 %v6815_v63, %v7482_v62  ;;  %v6817_v16 = vpop.eup %6816 }
 0x135   : > { %6287 = vmatmul.mubr.msk.bf16.vlgmr.msra.gmra.mrb[24].mxu1 %vm1935_vm3, %v7546_v30  ;;  %6293 = vmatmul.mubr.msk.bf16.vlgmr.msra.gmra.mrb[28].mxu0 %vm1469_vm2, %v7332_v8  ;;  %v6819_v62 = vpop.eup %6818  ;;  %v1590_v53 = vmul.f32 %v6817_v16, %v7493_v3 }
 0x136   : > { %6297 = vmatpush3.bf16.xpose.msra.mxu1 %v7638_v57  ;;  %6303 = vmatpush3.bf16.xpose.msra.mxu0 %v7629_v49  ;;  %v7682_v7 = vsel %vm1469_vm2, %v1571_v44, 0  ;;  %v1573_v59 = vpack.c.bf16 %v1565_v37, %v1564_v5  ;;  %v1591_v22 = vmul.f32 %v6819_v62, %v7498_v6 }
 0x137   : > { %6298 = vmatprep.mubr.msk.bf16.mxu1 %vm7113_vm0, %v8891_v2  ;;  %6304 = vmatprep.mubr.msk.bf16.mxu0 %vm7113_vm0, %v8891_v2 }
 0x138   : > { %6308 = vmatprep.subr.bf16.mxu1 %v8891_v2  ;;  %6314 = vmatprep.subr.bf16.mxu0 %v8891_v2  ;;  %v7693_v19 = vsel %vm1469_vm2, %v1573_v59, 0  ;;  %v1592_v3 = vpack.c.bf16 %v1591_v22, %v1590_v53 }
 0x13a   : > { %v2752_v6 = vsel %vm1469_vm2, %v1592_v3, 0 }
 0x13d   : > { %6299 = vmatmul.mubr.msk.bf16.vlgmr.msra.gmra.mrb[28].mxu1 %vm1469_vm2, %v7335_v9  ;;  %6305 = vmatmul.mubr.msk.bf16.vlgmr.msra.gmra.mrb[32].mxu0 %vm1469_vm2, %v7338_v10 }
 0x13e   : > { %6309 = vmatpush3.bf16.xpose.msra.mxu1 %v7660_v13  ;;  %6315 = vmatpush3.bf16.xpose.msra.mxu0 %v7651_v11 }
 0x13f   : > { %6310 = vmatprep.mubr.msk.bf16.mxu1 %vm7113_vm0, %v8891_v2  ;;  %6316 = vmatprep.mubr.msk.bf16.mxu0 %vm7113_vm0, %v8891_v2 }
 0x140   : > { %6320 = vmatprep.subr.bf16.mxu1 %v8891_v2  ;;  %6326 = vmatprep.subr.bf16.mxu0 %v8891_v2 }
 0x145   : > { %6311 = vmatmul.mubr.msk.bf16.vlgmr.msra.gmra.mrb[32].mxu1 %vm1469_vm2, %v7373_v21  ;;  %6317 = vmatmul.mubr.msk.bf16.vlgmr.msra.gmra.mrb[36].mxu0 %vm1469_vm2, %v7400_v33 }
 0x146   : > { %6321 = vmatpush3.bf16.xpose.msra.mxu1 %v7682_v7  ;;  %6327 = vmatpush3.bf16.xpose.msra.mxu0 %v7673_v47 }
 0x147   : > { %6322 = vmatprep.mubr.msk.bf16.mxu1 %vm7113_vm0, %v8891_v2  ;;  %6328 = vmatprep.mubr.msk.bf16.mxu0 %vm7113_vm0, %v8891_v2 }
 0x148   : > { %6332 = vmatprep.subr.bf16.mxu1 %v8891_v2  ;;  %6338 = vmatprep.subr.bf16.mxu0 %v8891_v2 }
 0x14d   : > { %6323 = vmatmul.mubr.msk.bf16.vlgmr.msra.gmra.mrb[36].mxu1 %vm1469_vm2, %v7420_v40  ;;  %6329 = vmatmul.mubr.msk.bf16.vlgmr.msra.gmra.mrb[40].mxu0 %vm1469_vm2, %v7440_v48 }
 0x14e   : > { %6333 = vmatpush3.bf16.xpose.msra.mxu1 %v7693_v19  ;;  %6339 = vmatpush3.bf16.xpose.msra.mxu0 %v2708_v15 }
 0x14f   : > { %6334 = vmatprep.mubr.msk.bf16.mxu1 %vm7113_vm0, %v8891_v2  ;;  %6340 = vmatprep.mubr.msk.bf16.mxu0 %vm7113_vm0, %v8891_v2 }
 0x150   : > { %6350 = vmatprep.subr.bf16.mxu1 %v8891_v2  ;;  %6344 = vmatprep.subr.bf16.mxu0 %v8891_v2 }
 0x155   : > { %6335 = vmatmul.mubr.msk.bf16.vlgmr.msra.gmra.mrb[40].mxu1 %vm1469_vm2, %v7463_v55  ;;  %6341 = vmatmul.mubr.msk.bf16.vlgmr.msra.gmra.mrb[44].mxu0 %vm1935_vm3, %v7546_v30 }
 0x156   : > { %6351 = vmatpush3.bf16.xpose.msra.mxu1 %v7618_v25  ;;  %6345 = vmatpush3.bf16.xpose.msra.mxu0 %v2752_v6  ;;  %v1604_v25 = vpop.xlane.xlu1 %1603 }
 0x157   : > { %6352 = vmatprep.mubr.msk.bf16.mxu1 %vm7113_vm0, %v8891_v2  ;;  %6356 = vmatprep.subr.bf16.mxu1 %v8891_v2  ;;  %v1606_v12 = vmax.f32 %v1604_v25, 2.5e-09 }
 0x158   : > { %6346 = vmatprep.mubr.msk.bf16.mxu0 %vm7113_vm0, %v8891_v2  ;;  %6362 = vmatprep.subr.bf16.mxu0 %v8891_v2 }
 0x159   : > { %6820 = vrsqrt.f32 %v1606_v12 }
 0x15a   : > { %6822 = vrsqrt.f32 %v1605_v34 }
 0x15d   : > { %6353 = vmatmul.mubr.msk.bf16.vlgmr.msra.gmra.mrb[44].mxu1 %vm1469_vm2, %v7335_v9 }
 0x15e   : > { %6357 = vmatpush3.bf16.xpose.msra.mxu1 %v7638_v57  ;;  %6358 = vmatprep.mubr.msk.bf16.mxu1 %vm7113_vm0, %v8891_v2 }
 0x15f   : > { %6368 = vmatprep.subr.bf16.mxu1 %v8891_v2 }
 0x161   : > { %6347 = vmatmul.mubr.msk.bf16.vlgmr.msra.gmra.mrb[44].mxu0 %vm1469_vm2, %v7332_v8 }
 0x162   : > { %6363 = vmatpush3.bf16.xpose.msra.mxu0 %v7629_v49  ;;  %6364 = vmatprep.mubr.msk.bf16.mxu0 %vm7113_vm0, %v8891_v2 }
 0x163   : > { %6374 = vmatprep.subr.bf16.mxu0 %v8891_v2 }
 0x165   : > { %6359 = vmatmul.mubr.msk.bf16.vlgmr.msra.gmra.mrb[48].mxu1 %vm1469_vm2, %v7338_v10 }
 0x166   : > { %6369 = vmatpush3.bf16.xpose.msra.mxu1 %v7660_v13  ;;  %6370 = vmatprep.mubr.msk.bf16.mxu1 %vm7113_vm0, %v8891_v2 }
 0x167   : > { %6380 = vmatprep.subr.bf16.mxu1 %v8891_v2 }
 0x169   : > { %6365 = vmatmul.mubr.msk.bf16.vlgmr.msra.gmra.mrb[48].mxu0 %vm1469_vm2, %v7373_v21 }
 0x16a   : > { %6375 = vmatpush3.bf16.xpose.msra.mxu0 %v7651_v11  ;;  %6376 = vmatprep.mubr.msk.bf16.mxu0 %vm7113_vm0, %v8891_v2 }
 0x16b   : > { %6386 = vmatprep.subr.bf16.mxu0 %v8891_v2 }
 0x16d   : > { %6371 = vmatmul.mubr.msk.bf16.vlgmr.msra.gmra.mrb[52].mxu1 %vm1469_vm2, %v7400_v33 }
 0x16e   : > { %6381 = vmatpush3.bf16.xpose.msra.mxu1 %v7682_v7  ;;  %6382 = vmatprep.mubr.msk.bf16.mxu1 %vm7113_vm0, %v8891_v2 }
 0x16f   : > { %6392 = vmatprep.subr.bf16.mxu1 %v8891_v2 }
 0x171   : > { %6377 = vmatmul.mubr.msk.bf16.vlgmr.msra.gmra.mrb[52].mxu0 %vm1469_vm2, %v7420_v40 }
 0x172   : > { %6387 = vmatpush3.bf16.xpose.msra.mxu0 %v7673_v47  ;;  %6388 = vmatprep.mubr.msk.bf16.mxu0 %vm7113_vm0, %v8891_v2 }
 0x173   : > { %6398 = vmatprep.subr.bf16.mxu0 %v8891_v2 }
 0x175   : > { %6383 = vmatmul.mubr.msk.bf16.vlgmr.msra.gmra.mrb[56].mxu1 %vm1469_vm2, %v7440_v48 }
 0x176   : > { %6393 = vmatpush3.bf16.xpose.msra.mxu1 %v3083_v26  ;;  %6394 = vmatprep.mubr.msk.bf16.mxu1 %vm7113_vm0, %v8891_v2 }
 0x177   : > { %6404 = vmatprep.subr.bf16.mxu1 %v8891_v2 }
 0x179   : > { %6389 = vmatmul.mubr.msk.bf16.vlgmr.msra.gmra.mrb[56].mxu0 %vm1469_vm2, %v7463_v55 }
 0x17a   : > { %6399 = vmatpush3.bf16.xpose.msra.mxu0 %v7638_v57  ;;  %6400 = vmatprep.mubr.msk.bf16.mxu0 %vm7113_vm0, %v8891_v2 }
 0x17b   : > { %6410 = vmatprep.subr.bf16.mxu0 %v8891_v2 }
 0x17d   : > { %6395 = vmatmul.mubr.msk.bf16.vlgmr.msra.gmra.mrb[60].mxu1 %vm1935_vm3, %v7546_v30  ;;  %v6821_v30 = vpop.eup %6820 }
 0x17e   : > { %6405 = vmatpush3.bf16.xpose.msra.mxu1 %v7629_v49  ;;  %6406 = vmatprep.mubr.msk.bf16.mxu1 %vm7113_vm0, %v8891_v2  ;;  %v6823_v20 = vpop.eup %6822 }
 0x17f   : > { %6416 = vmatprep.subr.bf16.mxu1 %v8891_v2 }
 0x181   : > { %6401 = vmatmul.mubr.msk.bf16.vlgmr.msra.gmra.mrb[60].mxu0 %vm1469_vm2, %v7332_v8  ;;  %v1609_v8 = vmul.f32 %v6823_v20, %v7503_v17 }
 0x182   : > { %6411 = vmatpush3.bf16.xpose.msra.mxu0 %v7660_v13  ;;  %6412 = vmatprep.mubr.msk.bf16.mxu0 %vm7113_vm0, %v8891_v2 }
 0x183   : > { %6422 = vmatprep.subr.bf16.mxu0 %v8891_v2 }
 0x185   : > { %6407 = vmatmul.mubr.msk.bf16.vlgmr.msra.gmra.mrb[64].mxu1 %vm1469_vm2, %v7335_v9  ;;  %v1610_v9 = vmul.f32 %v6821_v30, %v7508_v23 }
 0x186   : > { %6417 = vmatpush3.bf16.xpose.msra.mxu1 %v7651_v11  ;;  %6418 = vmatprep.mubr.msk.bf16.mxu1 %vm7113_vm0, %v8891_v2 }
 0x187   : > { %6428 = vmatprep.subr.bf16.mxu1 %v8891_v2 }
 0x189   : > { %6413 = vmatmul.mubr.msk.bf16.vlgmr.msra.gmra.mrb[64].mxu0 %vm1469_vm2, %v7338_v10  ;;  %v1611_v10 = vpack.c.bf16 %v1610_v9, %v1609_v8 }
 0x18a   : > { %6423 = vmatpush3.bf16.xpose.msra.mxu0 %v7682_v7  ;;  %6424 = vmatprep.mubr.msk.bf16.mxu0 %vm7113_vm0, %v8891_v2 }
 0x18b   : > { %6434 = vmatprep.subr.bf16.mxu0 %v8891_v2  ;;  %v3414_v17 = vsel %vm1469_vm2, %v1611_v10, 0 }
 0x18d   : > { %6419 = vmatmul.mubr.msk.bf16.vlgmr.msra.gmra.mrb[68].mxu1 %vm1469_vm2, %v7373_v21 }
 0x18e   : > { %6429 = vmatpush3.bf16.xpose.msra.mxu1 %v7673_v47  ;;  %6430 = vmatprep.mubr.msk.bf16.mxu1 %vm7113_vm0, %v8891_v2 }
 0x18f   : > { %6440 = vmatprep.subr.bf16.mxu1 %v8891_v2 }
 0x191   : > { %6425 = vmatmul.mubr.msk.bf16.vlgmr.msra.gmra.mrb[68].mxu0 %vm1469_vm2, %v7400_v33 }
 0x192   : > { %6435 = vmatpush3.bf16.xpose.msra.mxu0 %v7693_v19  ;;  %6436 = vmatprep.mubr.msk.bf16.mxu0 %vm7113_vm0, %v8891_v2 }
 0x193   : > { %6446 = vmatprep.subr.bf16.mxu0 %v8891_v2 }
 0x195   : > { %6431 = vmatmul.mubr.msk.bf16.vlgmr.msra.gmra.mrb[72].mxu1 %vm1469_vm2, %v7420_v40 }
 0x196   : > { %6441 = vmatpush3.bf16.xpose.msra.mxu1 %v3414_v17  ;;  %6442 = vmatprep.mubr.msk.bf16.mxu1 %vm7113_vm0, %v8891_v2 }
 0x197   : > { %6452 = vmatprep.subr.bf16.mxu1 %v8891_v2 }
 0x199   : > { %6437 = vmatmul.mubr.msk.bf16.vlgmr.msra.gmra.mrb[72].mxu0 %vm1469_vm2, %v7440_v48 }
 0x19a   : > { %6448 = vmatprep.mubr.msk.bf16.mxu0 %vm7113_vm0, %v8891_v2 }
 0x19d   : > { %6443 = vmatmul.mubr.msk.bf16.vlgmr.msra.gmra.mrb[60].mxu1 %vm1469_vm2, %v7463_v55 }
 0x19e   : > { %6454 = vmatprep.mubr.msk.bf16.mxu1 %vm7113_vm0, %v8891_v2 }
 0x1e8   : > { %v7823_v21 = vpop.f32.mrb[8].mxu1 }
 0x1e9   : > { %v6246_v33 = vpop.f32.mrb[9].mxu1 }
 0x1ea   : > { %v7825_v40 = vpop.f32.mrb[10].mxu1 }
 0x1eb   : > { %v6247_v23 = vpop.f32.mrb[11].mxu1 }
 0x1f0   : > { %v7827_v58 = vpop.f32.mrb[16].mxu0  ;;  %v7829_v27 = vpop.f32.mrb[12].mxu1 }
 0x1f1   : > { %v6258_v48 = vpop.f32.mrb[17].mxu0  ;;  %v6252_v14 = vpop.f32.mrb[13].mxu1 }
 0x1f2   : > { %v7831_v28 = vpop.f32.mrb[18].mxu0  ;;  %v7833_v35 = vpop.f32.mrb[14].mxu1 }
 0x1f3   : > { %v6259_v55 = vpop.f32.mrb[19].mxu0  ;;  %v6253_v42 = vpop.f32.mrb[15].mxu1 }
 0x1f8   : > { %v7835_v46 = vpop.f32.mrb[20].mxu0  ;;  %v7837_v49 = vpop.f32.mrb[16].mxu1 }
 0x1f9   : > { %v6270_v50 = vpop.f32.mrb[21].mxu0  ;;  %v6264_v52 = vpop.f32.mrb[17].mxu1 }
 0x1fa   : > { %v7839_v57 = vpop.f32.mrb[22].mxu0  ;;  %v7841_v61 = vpop.f32.mrb[18].mxu1 }
 0x1fb   : > { %v6271_v0 = vpop.f32.mrb[23].mxu0  ;;  %v6265_v36 = vpop.f32.mrb[19].mxu1 }
 0x200   : > { %v7843_v39 = vpop.f32.mrb[24].mxu0  ;;  %v7845_v4 = vpop.f32.mrb[20].mxu1 }
 0x201   : > { %v6282_v24 = vpop.f32.mrb[25].mxu0  ;;  %v6276_v45 = vpop.f32.mrb[21].mxu1 }
 0x202   : > { %v7847_v29 = vpop.f32.mrb[26].mxu0  ;;  %v7849_v32 = vpop.f32.mrb[22].mxu1 }
 0x203   : > { %v6283_v56 = vpop.f32.mrb[27].mxu0  ;;  %v6277_v31 = vpop.f32.mrb[23].mxu1 }
 0x208   : > { %v2336_v38 = vpop.f32.mrb[28].mxu0  ;;  %v7851_v11 = vpop.f32.mrb[24].mxu1 }
 0x209   : > { %v7854_v41 = vadd.f32 %v2336_v38, %v7823_v21  ;;  %v6294_v60 = vpop.f32.mrb[29].mxu0  ;;  %v6288_v13 = vpop.f32.mrb[25].mxu1 }
 0x20a   : > { %v2339_v43 = vpop.f32.mrb[30].mxu0  ;;  %v7856_v1 = vpop.f32.mrb[26].mxu1 }
 0x20b   : > { %v7859_v51 = vadd.f32 %v2339_v43, %v7825_v40  ;;  %v3457_v54 = vsel %vm1935_vm3, %v7854_v41, -inf  ;;  %v6289_v63 = vpop.f32.mrb[27].mxu1  ;;  %v6295_v44 = vpop.f32.mrb[31].mxu0 }
 0x20c   : > { %3458 = vmax.xlane.f32.xlu0 %v3457_v54 }
 0x20d   : > { %v3460_v47 = vsel %vm1935_vm3, %v7859_v51, -inf }
 0x20e   : > { %3461 = vmax.xlane.f32.xlu1 %v3460_v47 }
 0x210   : > { %v2388_v5 = vpop.f32.mrb[28].mxu1  ;;  %v2440_v37 = vpop.f32.mrb[32].mxu0 }
 0x211   : > { %v7866_v7 = vadd.f32 %v2388_v5, %v7829_v27  ;;  %v7869_v16 = vadd.f32 %v2440_v37, %v7827_v58  ;;  %v6300_v59 = vpop.f32.mrb[29].mxu1  ;;  %v6306_v62 = vpop.f32.mrb[33].mxu0 }
 0x212   : > { %v2391_v19 = vpop.f32.mrb[30].mxu1  ;;  %v2443_v53 = vpop.f32.mrb[34].mxu0 }
 0x213   : > { %v7872_v22 = vadd.f32 %v2391_v19, %v7833_v35  ;;  %v7875_v15 = vadd.f32 %v2443_v53, %v7831_v28  ;;  %v3463_v3 = vsel %vm1935_vm3, %v7866_v7, -inf  ;;  %v6301_v6 = vpop.f32.mrb[31].mxu1  ;;  %v6307_v26 = vpop.f32.mrb[35].mxu0  ;;  %v3469_v18 = vsel %vm1935_vm3, %v7869_v16, -inf }
 0x214   : > { %3464 = vmax.xlane.f32.xlu0 %v3463_v3 }
 0x215   : > { %v3466_v25 = vsel %vm1935_vm3, %v7872_v22, -inf  ;;  %v3472_v10 = vsel %vm1935_vm3, %v7875_v15, -inf }
 0x216   : > { %3467 = vmax.xlane.f32.xlu1 %v3466_v25 }
 0x218   : > { %3470 = vmax.xlane.f32.xlu0 %v3469_v18  ;;  %v2492_v12 = vpop.f32.mrb[32].mxu1  ;;  %v2544_v34 = vpop.f32.mrb[36].mxu0 }
 0x219   : > { %v7884_v30 = vadd.f32 %v2492_v12, %v7837_v49  ;;  %v7887_v20 = vadd.f32 %v2544_v34, %v7835_v46  ;;  %v6312_v8 = vpop.f32.mrb[33].mxu1  ;;  %v6318_v9 = vpop.f32.mrb[37].mxu0 }
 0x21a   : > { %3473 = vmax.xlane.f32.xlu1 %v3472_v10  ;;  %v2495_v17 = vpop.f32.mrb[34].mxu1  ;;  %v2547_v33 = vpop.f32.mrb[38].mxu0 }
 0x21b   : > { %8934 = vst [vmem:[#allocation16_spill] sm:$0xff] %v7884_v30  ;;  %8935 = vst [vmem:[#allocation17_spill] sm:$0xff] %v7887_v20  ;;  %v7892_v23 = vadd.f32 %v2495_v17, %v7841_v61  ;;  %v7895_v48 = vadd.f32 %v2547_v33, %v7839_v57  ;;  %v3475_v14 = vsel %vm1935_vm3, %v7884_v30, -inf  ;;  %v6313_v55 = vpop.f32.mrb[35].mxu1  ;;  %v6319_v42 = vpop.f32.mrb[39].mxu0  ;;  %v3481_v52 = vsel %vm1935_vm3, %v7887_v20, -inf }
 0x21c   : > { %3476 = vmax.xlane.f32.xlu0 %v3475_v14 }
 0x21d   : > { %8936 = vst [vmem:[#allocation18_spill] sm:$0xff] %v7892_v23  ;;  %8937 = vst [vmem:[#allocation19_spill] sm:$0xff] %v7895_v48  ;;  %v3478_v50 = vsel %vm1935_vm3, %v7892_v23, -inf  ;;  %v3484_v38 = vsel %vm1935_vm3, %v7895_v48, -inf }
 0x21e   : > { %3479 = vmax.xlane.f32.xlu1 %v3478_v50 }
 0x220   : > { %3482 = vmax.xlane.f32.xlu0 %v3481_v52  ;;  %v2596_v0 = vpop.f32.mrb[36].mxu1  ;;  %v2648_v36 = vpop.f32.mrb[40].mxu0 }
 0x221   : > { %v7904_v24 = vadd.f32 %v2596_v0, %v7845_v4  ;;  %v7907_v45 = vadd.f32 %v2648_v36, %v7843_v39  ;;  %v6324_v56 = vpop.f32.mrb[37].mxu1  ;;  %v6330_v31 = vpop.f32.mrb[41].mxu0 }
 0x222   : > { %3485 = vmax.xlane.f32.xlu1 %v3484_v38  ;;  %v2599_v60 = vpop.f32.mrb[38].mxu1  ;;  %v2651_v13 = vpop.f32.mrb[42].mxu0 }
 0x223   : > { %8938 = vst [vmem:[#allocation20_spill] sm:$0xff] %v7904_v24  ;;  %8939 = vst [vmem:[#allocation21_spill] sm:$0xff] %v7907_v45  ;;  %v7912_v43 = vadd.f32 %v2599_v60, %v7849_v32  ;;  %v7915_v54 = vadd.f32 %v2651_v13, %v7847_v29  ;;  %v3487_v63 = vsel %vm1935_vm3, %v7904_v24, -inf  ;;  %v6325_v44 = vpop.f32.mrb[39].mxu1  ;;  %v6331_v47 = vpop.f32.mrb[43].mxu0  ;;  %v3493_v37 = vsel %vm1935_vm3, %v7907_v45, -inf }
 0x224   : > { %3488 = vmax.xlane.f32.xlu0 %v3487_v63 }
 0x225   : > { %8940 = vst [vmem:[#allocation22_spill] sm:$0xff] %v7912_v43  ;;  %8941 = vst [vmem:[#allocation23_spill] sm:$0xff] %v7915_v54  ;;  %v3490_v5 = vsel %vm1935_vm3, %v7912_v43, -inf  ;;  %v3496_v53 = vsel %vm1935_vm3, %v7915_v54, -inf }
 0x226   : > { %3491 = vmax.xlane.f32.xlu1 %v3490_v5 }
 0x228   : > { %3494 = vmax.xlane.f32.xlu0 %v3493_v37  ;;  %v2700_v59 = vpop.f32.mrb[40].mxu1 }
 0x229   : > { %v7924_v62 = vadd.f32 %v2700_v59, %v7851_v11  ;;  %v6336_v19 = vpop.f32.mrb[41].mxu1 }
 0x22a   : > { %3497 = vmax.xlane.f32.xlu1 %v3496_v53  ;;  %v2703_v3 = vpop.f32.mrb[42].mxu1 }
 0x22b   : > { %8942 = vst [vmem:[#allocation24_spill] sm:$0xff] %v7924_v62  ;;  %v7929_v6 = vadd.f32 %v2703_v3, %v7856_v1  ;;  %v3499_v26 = vsel %vm1935_vm3, %v7924_v62, -inf  ;;  %v6337_v25 = vpop.f32.mrb[43].mxu1 }
 0x22c   : > { %3500 = vmax.xlane.f32.xlu0 %v3499_v26 }
 0x22d   : > { %8943 = vst [vmem:[#allocation25_spill] sm:$0xff] %v7929_v6  ;;  %v3502_v18 = vsel %vm1935_vm3, %v7929_v6, -inf }
 0x22e   : > { %3503 = vmax.xlane.f32.xlu1 %v3502_v18 }
 0x230   : > { %v2829_v12 = vpop.f32.mrb[44].mxu1 }
 0x231   : > { %v7936_v34 = vadd.f32 %v2829_v12, %v7823_v21  ;;  %v6354_v8 = vpop.f32.mrb[45].mxu1 }
 0x232   : > { %v2832_v9 = vpop.f32.mrb[46].mxu1 }
 0x233   : > { %v7939_v10 = vadd.f32 %v2832_v9, %v7825_v40  ;;  %v3511_v17 = vsel %vm1935_vm3, %v7936_v34, -inf  ;;  %v6355_v33 = vpop.f32.mrb[47].mxu1 }
 0x234   : > { %3512 = vmax.xlane.f32.xlu0 %v3511_v17  ;;  %v7943_v14 = vpop.f32.mrb[44].mxu0 }
 0x235   : > { %v3514_v55 = vsel %vm1935_vm3, %v7939_v10, -inf  ;;  %v6348_v42 = vpop.f32.mrb[45].mxu0  ;;  %v3505_v21 = vsel %vm1935_vm3, %v7943_v14, -inf }
 0x236   : > { %3515 = vmax.xlane.f32.xlu1 %v3514_v55  ;;  %v7947_v50 = vpop.f32.mrb[46].mxu0 }
 0x237   : > { %v6349_v52 = vpop.f32.mrb[47].mxu0  ;;  %v3508_v56 = vsel %vm1935_vm3, %v7947_v50, -inf }
 0x238   : > { %v2870_v40 = vpop.f32.mrb[48].mxu1  ;;  %3506 = vmax.xlane.f32.xlu0 %v3505_v21 }
 0x239   : > { %v7952_v0 = vadd.f32 %v2870_v40, %v7829_v27  ;;  %v6360_v36 = vpop.f32.mrb[49].mxu1 }
 0x23a   : > { %v2873_v31 = vpop.f32.mrb[50].mxu1  ;;  %3509 = vmax.xlane.f32.xlu1 %v3508_v56 }
 0x23b   : > { %v7957_v38 = vadd.f32 %v2873_v31, %v7833_v35  ;;  %v3517_v60 = vsel %vm1935_vm3, %v7952_v0, -inf  ;;  %v6361_v13 = vpop.f32.mrb[51].mxu1 }
 0x23c   : > { %3518 = vmax.xlane.f32.xlu0 %v3517_v60  ;;  %v2911_v63 = vpop.f32.mrb[48].mxu0 }
 0x23d   : > { %v7962_v44 = vadd.f32 %v2911_v63, %v7827_v58  ;;  %v6366_v47 = vpop.f32.mrb[49].mxu0  ;;  %v3520_v5 = vsel %vm1935_vm3, %v7957_v38, -inf }
 0x23e   : > { %3521 = vmax.xlane.f32.xlu1 %v3520_v5  ;;  %v2914_v37 = vpop.f32.mrb[50].mxu0 }
 0x23f   : > { %v7967_v59 = vadd.f32 %v2914_v37, %v7831_v28  ;;  %v3523_v19 = vsel %vm1935_vm3, %v7962_v44, -inf  ;;  %v6367_v53 = vpop.f32.mrb[51].mxu0 }
 0x240   : > { %v2952_v3 = vpop.f32.mrb[52].mxu1  ;;  %3524 = vmax.xlane.f32.xlu0 %v3523_v19 }
 0x241   : > { %v7972_v26 = vadd.f32 %v2952_v3, %v7837_v49  ;;  %v6372_v25 = vpop.f32.mrb[53].mxu1  ;;  %v3526_v18 = vsel %vm1935_vm3, %v7967_v59, -inf }
 0x242   : > { %v2955_v12 = vpop.f32.mrb[54].mxu1  ;;  %3527 = vmax.xlane.f32.xlu1 %v3526_v18 }
 0x243   : > { %v7977_v8 = vadd.f32 %v2955_v12, %v7841_v61  ;;  %v3529_v9 = vsel %vm1935_vm3, %v7972_v26, -inf  ;;  %v6373_v17 = vpop.f32.mrb[55].mxu1 }
 0x244   : > { %3530 = vmax.xlane.f32.xlu0 %v3529_v9  ;;  %v2993_v33 = vpop.f32.mrb[52].mxu0 }
 0x245   : > { %v7982_v55 = vadd.f32 %v2993_v33, %v7835_v46  ;;  %v6378_v42 = vpop.f32.mrb[53].mxu0  ;;  %v3532_v21 = vsel %vm1935_vm3, %v7977_v8, -inf }
 0x246   : > { %3533 = vmax.xlane.f32.xlu1 %v3532_v21  ;;  %v2996_v52 = vpop.f32.mrb[54].mxu0 }
 0x247   : > { %v7987_v40 = vadd.f32 %v2996_v52, %v7839_v57  ;;  %v3535_v36 = vsel %vm1935_vm3, %v7982_v55, -inf  ;;  %v6379_v56 = vpop.f32.mrb[55].mxu0 }
 0x248   : > { %v3034_v31 = vpop.f32.mrb[56].mxu1  ;;  %3536 = vmax.xlane.f32.xlu0 %v3535_v36 }
 0x249   : > { %8944 = vst [vmem:[#allocation26_spill] sm:$0xff] %v7987_v40  ;;  %v7992_v60 = vadd.f32 %v3034_v31, %v7845_v4  ;;  %v6384_v13 = vpop.f32.mrb[57].mxu1  ;;  %v3538_v63 = vsel %vm1935_vm3, %v7987_v40, -inf }
 0x24a   : > { %v3037_v47 = vpop.f32.mrb[58].mxu1  ;;  %3539 = vmax.xlane.f32.xlu1 %v3538_v63 }
 0x24b   : > { %8945 = vst [vmem:[#allocation27_spill] sm:$0xff] %v7992_v60  ;;  %v7997_v5 = vadd.f32 %v3037_v47, %v7849_v32  ;;  %v3541_v37 = vsel %vm1935_vm3, %v7992_v60, -inf  ;;  %v6385_v19 = vpop.f32.mrb[59].mxu1 }
 0x24c   : > { %3542 = vmax.xlane.f32.xlu0 %v3541_v37  ;;  %v3075_v53 = vpop.f32.mrb[56].mxu0 }
 0x24d   : > { %8946 = vst [vmem:[#allocation28_spill] sm:$0xff] %v7997_v5  ;;  %v8002_v3 = vadd.f32 %v3075_v53, %v7843_v39  ;;  %v6390_v25 = vpop.f32.mrb[57].mxu0  ;;  %v3544_v18 = vsel %vm1935_vm3, %v7997_v5, -inf }
 0x24e   : > { %3545 = vmax.xlane.f32.xlu1 %v3544_v18  ;;  %v3078_v12 = vpop.f32.mrb[58].mxu0 }
 0x24f   : > { %8947 = vst [vmem:[#allocation29_spill] sm:$0xff] %v8002_v3  ;;  %v8007_v9 = vadd.f32 %v3078_v12, %v7847_v29  ;;  %v3547_v17 = vsel %vm1935_vm3, %v8002_v3, -inf  ;;  %v6391_v33 = vpop.f32.mrb[59].mxu0 }
 0x250   : > { %3548 = vmax.xlane.f32.xlu0 %v3547_v17 }
 0x251   : > { %8948 = vst [vmem:[#allocation30_spill] sm:$0xff] %v8007_v9  ;;  %v3550_v42 = vsel %vm1935_vm3, %v8007_v9, -inf }
 0x252   : > { %3551 = vmax.xlane.f32.xlu1 %v3550_v42 }
 0x254   : > { %v3160_v21 = vpop.f32.mrb[60].mxu0 }
 0x255   : > { %v8014_v52 = vadd.f32 %v3160_v21, %v7829_v27  ;;  %v6402_v36 = vpop.f32.mrb[61].mxu0 }
 0x256   : > { %v3163_v56 = vpop.f32.mrb[62].mxu0 }
 0x257   : > { %v8017_v31 = vadd.f32 %v3163_v56, %v7833_v35  ;;  %v3569_v13 = vsel %vm1935_vm3, %v8014_v52, -inf  ;;  %v6403_v63 = vpop.f32.mrb[63].mxu0 }
 0x258   : > { %v3201_v47 = vpop.f32.mrb[64].mxu1  ;;  %3570 = vmax.xlane.f32.xlu0 %v3569_v13 }
 0x259   : > { %v8022_v37 = vadd.f32 %v3201_v47, %v7827_v58  ;;  %v6408_v19 = vpop.f32.mrb[65].mxu1  ;;  %v3572_v53 = vsel %vm1935_vm3, %v8017_v31, -inf }
 0x25a   : > { %v3204_v27 = vpop.f32.mrb[66].mxu1  ;;  %3573 = vmax.xlane.f32.xlu1 %v3572_v53 }
 0x25b   : > { %v8027_v25 = vadd.f32 %v3204_v27, %v7831_v28  ;;  %v3575_v35 = vsel %vm1935_vm3, %v8022_v37, -inf  ;;  %v6409_v18 = vpop.f32.mrb[67].mxu1 }
 0x25c   : > { %3576 = vmax.xlane.f32.xlu0 %v3575_v35  ;;  %v3242_v12 = vpop.f32.mrb[64].mxu0 }
 0x25d   : > { %v8032_v17 = vadd.f32 %v3242_v12, %v7837_v49  ;;  %v6414_v58 = vpop.f32.mrb[65].mxu0  ;;  %v3578_v33 = vsel %vm1935_vm3, %v8027_v25, -inf }
 0x25e   : > { %3579 = vmax.xlane.f32.xlu1 %v3578_v33  ;;  %v3245_v42 = vpop.f32.mrb[66].mxu0 }
 0x25f   : > { %8949 = vst [vmem:[#allocation31_spill] sm:$0xff] %v8032_v17  ;;  %v8037_v21 = vadd.f32 %v3245_v42, %v7841_v61  ;;  %v3581_v28 = vsel %vm1935_vm3, %v8032_v17, -inf  ;;  %v6415_v36 = vpop.f32.mrb[67].mxu0 }
 0x260   : > { %v3283_v56 = vpop.f32.mrb[68].mxu1  ;;  %3582 = vmax.xlane.f32.xlu0 %v3581_v28 }
 0x261   : > { %8950 = vst [vmem:[#allocation32_spill] sm:$0xff] %v8037_v21  ;;  %v8042_v13 = vadd.f32 %v3283_v56, %v7835_v46  ;;  %v6420_v49 = vpop.f32.mrb[69].mxu1  ;;  %v3584_v63 = vsel %vm1935_vm3, %v8037_v21, -inf }
 0x262   : > { %v3286_v47 = vpop.f32.mrb[70].mxu1  ;;  %3585 = vmax.xlane.f32.xlu1 %v3584_v63 }
 0x263   : > { %8951 = vst [vmem:[#allocation33_spill] sm:$0xff] %v8042_v13  ;;  %v8047_v19 = vadd.f32 %v3286_v47, %v7839_v57  ;;  %v3587_v61 = vsel %vm1935_vm3, %v8042_v13, -inf  ;;  %v6421_v53 = vpop.f32.mrb[71].mxu1 }
 0x264   : > { %3588 = vmax.xlane.f32.xlu0 %v3587_v61  ;;  %v3324_v27 = vpop.f32.mrb[68].mxu0 }
 0x265   : > { %8952 = vst [vmem:[#allocation34_spill] sm:$0xff] %v8047_v19  ;;  %v8052_v35 = vadd.f32 %v3324_v27, %v7845_v4  ;;  %v6426_v46 = vpop.f32.mrb[69].mxu0  ;;  %v3590_v18 = vsel %vm1935_vm3, %v8047_v19, -inf }
 0x266   : > { %3591 = vmax.xlane.f32.xlu1 %v3590_v18  ;;  %v3327_v12 = vpop.f32.mrb[70].mxu0 }
 0x267   : > { %8953 = vst [vmem:[#allocation35_spill] sm:$0xff] %v8052_v35  ;;  %v8057_v58 = vadd.f32 %v3327_v12, %v7849_v32  ;;  %v3593_v57 = vsel %vm1935_vm3, %v8052_v35, -inf  ;;  %v6427_v33 = vpop.f32.mrb[71].mxu0 }
 0x268   : > { %v3365_v42 = vpop.f32.mrb[72].mxu1  ;;  %3594 = vmax.xlane.f32.xlu0 %v3593_v57 }
 0x269   : > { %8954 = vst [vmem:[#allocation36_spill] sm:$0xff] %v8057_v58  ;;  %v8062_v28 = vadd.f32 %v3365_v42, %v7843_v39  ;;  %v6432_v4 = vpop.f32.mrb[73].mxu1  ;;  %v3596_v36 = vsel %vm1935_vm3, %v8057_v58, -inf }
 0x26a   : > { %v3368_v56 = vpop.f32.mrb[74].mxu1  ;;  %3597 = vmax.xlane.f32.xlu1 %v3596_v36  ;;  %v6766_v36 = vld [vmem:[%s1245_s9] sm:$0xff]   ;;  %s5508_s9 = sadd.s32 %s6065_s20, %s6043_s22  ;;  %s6988_s20 = sshll.u32 %s7115_s27, 4  ;;  %s6989_s20 = int_to_ptr.vmem [resolvable:$false] %s6988_s20 }
 0x26b   : > { %8955 = vst [vmem:[#allocation37_spill] sm:$0xff] %v8062_v28  ;;  %v8067_v49 = vadd.f32 %v3368_v56, %v7847_v29  ;;  %v3599_v32 = vsel %vm1935_vm3, %v8062_v28, -inf  ;;  %v6433_v63 = vpop.f32.mrb[75].mxu1  ;;  %6447 = vmatpush3.bf16.msra.mxu0 %v6766_v36  ;;  %v8097_v56 = vld [vmem:[%s7329_s29] sm:$0xff]   ;;  %s6044_s14 = sshll.u32 %s5508_s9, 6  ;;  %s6990_s22 = scalar_lea.vmem %s6989_s20, 2048 }
 0x26c   : > { %3600 = vmax.xlane.f32.xlu0 %v3599_v32  ;;  %v3406_v47 = vpop.f32.mrb[72].mxu0  ;;  %6458 = vmatprep.subr.bf16.mxu0 %v8891_v2  ;;  %8961 = vst [vmem:[#allocation43_spill] sm:$0xff] %v8097_v56  ;;  %s8765_s23 = scalar_lea.hbm %s8880_s13, %s6044_s14  ;;  %p6991_p11 = scmp.lt.s32.totalorder %s8767_s25, %s6989_s20 }
 0x26d   : > { %8956 = vst [vmem:[#allocation38_spill] sm:$0xff] %v8067_v49  ;;  %v8072_v61 = vadd.f32 %v3406_v47, %v7851_v11  ;;  %v6438_v39 = vpop.f32.mrb[73].mxu0  ;;  %v3602_v53 = vsel %vm1935_vm3, %v8067_v49, -inf  ;;  %6453 = vmatpush3.bf16.msra.mxu1 %v8097_v56  ;;  %p6992_p12 = scmp.lt.s32.totalorder %s6990_s22, %s6984_s28 }
 0x26e   : > { %3603 = vmax.xlane.f32.xlu1 %v3602_v53  ;;  %v3409_v27 = vpop.f32.mrb[74].mxu0  ;;  %6464 = vmatprep.subr.bf16.mxu1 %v8891_v2 }
 0x26f   : > { %8957 = vst [vmem:[#allocation39_spill] sm:$0xff] %v8072_v61  ;;  %v8077_v46 = vadd.f32 %v3409_v27, %v7856_v1  ;;  %v3605_v29 = vsel %vm1935_vm3, %v8072_v61, -inf  ;;  %v6439_v18 = vpop.f32.mrb[75].mxu0  ;;  %p6993_p13 = por %p6992_p12, %p6991_p11 }
 0x270   : > { %3606 = vmax.xlane.f32.xlu0 %v3605_v29  ;;  %v8081_v12 = vpop.f32.mrb[60].mxu1 }
 0x271   : > { %8958 = vst [vmem:[#allocation40_spill] sm:$0xff] %v8077_v46  ;;  %8959 = vst [vmem:[#allocation41_spill] sm:$0xff] %v8081_v12  ;;  %v6444_v11 = vpop.f32.mrb[61].mxu1  ;;  %v3608_v57 = vsel %vm1935_vm3, %v8077_v46, -inf  ;;  %v3611_v1 = vsel %vm1935_vm3, %v8081_v12, -inf  ;;  %p6994_p0 = pnand %p6993_p13, %p6987_p10 }
 0x272   : > { %3609 = vmax.xlane.f32.xlu1 %v3608_v57  ;;  %v8085_v33 = vpop.f32.mrb[62].mxu1 }
 0x273   : > { %8960 = vst [vmem:[#allocation42_spill] sm:$0xff] %v8085_v33  ;;  %v6445_v42 = vpop.f32.mrb[63].mxu1  ;;  %v3614_v4 = vsel %vm1935_vm3, %v8085_v33, -inf }
 0x274   : > { %3612 = vmax.xlane.f32.xlu0 %v3611_v1 }
 0x276   : > { %3615 = vmax.xlane.f32.xlu1 %v3614_v4 }
 0x299   : > { %v3459_v32 = vpop.xlane.xlu0 %3458 }
 0x29b   : > { %v3462_v63 = vpop.xlane.xlu1 %3461 }
 0x2a1   : > { %v3465_v47 = vpop.xlane.xlu0 %3464 }
 0x2a3   : > { %v3468_v39 = vpop.xlane.xlu1 %3467 }
 0x2a5   : > { %v3471_v53 = vpop.xlane.xlu0 %3470 }
 0x2a7   : > { %v3474_v27 = vpop.xlane.xlu1 %3473 }
 0x2a9   : > { %v8101_v29 = vpop.xlane.xlu0 %3476 }
 0x2ab   : > { %v8103_v18 = vpop.xlane.xlu1 %3479 }
 0x2ad   : > { %v8105_v11 = vpop.xlane.xlu0 %3482 }
 0x2af   : > { %v8107_v57 = vpop.xlane.xlu1 %3485 }
 0x2b1   : > { %v8109_v42 = vpop.xlane.xlu0 %3488 }
 0x2b3   : > { %v8111_v1 = vpop.xlane.xlu1 %3491 }
 0x2b5   : > { %v8113_v4 = vpop.xlane.xlu0 %3494 }
 0x2b7   : > { %v8115_v36 = vpop.xlane.xlu1 %3497 }
 0x2b9   : > { %v8117_v2 = vpop.xlane.xlu0 %3500 }
 0x2ba   : > { %8962 = vst [vmem:[#allocation44_spill] sm:$0xff] %v8117_v2 }
 0x2bb   : > { %v8119_v46 = vpop.xlane.xlu1 %3503 }
 0x2bc   : > { %8963 = vst [vmem:[#allocation45_spill] sm:$0xff] %v8119_v46 }
 0x2c1   : > { %v3513_v61 = vpop.xlane.xlu0 %3512 }
 0x2c3   : > { %v3516_v49 = vpop.xlane.xlu1 %3515 }
 0x2c5   : > { %v3507_v28 = vpop.xlane.xlu0 %3506 }
 0x2c6   : > { %v3553_v23 = vmax.f32 %v3459_v32, %v3507_v28 }
 0x2c7   : > { %v3510_v62 = vpop.xlane.xlu1 %3509 }
 0x2c8   : > { %v3554_v9 = vmax.f32 %v3462_v63, %v3510_v62  ;;  %v3555_v63 = vmax.f32 %v3465_v47, %v3513_v61 }
 0x2c9   : > { %v3519_v6 = vpop.xlane.xlu0 %3518 }
 0x2cb   : > { %v3522_v45 = vpop.xlane.xlu1 %3521 }
 0x2cd   : > { %v3525_v54 = vpop.xlane.xlu0 %3524 }
 0x2cf   : > { %v3528_v24 = vpop.xlane.xlu1 %3527 }
 0x2d1   : > { %v8121_v43 = vpop.xlane.xlu0 %3530 }
 0x2d3   : > { %v8123_v58 = vpop.xlane.xlu1 %3533 }
 0x2d5   : > { %v8125_v35 = vpop.xlane.xlu0 %3536 }
 0x2d7   : > { %v8127_v56 = vpop.xlane.xlu1 %3539 }
 0x2d9   : > { %v8129_v48 = vpop.xlane.xlu0 %3542 }
 0x2db   : > { %v8131_v20 = vpop.xlane.xlu1 %3545 }
 0x2dd   : > { %v8133_v19 = vpop.xlane.xlu0 %3548 }
 0x2de   : > { %8964 = vst [vmem:[#allocation46_spill] sm:$0xff] %v8133_v19 }
 0x2df   : > { %v8139_v13 = vpop.xlane.xlu1 %3551 }
 0x2e0   : > { %8965 = vst [vmem:[#allocation47_spill] sm:$0xff] %v8139_v13 }
 0x2e5   : > { %v3571_v33 = vpop.xlane.xlu0 %3570 }
 0x2e6   : > { %v8141_v12 = vmax.f32 %v3553_v23, %v3571_v33 }
 0x2e7   : > { %v3574_v3 = vpop.xlane.xlu1 %3573 }
 0x2e8   : > { %v8143_v30 = vmax.f32 %v3554_v9, %v3574_v3  ;;  %v3633_v21 = vsub.f32 %v7854_v41, %v8141_v12  ;;  %v3753_v23 = vsub.f32 %v7943_v14, %v8141_v12  ;;  %v3556_v3 = vmax.f32 %v3468_v39, %v3516_v49 }
 0x2e9   : > { %v3577_v5 = vpop.xlane.xlu0 %3576  ;;  %v3558_v9 = vmax.f32 %v3474_v27, %v3522_v45  ;;  %v4631_v40 = vsub.f32 %v8014_v52, %v8141_v12  ;;  %v3559_v52 = vmax.f32 %v8101_v29, %v3525_v54 }
 0x2ea   : > { %v3634_v60 = vsub.f32 %v7859_v51, %v8143_v30  ;;  %v3649_v46 = vmul.f32 1.442695, %v3633_v21  ;;  %v3754_v13 = vsub.f32 %v7947_v50, %v8143_v30  ;;  %v3769_v2 = vmul.f32 1.442695, %v3753_v23 }
 0x2eb   : > { %v3580_v17 = vpop.xlane.xlu1 %3579  ;;  %v3557_v21 = vmax.f32 %v3471_v53, %v3519_v6  ;;  %v8159_v14 = vmax.f32 %v3555_v63, %v3577_v5  ;;  %v4632_v45 = vsub.f32 %v8017_v31, %v8143_v30  ;;  %v4647_v5 = vmul.f32 1.442695, %v4631_v40 }
 0x2ec   : > { %v3651_v62 = vmul.f32 1.442695, %v3634_v60  ;;  %6824 = vpow2.f32 %v3649_v46  ;;  %v3771_v32 = vmul.f32 1.442695, %v3754_v13  ;;  %v8153_v51 = vmax.f32 %v3556_v3, %v3580_v17 }
 0x2ed   : > { %v3583_v28 = vpop.xlane.xlu0 %3582  ;;  %v3560_v13 = vmax.f32 %v8103_v18, %v3528_v24  ;;  %v3755_v61 = vsub.f32 %v7936_v34, %v8159_v14  ;;  %v3561_v31 = vmax.f32 %v8105_v11, %v8121_v43  ;;  %v4649_v24 = vmul.f32 1.442695, %v4632_v45 }
 0x2ee   : > { %6826 = vpow2.f32 %v3651_v62  ;;  %v8163_v60 = vmax.f32 %v3557_v21, %v3583_v28  ;;  %v3756_v6 = vsub.f32 %v7939_v10, %v8153_v51  ;;  %v3635_v54 = vsub.f32 %v7866_v7, %v8159_v14 }
 0x2ef   : > { %v3586_v33 = vpop.xlane.xlu1 %3585  ;;  %6828 = vpow2.f32 %v3771_v32  ;;  %v3636_v40 = vsub.f32 %v7872_v22, %v8153_v51  ;;  %v3773_v27 = vmul.f32 1.442695, %v3755_v61  ;;  %v3563_v7 = vmax.f32 %v8109_v42, %v8125_v35 }
 0x2f0   : > { %v8155_v19 = vmax.f32 %v3558_v9, %v3586_v33  ;;  %6830 = vpow2.f32 %v3769_v2  ;;  %v3562_v2 = vmax.f32 %v8107_v57, %v8123_v58  ;;  %v3757_v10 = vsub.f32 %v7952_v0, %v8163_v60 }
 0x2f1   : > { %v3589_v41 = vpop.xlane.xlu0 %3588  ;;  %v3775_v34 = vmul.f32 1.442695, %v3756_v6  ;;  %6832 = vpow2.f32 %v4647_v5  ;;  %v3653_v11 = vmul.f32 1.442695, %v3635_v54  ;;  %v3655_v57 = vmul.f32 1.442695, %v3636_v40 }
 0x2f2   : > { %v3758_v17 = vsub.f32 %v7957_v38, %v8155_v19  ;;  %v8185_v47 = vmax.f32 %v3559_v52, %v3589_v41  ;;  %6834 = vpow2.f32 %v4649_v24  ;;  %v3777_v22 = vmul.f32 1.442695, %v3757_v10  ;;  %v8216_v41 = vld [vmem:[%s7329_s29 + $0x8] sm:$0xff]   ;;  %v8968_v10 = vld [vmem:[#allocation46_spill] sm:$0xff] }
 0x2f3   : > { %v3592_v50 = vpop.xlane.xlu1 %3591  ;;  %6836 = vpow2.f32 %v3775_v34  ;;  %v3564_v3 = vmax.f32 %v8111_v1, %v8127_v56  ;;  %v4634_v1 = vsub.f32 %v8027_v25, %v8153_v51  ;;  %v3566_v6 = vmax.f32 %v8115_v36, %v8131_v20  ;;  %v8967_v36 = vld [vmem:[#allocation26_spill] sm:$0xff]  ;;  %v8970_v40 = vld [vmem:[#allocation47_spill] sm:$0xff]  ;;  %v8971_v34 = vld [vmem:[#allocation45_spill] sm:$0xff] }
 0x2f4   : > { %v8173_v46 = vmax.f32 %v3560_v13, %v3592_v50  ;;  %v3779_v43 = vmul.f32 1.442695, %v3758_v17  ;;  %v3759_v28 = vsub.f32 %v7962_v44, %v8185_v47  ;;  %v8966_v5 = vmov 0.0  }
 0x2f5   : > { %v3595_v49 = vpop.xlane.xlu0 %3594  ;;  %v3638_v20 = vsub.f32 %v7875_v15, %v8155_v19 }
 0x2f6   : > { %v8187_v39 = vpop.eup %6824  ;;  %v8189_v53 = vmax.f32 %v3561_v31, %v3595_v49  ;;  %v3760_v0 = vsub.f32 %v7967_v59, %v8173_v46  ;;  %6838 = vpow2.f32 %v3779_v43  ;;  %v3781_v63 = vmul.f32 1.442695, %v3759_v28 }
 0x2f7   : > { %v3598_v38 = vpop.xlane.xlu1 %3597  ;;  %v3681_v62 = vsel %vm1935_vm3, %v8187_v39, 0.0  ;;  %6840 = vpow2.f32 %v3773_v27  ;;  %v4653_v31 = vmul.f32 1.442695, %v4634_v1  ;;  %v3568_v43 = vmax.f32 %v8971_v34, %v8970_v40  ;;  %v8972_v27 = vld [vmem:[#allocation31_spill] sm:$0xff] }
 0x2f8   : > { %v8191_v58 = vpop.eup %6826  ;;  %v8195_v29 = vmax.f32 %v3562_v2, %v3598_v38  ;;  %v3761_v59 = vsub.f32 %v7972_v26, %v8189_v53  ;;  %v3783_v9 = vmul.f32 1.442695, %v3760_v0  ;;  %3682 = vadd.xlane.f32.xlu0 %v3681_v62  ;;  %v4633_v26 = vsub.f32 %v8022_v37, %v8159_v14  ;;  %v8969_v38 = vld [vmem:[#allocation44_spill] sm:$0xff]  ;;  %v8973_v62 = vld [vmem:[#allocation27_spill] sm:$0xff] }
 0x2f9   : > { %v3601_v18 = vpop.xlane.xlu0 %3600  ;;  %v6829_v23 = vpop.eup %6828  ;;  %v3684_v35 = vsel %vm1935_vm3, %v8191_v58, 0.0  ;;  %6842 = vpow2.f32 %v3777_v22  ;;  %v3565_v37 = vmax.f32 %v8113_v4, %v8129_v48  ;;  %v3637_v4 = vsub.f32 %v7869_v16, %v8163_v60 }
 0x2fa   : > { %v6831_v33 = vpop.eup %6830  ;;  %v3762_v44 = vsub.f32 %v7977_v8, %v8195_v29  ;;  %3685 = vadd.xlane.f32.xlu1 %v3684_v35  ;;  %v8213_v32 = vmax.f32 %v3563_v7, %v3601_v18  ;;  %6844 = vpow2.f32 %v3653_v11  ;;  %v3785_v8 = vmul.f32 1.442695, %v3761_v59  ;;  %v8260_v18 = vld [vmem:[%s7329_s29 + $0x10] sm:$0xff]  }
 0x2fb   : > { %v3604_v42 = vpop.xlane.xlu1 %3603  ;;  %v3865_v56 = vpack.c.bf16 %v6829_v23, %v6831_v33  ;;  %6846 = vpow2.f32 %v3655_v57  ;;  %v3801_v50 = vsel %vm1935_vm3, %v6831_v33, 0.0  ;;  %v4651_v17 = vmul.f32 1.442695, %v4633_v26  ;;  %v8234_v48 = vpop.eup %6832  ;;  %v8974_v26 = vld [vmem:[#allocation28_spill] sm:$0xff] }
 0x2fc   : > { %v8218_v21 = vmax.f32 %v3564_v3, %v3604_v42  ;;  %6848 = vpow2.f32 %v3783_v9  ;;  %v3787_v13 = vmul.f32 1.442695, %v3762_v44  ;;  %3802 = vadd.xlane.f32.xlu0 %v3801_v50  ;;  %v3763_v49 = vsub.f32 %v7982_v55, %v8213_v32  ;;  %v8243_v61 = vpop.eup %6834  ;;  %v8273_v9 = vld [vmem:[%s7329_s29 + $0x18] sm:$0xff]  }
 0x2fd   : > { %v3607_v45 = vpop.xlane.xlu0 %3606  ;;  %6449 = vmatmul.mubr.msk.bf16.vlgmr.msra.gmra.mrb[76].mxu0 %vm1935_vm3, %v3865_v56  ;;  %v3804_v25 = vsel %vm1935_vm3, %v6829_v23, 0.0  ;;  %6850 = vpow2.f32 %v3781_v63  ;;  %v8247_v24 = vpop.eup %6836  ;;  %v3567_v54 = vmax.f32 %v8969_v38, %v8968_v10  ;;  %v4635_v0 = vsub.f32 %v8972_v27, %v8163_v60  ;;  %v8978_v10 = vld [vmem:[#allocation41_spill] sm:$0xff] }
 0x2fe   : > { %6459 = vmatpush3.bf16.msra.mxu0 %v8216_v41  ;;  %6460 = vmatprep.mubr.msk.bf16.mxu0 %vm7113_vm0, %v8966_v5  ;;  %v3764_v55 = vsub.f32 %v8967_v36, %v8218_v21  ;;  %6852 = vpow2.f32 %v3785_v8  ;;  %v8245_v2 = vmax.f32 %v3565_v37, %v3607_v45  ;;  %v3789_v7 = vmul.f32 1.442695, %v3763_v49  ;;  %v8975_v37 = vld [vmem:[#allocation32_spill] sm:$0xff]  ;;  %v8977_v36 = vld [vmem:[#allocation29_spill] sm:$0xff] }
 0x2ff   : > { %v3610_v52 = vpop.xlane.xlu1 %3609  ;;  %3805 = vadd.xlane.f32.xlu1 %v3804_v25  ;;  %6470 = vmatprep.subr.bf16.mxu0 %v8966_v5  ;;  %6854 = vpow2.f32 %v3787_v13  ;;  %v3657_v57 = vmul.f32 1.442695, %v3637_v4  ;;  %v3659_v28 = vmul.f32 1.442695, %v3638_v20  ;;  %v4679_v33 = vsel %vm1935_vm3, %v8234_v48, 0.0 }
 0x300   : > { %v8249_v16 = vmax.f32 %v3566_v6, %v3610_v52  ;;  %v8251_v15 = vpop.eup %6838  ;;  %6856 = vpow2.f32 %v4651_v17  ;;  %v3791_v23 = vmul.f32 1.442695, %v3764_v55  ;;  %v3765_v35 = vsub.f32 %v8973_v62, %v8245_v2  ;;  %4680 = vadd.xlane.f32.xlu0 %v4679_v33  ;;  %v8976_v17 = vld [vmem:[#allocation16_spill] sm:$0xff]  ;;  %v8328_v62 = vld [vmem:[%s7329_s29 + $0x20] sm:$0xff]  }
 0x301   : > { %v3613_v22 = vpop.xlane.xlu0 %3612  ;;  %v8262_v11 = vpop.eup %6840  ;;  %6858 = vpow2.f32 %v4653_v31  ;;  %v4682_v1 = vsel %vm1935_vm3, %v8243_v61, 0.0  ;;  %v4636_v13 = vsub.f32 %v8975_v37, %v8155_v19  ;;  %v3639_v49 = vsub.f32 %v8976_v17, %v8185_v47 }
 0x302   : > { %v3866_v42 = vpack.c.bf16 %v8247_v24, %v8262_v11  ;;  %v3766_v63 = vsub.f32 %v8974_v26, %v8249_v16  ;;  %v8279_v56 = vmax.f32 %v3567_v54, %v3613_v22  ;;  %6860 = vpow2.f32 %v3789_v7  ;;  %v8335_v26 = vld [vmem:[%s7329_s29 + $0x28] sm:$0xff]  }
 0x303   : > { %v8264_v59 = vpop.eup %6842  ;;  %v3616_v3 = vpop.xlane.xlu1 %3615  ;;  %4683 = vadd.xlane.f32.xlu1 %v4682_v1  ;;  %6862 = vpow2.f32 %v3791_v23  ;;  %v3793_v25 = vmul.f32 1.442695, %v3765_v35  ;;  %v4655_v4 = vmul.f32 1.442695, %v4635_v0  ;;  %v4657_v27 = vmul.f32 1.442695, %v4636_v13 }
 0x304   : > { %v8275_v44 = vpop.eup %6844  ;;  %v3867_v8 = vpack.c.bf16 %v8251_v15, %v8264_v59  ;;  %6455 = vmatmul.mubr.msk.bf16.vlgmr.msra.gmra.mrb[76].mxu1 %vm1935_vm3, %v3866_v42  ;;  %v8292_v6 = vmax.f32 %v3568_v43, %v3616_v3  ;;  %6864 = vpow2.f32 %v3657_v57  ;;  %v3795_v20 = vmul.f32 1.442695, %v3766_v63  ;;  %v8979_v0 = vld [vmem:[#allocation30_spill] sm:$0xff] }
 0x305   : > { %v8285_v50 = vpop.eup %6846  ;;  %6465 = vmatpush3.bf16.msra.mxu1 %v8260_v18  ;;  %6466 = vmatprep.mubr.msk.bf16.mxu1 %vm7113_vm0, %v8966_v5  ;;  %6866 = vpow2.f32 %v3659_v28  ;;  %v3767_v55 = vsub.f32 %v8977_v36, %v8279_v56  ;;  %v4645_v38 = vsub.f32 %v8978_v10, %v8279_v56  ;;  %v3687_v54 = vsel %vm1935_vm3, %v8275_v44, 0.0  ;;  %v8980_v57 = vld [vmem:[#allocation42_spill] sm:$0xff]  ;;  %v8982_v10 = vld [vmem:[#allocation33_spill] sm:$0xff] }
 0x306   : > { %v8288_v45 = vpop.eup %6848  ;;  %6461 = vmatmul.mubr.msk.bf16.vlgmr.msra.gmra.mrb[80].mxu0 %vm1935_vm3, %v3867_v8  ;;  %6476 = vmatprep.subr.bf16.mxu1 %v8966_v5  ;;  %v3690_v40 = vsel %vm1935_vm3, %v8285_v50, 0.0  ;;  %v3768_v7 = vsub.f32 %v8979_v0, %v8292_v6  ;;  %v3661_v22 = vmul.f32 1.442695, %v3639_v49  ;;  %6868 = vpow2.f32 %v3793_v25  ;;  %v8981_v42 = vld [vmem:[#allocation18_spill] sm:$0xff] }
 0x307   : > { %6471 = vmatpush3.bf16.msra.mxu0 %v8273_v9  ;;  %v8301_v52 = vpop.eup %6850  ;;  %6472 = vmatprep.mubr.msk.bf16.mxu0 %vm7113_vm0, %v8966_v5  ;;  %v4646_v28 = vsub.f32 %v8980_v57, %v8292_v6  ;;  %v3640_v33 = vsub.f32 %v8981_v42, %v8173_v46  ;;  %6870 = vpow2.f32 %v3795_v20  ;;  %v3797_v3 = vmul.f32 1.442695, %v3767_v55  ;;  %v8984_v42 = vld [vmem:[#allocation17_spill] sm:$0xff] }
 0x308   : > { %v8308_v31 = vpop.eup %6852  ;;  %v3868_v34 = vpack.c.bf16 %v8288_v45, %v8301_v52  ;;  %6482 = vmatprep.subr.bf16.mxu0 %v8966_v5  ;;  %3688 = vadd.xlane.f32.xlu0 %v3687_v54  ;;  %6872 = vpow2.f32 %v4655_v4  ;;  %v4675_v1 = vmul.f32 1.442695, %v4645_v38  ;;  %v3807_v8 = vsel %vm1935_vm3, %v8262_v11, 0.0  ;;  %v8369_v54 = vld [vmem:[%s7329_s29 + $0x30] sm:$0xff]  }
 0x309   : > { %v8319_v43 = vpop.eup %6854  ;;  %3691 = vadd.xlane.f32.xlu1 %v3690_v40  ;;  %v3810_v37 = vsel %vm1935_vm3, %v8247_v24, 0.0  ;;  %6874 = vpow2.f32 %v4657_v27  ;;  %v3799_v13 = vmul.f32 1.442695, %v3768_v7  ;;  %v4677_v49 = vmul.f32 1.442695, %v4646_v28  ;;  %v8983_v40 = vld [vmem:[#allocation34_spill] sm:$0xff] }
 0x30a   : > { %v3869_v23 = vpack.c.bf16 %v8319_v43, %v8308_v31  ;;  %v8330_v35 = vpop.eup %6856  ;;  %6876 = vpow2.f32 %v3661_v22  ;;  %v3663_v4 = vmul.f32 1.442695, %v3640_v33  ;;  %v4637_v38 = vsub.f32 %v8982_v10, %v8185_v47 }
 0x30b   : > { %v8337_v63 = vpop.eup %6858  ;;  %6878 = vpow2.f32 %v3797_v3  ;;  %v4685_v11 = vsel %vm1935_vm3, %v8330_v35, 0.0  ;;  %v4743_v22 = vpack.c.bf16 %v8243_v61, %v8234_v48  ;;  %v3641_v33 = vsub.f32 %v8984_v42, %v8189_v53  ;;  %v8987_v42 = vld [vmem:[#allocation35_spill] sm:$0xff] }
 0x30c   : > { %6467 = vmatmul.mubr.msk.bf16.vlgmr.msra.gmra.mrb[80].mxu1 %vm1935_vm3, %v3868_v34  ;;  %3808 = vadd.xlane.f32.xlu0 %v3807_v8  ;;  %v8344_v17 = vpop.eup %6860  ;;  %6880 = vpow2.f32 %v4675_v1  ;;  %v4688_v20 = vsel %vm1935_vm3, %v8337_v63, 0.0  ;;  %v4638_v34 = vsub.f32 %v8983_v40, %v8173_v46  ;;  %v4744_v48 = vpack.c.bf16 %v8337_v63, %v8330_v35 }
 0x30d   : > { %3811 = vadd.xlane.f32.xlu1 %v3810_v37  ;;  %6477 = vmatpush3.bf16.msra.mxu1 %v8328_v62  ;;  %v8348_v25 = vpop.eup %6862  ;;  %6882 = vpow2.f32 %v3799_v13  ;;  %v8985_v37 = vld [vmem:[#allocation19_spill] sm:$0xff]  ;;  %v3665_v10 = vmul.f32 1.442695, %v3641_v33  ;;  %v4639_v33 = vsub.f32 %v8987_v42, %v8189_v53 }
 0x30e   : > { %6473 = vmatmul.mubr.msk.bf16.vlgmr.msra.gmra.mrb[84].mxu0 %vm1935_vm3, %v3869_v23  ;;  %6478 = vmatprep.mubr.msk.bf16.mxu1 %vm7113_vm0, %v8966_v5  ;;  %v8353_v24 = vpop.eup %6864  ;;  %v3870_v36 = vpack.c.bf16 %v8348_v25, %v8344_v17  ;;  %6884 = vpow2.f32 %v4677_v49  ;;  %v4659_v23 = vmul.f32 1.442695, %v4637_v38  ;;  %v4661_v8 = vmul.f32 1.442695, %v4638_v34  ;;  %v8986_v38 = vld [vmem:[#allocation43_spill] sm:$0xff] }
 0x30f   : > { %6483 = vmatpush3.bf16.msra.mxu0 %v8335_v26  ;;  %6484 = vmatprep.mubr.msk.bf16.mxu0 %vm7113_vm0, %v8966_v5  ;;  %v8364_v55 = vpop.eup %6866  ;;  %6886 = vpow2.f32 %v3663_v4  ;;  %v3693_v0 = vsel %vm1935_vm3, %v8353_v24, 0.0  ;;  %v3642_v13 = vsub.f32 %v8985_v37, %v8195_v29  ;;  %v3813_v4 = vsel %vm1935_vm3, %v8264_v59, 0.0 }
 0x310   : > { %6488 = vmatprep.subr.bf16.mxu1 %v8966_v5  ;;  %4686 = vadd.xlane.f32.xlu0 %v4685_v11  ;;  %v8374_v27 = vpop.eup %6868  ;;  %v3696_v7 = vsel %vm1935_vm3, %v8364_v55, 0.0  ;;  %v3816_v11 = vsel %vm1935_vm3, %v8251_v15, 0.0  ;;  %6888 = vpow2.f32 %v4659_v23 }
 0x311   : > { %4689 = vadd.xlane.f32.xlu1 %v4688_v20  ;;  %6494 = vmatprep.subr.bf16.mxu0 %v8966_v5  ;;  %v8383_v57 = vpop.eup %6870  ;;  %6890 = vpow2.f32 %v4661_v8  ;;  %v3667_v59 = vmul.f32 1.442695, %v3642_v13  ;;  %v8988_v8 = vld [vmem:[#allocation36_spill] sm:$0xff]  ;;  %v3745_v13 = vpack.c.bf16 %v8191_v58, %v8187_v39  ;;  %v4663_v58 = vmul.f32 1.442695, %v4639_v33 }
 0x312   : > { %v8385_v28 = vpop.eup %6872  ;;  %v3871_v3 = vpack.c.bf16 %v8383_v57, %v8374_v27  ;;  %6892 = vpow2.f32 %v3665_v10  ;;  %v4640_v37 = vsub.f32 %v8988_v8, %v8195_v29  ;;  %v8992_v8 = vld [vmem:[#allocation21_spill] sm:$0xff]  ;;  %v3837_v35 = vsel %vm1935_vm3, %v8374_v27, 0.0 }
 0x313   : > { %v8394_v1 = vpop.eup %6874  ;;  %6894 = vpow2.f32 %v3667_v59  ;;  %v8991_v59 = vld [vmem:[#allocation23_spill] sm:$0xff]  ;;  %v3840_v63 = vsel %vm1935_vm3, %v8383_v57, 0.0 }
 0x314   : > { %6479 = vmatmul.mubr.msk.bf16.vlgmr.msra.gmra.mrb[84].mxu1 %vm1935_vm3, %v3870_v36  ;;  %3694 = vadd.xlane.f32.xlu0 %v3693_v0  ;;  %v8399_v49 = vpop.eup %6876  ;;  %v4691_v0 = vsel %vm1935_vm3, %v8385_v28, 0.0  ;;  %6896 = vpow2.f32 %v4663_v58 }
 0x315   : > { %3697 = vadd.xlane.f32.xlu1 %v3696_v7  ;;  %6489 = vmatpush3.bf16.msra.mxu1 %v8369_v54  ;;  %v8406_v20 = vpop.eup %6878  ;;  %v4694_v7 = vsel %vm1935_vm3, %v8394_v1, 0.0 }
 0x316   : > { %6490 = vmatprep.mubr.msk.bf16.mxu1 %vm7113_vm0, %v8966_v5  ;;  %6500 = vmatprep.subr.bf16.mxu1 %v8966_v5  ;;  %v8408_v36 = vpop.eup %6880 }
 0x317   : > { %6485 = vmatmul.mubr.msk.bf16.vlgmr.msra.gmra.mrb[88].mxu0 %vm1935_vm3, %v3871_v3  ;;  %v8413_v40 = vpop.eup %6882 }
 0x318   : > { %3814 = vadd.xlane.f32.xlu0 %v3813_v4  ;;  %6495 = vmatpush3.bf16.msra.mxu0 %v8986_v38  ;;  %v8416_v15 = vpop.eup %6884  ;;  %v3872_v34 = vpack.c.bf16 %v8413_v40, %v8406_v20  ;;  %v8989_v4 = vld [vmem:[#allocation22_spill] sm:$0xff]  ;;  %v8990_v38 = vld [vmem:[#allocation20_spill] sm:$0xff] }
 0x319   : > { %3817 = vadd.xlane.f32.xlu1 %v3816_v11  ;;  %6496 = vmatprep.mubr.msk.bf16.mxu0 %vm7113_vm0, %v8966_v5  ;;  %v8424_v23 = vpop.eup %6886  ;;  %v4750_v3 = vpack.c.bf16 %v8416_v15, %v8408_v36  ;;  %v3644_v11 = vsub.f32 %v8989_v4, %v8218_v21  ;;  %v3643_v10 = vsub.f32 %v8990_v38, %v8213_v32 }
 0x31a   : > { %6506 = vmatprep.subr.bf16.mxu0 %v8966_v5  ;;  %v3702_v39 = vsel %vm1935_vm3, %v8424_v23, 0.0  ;;  %v8456_v4 = vpop.eup %6888  ;;  %v3746_v38 = vpack.c.bf16 %v8285_v50, %v8275_v44  ;;  %v8993_v50 = vld [vmem:[#allocation25_spill] sm:$0xff] }
 0x31b   : > { %v3671_v42 = vmul.f32 1.442695, %v3644_v11  ;;  %v3669_v33 = vmul.f32 1.442695, %v3643_v10  ;;  %v3747_v10 = vpack.c.bf16 %v8364_v55, %v8353_v24  ;;  %v4697_v58 = vsel %vm1935_vm3, %v8456_v4, 0.0 }
 0x31c   : > { %4692 = vadd.xlane.f32.xlu0 %v4691_v0  ;;  %6491 = vmatmul.mubr.msk.bf16.vlgmr.msra.gmra.mrb[88].mxu1 %vm1935_vm3, %v3872_v34  ;;  %v3699_v34 = vsel %vm1935_vm3, %v8399_v49, 0.0  ;;  %v3646_v0 = vsub.f32 %v8991_v59, %v8249_v16  ;;  %v8994_v59 = vld [vmem:[#allocation24_spill] sm:$0xff] }
 0x31d   : > { %4695 = vadd.xlane.f32.xlu1 %v4694_v7  ;;  %6501 = vmatpush3.bf16.msra.mxu1 %v8216_v41  ;;  %v4665_v7 = vmul.f32 1.442695, %v4640_v37  ;;  %v3819_v37 = vsel %vm1935_vm3, %v8301_v52, 0.0  ;;  %v3648_v52 = vsub.f32 %v8993_v50, %v8292_v6 }
 0x31e   : > { %6502 = vmatprep.mubr.msk.bf16.mxu1 %vm7113_vm0, %v8966_v5  ;;  %6512 = vmatprep.subr.bf16.mxu1 %v8966_v5  ;;  %v3675_v11 = vmul.f32 1.442695, %v3646_v0  ;;  %v3647_v0 = vsub.f32 %v8994_v59, %v8279_v56  ;;  %v8512_v59 = vld [vmem:[%s7329_s29 + $0x38] sm:$0xff]  }
 0x31f   : > { %6497 = vmatmul.mubr.msk.bf16.vlgmr.msra.gmra.mrb[76].mxu0 %vm1935_vm3, %v3745_v13  ;;  %v3645_v13 = vsub.f32 %v8992_v8, %v8245_v2  ;;  %6898 = vpow2.f32 %v4665_v7  ;;  %v8995_v7 = vld [vmem:[#allocation37_spill] sm:$0xff]  ;;  %v8996_v8 = vld [vmem:[#allocation38_spill] sm:$0xff] }
 0x320   : > { %3700 = vadd.xlane.f32.xlu0 %v3699_v34  ;;  %6507 = vmatpush3.bf16.msra.mxu0 %v8260_v18  ;;  %v3822_v34 = vsel %vm1935_vm3, %v8288_v45, 0.0  ;;  %6900 = vpow2.f32 %v3671_v42  ;;  %v4641_v42 = vsub.f32 %v8995_v7, %v8213_v32 }
 0x321   : > { %3703 = vadd.xlane.f32.xlu1 %v3702_v39  ;;  %6508 = vmatprep.mubr.msk.bf16.mxu0 %vm7113_vm0, %v8966_v5  ;;  %v8464_v39 = vpop.eup %6890  ;;  %v3673_v44 = vmul.f32 1.442695, %v3645_v13  ;;  %6902 = vpow2.f32 %v3669_v33  ;;  %v4642_v13 = vsub.f32 %v8996_v8, %v8218_v21  ;;  %v3679_v33 = vmul.f32 1.442695, %v3648_v52 }
 0x322   : > { %6518 = vmatprep.subr.bf16.mxu0 %v8966_v5  ;;  %v6893_v45 = vpop.eup %6892  ;;  %v4700_v24 = vsel %vm1935_vm3, %v8464_v39, 0.0  ;;  %6904 = vpow2.f32 %v3675_v11  ;;  %v3677_v11 = vmul.f32 1.442695, %v3647_v0  ;;  %v3828_v52 = vsel %vm1935_vm3, %v8319_v43, 0.0 }
 0x323   : > { %v6895_v55 = vpop.eup %6894  ;;  %6906 = vpow2.f32 %v3673_v44  ;;  %v4669_v44 = vmul.f32 1.442695, %v4642_v13 }
 0x324   : > { %3820 = vadd.xlane.f32.xlu0 %v3819_v37  ;;  %6503 = vmatmul.mubr.msk.bf16.vlgmr.msra.gmra.mrb[76].mxu1 %vm1935_vm3, %v3746_v38  ;;  %v3748_v38 = vpack.c.bf16 %v8424_v23, %v8399_v49  ;;  %v3705_v37 = vsel %vm1935_vm3, %v6893_v45, 0.0  ;;  %v3749_v50 = vpack.c.bf16 %v6895_v55, %v6893_v45  ;;  %6908 = vpow2.f32 %v3679_v33  ;;  %v8998_v33 = vld [vmem:[#allocation40_spill] sm:$0xff] }
 0x325   : > { %3823 = vadd.xlane.f32.xlu1 %v3822_v34  ;;  %6513 = vmatpush3.bf16.msra.mxu1 %v8273_v9  ;;  %v3708_v34 = vsel %vm1935_vm3, %v6895_v55, 0.0  ;;  %v3825_v23 = vsel %vm1935_vm3, %v8308_v31, 0.0  ;;  %6910 = vpow2.f32 %v3677_v11 }
 0x326   : > { %6514 = vmatprep.mubr.msk.bf16.mxu1 %vm7113_vm0, %v8966_v5  ;;  %6524 = vmatprep.subr.bf16.mxu1 %v8966_v5 }
 0x327   : > { %6509 = vmatmul.mubr.msk.bf16.vlgmr.msra.gmra.mrb[80].mxu0 %vm1935_vm3, %v3747_v10  ;;  %v4667_v10 = vmul.f32 1.442695, %v4641_v42  ;;  %v8997_v42 = vld [vmem:[#allocation39_spill] sm:$0xff] }
 0x328   : > { %4698 = vadd.xlane.f32.xlu0 %v4697_v58  ;;  %6519 = vmatpush3.bf16.msra.mxu0 %v8328_v62  ;;  %v8495_v58 = vpop.eup %6896  ;;  %v4643_v8 = vsub.f32 %v8997_v42, %v8245_v2 }
 0x329   : > { %4701 = vadd.xlane.f32.xlu1 %v4700_v24  ;;  %6520 = vmatprep.mubr.msk.bf16.mxu0 %vm7113_vm0, %v8966_v5  ;;  %v8500_v49 = vpop.eup %6898  ;;  %6912 = vpow2.f32 %v4667_v10  ;;  %v4703_v43 = vsel %vm1935_vm3, %v8495_v58, 0.0 }
 0x32a   : > { %6530 = vmatprep.subr.bf16.mxu0 %v8966_v5  ;;  %v6901_v45 = vpop.eup %6900  ;;  %6914 = vpow2.f32 %v4669_v44  ;;  %v4706_v0 = vsel %vm1935_vm3, %v8500_v49, 0.0  ;;  %v4671_v10 = vmul.f32 1.442695, %v4643_v8 }
 0x32b   : > { %v6903_v24 = vpop.eup %6902 }
 0x32c   : > { %3706 = vadd.xlane.f32.xlu0 %v3705_v37  ;;  %6515 = vmatmul.mubr.msk.bf16.vlgmr.msra.gmra.mrb[80].mxu1 %vm1935_vm3, %v3748_v38  ;;  %v6905_v55 = vpop.eup %6904  ;;  %v3750_v31 = vpack.c.bf16 %v6901_v45, %v6903_v24  ;;  %v4644_v38 = vsub.f32 %v8998_v33, %v8249_v16  ;;  %v3711_v37 = vsel %vm1935_vm3, %v6903_v24, 0.0  ;;  %v3834_v24 = vsel %vm1935_vm3, %v8348_v25, 0.0 }
 0x32d   : > { %3709 = vadd.xlane.f32.xlu1 %v3708_v34  ;;  %6525 = vmatpush3.bf16.msra.mxu1 %v8335_v26  ;;  %v6907_v7 = vpop.eup %6906  ;;  %v3714_v34 = vsel %vm1935_vm3, %v6901_v45, 0.0  ;;  %v3831_v45 = vsel %vm1935_vm3, %v8344_v17, 0.0  ;;  %6916 = vpow2.f32 %v4671_v10  ;;  %v4745_v25 = vpack.c.bf16 %v8394_v1, %v8385_v28 }
 0x32e   : > { %6526 = vmatprep.mubr.msk.bf16.mxu1 %vm7113_vm0, %v8966_v5  ;;  %6536 = vmatprep.subr.bf16.mxu1 %v8966_v5  ;;  %v3751_v13 = vpack.c.bf16 %v6905_v55, %v6907_v7  ;;  %v6909_v11 = vpop.eup %6908  ;;  %v4673_v44 = vmul.f32 1.442695, %v4644_v38  ;;  %v3717_v61 = vsel %vm1935_vm3, %v6907_v7, 0.0 }
 0x32f   : > { %6521 = vmatmul.mubr.msk.bf16.vlgmr.msra.gmra.mrb[84].mxu0 %vm1935_vm3, %v3749_v50  ;;  %v6911_v50 = vpop.eup %6910  ;;  %v3726_v1 = vsel %vm1935_vm3, %v6909_v11, 0.0 }
 0x330   : > { %3826 = vadd.xlane.f32.xlu0 %v3825_v23  ;;  %6531 = vmatpush3.bf16.msra.mxu0 %v8369_v54  ;;  %6918 = vpow2.f32 %v4673_v44  ;;  %v3723_v28 = vsel %vm1935_vm3, %v6911_v50, 0.0 }
 0x331   : > { %3829 = vadd.xlane.f32.xlu1 %v3828_v52  ;;  %6532 = vmatprep.mubr.msk.bf16.mxu0 %vm7113_vm0, %v8966_v5  ;;  %v3752_v52 = vpack.c.bf16 %v6909_v11, %v6911_v50 }
 0x332   : > { %6542 = vmatprep.subr.bf16.mxu0 %v8966_v5 }
 0x333   : > { %v8535_v23 = vpop.eup %6912 }
 0x334   : > { %4704 = vadd.xlane.f32.xlu0 %v4703_v43  ;;  %6527 = vmatmul.mubr.msk.bf16.vlgmr.msra.gmra.mrb[84].mxu1 %vm1935_vm3, %v3750_v31  ;;  %v6915_v31 = vpop.eup %6914 }
 0x335   : > { %4707 = vadd.xlane.f32.xlu1 %v4706_v0  ;;  %6537 = vmatpush3.bf16.msra.mxu1 %v8512_v59  ;;  %v4712_v17 = vsel %vm1935_vm3, %v6915_v31, 0.0 }
 0x336   : > { %6538 = vmatprep.mubr.msk.bf16.mxu1 %vm7113_vm0, %v8966_v5  ;;  %6548 = vmatprep.subr.bf16.mxu1 %v8966_v5 }
 0x337   : > { %6533 = vmatmul.mubr.msk.bf16.vlgmr.msra.gmra.mrb[88].mxu0 %vm1935_vm3, %v3751_v13 }
 0x338   : > { %3712 = vadd.xlane.f32.xlu0 %v3711_v37  ;;  %6543 = vmatpush3.bf16.msra.mxu0 %v8216_v41  ;;  %v4709_v41 = vsel %vm1935_vm3, %v8535_v23, 0.0 }
 0x339   : > { %3715 = vadd.xlane.f32.xlu1 %v3714_v34  ;;  %6544 = vmatprep.mubr.msk.bf16.mxu0 %vm7113_vm0, %v8966_v5 }
 0x33a   : > { %6554 = vmatprep.subr.bf16.mxu0 %v8966_v5 }
 0x33c   : > { %3832 = vadd.xlane.f32.xlu0 %v3831_v45  ;;  %6539 = vmatmul.mubr.msk.bf16.vlgmr.msra.gmra.mrb[88].mxu1 %vm1935_vm3, %v3752_v52 }
 0x33d   : > { %3835 = vadd.xlane.f32.xlu1 %v3834_v24  ;;  %6549 = vmatpush3.bf16.msra.mxu1 %v8260_v18  ;;  %v3720_v18 = vsel %vm1935_vm3, %v6905_v55, 0.0  ;;  %v4721_v55 = vsel %vm1935_vm3, %v8408_v36, 0.0 }
 0x33e   : > { %6550 = vmatprep.mubr.msk.bf16.mxu1 %vm7113_vm0, %v8966_v5  ;;  %6560 = vmatprep.subr.bf16.mxu1 %v8966_v5 }
 0x33f   : > { %6545 = vmatmul.mubr.msk.bf16.vlgmr.msra.gmra.mrb[76].mxu0 %vm1935_vm3, %v4743_v22 }
 0x340   : > { %4710 = vadd.xlane.f32.xlu0 %v4709_v41  ;;  %6555 = vmatpush3.bf16.msra.mxu0 %v8273_v9  ;;  %v6917_v9 = vpop.eup %6916 }
 0x341   : > { %4713 = vadd.xlane.f32.xlu1 %v4712_v17  ;;  %6556 = vmatprep.mubr.msk.bf16.mxu0 %vm7113_vm0, %v8966_v5  ;;  %v6919_v22 = vpop.eup %6918  ;;  %v4715_v27 = vsel %vm1935_vm3, %v6917_v9, 0.0 }
 0x342   : > { %6566 = vmatprep.subr.bf16.mxu0 %v8966_v5  ;;  %v4718_v57 = vsel %vm1935_vm3, %v6919_v22, 0.0 }
 0x344   : > { %3718 = vadd.xlane.f32.xlu0 %v3717_v61  ;;  %6551 = vmatmul.mubr.msk.bf16.vlgmr.msra.gmra.mrb[76].mxu1 %vm1935_vm3, %v4744_v48 }
 0x345   : > { %3721 = vadd.xlane.f32.xlu1 %v3720_v18  ;;  %6561 = vmatpush3.bf16.msra.mxu1 %v8328_v62  ;;  %v4746_v62 = vpack.c.bf16 %v8464_v39, %v8456_v4  ;;  %v4748_v4 = vpack.c.bf16 %v6915_v31, %v8535_v23  ;;  %v3843_v39 = vsel %vm1935_vm3, %v8406_v20, 0.0  ;;  %v4724_v20 = vsel %vm1935_vm3, %v8416_v15, 0.0 }
 0x346   : > { %6562 = vmatprep.mubr.msk.bf16.mxu1 %vm7113_vm0, %v8966_v5  ;;  %6572 = vmatprep.subr.bf16.mxu1 %v8966_v5 }
 0x347   : > { %6557 = vmatmul.mubr.msk.bf16.vlgmr.msra.gmra.mrb[80].mxu0 %vm1935_vm3, %v4745_v25 }
 0x348   : > { %3838 = vadd.xlane.f32.xlu0 %v3837_v35  ;;  %6567 = vmatpush3.bf16.msra.mxu0 %v8335_v26  ;;  %v4747_v26 = vpack.c.bf16 %v8500_v49, %v8495_v58  ;;  %v3846_v58 = vsel %vm1935_vm3, %v8413_v40, 0.0  ;;  %v4749_v49 = vpack.c.bf16 %v6919_v22, %v6917_v9  ;;  %v6038_v40 = vld [vmem:[%s8879_s12] ss:$0 sm:$0xff] }
 0x349   : > { %3841 = vadd.xlane.f32.xlu1 %v3840_v63  ;;  %6568 = vmatprep.mubr.msk.bf16.mxu0 %vm7113_vm0, %v8966_v5 }
 0x34a   : > { %6578 = vmatprep.subr.bf16.mxu0 %v8966_v5 }
 0x34c   : > { %4716 = vadd.xlane.f32.xlu0 %v4715_v27  ;;  %6563 = vmatmul.mubr.msk.bf16.vlgmr.msra.gmra.mrb[80].mxu1 %vm1935_vm3, %v4746_v62 }
 0x34d   : > { %4719 = vadd.xlane.f32.xlu1 %v4718_v57  ;;  %6573 = vmatpush3.bf16.msra.mxu1 %v8369_v54  ;;  %v6775_v54 = vld [vmem:[%s1282_s18] sm:$0xff]  }
 0x34e   : > { %6574 = vmatprep.mubr.msk.bf16.mxu1 %vm7113_vm0, %v8966_v5  ;;  %6584 = vmatprep.subr.bf16.mxu1 %v8966_v5 }
 0x34f   : > { %6569 = vmatmul.mubr.msk.bf16.vlgmr.msra.gmra.mrb[84].mxu0 %vm1935_vm3, %v4747_v26 }
 0x350   : > { %3724 = vadd.xlane.f32.xlu0 %v3723_v28  ;;  %6579 = vmatpush3.bf16.msra.mxu0 %v8512_v59 }
 0x351   : > { %3727 = vadd.xlane.f32.xlu1 %v3726_v1  ;;  %6580 = vmatprep.mubr.msk.bf16.mxu0 %vm7113_vm0, %v8966_v5 }
 0x354   : > { %3844 = vadd.xlane.f32.xlu0 %v3843_v39  ;;  %6575 = vmatmul.mubr.msk.bf16.vlgmr.msra.gmra.mrb[84].mxu1 %vm1935_vm3, %v4748_v4 }
 0x355   : > { %3847 = vadd.xlane.f32.xlu1 %v3846_v58  ;;  %6585 = vmatpush3.bf16.msra.mxu1 %v6775_v54 }
 0x356   : > { %6586 = vmatprep.mubr.msk.bf16.mxu1 %vm7113_vm0, %v8966_v5  ;;  %v7114_v5 = vmov 0  }
 0x357   : > { %6581 = vmatmul.mubr.msk.bf16.vlgmr.msra.gmra.mrb[88].mxu0 %vm1935_vm3, %v4749_v49  ;;  %6744 = vset.pattern.permute.xlu0 %v7114_v5 }
 0x358   : > { %4722 = vadd.xlane.f32.xlu0 %v4721_v55  ;;  %6743 = vset.pattern.permute.xlu1 %v7114_v5 }
 0x359   : > { %4725 = vadd.xlane.f32.xlu1 %v4724_v20 }
 0x35c   : > { %6587 = vmatmul.mubr.msk.bf16.vlgmr.msra.gmra.mrb[88].mxu1 %vm1935_vm3, %v4750_v3 }
 0x36a   : > { %5313 = vbcast.lane.b32.xlu1 %v6038_v40, 264 }
 0x36e   : > { %5309 = vbcast.lane.b32.xlu0 %v6038_v40, 256 }
 0x385   : > { %v3683_v59 = vpop.xlane.xlu0 %3682 }
 0x387   : > { %v3686_v43 = vpop.xlane.xlu1 %3685 }
 0x389   : > { %v3803_v0 = vpop.xlane.xlu0 %3802 }
 0x38a   : > { %v3849_v7 = vadd.f32 %v3803_v0, %v3683_v59 }
 0x38c   : > { %v3806_v42 = vpop.xlane.xlu1 %3805 }
 0x38d   : > { %v3850_v8 = vadd.f32 %v3806_v42, %v3686_v43  ;;  %v4681_v13 = vpop.xlane.xlu0 %4680 }
 0x38e   : > { %v8619_v33 = vadd.f32 %v4681_v13, %v3849_v7 }
 0x390   : > { %v4684_v36 = vpop.xlane.xlu1 %4683 }
 0x391   : > { %v8621_v15 = vadd.f32 %v4684_v36, %v3850_v8 }
 0x395   : > { %v3689_v3 = vpop.xlane.xlu0 %3688 }
 0x396   : > { %v3692_v38 = vpop.xlane.xlu1 %3691 }
 0x399   : > { %v3809_v37 = vpop.xlane.xlu0 %3808 }
 0x39a   : > { %v3812_v34 = vpop.xlane.xlu1 %3811  ;;  %v3851_v58 = vadd.f32 %v3809_v37, %v3689_v3 }
 0x39b   : > { %v3852_v11 = vadd.f32 %v3812_v34, %v3692_v38 }
 0x39d   : > { %v4687_v10 = vpop.xlane.xlu0 %4686 }
 0x39e   : > { %v4690_v50 = vpop.xlane.xlu1 %4689  ;;  %v8629_v20 = vadd.f32 %v4687_v10, %v3851_v58 }
 0x39f   : > { %v8623_v44 = vadd.f32 %v4690_v50, %v3852_v11 }
 0x3a0   : > { %6920 = vlog2.f32 %v8629_v20 }
 0x3a1   : > { %v3695_v23 = vpop.xlane.xlu0 %3694  ;;  %6922 = vlog2.f32 %v8619_v33 }
 0x3a2   : > { %v3698_v52 = vpop.xlane.xlu1 %3697 }
 0x3a5   : > { %v3815_v45 = vpop.xlane.xlu0 %3814 }
 0x3a6   : > { %v3818_v24 = vpop.xlane.xlu1 %3817  ;;  %v3853_v38 = vadd.f32 %v3815_v45, %v3695_v23 }
 0x3a7   : > { %v3854_v40 = vadd.f32 %v3818_v24, %v3698_v52 }
 0x3a9   : > { %v4693_v31 = vpop.xlane.xlu0 %4692 }
 0x3aa   : > { %v4696_v41 = vpop.xlane.xlu1 %4695  ;;  %v8643_v34 = vadd.f32 %v4693_v31, %v3853_v38  ;;  %v6921_v11 = vpop.eup %6920 }
 0x3ab   : > { %v8631_v43 = vadd.f32 %v4696_v41, %v3854_v40  ;;  %v6923_v24 = vpop.eup %6922  ;;  %v5259_v45 = vmul.f32 0.6931472, %v6921_v11 }
 0x3ad   : > { %v3701_v17 = vpop.xlane.xlu0 %3700  ;;  %6924 = vlog2.f32 %v8631_v43 }
 0x3ae   : > { %v3704_v48 = vpop.xlane.xlu1 %3703  ;;  %6926 = vlog2.f32 %v8621_v15 }
 0x3b1   : > { %v3821_v61 = vpop.xlane.xlu0 %3820 }
 0x3b2   : > { %v3824_v18 = vpop.xlane.xlu1 %3823  ;;  %v3855_v41 = vadd.f32 %v3821_v61, %v3701_v17  ;;  %v5288_v61 = vadd.f32 %v5259_v45, %v8159_v14 }
 0x3b3   : > { %v3856_v0 = vadd.f32 %v3824_v18, %v3704_v48 }
 0x3b5   : > { %v4699_v25 = vpop.xlane.xlu0 %4698 }
 0x3b6   : > { %v4702_v9 = vpop.xlane.xlu1 %4701 }
 0x3b7   : > { %v8636_v8 = vadd.f32 %v4702_v9, %v3856_v0  ;;  %v6925_v23 = vpop.eup %6924  ;;  %v8649_v9 = vadd.f32 %v4699_v25, %v3855_v41 }
 0x3b8   : > { %v5265_v58 = vmul.f32 0.6931472, %v6925_v23 }
 0x3b9   : > { %v3707_v35 = vpop.xlane.xlu0 %3706  ;;  %6928 = vlog2.f32 %v8636_v8 }
 0x3ba   : > { %v3710_v63 = vpop.xlane.xlu1 %3709  ;;  %6930 = vlog2.f32 %v8623_v44  ;;  %v5291_v14 = vadd.f32 %v5265_v58, %v8155_v19 }
 0x3bd   : > { %v3827_v22 = vpop.xlane.xlu0 %3826 }
 0x3be   : > { %v3830_v62 = vpop.xlane.xlu1 %3829 }
 0x3bf   : > { %v3858_v13 = vadd.f32 %v3830_v62, %v3710_v63  ;;  %v5255_v63 = vmul.f32 0.6931472, %v6923_v24 }
 0x3c1   : > { %v4705_v27 = vpop.xlane.xlu0 %4704  ;;  %v5286_v25 = vadd.f32 %v5255_v63, %v8141_v12 }
 0x3c2   : > { %v4708_v57 = vpop.xlane.xlu1 %4707 }
 0x3c3   : > { %v8640_v37 = vadd.f32 %v4708_v57, %v3858_v13 }
 0x3c5   : > { %v3713_v26 = vpop.xlane.xlu0 %3712  ;;  %6932 = vlog2.f32 %v8640_v37 }
 0x3c6   : > { %v3716_v28 = vpop.xlane.xlu1 %3715  ;;  %6934 = vlog2.f32 %v8643_v34 }
 0x3c9   : > { %v3833_v1 = vpop.xlane.xlu0 %3832 }
 0x3ca   : > { %v3836_v54 = vpop.xlane.xlu1 %3835 }
 0x3cb   : > { %v3860_v10 = vadd.f32 %v3836_v54, %v3716_v28  ;;  %v6927_v28 = vpop.eup %6926  ;;  %v3857_v54 = vadd.f32 %v3827_v22, %v3707_v35  ;;  %v3859_v22 = vadd.f32 %v3833_v1, %v3713_v26 }
 0x3cc   : > { %v5257_v40 = vmul.f32 0.6931472, %v6927_v28 }
 0x3cd   : > { %v8625_v4 = vpop.xlane.xlu0 %4710 }
 0x3ce   : > { %v4714_v39 = vpop.xlane.xlu1 %4713  ;;  %v8671_v12 = vadd.f32 %v8625_v4, %v3859_v22  ;;  %v5287_v26 = vadd.f32 %v5257_v40, %v8143_v30 }
 0x3cf   : > { %v8646_v48 = vadd.f32 %v4714_v39, %v3860_v10  ;;  %v8656_v39 = vadd.f32 %v4705_v27, %v3857_v54 }
 0x3d1   : > { %v8627_v49 = vpop.xlane.xlu0 %3718  ;;  %6936 = vlog2.f32 %v8646_v48 }
 0x3d2   : > { %v3722_v55 = vpop.xlane.xlu1 %3721  ;;  %6938 = vlog2.f32 %v8649_v9 }
 0x3d5   : > { %v3839_v5 = vpop.xlane.xlu0 %3838 }
 0x3d6   : > { %v3842_v59 = vpop.xlane.xlu1 %3841  ;;  %v3861_v38 = vadd.f32 %v3839_v5, %v8627_v49 }
 0x3d7   : > { %v3862_v18 = vadd.f32 %v3842_v59, %v3722_v55  ;;  %v6929_v55 = vpop.eup %6928 }
 0x3d8   : > { %v6931_v35 = vpop.eup %6930 }
 0x3d9   : > { %v4717_v7 = vpop.xlane.xlu0 %4716  ;;  %v6933_v11 = vpop.eup %6932  ;;  %v5261_v1 = vmul.f32 0.6931472, %v6931_v35 }
 0x3da   : > { %v4720_v42 = vpop.xlane.xlu1 %4719  ;;  %v6935_v19 = vpop.eup %6934  ;;  %v8676_v10 = vadd.f32 %v4717_v7, %v3861_v38  ;;  %v5273_v41 = vmul.f32 0.6931472, %v6933_v11 }
 0x3db   : > { %v8651_v31 = vadd.f32 %v4720_v42, %v3862_v18  ;;  %v6937_v5 = vpop.eup %6936  ;;  %v5289_v30 = vadd.f32 %v5261_v1, %v8153_v51  ;;  %v5263_v18 = vmul.f32 0.6931472, %v6935_v19 }
 0x3dc   : > { %v6939_v23 = vpop.eup %6938  ;;  %v5277_v28 = vmul.f32 0.6931472, %v6937_v5 }
 0x3dd   : > { %v3725_v36 = vpop.xlane.xlu0 %3724  ;;  %6940 = vlog2.f32 %v8651_v31 }
 0x3de   : > { %v3728_v3 = vpop.xlane.xlu1 %3727  ;;  %6942 = vlog2.f32 %v8656_v39 }
 0x3e1   : > { %v3845_v50 = vpop.xlane.xlu0 %3844 }
 0x3e2   : > { %v3848_v52 = vpop.xlane.xlu1 %3847  ;;  %v3863_v49 = vadd.f32 %v3845_v50, %v3725_v36  ;;  %v5290_v36 = vadd.f32 %v5263_v18, %v8163_v60  ;;  %v5267_v50 = vmul.f32 0.6931472, %v6939_v23 }
 0x3e3   : > { %v3864_v17 = vadd.f32 %v3848_v52, %v3728_v3  ;;  %v5269_v3 = vmul.f32 0.6931472, %v6929_v55 }
 0x3e5   : > { %v4723_v62 = vpop.xlane.xlu0 %4722  ;;  %v5293_v4 = vadd.f32 %v5269_v3, %v8173_v46 }
 0x3e6   : > { %v4726_v57 = vpop.xlane.xlu1 %4725  ;;  %v8684_v7 = vadd.f32 %v4723_v62, %v3863_v49 }
 0x3e7   : > { %v8660_v59 = vadd.f32 %v4726_v57, %v3864_v17  ;;  %v6941_v63 = vpop.eup %6940  ;;  %v5295_v57 = vadd.f32 %v5273_v41, %v8195_v29  ;;  %v5292_v29 = vadd.f32 %v5267_v50, %v8185_v47 }
 0x3e8   : > { %v6943_v51 = vpop.eup %6942  ;;  %v5281_v54 = vmul.f32 0.6931472, %v6941_v63 }
 0x3e9   : > { %v8662_v0 = vpop.permute.xlu0 %5309  ;;  %6944 = vlog2.f32 %v8660_v59  ;;  %v5271_v55 = vmul.f32 0.6931472, %v6943_v51 }
 0x3ea   : > { %v5319_v42 = vadd.f32 %v8662_v0, %v5288_v61  ;;  %v8666_v13 = vpop.permute.xlu1 %5313  ;;  %v5317_v27 = vadd.f32 %v8662_v0, %v5286_v25  ;;  %6946 = vlog2.f32 %v8671_v12  ;;  %v5321_v17 = vadd.f32 %v8662_v0, %v5290_v36 }
 0x3eb   : > { %v5322_v52 = vadd.f32 %v8666_v13, %v5291_v14  ;;  %v5318_v24 = vadd.f32 %v8666_v13, %v5287_v26  ;;  %6948 = vlog2.f32 %v8676_v10  ;;  %v5324_v45 = vadd.f32 %v8666_v13, %v5293_v4 }
 0x3ec   : > { %5356 = vperm.xlu0 %6744, %v5319_v42   ;;  %5350 = vperm.xlu1 %6743, %v5317_v27   ;;  %v5320_v46 = vadd.f32 %v8666_v13, %v5289_v30  ;;  %6950 = vlog2.f32 %v8684_v7  ;;  %v5326_v62 = vadd.f32 %v8666_v13, %v5295_v57  ;;  %v5297_v61 = vadd.f32 %v5277_v28, %v8218_v21 }
 0x3ed   : > { %v5299_v60 = vadd.f32 %v5281_v54, %v8249_v16  ;;  %v5323_v22 = vadd.f32 %v8662_v0, %v5292_v29  ;;  %v5294_v14 = vadd.f32 %v5271_v55, %v8189_v53  ;;  %6952 = vrcp.f32 %v8619_v33 }
 0x3ee   : > { %v5328_v35 = vadd.f32 %v8666_v13, %v5297_v61  ;;  %6954 = vrcp.f32 %v8621_v15 }
 0x3ef   : > { %v5330_v47 = vadd.f32 %v8666_v13, %v5299_v60  ;;  %v5325_v38 = vadd.f32 %v8662_v0, %v5294_v14  ;;  %6956 = vrcp.f32 %v8629_v20 }
 0x3f0   : > { %5365 = vperm.xlu0 %6744, %v5322_v52   ;;  %5353 = vperm.xlu1 %6743, %v5318_v24   ;;  %6958 = vrcp.f32 %v8623_v44 }
 0x3f1   : > { %6960 = vrcp.f32 %v8643_v34 }
 0x3f2   : > { %6962 = vrcp.f32 %v8631_v43 }
 0x3f3   : > { %v6945_v58 = vpop.eup %6944  ;;  %6964 = vrcp.f32 %v8649_v9 }
 0x3f4   : > { %5371 = vperm.xlu0 %6744, %v5324_v45   ;;  %5359 = vperm.xlu1 %6743, %v5320_v46   ;;  %v6947_v25 = vpop.eup %6946  ;;  %v5285_v40 = vmul.f32 0.6931472, %v6945_v58  ;;  %6966 = vrcp.f32 %v8636_v8 }
 0x3f5   : > { %v6949_v42 = vpop.eup %6948  ;;  %v5275_v27 = vmul.f32 0.6931472, %v6947_v25  ;;  %6968 = vrcp.f32 %v8656_v39 }
 0x3f6   : > { %v5301_v21 = vadd.f32 %v5285_v40, %v8292_v6  ;;  %v5279_v3 = vmul.f32 0.6931472, %v6949_v42  ;;  %v6951_v11 = vpop.eup %6950  ;;  %6970 = vrcp.f32 %v8640_v37 }
 0x3f7   : > { %v5296_v16 = vadd.f32 %v5275_v27, %v8213_v32  ;;  %v5283_v53 = vmul.f32 0.6931472, %v6951_v11  ;;  %6972 = vrcp.f32 %v8671_v12 }
 0x3f8   : > { %5377 = vperm.xlu0 %6744, %v5326_v62   ;;  %5362 = vperm.xlu1 %6743, %v5321_v17   ;;  %v5332_v26 = vadd.f32 %v8666_v13, %v5301_v21  ;;  %v5298_v1 = vadd.f32 %v5279_v3, %v8245_v2  ;;  %v6953_v2 = vpop.eup %6952  ;;  %6974 = vrcp.f32 %v8646_v48 }
 0x3f9   : > { %v5327_v19 = vadd.f32 %v8662_v0, %v5296_v16  ;;  %v5300_v6 = vadd.f32 %v5283_v53, %v8279_v56  ;;  %v6955_v15 = vpop.eup %6954  ;;  %6976 = vrcp.f32 %v8676_v10 }
 0x3fa   : > { %v5329_v52 = vadd.f32 %v8662_v0, %v5298_v1  ;;  %v6957_v43 = vpop.eup %6956  ;;  %6978 = vrcp.f32 %v8651_v31 }
 0x3fb   : > { %v5331_v32 = vadd.f32 %v8662_v0, %v5300_v6  ;;  %v6959_v41 = vpop.eup %6958  ;;  %6980 = vrcp.f32 %v8684_v7 }
 0x3fc   : > { %5383 = vperm.xlu0 %6744, %v5328_v35   ;;  %5368 = vperm.xlu1 %6743, %v5323_v22   ;;  %v6961_v9 = vpop.eup %6960  ;;  %6982 = vrcp.f32 %v8660_v59 }
 0x3fd   : > { %v6963_v39 = vpop.eup %6962 }
 0x3fe   : > { %v6965_v54 = vpop.eup %6964 }
 0x3ff   : > { %v6967_v58 = vpop.eup %6966 }
 0x400   : > { %5389 = vperm.xlu0 %6744, %v5330_v47   ;;  %5374 = vperm.xlu1 %6743, %v5325_v38   ;;  %v6969_v29 = vpop.eup %6968 }
 0x401   : > { %v6971_v10 = vpop.eup %6970 }
 0x402   : > { %v6973_v47 = vpop.eup %6972 }
 0x403   : > { %v6975_v38 = vpop.eup %6974 }
 0x404   : > { %5395 = vperm.xlu0 %6744, %v5332_v26   ;;  %5380 = vperm.xlu1 %6743, %v5327_v19   ;;  %v6977_v26 = vpop.eup %6976 }
 0x405   : > { %v6979_v59 = vpop.eup %6978 }
 0x408   : > { %5386 = vperm.xlu1 %6743, %v5329_v52  }
 0x40c   : > { %5392 = vperm.xlu1 %6743, %v5331_v32  }
 0x412   : > { %v4788_v56 = vpop.f32.mrb[76].mxu0 }
 0x413   : > { %v5157_v33 = vmul.f32 %v6953_v2, %v4788_v56  ;;  %v6546_v13 = vpop.f32.mrb[77].mxu0 }
 0x414   : > { %v4791_v0 = vpop.f32.mrb[78].mxu0 }
 0x415   : > { %v6049_v24 = vpack.c.bf16 %v5157_v33, %v5157_v33  ;;  %v5158_v4 = vmul.f32 %v6955_v15, %v4791_v0  ;;  %v6547_v20 = vpop.f32.mrb[79].mxu0 }
 0x417   : > { %5238 = vst.msk [vmem:[%s8721_s21] sm:$0xf] %vm5237_vm4, %v6049_v24  ;;  %v6050_v44 = vpack.c.bf16 %v5158_v4, %v5158_v4  ;;  %v4832_v34 = vpop.f32.mrb[76].mxu1  ;;  %v6981_v24 = vpop.eup %6980 }
 0x418   : > { %v5159_v49 = vmul.f32 %v6957_v43, %v4832_v34  ;;  %v6552_v5 = vpop.f32.mrb[77].mxu1  ;;  %v6983_v43 = vpop.eup %6982 }
 0x419   : > { %5239 = vst.msk [vmem:[%s8721_s21 + $0x4] sm:$0xf] %vm5237_vm4, %v6050_v44  ;;  %v4835_v8 = vpop.f32.mrb[78].mxu1 }
 0x41a   : > { %v4876_v30 = vpop.f32.mrb[80].mxu0  ;;  %v6051_v18 = vpack.c.bf16 %v5159_v49, %v5159_v49  ;;  %v5160_v23 = vmul.f32 %v6959_v41, %v4835_v8  ;;  %v6553_v45 = vpop.f32.mrb[79].mxu1 }
 0x41b   : > { %v5161_v63 = vmul.f32 %v6961_v9, %v4876_v30  ;;  %v6558_v46 = vpop.f32.mrb[81].mxu0 }
 0x41c   : > { %v4879_v57 = vpop.f32.mrb[82].mxu0  ;;  %5240 = vst.msk [vmem:[%s8721_s21 + $0x8] sm:$0xf] %vm5237_vm4, %v6051_v18  ;;  %v6052_v28 = vpack.c.bf16 %v5160_v23, %v5160_v23 }
 0x41d   : > { %v6053_v36 = vpack.c.bf16 %v5161_v63, %v5161_v63  ;;  %v5162_v50 = vmul.f32 %v6963_v39, %v4879_v57  ;;  %v6559_v51 = vpop.f32.mrb[83].mxu0 }
 0x41e   : > { %5241 = vst.msk [vmem:[%s8721_s21 + $0xc] sm:$0xf] %vm5237_vm4, %v6052_v28 }
 0x41f   : > { %5242 = vst.msk [vmem:[%s8721_s21 + $0x10] sm:$0xf] %vm5237_vm4, %v6053_v36  ;;  %v6054_v37 = vpack.c.bf16 %v5162_v50, %v5162_v50  ;;  %v4920_v62 = vpop.f32.mrb[80].mxu1 }
 0x420   : > { %v5163_v17 = vmul.f32 %v6965_v54, %v4920_v62  ;;  %v6564_v61 = vpop.f32.mrb[81].mxu1 }
 0x421   : > { %5243 = vst.msk [vmem:[%s8721_s21 + $0x14] sm:$0xf] %vm5237_vm4, %v6054_v37  ;;  %v4923_v48 = vpop.f32.mrb[82].mxu1 }
 0x422   : > { %v4964_v12 = vpop.f32.mrb[84].mxu0  ;;  %v6055_v55 = vpack.c.bf16 %v5163_v17, %v5163_v17  ;;  %v5164_v25 = vmul.f32 %v6967_v58, %v4923_v48  ;;  %v6565_v60 = vpop.f32.mrb[83].mxu1 }
 0x423   : > { %v5165_v40 = vmul.f32 %v6969_v29, %v4964_v12  ;;  %v6570_v35 = vpop.f32.mrb[85].mxu0 }
 0x424   : > { %v4967_v22 = vpop.f32.mrb[86].mxu0  ;;  %5244 = vst.msk [vmem:[%s8721_s21 + $0x18] sm:$0xf] %vm5237_vm4, %v6055_v55  ;;  %v6056_v42 = vpack.c.bf16 %v5164_v25, %v5164_v25 }
 0x425   : > { %v6057_v14 = vpack.c.bf16 %v5165_v40, %v5165_v40  ;;  %v5166_v27 = vmul.f32 %v6971_v10, %v4967_v22  ;;  %v6571_v21 = vpop.f32.mrb[87].mxu0 }
 0x426   : > { %5245 = vst.msk [vmem:[%s8721_s21 + $0x1c] sm:$0xf] %vm5237_vm4, %v6056_v42 }
 0x427   : > { %5246 = vst.msk [vmem:[%s8721_s21 + $0x20] sm:$0xf] %vm5237_vm4, %v6057_v14  ;;  %v6058_v31 = vpack.c.bf16 %v5166_v27, %v5166_v27  ;;  %v5008_v3 = vpop.f32.mrb[84].mxu1 }
 0x428   : > { %v5167_v11 = vmul.f32 %v6973_v47, %v5008_v3  ;;  %v6576_v16 = vpop.f32.mrb[85].mxu1 }
 0x429   : > { %5247 = vst.msk [vmem:[%s8721_s21 + $0x24] sm:$0xf] %vm5237_vm4, %v6058_v31  ;;  %v5011_v1 = vpop.f32.mrb[86].mxu1 }
 0x42a   : > { %v5052_v7 = vpop.f32.mrb[88].mxu0  ;;  %v6059_v53 = vpack.c.bf16 %v5167_v11, %v5167_v11  ;;  %v5168_v19 = vmul.f32 %v6975_v38, %v5011_v1  ;;  %v6577_v6 = vpop.f32.mrb[87].mxu1 }
 0x42b   : > { %v5169_v52 = vmul.f32 %v6977_v26, %v5052_v7  ;;  %v6582_v32 = vpop.f32.mrb[89].mxu0 }
 0x42c   : > { %v5055_v2 = vpop.f32.mrb[90].mxu0  ;;  %5248 = vst.msk [vmem:[%s8721_s21 + $0x28] sm:$0xf] %vm5237_vm4, %v6059_v53  ;;  %v6060_v56 = vpack.c.bf16 %v5168_v19, %v5168_v19 }
 0x42d   : > { %v6061_v33 = vpack.c.bf16 %v5169_v52, %v5169_v52  ;;  %v5170_v13 = vmul.f32 %v6979_v59, %v5055_v2  ;;  %v6583_v15 = vpop.f32.mrb[91].mxu0 }
 0x42e   : > { %5249 = vst.msk [vmem:[%s8721_s21 + $0x2c] sm:$0xf] %vm5237_vm4, %v6060_v56 }
 0x42f   : > { %5250 = vst.msk [vmem:[%s8721_s21 + $0x30] sm:$0xf] %vm5237_vm4, %v6061_v33  ;;  %v6062_v0 = vpack.c.bf16 %v5170_v13, %v5170_v13  ;;  %v5102_v4 = vpop.f32.mrb[88].mxu1 }
 0x430   : > { %v5171_v20 = vmul.f32 %v6981_v24, %v5102_v4  ;;  %v6588_v44 = vpop.f32.mrb[89].mxu1 }
 0x431   : > { %5251 = vst.msk [vmem:[%s8721_s21 + $0x34] sm:$0xf] %vm5237_vm4, %v6062_v0  ;;  %v5105_v34 = vpop.f32.mrb[90].mxu1 }
 0x432   : > { %v6063_v41 = vpack.c.bf16 %v5171_v20, %v5171_v20  ;;  %v5172_v49 = vmul.f32 %v6983_v43, %v5105_v34  ;;  %v6589_v5 = vpop.f32.mrb[91].mxu1 }
 0x434   : > { %5252 = vst.msk [vmem:[%s8721_s21 + $0x38] sm:$0xf] %vm5237_vm4, %v6063_v41  ;;  %v6064_v9 = vpack.c.bf16 %v5172_v49, %v5172_v49 }
 0x436   : > { %5253 = vst.msk [vmem:[%s8721_s21 + $0x3c] sm:$0xf] %vm5237_vm4, %v6064_v9 }
 0x437   : > { %6997 = shalt.err (!%p6994_p0)
}
 0x438   : > { %s6998_s21 = scalar_lea.hbm %s8765_s23, 1024  ;;  %s7002_s18 = scalar_lea.hbm %s8880_s13, 8192 }
 0x439   : > { %p6999_p1 = scmp.ne.s32.totalorder %s8765_s23, %s6998_s21  ;;  %p7003_p5 = scmp.lt.u32.totalorder %s8765_s23, %s8880_s13 }
 0x43a   : > { %p7004_p6 = scmp.lt.u32.totalorder %s7002_s18, %s6998_s21  ;;  %p7006_p9 = scmp.lt.u32.totalorder %s6998_s21, %s8765_s23 }
 0x43b   : > { %p7000_p2 = pnand %p6999_p1, %p7245_p3 }
 0x43c   : > { %p7005_p7 = por %p7004_p6, %p7003_p5 }
 0x43d   : > { %p7001_p4 = pneg %p7000_p2 }
 0x43e   : > { %p7007_p10 = por %p7006_p9, %p7005_p7 }
 0x440   : > { %p7008_p11 = pnand %p7007_p10, %p7001_p4 }
 0x442   : > { %7011 = shalt.err (!%p7008_p11)
}
 0x443   : > { %s7116_s28 = smov 64   ;;  %s7117_s20 = smov 4   ;;  %v5397_v46 = vlaneseq  ;;  %vm5408_vm5 = vcmask 130112   ;;  %vm5473_vm6 = vcmask 1041409   ;;  %vm5475_vm7 = vcmask 1042434  }
 0x444   : > { %6662 = dma.vmem_to_hbm [thread:$0]  (%p7245_p3), %s8767_s25, 1024, %s8765_s23, %s5490_s19, %s7116_s28, %s7116_s28, %s7117_s20   ;;  %vm5477_vm8 = vcmask 1043459   ;;  %vm5479_vm9 = vcmask 1044484   ;;  %vm5481_vm10 = vcmask 1045509   ;;  %vm5483_vm11 = vcmask 1046534  }
 0x445   : > { %v5398_v28 = vand.u32 127, %v5397_v46  ;;  %v5400_v50 = vshrl.u32 %v5397_v46, 7  ;;  %s5867_s25 = sshll.u32 %s8713_s24, 3  ;;  %s6045_s23 = sshll.u32 %s7098_s17, 1  ;;  %vm5485_vm12 = vcmask 1047559  }
 0x446   : > { %s5525_s19 = sadd.s32 %s7094_s16, %s6045_s23  ;;  %s1126_s22 = scalar_lea.vmem [#allocation4], %s5867_s25 }
 0x447   : > { %v5403_v51 = vadd.s32 4294967288, %v5398_v28  ;;  %v5401_v62 = vsub.s32 %v5398_v28, %v5400_v50  ;;  %s6046_s17 = sshll.u32 %s5525_s19, 7  ;;  %s5529_s16 = sshll.u32 %s1126_s22, 4  ;;  %s8814_s16 = int_to_ptr.vmem [resolvable:$true] %s5529_s16 }
 0x448   : > { %s8999_s14 = sld [smem:[#allocation49_spill]]  ;;  %s5495_s29 = scalar_lea.sflag [#allocation5], %s8713_s24 }
 0x449   : > { %v5406_v58 = vsub.s32 %v5403_v51, %v5400_v50  ;;  %s7012_s27 = scalar_lea.vmem %s8814_s16, 128  ;;  %s7118_s28 = smov [#allocation4]  }
 0x44a   : > { %p7013_p12 = scmp.ne.s32.totalorder %s8814_s16, %s7012_s27  ;;  %s7016_s20 = sshll.u32 %s7118_s28, 4  ;;  %s7017_s20 = int_to_ptr.vmem [resolvable:$false] %s7016_s20 }
 0x44b   : > { %s7018_s25 = scalar_lea.vmem %s7017_s20, 256  ;;  %p7019_p1 = scmp.lt.s32.totalorder %s8814_s16, %s7017_s20 }
 0x44c   : > { %p7014_p13 = pnand %p7013_p12, %p7245_p3  ;;  %p7020_p2 = scmp.lt.s32.totalorder %s7018_s25, %s7012_s27 }
 0x44e   : > { %s8812_s18 = scalar_lea.hbm %s8999_s14, %s6046_s17  ;;  %p7015_p0 = pneg %p7014_p13 }
 0x44f   : > { %p7021_p4 = por %p7020_p2, %p7019_p1 }
 0x451   : > { %p7022_p5 = pnand %p7021_p4, %p7015_p0 }
 0x46b   : > { %v5357_v8 = vpop.permute.xlu0 %5356  ;;  %v5351_v30 = vpop.permute.xlu1 %5350 }
 0x46c   : > { %v5413_v12 = vrot.slane %v5357_v8, %v5401_v62  ;;  %v5402_v35 = vrot.slane %v5351_v30, %v5401_v62 }
 0x46f   : > { %v5366_v18 = vpop.permute.xlu0 %5365  ;;  %v5354_v23 = vpop.permute.xlu1 %5353 }
 0x470   : > { %v5407_v55 = vrot.slane %v5354_v23, %v5406_v58  ;;  %v5426_v60 = vrot.slane %v5366_v18, %v5406_v58 }
 0x472   : > { %v5409_v31 = vsel %vm5408_vm5, %v5407_v55, %v5402_v35 }
 0x473   : > { %v5372_v45 = vpop.permute.xlu0 %5371  ;;  %v5360_v63 = vpop.permute.xlu1 %5359 }
 0x474   : > { %v5417_v17 = vrot.slane %v5360_v63, %v5406_v58  ;;  %v5435_v10 = vrot.slane %v5372_v45, %v5406_v58 }
 0x476   : > { %v5418_v22 = vsel %vm5408_vm5, %v5417_v17, %v5413_v12 }
 0x477   : > { %v5378_v39 = vpop.permute.xlu0 %5377  ;;  %v5363_v57 = vpop.permute.xlu1 %5362  ;;  %v5474_v11 = vsel %vm5473_vm6, %v5418_v22, %v5409_v31 }
 0x478   : > { %v5422_v61 = vrot.slane %v5363_v57, %v5401_v62  ;;  %v5444_v14 = vrot.slane %v5378_v39, %v5406_v58 }
 0x47a   : > { %v5427_v27 = vsel %vm5408_vm5, %v5426_v60, %v5422_v61 }
 0x47b   : > { %v5369_v36 = vpop.permute.xlu1 %5368  ;;  %v5384_v37 = vpop.permute.xlu0 %5383  ;;  %v5476_v7 = vsel %vm5475_vm7, %v5427_v27, %v5474_v11 }
 0x47c   : > { %v5431_v25 = vrot.slane %v5369_v36, %v5401_v62  ;;  %v5453_v47 = vrot.slane %v5384_v37, %v5406_v58 }
 0x47e   : > { %v5436_v3 = vsel %vm5408_vm5, %v5435_v10, %v5431_v25 }
 0x47f   : > { %v5375_v54 = vpop.permute.xlu1 %5374  ;;  %v5390_v29 = vpop.permute.xlu0 %5389  ;;  %v5478_v19 = vsel %vm5477_vm8, %v5436_v3, %v5476_v7 }
 0x480   : > { %v5440_v40 = vrot.slane %v5375_v54, %v5401_v62  ;;  %v5462_v16 = vrot.slane %v5390_v29, %v5406_v58 }
 0x482   : > { %v5445_v26 = vsel %vm5408_vm5, %v5444_v14, %v5440_v40 }
 0x483   : > { %v5381_v48 = vpop.permute.xlu1 %5380  ;;  %v5396_v1 = vpop.permute.xlu0 %5395  ;;  %v5480_v32 = vsel %vm5479_vm9, %v5445_v26, %v5478_v19 }
 0x484   : > { %v5449_v42 = vrot.slane %v5381_v48, %v5401_v62  ;;  %v5471_v59 = vrot.slane %v5396_v1, %v5406_v58 }
 0x486   : > { %v5454_v53 = vsel %vm5408_vm5, %v5453_v47, %v5449_v42 }
 0x487   : > { %v5387_v21 = vpop.permute.xlu1 %5386  ;;  %v5482_v56 = vsel %vm5481_vm10, %v5454_v53, %v5480_v32 }
 0x488   : > { %v5458_v38 = vrot.slane %v5387_v21, %v5401_v62 }
 0x48a   : > { %v5463_v6 = vsel %vm5408_vm5, %v5462_v16, %v5458_v38 }
 0x48b   : > { %v5393_v52 = vpop.permute.xlu1 %5392  ;;  %v5484_v33 = vsel %vm5483_vm11, %v5463_v6, %v5482_v56 }
 0x48c   : > { %v5467_v2 = vrot.slane %v5393_v52, %v5401_v62 }
 0x48e   : > { %v5472_v13 = vsel %vm5408_vm5, %v5471_v59, %v5467_v2 }
 0x48f   : > { %v5486_v15 = vsel %vm5485_vm12, %v5472_v13, %v5484_v33 }
 0x490   : > { %5488 = vst.msk [vmem:[%s1126_s22] sm:$0xff] %vm1935_vm3, %v5486_v15 }
 0x491   : > { %7025 = shalt.err (!%p7022_p5)
}
 0x492   : > { %s7026_s24 = scalar_lea.hbm %s8812_s18, 128  ;;  %s7030_s17 = scalar_lea.hbm %s8999_s14, 1024 }
 0x493   : > { %p7027_p6 = scmp.ne.s32.totalorder %s8812_s18, %s7026_s24  ;;  %p7031_p10 = scmp.lt.u32.totalorder %s8812_s18, %s8999_s14 }
 0x494   : > { %p7032_p11 = scmp.lt.u32.totalorder %s7030_s17, %s7026_s24  ;;  %p7034_p13 = scmp.lt.u32.totalorder %s7026_s24, %s8812_s18 }
 0x495   : > { %p7028_p7 = pnand %p7027_p6, %p7245_p3 }
 0x496   : > { %p7033_p12 = por %p7032_p11, %p7031_p10 }
 0x497   : > { %p7029_p9 = pneg %p7028_p7 }
 0x498   : > { %p7035_p0 = por %p7034_p13, %p7033_p12 }
 0x49a   : > { %p7036_p1 = pnand %p7035_p0, %p7029_p9 }
 0x49c   : > { %7039 = shalt.err (!%p7036_p1)
}
 0x49d   : > { %6663 = dma.vmem_to_hbm [thread:$0]  (%p7245_p3), %s8814_s16, 128, %s8812_s18, %s5495_s29  }
 0x49e PF: > { %s9000_s9 = sld [smem:[#allocation11_spill]]  ;;  %s9001_s27 = sld [smem:[#allocation8_spill]] }
 0x4a4   : > { %p6673_p2 = scmp.ge.s32.totalorder %s9000_s9, 2  ;;  %s5541_s20 = sand.u32 1, %s9001_s27  }
 0x4a5   : > { %s5542_s25 = scalar_lea.sflag [#allocation3], %s5541_s20 }
 0x4a6   : > { %p6667_p4 = pnand %p6673_p2, %p7254_p8 }
 0x4a8   : > { %7073 = dma.done.wait (!%p6667_p4), %s5542_s25, 1024  }
 0x4a9   : > { %7075 = vsyncadd (!%p6667_p4), %s5542_s25, 4294966272  ;;  %s5551_s24 = scalar_lea.sflag [#allocation5], %s5541_s20 }
 0x4aa   : > { %7077 = dma.done.wait (!%p6667_p4), %s5551_s24, 128  }
 0x4ab   : > { %7079 = vsyncadd (!%p6667_p4), %s5551_s24, 4294967168  ;;  %s31_s20 = sadd.s32 1, %s9000_s9   ;;  %s9003_s26 = sld [smem:[#allocation15_spill]] }
 0x4ac   : > { %p28_p5 = scmp.ge.s32.totalorder %s31_s20, 10   ;;  %s9004_s16 = sld [smem:[#allocation9_spill]] }
 0x4ad   : > { %s9005_s17 = sld [smem:[#allocation10_spill]]  ;;  %s9006_s18 = sld [smem:[#allocation12_spill]] }
 0x4ae   : > { %s9007_s19 = sld [smem:[#allocation13_spill]]  ;;  %s9008_s29 = smov %s7086_s30 }
 0x4af   : > { %s9009_s30 = smov %s7090_s15  ;;  %30 = sbr.rel (!%p28_p5) target bundleno = 10 (0xa), region = 148 }
 0x4b1   : > { %s9010_s15 = smov %s9003_s26 }
 0x4b6   :  { %5556 = vsyncpa [#allocation3], 1 }
 0x4b7   :  { %5558 = vsyncpa [#allocation3 + $0x1], 1 }
 0x4b8   :  { %5559 = vsyncpa [#allocation5], 1 }
 0x4b9   :  { %5561 = vsyncpa [#allocation5 + $0x1], 1 }

// kernel: dnlf_forward.17
= control target key start
LH: loop header
LB: loop body
LE: loop exit
PB: predicated region body
PF: predicated region fallthrough
CT: control target
= control target key end

     0   :  { %v194_v0 = vmov 0.0   ;;  %vm195_vm0 = vmmov 0   ;;  %s249_s1 = inlined_call_operand.vmem [shape: bf16[128,128], index: 1, kind: input, shape index: {}]   ;;  %s250_s0 = inlined_call_operand.vmem [shape: bf16[8,128], index: 0, kind: input, shape index: {}]   ;;  %s251_s2 = inlined_call_operand.vmem [shape: f32[1,128], index: 2, kind: input, shape index: {}]   ;;  %s252_s3 = inlined_call_operand.vmem [shape: f32[8,128], index: 3, kind: output, shape index: {}]  }
   0x1   :  { %164 = vmatprep.subr.bf16.mxu0 %v194_v0  ;;  %v186_v1 = vld [vmem:[%s249_s1] sm:$0xff]   ;;  %180 = vmatprep.mubr.msk.bf16.mxu0 %vm195_vm0, %v194_v0  ;;  %v187_v2 = vld [vmem:[%s249_s1 + $0x8] sm:$0xff]   ;;  %v188_v3 = vld [vmem:[%s249_s1 + $0x10] sm:$0xff]  }
   0x2   :  { %165 = vmatpush3.bf16.msra.mxu0 %v186_v1  ;;  %v189_v4 = vld [vmem:[%s249_s1 + $0x18] sm:$0xff]   ;;  %v190_v5 = vld [vmem:[%s249_s1 + $0x20] sm:$0xff]   ;;  %v191_v6 = vld [vmem:[%s249_s1 + $0x28] sm:$0xff]  }
   0x3   :  { %166 = vmatprep.subr.bf16.mxu0 %v194_v0  ;;  %v192_v7 = vld [vmem:[%s249_s1 + $0x30] sm:$0xff]   ;;  %v193_v8 = vld [vmem:[%s249_s1 + $0x38] sm:$0xff]   ;;  %v21_v9 = vld [vmem:[%s250_s0] sm:$0xf] }
   0x4   :  { %v154_v10 = vld [vmem:[%s251_s2] ss:$0 sm:$0xff] }
   0x6   :  { %167 = vmatpush3.bf16.msra.mxu0 %v187_v2 }
   0x7   :  { %168 = vmatprep.subr.bf16.mxu0 %v194_v0 }
   0xa   :  { %169 = vmatpush3.bf16.msra.mxu0 %v188_v3 }
   0xb   :  { %170 = vmatprep.subr.bf16.mxu0 %v194_v0 }
   0xe   :  { %171 = vmatpush3.bf16.msra.mxu0 %v189_v4 }
   0xf   :  { %172 = vmatprep.subr.bf16.mxu0 %v194_v0 }
  0x12   :  { %173 = vmatpush3.bf16.msra.mxu0 %v190_v5 }
  0x13   :  { %174 = vmatprep.subr.bf16.mxu0 %v194_v0 }
  0x16   :  { %175 = vmatpush3.bf16.msra.mxu0 %v191_v6 }
  0x17   :  { %176 = vmatprep.subr.bf16.mxu0 %v194_v0 }
  0x1a   :  { %177 = vmatpush3.bf16.msra.mxu0 %v192_v7 }
  0x1b   :  { %178 = vmatprep.subr.bf16.mxu0 %v194_v0 }
  0x1e   :  { %179 = vmatpush3.bf16.msra.mxu0 %v193_v8 }
  0x21   :  { %181 = vmatmul.mubr.bf16.vlgmr.msra.gmra.mrb[0].mxu0 %v21_v9 }
  0xf4   :  { %v120_v11 = vpop.f32.mrb[0].mxu0 }
  0xf5   :  { %v139_v12 = vadd.f32 %v154_v10, %v120_v11  ;;  %v182_v13 = vpop.f32.mrb[1].mxu0 }
  0xf6   :  { %v123_v14 = vpop.f32.mrb[2].mxu0 }
  0xf7   :  { %v140_v15 = vmax.f32 %v139_v12, 0.0  ;;  %v183_v16 = vpop.f32.mrb[3].mxu0 }
  0xf9   :  { %141 = vst [vmem:[%s252_s3] sm:$0xff] %v140_v15 }

// kernel: dnlf_forward.18
= control target key start
LH: loop header
LB: loop body
LE: loop exit
PB: predicated region body
PF: predicated region fallthrough
CT: control target
= control target key end

     0   :  { %v204_v0 = vmov 0.0   ;;  %vm205_vm0 = vmmov 0   ;;  %s259_s1 = inlined_call_operand.vmem [shape: bf16[128,128], index: 1, kind: input, shape index: {}]   ;;  %s260_s0 = inlined_call_operand.vmem [shape: bf16[8,128], index: 0, kind: input, shape index: {}]   ;;  %s261_s2 = inlined_call_operand.vmem [shape: f32[1,128], index: 2, kind: input, shape index: {}]   ;;  %s262_s3 = inlined_call_operand.vmem [shape: f32[8,128], index: 3, kind: output, shape index: {}]  }
   0x1   :  { %170 = vmatprep.subr.bf16.mxu0 %v204_v0  ;;  %v192_v1 = vld [vmem:[%s259_s1] sm:$0xff]   ;;  %186 = vmatprep.mubr.msk.bf16.mxu0 %vm205_vm0, %v204_v0  ;;  %v193_v2 = vld [vmem:[%s259_s1 + $0x8] sm:$0xff]   ;;  %v194_v3 = vld [vmem:[%s259_s1 + $0x10] sm:$0xff]  }
   0x2   :  { %171 = vmatpush3.bf16.msra.mxu0 %v192_v1  ;;  %v195_v4 = vld [vmem:[%s259_s1 + $0x18] sm:$0xff]   ;;  %v196_v5 = vld [vmem:[%s259_s1 + $0x20] sm:$0xff]   ;;  %v197_v6 = vld [vmem:[%s259_s1 + $0x28] sm:$0xff]  }
   0x3   :  { %172 = vmatprep.subr.bf16.mxu0 %v204_v0  ;;  %v198_v7 = vld [vmem:[%s259_s1 + $0x30] sm:$0xff]   ;;  %v199_v8 = vld [vmem:[%s259_s1 + $0x38] sm:$0xff]   ;;  %v21_v9 = vld [vmem:[%s260_s0] sm:$0xf] }
   0x4   :  { %v159_v10 = vld [vmem:[%s261_s2] ss:$0 sm:$0xff] }
   0x6   :  { %173 = vmatpush3.bf16.msra.mxu0 %v193_v2 }
   0x7   :  { %174 = vmatprep.subr.bf16.mxu0 %v204_v0 }
   0xa   :  { %175 = vmatpush3.bf16.msra.mxu0 %v194_v3 }
   0xb   :  { %176 = vmatprep.subr.bf16.mxu0 %v204_v0 }
   0xe   :  { %177 = vmatpush3.bf16.msra.mxu0 %v195_v4 }
   0xf   :  { %178 = vmatprep.subr.bf16.mxu0 %v204_v0 }
  0x12   :  { %179 = vmatpush3.bf16.msra.mxu0 %v196_v5 }
  0x13   :  { %180 = vmatprep.subr.bf16.mxu0 %v204_v0 }
  0x16   :  { %181 = vmatpush3.bf16.msra.mxu0 %v197_v6 }
  0x17   :  { %182 = vmatprep.subr.bf16.mxu0 %v204_v0 }
  0x1a   :  { %183 = vmatpush3.bf16.msra.mxu0 %v198_v7 }
  0x1b   :  { %184 = vmatprep.subr.bf16.mxu0 %v204_v0 }
  0x1e   :  { %185 = vmatpush3.bf16.msra.mxu0 %v199_v8 }
  0x21   :  { %187 = vmatmul.mubr.bf16.vlgmr.msra.gmra.mrb[0].mxu0 %v21_v9 }
  0xf4   :  { %v120_v11 = vpop.f32.mrb[0].mxu0 }
  0xf5   :  { %v139_v12 = vadd.f32 %v159_v10, %v120_v11  ;;  %v188_v13 = vpop.f32.mrb[1].mxu0 }
  0xf6   :  { %v123_v14 = vpop.f32.mrb[2].mxu0 }
  0xf7   :  { %v160_v15 = vmul.f32 -1.442695, %v139_v12  ;;  %v189_v16 = vpop.f32.mrb[3].mxu0 }
  0xf9   :  { %200 = vpow2.f32 %v160_v15 }
 0x103   :  { %v201_v17 = vpop.eup %200 }
 0x104   :  { %v143_v18 = vadd.f32 1.0, %v201_v17 }
 0x106   :  { %202 = vrcp.f32 %v143_v18 }
 0x110   :  { %v203_v19 = vpop.eup %202 }
 0x111   :  { %146 = vst [vmem:[%s262_s3] sm:$0xff] %v203_v19 }

// kernel: dnlf_forward.20
= control target key start
LH: loop header
LB: loop body
LE: loop exit
PB: predicated region body
PF: predicated region fallthrough
CT: control target
= control target key end

     0   :  { %s1708_s1 = inlined_call_operand.vmem [shape: bf16[128,128], index: 1, kind: input, shape index: {}]   ;;  %s1709_s0 = inlined_call_operand.vmem [shape: bf16[512,128], index: 0, kind: input, shape index: {}]   ;;  %s1710_s2 = inlined_call_operand.vmem [shape: f32[1,128], index: 2, kind: input, shape index: {}]   ;;  %s1711_s3 = inlined_call_operand.vmem [shape: f32[512,128], index: 3, kind: output, shape index: {}]  }
   0x1   :  { %v1267_v0 = vld [vmem:[%s1708_s1] sm:$0xff]   ;;  %v1268_v1 = vld [vmem:[%s1708_s1 + $0x8] sm:$0xff]   ;;  %v1269_v2 = vld [vmem:[%s1708_s1 + $0x10] sm:$0xff]  }
   0x2   :  { %1171 = vmatprep.subr.bf16.mxu0 %v1267_v0  ;;  %1251 = vmatprep.subr.bf16.mxu1 %v1267_v0  ;;  %v1270_v3 = vld [vmem:[%s1708_s1 + $0x18] sm:$0xff]   ;;  %v1275_v4 = vld [vmem:[%s1709_s0] sm:$0xff]   ;;  %v1272_v7 = vld [vmem:[%s1708_s1 + $0x28] sm:$0xff]  }
   0x3   :  { %1172 = vmatpush3.bf16.msra.mxu0 %v1267_v0  ;;  %1259 = vmatpush3.bf16.msra.mxu1 %v1267_v0  ;;  %v1276_v5 = vld [vmem:[%s1709_s0 + $0x80] sm:$0xff]   ;;  %v1273_v8 = vld [vmem:[%s1708_s1 + $0x30] sm:$0xff]   ;;  %v1274_v9 = vld [vmem:[%s1708_s1 + $0x38] sm:$0xff]  }
   0x4   :  { %1173 = vmatprep.subr.bf16.mxu0 %v1268_v1  ;;  %1252 = vmatprep.subr.bf16.mxu1 %v1268_v1  ;;  %v1271_v6 = vld [vmem:[%s1708_s1 + $0x20] sm:$0xff]   ;;  %v1277_v10 = vld [vmem:[%s1709_s0 + $0x8] sm:$0xff]   ;;  %v1279_v12 = vld [vmem:[%s1709_s0 + $0x10] sm:$0xff]  }
   0x5   :  { %1187 = vmatprep.mubr.bf16.mxu0 %v1275_v4  ;;  %1219 = vmatprep.mubr.bf16.mxu1 %v1276_v5  ;;  %v1278_v11 = vld [vmem:[%s1709_s0 + $0x88] sm:$0xff]   ;;  %v1280_v13 = vld [vmem:[%s1709_s0 + $0x90] sm:$0xff]   ;;  %v1281_v14 = vld [vmem:[%s1709_s0 + $0x18] sm:$0xff]  }
   0x6   :  { %v1282_v15 = vld [vmem:[%s1709_s0 + $0x98] sm:$0xff]   ;;  %v1283_v16 = vld [vmem:[%s1709_s0 + $0x20] sm:$0xff]   ;;  %v1285_v18 = vld [vmem:[%s1709_s0 + $0x28] sm:$0xff]  }
   0x7   :  { %1174 = vmatpush3.bf16.msra.mxu0 %v1268_v1  ;;  %1260 = vmatpush3.bf16.msra.mxu1 %v1268_v1  ;;  %v1284_v17 = vld [vmem:[%s1709_s0 + $0xa0] sm:$0xff]   ;;  %v1286_v19 = vld [vmem:[%s1709_s0 + $0xa8] sm:$0xff]   ;;  %v1287_v20 = vld [vmem:[%s1709_s0 + $0x30] sm:$0xff]  }
   0x8   :  { %1175 = vmatprep.subr.bf16.mxu0 %v1269_v2  ;;  %1253 = vmatprep.subr.bf16.mxu1 %v1269_v2  ;;  %v1288_v21 = vld [vmem:[%s1709_s0 + $0xb0] sm:$0xff]   ;;  %v1289_v22 = vld [vmem:[%s1709_s0 + $0x38] sm:$0xff]   ;;  %v1291_v24 = vld [vmem:[%s1709_s0 + $0x40] sm:$0xff]  }
   0x9   :  { %v1290_v23 = vld [vmem:[%s1709_s0 + $0xb8] sm:$0xff]   ;;  %v1292_v25 = vld [vmem:[%s1709_s0 + $0xc0] sm:$0xff]   ;;  %v1293_v26 = vld [vmem:[%s1709_s0 + $0x48] sm:$0xff]  }
   0xa   :  { %v1294_v27 = vld [vmem:[%s1709_s0 + $0xc8] sm:$0xff]   ;;  %v1295_v28 = vld [vmem:[%s1709_s0 + $0x50] sm:$0xff]   ;;  %v1297_v30 = vld [vmem:[%s1709_s0 + $0x58] sm:$0xff]  }
   0xb   :  { %1176 = vmatpush3.bf16.msra.mxu0 %v1269_v2  ;;  %1261 = vmatpush3.bf16.msra.mxu1 %v1269_v2  ;;  %v1296_v29 = vld [vmem:[%s1709_s0 + $0xd0] sm:$0xff]   ;;  %v1298_v31 = vld [vmem:[%s1709_s0 + $0xd8] sm:$0xff]   ;;  %v1299_v32 = vld [vmem:[%s1709_s0 + $0x60] sm:$0xff]  }
   0xc   :  { %1177 = vmatprep.subr.bf16.mxu0 %v1270_v3  ;;  %1254 = vmatprep.subr.bf16.mxu1 %v1270_v3  ;;  %v1300_v33 = vld [vmem:[%s1709_s0 + $0xe0] sm:$0xff]   ;;  %v1301_v34 = vld [vmem:[%s1709_s0 + $0x68] sm:$0xff]   ;;  %v1303_v36 = vld [vmem:[%s1709_s0 + $0x70] sm:$0xff]  }
   0xd   :  { %v1302_v35 = vld [vmem:[%s1709_s0 + $0xe8] sm:$0xff]   ;;  %v1304_v37 = vld [vmem:[%s1709_s0 + $0xf0] sm:$0xff]   ;;  %v1305_v38 = vld [vmem:[%s1709_s0 + $0x78] sm:$0xff]  }
   0xe   :  { %v1306_v39 = vld [vmem:[%s1709_s0 + $0xf8] sm:$0xff]   ;;  %v1450_v40 = vld [vmem:[%s1710_s2] ss:$0 sm:$0xff] }
   0xf   :  { %1178 = vmatpush3.bf16.msra.mxu0 %v1270_v3  ;;  %1262 = vmatpush3.bf16.msra.mxu1 %v1270_v3 }
  0x10   :  { %1179 = vmatprep.subr.bf16.mxu0 %v1271_v6  ;;  %1255 = vmatprep.subr.bf16.mxu1 %v1271_v6 }
  0x13   :  { %1180 = vmatpush3.bf16.msra.mxu0 %v1271_v6  ;;  %1263 = vmatpush3.bf16.msra.mxu1 %v1271_v6 }
  0x14   :  { %1181 = vmatprep.subr.bf16.mxu0 %v1272_v7  ;;  %1256 = vmatprep.subr.bf16.mxu1 %v1272_v7 }
  0x17   :  { %1182 = vmatpush3.bf16.msra.mxu0 %v1272_v7  ;;  %1264 = vmatpush3.bf16.msra.mxu1 %v1272_v7 }
  0x18   :  { %1183 = vmatprep.subr.bf16.mxu0 %v1273_v8  ;;  %1257 = vmatprep.subr.bf16.mxu1 %v1273_v8 }
  0x1b   :  { %1184 = vmatpush3.bf16.msra.mxu0 %v1273_v8  ;;  %1265 = vmatpush3.bf16.msra.mxu1 %v1273_v8 }
  0x1c   :  { %1185 = vmatprep.subr.bf16.mxu0 %v1274_v9  ;;  %1258 = vmatprep.subr.bf16.mxu1 %v1274_v9 }
  0x1f   :  { %1186 = vmatpush3.bf16.msra.mxu0 %v1274_v9  ;;  %1266 = vmatpush3.bf16.msra.mxu1 %v1274_v9 }
  0x22   :  { %1188 = vmatmul.mubr.bf16.vlgmr.msra.gmra.mrb[0].mxu0 %v1277_v10  ;;  %1220 = vmatmul.mubr.bf16.vlgmr.msra.gmra.mrb[0].mxu1 %v1278_v11 }
  0x23   :  { %1191 = vmatprep.mubr.bf16.mxu0 %v1279_v12  ;;  %1223 = vmatprep.mubr.bf16.mxu1 %v1280_v13 }
  0x2a   :  { %1192 = vmatmul.mubr.bf16.gmra.mrb[4].mxu0 %v1281_v14  ;;  %1224 = vmatmul.mubr.bf16.gmra.mrb[4].mxu1 %v1282_v15 }
  0x2b   :  { %1195 = vmatprep.mubr.bf16.mxu0 %v1283_v16  ;;  %1227 = vmatprep.mubr.bf16.mxu1 %v1284_v17 }
  0x32   :  { %1196 = vmatmul.mubr.bf16.gmra.mrb[8].mxu0 %v1285_v18  ;;  %1228 = vmatmul.mubr.bf16.gmra.mrb[8].mxu1 %v1286_v19 }
  0x33   :  { %1199 = vmatprep.mubr.bf16.mxu0 %v1287_v20  ;;  %1231 = vmatprep.mubr.bf16.mxu1 %v1288_v21 }
  0x3a   :  { %1200 = vmatmul.mubr.bf16.gmra.mrb[12].mxu0 %v1289_v22  ;;  %1232 = vmatmul.mubr.bf16.gmra.mrb[12].mxu1 %v1290_v23 }
  0x3b   :  { %1203 = vmatprep.mubr.bf16.mxu0 %v1291_v24  ;;  %1235 = vmatprep.mubr.bf16.mxu1 %v1292_v25 }
  0x42   :  { %1204 = vmatmul.mubr.bf16.gmra.mrb[16].mxu0 %v1293_v26  ;;  %1236 = vmatmul.mubr.bf16.gmra.mrb[16].mxu1 %v1294_v27 }
  0x43   :  { %1207 = vmatprep.mubr.bf16.mxu0 %v1295_v28  ;;  %1239 = vmatprep.mubr.bf16.mxu1 %v1296_v29 }
  0x4a   :  { %1208 = vmatmul.mubr.bf16.gmra.mrb[20].mxu0 %v1297_v30  ;;  %1240 = vmatmul.mubr.bf16.gmra.mrb[20].mxu1 %v1298_v31 }
  0x4b   :  { %1211 = vmatprep.mubr.bf16.mxu0 %v1299_v32  ;;  %1243 = vmatprep.mubr.bf16.mxu1 %v1300_v33 }
  0x52   :  { %1212 = vmatmul.mubr.bf16.gmra.mrb[24].mxu0 %v1301_v34  ;;  %1244 = vmatmul.mubr.bf16.gmra.mrb[24].mxu1 %v1302_v35 }
  0x53   :  { %1215 = vmatprep.mubr.bf16.mxu0 %v1303_v36  ;;  %1247 = vmatprep.mubr.bf16.mxu1 %v1304_v37 }
  0x5a   :  { %1216 = vmatmul.mubr.bf16.gmra.mrb[28].mxu0 %v1305_v38  ;;  %1248 = vmatmul.mubr.bf16.gmra.mrb[28].mxu1 %v1306_v39 }
  0xf5   :  { %v1189_v41 = vpop.f32.mrb[0].mxu0  ;;  %v1221_v42 = vpop.f32.mrb[0].mxu1 }
  0xf6   :  { %v960_v43 = vadd.f32 %v1189_v41, %v1450_v40  ;;  %v992_v44 = vadd.f32 %v1221_v42, %v1450_v40  ;;  %v501_v45 = vpop.f32.mrb[1].mxu0  ;;  %v629_v46 = vpop.f32.mrb[1].mxu1 }
  0xf7   :  { %v958_v47 = vadd.f32 %v1450_v40, %v501_v45  ;;  %v990_v48 = vadd.f32 %v1450_v40, %v629_v46  ;;  %v1190_v49 = vpop.f32.mrb[2].mxu0  ;;  %v1222_v50 = vpop.f32.mrb[2].mxu1 }
  0xf8   :  { %1024 = vst [vmem:[%s1711_s3 + $0x10] sm:$0xff] %v960_v43  ;;  %1056 = vst [vmem:[%s1711_s3 + $0x110] sm:$0xff] %v992_v44  ;;  %v961_v51 = vadd.f32 %v1190_v49, %v1450_v40  ;;  %v993_v52 = vadd.f32 %v1222_v50, %v1450_v40  ;;  %v504_v53 = vpop.f32.mrb[3].mxu0  ;;  %v632_v54 = vpop.f32.mrb[3].mxu1 }
  0xf9   :  { %1022 = vst [vmem:[%s1711_s3] sm:$0xff] %v958_v47  ;;  %1054 = vst [vmem:[%s1711_s3 + $0x100] sm:$0xff] %v990_v48  ;;  %v959_v55 = vadd.f32 %v1450_v40, %v504_v53  ;;  %v991_v56 = vadd.f32 %v1450_v40, %v632_v54 }
  0xfa   :  { %1025 = vst [vmem:[%s1711_s3 + $0x18] sm:$0xff] %v961_v51  ;;  %1057 = vst [vmem:[%s1711_s3 + $0x118] sm:$0xff] %v993_v52 }
  0xfb   :  { %1023 = vst [vmem:[%s1711_s3 + $0x8] sm:$0xff] %v959_v55  ;;  %1055 = vst [vmem:[%s1711_s3 + $0x108] sm:$0xff] %v991_v56 }
  0xfd   :  { %v1193_v57 = vpop.f32.mrb[4].mxu0  ;;  %v1225_v58 = vpop.f32.mrb[4].mxu1 }
  0xfe   :  { %v964_v59 = vadd.f32 %v1193_v57, %v1450_v40  ;;  %v996_v60 = vadd.f32 %v1225_v58, %v1450_v40  ;;  %v517_v61 = vpop.f32.mrb[5].mxu0  ;;  %v645_v62 = vpop.f32.mrb[5].mxu1 }
  0xff   :  { %v962_v63 = vadd.f32 %v1450_v40, %v517_v61  ;;  %v994_v0 = vadd.f32 %v1450_v40, %v645_v62  ;;  %v1194_v1 = vpop.f32.mrb[6].mxu0  ;;  %v1226_v2 = vpop.f32.mrb[6].mxu1 }
 0x100   :  { %1028 = vst [vmem:[%s1711_s3 + $0x30] sm:$0xff] %v964_v59  ;;  %1060 = vst [vmem:[%s1711_s3 + $0x130] sm:$0xff] %v996_v60  ;;  %v965_v3 = vadd.f32 %v1194_v1, %v1450_v40  ;;  %v997_v4 = vadd.f32 %v1226_v2, %v1450_v40  ;;  %v520_v5 = vpop.f32.mrb[7].mxu0  ;;  %v648_v6 = vpop.f32.mrb[7].mxu1 }
 0x101   :  { %1026 = vst [vmem:[%s1711_s3 + $0x20] sm:$0xff] %v962_v63  ;;  %1058 = vst [vmem:[%s1711_s3 + $0x120] sm:$0xff] %v994_v0  ;;  %v963_v7 = vadd.f32 %v1450_v40, %v520_v5  ;;  %v995_v8 = vadd.f32 %v1450_v40, %v648_v6 }
 0x102   :  { %1029 = vst [vmem:[%s1711_s3 + $0x38] sm:$0xff] %v965_v3  ;;  %1061 = vst [vmem:[%s1711_s3 + $0x138] sm:$0xff] %v997_v4 }
 0x103   :  { %1027 = vst [vmem:[%s1711_s3 + $0x28] sm:$0xff] %v963_v7  ;;  %1059 = vst [vmem:[%s1711_s3 + $0x128] sm:$0xff] %v995_v8 }
 0x105   :  { %v1197_v9 = vpop.f32.mrb[8].mxu0  ;;  %v1229_v10 = vpop.f32.mrb[8].mxu1 }
 0x106   :  { %v968_v11 = vadd.f32 %v1197_v9, %v1450_v40  ;;  %v1000_v12 = vadd.f32 %v1229_v10, %v1450_v40  ;;  %v533_v13 = vpop.f32.mrb[9].mxu0  ;;  %v661_v14 = vpop.f32.mrb[9].mxu1 }
 0x107   :  { %v966_v15 = vadd.f32 %v1450_v40, %v533_v13  ;;  %v998_v16 = vadd.f32 %v1450_v40, %v661_v14  ;;  %v1198_v17 = vpop.f32.mrb[10].mxu0  ;;  %v1230_v18 = vpop.f32.mrb[10].mxu1 }
 0x108   :  { %1032 = vst [vmem:[%s1711_s3 + $0x50] sm:$0xff] %v968_v11  ;;  %1064 = vst [vmem:[%s1711_s3 + $0x150] sm:$0xff] %v1000_v12  ;;  %v969_v19 = vadd.f32 %v1198_v17, %v1450_v40  ;;  %v1001_v20 = vadd.f32 %v1230_v18, %v1450_v40  ;;  %v536_v21 = vpop.f32.mrb[11].mxu0  ;;  %v664_v22 = vpop.f32.mrb[11].mxu1 }
 0x109   :  { %1030 = vst [vmem:[%s1711_s3 + $0x40] sm:$0xff] %v966_v15  ;;  %1062 = vst [vmem:[%s1711_s3 + $0x140] sm:$0xff] %v998_v16  ;;  %v967_v23 = vadd.f32 %v1450_v40, %v536_v21  ;;  %v999_v24 = vadd.f32 %v1450_v40, %v664_v22 }
 0x10a   :  { %1033 = vst [vmem:[%s1711_s3 + $0x58] sm:$0xff] %v969_v19  ;;  %1065 = vst [vmem:[%s1711_s3 + $0x158] sm:$0xff] %v1001_v20 }
 0x10b   :  { %1031 = vst [vmem:[%s1711_s3 + $0x48] sm:$0xff] %v967_v23  ;;  %1063 = vst [vmem:[%s1711_s3 + $0x148] sm:$0xff] %v999_v24 }
 0x10d   :  { %v1201_v25 = vpop.f32.mrb[12].mxu0  ;;  %v1233_v26 = vpop.f32.mrb[12].mxu1 }
 0x10e   :  { %v972_v27 = vadd.f32 %v1201_v25, %v1450_v40  ;;  %v1004_v28 = vadd.f32 %v1233_v26, %v1450_v40  ;;  %v549_v29 = vpop.f32.mrb[13].mxu0  ;;  %v677_v30 = vpop.f32.mrb[13].mxu1 }
 0x10f   :  { %v970_v31 = vadd.f32 %v1450_v40, %v549_v29  ;;  %v1002_v32 = vadd.f32 %v1450_v40, %v677_v30  ;;  %v1202_v33 = vpop.f32.mrb[14].mxu0  ;;  %v1234_v34 = vpop.f32.mrb[14].mxu1 }
 0x110   :  { %1036 = vst [vmem:[%s1711_s3 + $0x70] sm:$0xff] %v972_v27  ;;  %1068 = vst [vmem:[%s1711_s3 + $0x170] sm:$0xff] %v1004_v28  ;;  %v973_v35 = vadd.f32 %v1202_v33, %v1450_v40  ;;  %v1005_v36 = vadd.f32 %v1234_v34, %v1450_v40  ;;  %v552_v37 = vpop.f32.mrb[15].mxu0  ;;  %v680_v38 = vpop.f32.mrb[15].mxu1 }
 0x111   :  { %1034 = vst [vmem:[%s1711_s3 + $0x60] sm:$0xff] %v970_v31  ;;  %1066 = vst [vmem:[%s1711_s3 + $0x160] sm:$0xff] %v1002_v32  ;;  %v971_v39 = vadd.f32 %v1450_v40, %v552_v37  ;;  %v1003_v41 = vadd.f32 %v1450_v40, %v680_v38 }
 0x112   :  { %1037 = vst [vmem:[%s1711_s3 + $0x78] sm:$0xff] %v973_v35  ;;  %1069 = vst [vmem:[%s1711_s3 + $0x178] sm:$0xff] %v1005_v36 }
 0x113   :  { %1035 = vst [vmem:[%s1711_s3 + $0x68] sm:$0xff] %v971_v39  ;;  %1067 = vst [vmem:[%s1711_s3 + $0x168] sm:$0xff] %v1003_v41 }
 0x115   :  { %v1205_v42 = vpop.f32.mrb[16].mxu0  ;;  %v1237_v43 = vpop.f32.mrb[16].mxu1 }
 0x116   :  { %v976_v44 = vadd.f32 %v1205_v42, %v1450_v40  ;;  %v1008_v45 = vadd.f32 %v1237_v43, %v1450_v40  ;;  %v565_v46 = vpop.f32.mrb[17].mxu0  ;;  %v693_v47 = vpop.f32.mrb[17].mxu1 }
 0x117   :  { %v974_v48 = vadd.f32 %v1450_v40, %v565_v46  ;;  %v1006_v49 = vadd.f32 %v1450_v40, %v693_v47  ;;  %v1206_v50 = vpop.f32.mrb[18].mxu0  ;;  %v1238_v51 = vpop.f32.mrb[18].mxu1 }
 0x118   :  { %1040 = vst [vmem:[%s1711_s3 + $0x90] sm:$0xff] %v976_v44  ;;  %1072 = vst [vmem:[%s1711_s3 + $0x190] sm:$0xff] %v1008_v45  ;;  %v977_v52 = vadd.f32 %v1206_v50, %v1450_v40  ;;  %v1009_v53 = vadd.f32 %v1238_v51, %v1450_v40  ;;  %v568_v54 = vpop.f32.mrb[19].mxu0  ;;  %v696_v55 = vpop.f32.mrb[19].mxu1 }
 0x119   :  { %1038 = vst [vmem:[%s1711_s3 + $0x80] sm:$0xff] %v974_v48  ;;  %1070 = vst [vmem:[%s1711_s3 + $0x180] sm:$0xff] %v1006_v49  ;;  %v975_v56 = vadd.f32 %v1450_v40, %v568_v54  ;;  %v1007_v57 = vadd.f32 %v1450_v40, %v696_v55 }
 0x11a   :  { %1041 = vst [vmem:[%s1711_s3 + $0x98] sm:$0xff] %v977_v52  ;;  %1073 = vst [vmem:[%s1711_s3 + $0x198] sm:$0xff] %v1009_v53 }
 0x11b   :  { %1039 = vst [vmem:[%s1711_s3 + $0x88] sm:$0xff] %v975_v56  ;;  %1071 = vst [vmem:[%s1711_s3 + $0x188] sm:$0xff] %v1007_v57 }
 0x11d   :  { %v1209_v58 = vpop.f32.mrb[20].mxu0  ;;  %v1241_v59 = vpop.f32.mrb[20].mxu1 }
 0x11e   :  { %v980_v60 = vadd.f32 %v1209_v58, %v1450_v40  ;;  %v1012_v61 = vadd.f32 %v1241_v59, %v1450_v40  ;;  %v581_v62 = vpop.f32.mrb[21].mxu0  ;;  %v709_v63 = vpop.f32.mrb[21].mxu1 }
 0x11f   :  { %v978_v0 = vadd.f32 %v1450_v40, %v581_v62  ;;  %v1010_v1 = vadd.f32 %v1450_v40, %v709_v63  ;;  %v1210_v2 = vpop.f32.mrb[22].mxu0  ;;  %v1242_v3 = vpop.f32.mrb[22].mxu1 }
 0x120   :  { %1044 = vst [vmem:[%s1711_s3 + $0xb0] sm:$0xff] %v980_v60  ;;  %1076 = vst [vmem:[%s1711_s3 + $0x1b0] sm:$0xff] %v1012_v61  ;;  %v981_v4 = vadd.f32 %v1210_v2, %v1450_v40  ;;  %v1013_v5 = vadd.f32 %v1242_v3, %v1450_v40  ;;  %v584_v6 = vpop.f32.mrb[23].mxu0  ;;  %v712_v7 = vpop.f32.mrb[23].mxu1 }
 0x121   :  { %1042 = vst [vmem:[%s1711_s3 + $0xa0] sm:$0xff] %v978_v0  ;;  %1074 = vst [vmem:[%s1711_s3 + $0x1a0] sm:$0xff] %v1010_v1  ;;  %v979_v8 = vadd.f32 %v1450_v40, %v584_v6  ;;  %v1011_v9 = vadd.f32 %v1450_v40, %v712_v7 }
 0x122   :  { %1045 = vst [vmem:[%s1711_s3 + $0xb8] sm:$0xff] %v981_v4  ;;  %1077 = vst [vmem:[%s1711_s3 + $0x1b8] sm:$0xff] %v1013_v5 }
 0x123   :  { %1043 = vst [vmem:[%s1711_s3 + $0xa8] sm:$0xff] %v979_v8  ;;  %1075 = vst [vmem:[%s1711_s3 + $0x1a8] sm:$0xff] %v1011_v9 }
 0x125   :  { %v1213_v10 = vpop.f32.mrb[24].mxu0  ;;  %v1245_v11 = vpop.f32.mrb[24].mxu1 }
 0x126   :  { %v984_v12 = vadd.f32 %v1213_v10, %v1450_v40  ;;  %v1016_v13 = vadd.f32 %v1245_v11, %v1450_v40  ;;  %v597_v14 = vpop.f32.mrb[25].mxu0  ;;  %v725_v15 = vpop.f32.mrb[25].mxu1 }
 0x127   :  { %v982_v16 = vadd.f32 %v1450_v40, %v597_v14  ;;  %v1014_v17 = vadd.f32 %v1450_v40, %v725_v15  ;;  %v1214_v18 = vpop.f32.mrb[26].mxu0  ;;  %v1246_v19 = vpop.f32.mrb[26].mxu1 }
 0x128   :  { %1048 = vst [vmem:[%s1711_s3 + $0xd0] sm:$0xff] %v984_v12  ;;  %1080 = vst [vmem:[%s1711_s3 + $0x1d0] sm:$0xff] %v1016_v13  ;;  %v985_v20 = vadd.f32 %v1214_v18, %v1450_v40  ;;  %v1017_v21 = vadd.f32 %v1246_v19, %v1450_v40  ;;  %v600_v22 = vpop.f32.mrb[27].mxu0  ;;  %v728_v23 = vpop.f32.mrb[27].mxu1 }
 0x129   :  { %1046 = vst [vmem:[%s1711_s3 + $0xc0] sm:$0xff] %v982_v16  ;;  %1078 = vst [vmem:[%s1711_s3 + $0x1c0] sm:$0xff] %v1014_v17  ;;  %v983_v24 = vadd.f32 %v1450_v40, %v600_v22  ;;  %v1015_v25 = vadd.f32 %v1450_v40, %v728_v23 }
 0x12a   :  { %1049 = vst [vmem:[%s1711_s3 + $0xd8] sm:$0xff] %v985_v20  ;;  %1081 = vst [vmem:[%s1711_s3 + $0x1d8] sm:$0xff] %v1017_v21 }
 0x12b   :  { %1047 = vst [vmem:[%s1711_s3 + $0xc8] sm:$0xff] %v983_v24  ;;  %1079 = vst [vmem:[%s1711_s3 + $0x1c8] sm:$0xff] %v1015_v25 }
 0x12d   :  { %v1217_v26 = vpop.f32.mrb[28].mxu0  ;;  %v1249_v27 = vpop.f32.mrb[28].mxu1 }
 0x12e   :  { %v988_v28 = vadd.f32 %v1217_v26, %v1450_v40  ;;  %v1020_v29 = vadd.f32 %v1249_v27, %v1450_v40  ;;  %v613_v30 = vpop.f32.mrb[29].mxu0  ;;  %v741_v31 = vpop.f32.mrb[29].mxu1 }
 0x12f   :  { %v986_v32 = vadd.f32 %v1450_v40, %v613_v30  ;;  %v1018_v33 = vadd.f32 %v1450_v40, %v741_v31  ;;  %v1218_v34 = vpop.f32.mrb[30].mxu0  ;;  %v1250_v35 = vpop.f32.mrb[30].mxu1 }
 0x130   :  { %1052 = vst [vmem:[%s1711_s3 + $0xf0] sm:$0xff] %v988_v28  ;;  %1084 = vst [vmem:[%s1711_s3 + $0x1f0] sm:$0xff] %v1020_v29  ;;  %v989_v36 = vadd.f32 %v1218_v34, %v1450_v40  ;;  %v1021_v37 = vadd.f32 %v1250_v35, %v1450_v40  ;;  %v616_v38 = vpop.f32.mrb[31].mxu0  ;;  %v744_v39 = vpop.f32.mrb[31].mxu1 }
 0x131   :  { %1050 = vst [vmem:[%s1711_s3 + $0xe0] sm:$0xff] %v986_v32  ;;  %1082 = vst [vmem:[%s1711_s3 + $0x1e0] sm:$0xff] %v1018_v33  ;;  %v987_v41 = vadd.f32 %v1450_v40, %v616_v38  ;;  %v1019_v42 = vadd.f32 %v1450_v40, %v744_v39 }
 0x132   :  { %1053 = vst [vmem:[%s1711_s3 + $0xf8] sm:$0xff] %v989_v36  ;;  %1085 = vst [vmem:[%s1711_s3 + $0x1f8] sm:$0xff] %v1021_v37 }
 0x133   :  { %1051 = vst [vmem:[%s1711_s3 + $0xe8] sm:$0xff] %v987_v41  ;;  %1083 = vst [vmem:[%s1711_s3 + $0x1e8] sm:$0xff] %v1019_v42 }

// kernel: dnlf_forward.19
= control target key start
LH: loop header
LB: loop body
LE: loop exit
PB: predicated region body
PF: predicated region fallthrough
CT: control target
= control target key end

     0   :  { %s1772_s1 = inlined_call_operand.vmem [shape: bf16[128,128], index: 1, kind: input, shape index: {}]   ;;  %s1773_s0 = inlined_call_operand.vmem [shape: bf16[512,128], index: 0, kind: input, shape index: {}]   ;;  %s1774_s2 = inlined_call_operand.vmem [shape: f32[1,128], index: 2, kind: input, shape index: {}]   ;;  %s1775_s3 = inlined_call_operand.vmem [shape: f32[512,128], index: 3, kind: output, shape index: {}]  }
   0x1   :  { %v1331_v0 = vld [vmem:[%s1772_s1] sm:$0xff]   ;;  %v1332_v1 = vld [vmem:[%s1772_s1 + $0x8] sm:$0xff]   ;;  %v1333_v2 = vld [vmem:[%s1772_s1 + $0x10] sm:$0xff]  }
   0x2   :  { %1235 = vmatprep.subr.bf16.mxu0 %v1331_v0  ;;  %1315 = vmatprep.subr.bf16.mxu1 %v1331_v0  ;;  %v1334_v3 = vld [vmem:[%s1772_s1 + $0x18] sm:$0xff]   ;;  %v1339_v4 = vld [vmem:[%s1773_s0] sm:$0xff]   ;;  %v1336_v7 = vld [vmem:[%s1772_s1 + $0x28] sm:$0xff]  }
   0x3   :  { %1236 = vmatpush3.bf16.msra.mxu0 %v1331_v0  ;;  %1323 = vmatpush3.bf16.msra.mxu1 %v1331_v0  ;;  %v1340_v5 = vld [vmem:[%s1773_s0 + $0x80] sm:$0xff]   ;;  %v1337_v8 = vld [vmem:[%s1772_s1 + $0x30] sm:$0xff]   ;;  %v1338_v9 = vld [vmem:[%s1772_s1 + $0x38] sm:$0xff]  }
   0x4   :  { %1237 = vmatprep.subr.bf16.mxu0 %v1332_v1  ;;  %1316 = vmatprep.subr.bf16.mxu1 %v1332_v1  ;;  %v1335_v6 = vld [vmem:[%s1772_s1 + $0x20] sm:$0xff]   ;;  %v1341_v10 = vld [vmem:[%s1773_s0 + $0x8] sm:$0xff]   ;;  %v1343_v12 = vld [vmem:[%s1773_s0 + $0x10] sm:$0xff]  }
   0x5   :  { %1251 = vmatprep.mubr.bf16.mxu0 %v1339_v4  ;;  %1283 = vmatprep.mubr.bf16.mxu1 %v1340_v5  ;;  %v1342_v11 = vld [vmem:[%s1773_s0 + $0x88] sm:$0xff]   ;;  %v1344_v13 = vld [vmem:[%s1773_s0 + $0x90] sm:$0xff]   ;;  %v1345_v14 = vld [vmem:[%s1773_s0 + $0x18] sm:$0xff]  }
   0x6   :  { %v1346_v15 = vld [vmem:[%s1773_s0 + $0x98] sm:$0xff]   ;;  %v1347_v16 = vld [vmem:[%s1773_s0 + $0x20] sm:$0xff]   ;;  %v1349_v18 = vld [vmem:[%s1773_s0 + $0x28] sm:$0xff]  }
   0x7   :  { %1238 = vmatpush3.bf16.msra.mxu0 %v1332_v1  ;;  %1324 = vmatpush3.bf16.msra.mxu1 %v1332_v1  ;;  %v1348_v17 = vld [vmem:[%s1773_s0 + $0xa0] sm:$0xff]   ;;  %v1350_v19 = vld [vmem:[%s1773_s0 + $0xa8] sm:$0xff]   ;;  %v1351_v20 = vld [vmem:[%s1773_s0 + $0x30] sm:$0xff]  }
   0x8   :  { %1239 = vmatprep.subr.bf16.mxu0 %v1333_v2  ;;  %1317 = vmatprep.subr.bf16.mxu1 %v1333_v2  ;;  %v1352_v21 = vld [vmem:[%s1773_s0 + $0xb0] sm:$0xff]   ;;  %v1353_v22 = vld [vmem:[%s1773_s0 + $0x38] sm:$0xff]   ;;  %v1355_v24 = vld [vmem:[%s1773_s0 + $0x40] sm:$0xff]  }
   0x9   :  { %v1354_v23 = vld [vmem:[%s1773_s0 + $0xb8] sm:$0xff]   ;;  %v1356_v25 = vld [vmem:[%s1773_s0 + $0xc0] sm:$0xff]   ;;  %v1357_v26 = vld [vmem:[%s1773_s0 + $0x48] sm:$0xff]  }
   0xa   :  { %v1358_v27 = vld [vmem:[%s1773_s0 + $0xc8] sm:$0xff]   ;;  %v1359_v28 = vld [vmem:[%s1773_s0 + $0x50] sm:$0xff]   ;;  %v1361_v30 = vld [vmem:[%s1773_s0 + $0x58] sm:$0xff]  }
   0xb   :  { %1240 = vmatpush3.bf16.msra.mxu0 %v1333_v2  ;;  %1325 = vmatpush3.bf16.msra.mxu1 %v1333_v2  ;;  %v1360_v29 = vld [vmem:[%s1773_s0 + $0xd0] sm:$0xff]   ;;  %v1362_v31 = vld [vmem:[%s1773_s0 + $0xd8] sm:$0xff]   ;;  %v1363_v32 = vld [vmem:[%s1773_s0 + $0x60] sm:$0xff]  }
   0xc   :  { %1241 = vmatprep.subr.bf16.mxu0 %v1334_v3  ;;  %1318 = vmatprep.subr.bf16.mxu1 %v1334_v3  ;;  %v1364_v33 = vld [vmem:[%s1773_s0 + $0xe0] sm:$0xff]   ;;  %v1365_v34 = vld [vmem:[%s1773_s0 + $0x68] sm:$0xff]   ;;  %v1367_v36 = vld [vmem:[%s1773_s0 + $0x70] sm:$0xff]  }
   0xd   :  { %v1366_v35 = vld [vmem:[%s1773_s0 + $0xe8] sm:$0xff]   ;;  %v1368_v37 = vld [vmem:[%s1773_s0 + $0xf0] sm:$0xff]   ;;  %v1369_v38 = vld [vmem:[%s1773_s0 + $0x78] sm:$0xff]  }
   0xe   :  { %v1370_v39 = vld [vmem:[%s1773_s0 + $0xf8] sm:$0xff]   ;;  %v1514_v40 = vld [vmem:[%s1774_s2] ss:$0 sm:$0xff] }
   0xf   :  { %1242 = vmatpush3.bf16.msra.mxu0 %v1334_v3  ;;  %1326 = vmatpush3.bf16.msra.mxu1 %v1334_v3 }
  0x10   :  { %1243 = vmatprep.subr.bf16.mxu0 %v1335_v6  ;;  %1319 = vmatprep.subr.bf16.mxu1 %v1335_v6 }
  0x13   :  { %1244 = vmatpush3.bf16.msra.mxu0 %v1335_v6  ;;  %1327 = vmatpush3.bf16.msra.mxu1 %v1335_v6 }
  0x14   :  { %1245 = vmatprep.subr.bf16.mxu0 %v1336_v7  ;;  %1320 = vmatprep.subr.bf16.mxu1 %v1336_v7 }
  0x17   :  { %1246 = vmatpush3.bf16.msra.mxu0 %v1336_v7  ;;  %1328 = vmatpush3.bf16.msra.mxu1 %v1336_v7 }
  0x18   :  { %1247 = vmatprep.subr.bf16.mxu0 %v1337_v8  ;;  %1321 = vmatprep.subr.bf16.mxu1 %v1337_v8 }
  0x1b   :  { %1248 = vmatpush3.bf16.msra.mxu0 %v1337_v8  ;;  %1329 = vmatpush3.bf16.msra.mxu1 %v1337_v8 }
  0x1c   :  { %1249 = vmatprep.subr.bf16.mxu0 %v1338_v9  ;;  %1322 = vmatprep.subr.bf16.mxu1 %v1338_v9 }
  0x1f   :  { %1250 = vmatpush3.bf16.msra.mxu0 %v1338_v9  ;;  %1330 = vmatpush3.bf16.msra.mxu1 %v1338_v9 }
  0x22   :  { %1252 = vmatmul.mubr.bf16.vlgmr.msra.gmra.mrb[0].mxu0 %v1341_v10  ;;  %1284 = vmatmul.mubr.bf16.vlgmr.msra.gmra.mrb[0].mxu1 %v1342_v11 }
  0x23   :  { %1255 = vmatprep.mubr.bf16.mxu0 %v1343_v12  ;;  %1287 = vmatprep.mubr.bf16.mxu1 %v1344_v13 }
  0x2a   :  { %1256 = vmatmul.mubr.bf16.gmra.mrb[4].mxu0 %v1345_v14  ;;  %1288 = vmatmul.mubr.bf16.gmra.mrb[4].mxu1 %v1346_v15 }
  0x2b   :  { %1259 = vmatprep.mubr.bf16.mxu0 %v1347_v16  ;;  %1291 = vmatprep.mubr.bf16.mxu1 %v1348_v17 }
  0x32   :  { %1260 = vmatmul.mubr.bf16.gmra.mrb[8].mxu0 %v1349_v18  ;;  %1292 = vmatmul.mubr.bf16.gmra.mrb[8].mxu1 %v1350_v19 }
  0x33   :  { %1263 = vmatprep.mubr.bf16.mxu0 %v1351_v20  ;;  %1295 = vmatprep.mubr.bf16.mxu1 %v1352_v21 }
  0x3a   :  { %1264 = vmatmul.mubr.bf16.gmra.mrb[12].mxu0 %v1353_v22  ;;  %1296 = vmatmul.mubr.bf16.gmra.mrb[12].mxu1 %v1354_v23 }
  0x3b   :  { %1267 = vmatprep.mubr.bf16.mxu0 %v1355_v24  ;;  %1299 = vmatprep.mubr.bf16.mxu1 %v1356_v25 }
  0x42   :  { %1268 = vmatmul.mubr.bf16.gmra.mrb[16].mxu0 %v1357_v26  ;;  %1300 = vmatmul.mubr.bf16.gmra.mrb[16].mxu1 %v1358_v27 }
  0x43   :  { %1271 = vmatprep.mubr.bf16.mxu0 %v1359_v28  ;;  %1303 = vmatprep.mubr.bf16.mxu1 %v1360_v29 }
  0x4a   :  { %1272 = vmatmul.mubr.bf16.gmra.mrb[20].mxu0 %v1361_v30  ;;  %1304 = vmatmul.mubr.bf16.gmra.mrb[20].mxu1 %v1362_v31 }
  0x4b   :  { %1275 = vmatprep.mubr.bf16.mxu0 %v1363_v32  ;;  %1307 = vmatprep.mubr.bf16.mxu1 %v1364_v33 }
  0x52   :  { %1276 = vmatmul.mubr.bf16.gmra.mrb[24].mxu0 %v1365_v34  ;;  %1308 = vmatmul.mubr.bf16.gmra.mrb[24].mxu1 %v1366_v35 }
  0x53   :  { %1279 = vmatprep.mubr.bf16.mxu0 %v1367_v36  ;;  %1311 = vmatprep.mubr.bf16.mxu1 %v1368_v37 }
  0x5a   :  { %1280 = vmatmul.mubr.bf16.gmra.mrb[28].mxu0 %v1369_v38  ;;  %1312 = vmatmul.mubr.bf16.gmra.mrb[28].mxu1 %v1370_v39 }
  0xf5   :  { %v1253_v41 = vpop.f32.mrb[0].mxu0  ;;  %v1285_v42 = vpop.f32.mrb[0].mxu1 }
  0xf6   :  { %v960_v43 = vadd.f32 %v1253_v41, %v1514_v40  ;;  %v992_v44 = vadd.f32 %v1285_v42, %v1514_v40  ;;  %v501_v45 = vpop.f32.mrb[1].mxu0  ;;  %v629_v46 = vpop.f32.mrb[1].mxu1 }
  0xf7   :  { %v958_v47 = vadd.f32 %v1514_v40, %v501_v45  ;;  %v990_v48 = vadd.f32 %v1514_v40, %v629_v46  ;;  %v1254_v49 = vpop.f32.mrb[2].mxu0  ;;  %v1286_v50 = vpop.f32.mrb[2].mxu1 }
  0xf8   :  { %v1024_v51 = vmax.f32 %v960_v43, 0.0  ;;  %v1056_v52 = vmax.f32 %v992_v44, 0.0  ;;  %v961_v53 = vadd.f32 %v1254_v49, %v1514_v40  ;;  %v993_v54 = vadd.f32 %v1286_v50, %v1514_v40  ;;  %v504_v55 = vpop.f32.mrb[3].mxu0  ;;  %v632_v56 = vpop.f32.mrb[3].mxu1 }
  0xf9   :  { %v1022_v57 = vmax.f32 %v958_v47, 0.0  ;;  %v1054_v58 = vmax.f32 %v990_v48, 0.0  ;;  %v959_v59 = vadd.f32 %v1514_v40, %v504_v55  ;;  %v991_v60 = vadd.f32 %v1514_v40, %v632_v56 }
  0xfa   :  { %1088 = vst [vmem:[%s1775_s3 + $0x10] sm:$0xff] %v1024_v51  ;;  %1120 = vst [vmem:[%s1775_s3 + $0x110] sm:$0xff] %v1056_v52  ;;  %v1025_v61 = vmax.f32 %v961_v53, 0.0  ;;  %v1057_v62 = vmax.f32 %v993_v54, 0.0 }
  0xfb   :  { %1086 = vst [vmem:[%s1775_s3] sm:$0xff] %v1022_v57  ;;  %1118 = vst [vmem:[%s1775_s3 + $0x100] sm:$0xff] %v1054_v58  ;;  %v1023_v63 = vmax.f32 %v959_v59, 0.0  ;;  %v1055_v0 = vmax.f32 %v991_v60, 0.0 }
  0xfc   :  { %1089 = vst [vmem:[%s1775_s3 + $0x18] sm:$0xff] %v1025_v61  ;;  %1121 = vst [vmem:[%s1775_s3 + $0x118] sm:$0xff] %v1057_v62 }
  0xfd   :  { %1087 = vst [vmem:[%s1775_s3 + $0x8] sm:$0xff] %v1023_v63  ;;  %1119 = vst [vmem:[%s1775_s3 + $0x108] sm:$0xff] %v1055_v0  ;;  %v1257_v1 = vpop.f32.mrb[4].mxu0  ;;  %v1289_v2 = vpop.f32.mrb[4].mxu1 }
  0xfe   :  { %v964_v3 = vadd.f32 %v1257_v1, %v1514_v40  ;;  %v996_v4 = vadd.f32 %v1289_v2, %v1514_v40  ;;  %v517_v5 = vpop.f32.mrb[5].mxu0  ;;  %v645_v6 = vpop.f32.mrb[5].mxu1 }
  0xff   :  { %v962_v7 = vadd.f32 %v1514_v40, %v517_v5  ;;  %v994_v8 = vadd.f32 %v1514_v40, %v645_v6  ;;  %v1258_v9 = vpop.f32.mrb[6].mxu0  ;;  %v1290_v10 = vpop.f32.mrb[6].mxu1 }
 0x100   :  { %v1028_v11 = vmax.f32 %v964_v3, 0.0  ;;  %v1060_v12 = vmax.f32 %v996_v4, 0.0  ;;  %v965_v13 = vadd.f32 %v1258_v9, %v1514_v40  ;;  %v997_v14 = vadd.f32 %v1290_v10, %v1514_v40  ;;  %v520_v15 = vpop.f32.mrb[7].mxu0  ;;  %v648_v16 = vpop.f32.mrb[7].mxu1 }
 0x101   :  { %v1026_v17 = vmax.f32 %v962_v7, 0.0  ;;  %v1058_v18 = vmax.f32 %v994_v8, 0.0  ;;  %v963_v19 = vadd.f32 %v1514_v40, %v520_v15  ;;  %v995_v20 = vadd.f32 %v1514_v40, %v648_v16 }
 0x102   :  { %1092 = vst [vmem:[%s1775_s3 + $0x30] sm:$0xff] %v1028_v11  ;;  %1124 = vst [vmem:[%s1775_s3 + $0x130] sm:$0xff] %v1060_v12  ;;  %v1029_v21 = vmax.f32 %v965_v13, 0.0  ;;  %v1061_v22 = vmax.f32 %v997_v14, 0.0 }
 0x103   :  { %1090 = vst [vmem:[%s1775_s3 + $0x20] sm:$0xff] %v1026_v17  ;;  %1122 = vst [vmem:[%s1775_s3 + $0x120] sm:$0xff] %v1058_v18  ;;  %v1027_v23 = vmax.f32 %v963_v19, 0.0  ;;  %v1059_v24 = vmax.f32 %v995_v20, 0.0 }
 0x104   :  { %1093 = vst [vmem:[%s1775_s3 + $0x38] sm:$0xff] %v1029_v21  ;;  %1125 = vst [vmem:[%s1775_s3 + $0x138] sm:$0xff] %v1061_v22 }
 0x105   :  { %1091 = vst [vmem:[%s1775_s3 + $0x28] sm:$0xff] %v1027_v23  ;;  %1123 = vst [vmem:[%s1775_s3 + $0x128] sm:$0xff] %v1059_v24  ;;  %v1261_v25 = vpop.f32.mrb[8].mxu0  ;;  %v1293_v26 = vpop.f32.mrb[8].mxu1 }
 0x106   :  { %v968_v27 = vadd.f32 %v1261_v25, %v1514_v40  ;;  %v1000_v28 = vadd.f32 %v1293_v26, %v1514_v40  ;;  %v533_v29 = vpop.f32.mrb[9].mxu0  ;;  %v661_v30 = vpop.f32.mrb[9].mxu1 }
 0x107   :  { %v966_v31 = vadd.f32 %v1514_v40, %v533_v29  ;;  %v998_v32 = vadd.f32 %v1514_v40, %v661_v30  ;;  %v1262_v33 = vpop.f32.mrb[10].mxu0  ;;  %v1294_v34 = vpop.f32.mrb[10].mxu1 }
 0x108   :  { %v1032_v35 = vmax.f32 %v968_v27, 0.0  ;;  %v1064_v36 = vmax.f32 %v1000_v28, 0.0  ;;  %v969_v37 = vadd.f32 %v1262_v33, %v1514_v40  ;;  %v1001_v38 = vadd.f32 %v1294_v34, %v1514_v40  ;;  %v536_v39 = vpop.f32.mrb[11].mxu0  ;;  %v664_v41 = vpop.f32.mrb[11].mxu1 }
 0x109   :  { %v1030_v42 = vmax.f32 %v966_v31, 0.0  ;;  %v1062_v43 = vmax.f32 %v998_v32, 0.0  ;;  %v967_v44 = vadd.f32 %v1514_v40, %v536_v39  ;;  %v999_v45 = vadd.f32 %v1514_v40, %v664_v41 }
 0x10a   :  { %1096 = vst [vmem:[%s1775_s3 + $0x50] sm:$0xff] %v1032_v35  ;;  %1128 = vst [vmem:[%s1775_s3 + $0x150] sm:$0xff] %v1064_v36  ;;  %v1033_v46 = vmax.f32 %v969_v37, 0.0  ;;  %v1065_v47 = vmax.f32 %v1001_v38, 0.0 }
 0x10b   :  { %1094 = vst [vmem:[%s1775_s3 + $0x40] sm:$0xff] %v1030_v42  ;;  %1126 = vst [vmem:[%s1775_s3 + $0x140] sm:$0xff] %v1062_v43  ;;  %v1031_v48 = vmax.f32 %v967_v44, 0.0  ;;  %v1063_v49 = vmax.f32 %v999_v45, 0.0 }
 0x10c   :  { %1097 = vst [vmem:[%s1775_s3 + $0x58] sm:$0xff] %v1033_v46  ;;  %1129 = vst [vmem:[%s1775_s3 + $0x158] sm:$0xff] %v1065_v47 }
 0x10d   :  { %1095 = vst [vmem:[%s1775_s3 + $0x48] sm:$0xff] %v1031_v48  ;;  %1127 = vst [vmem:[%s1775_s3 + $0x148] sm:$0xff] %v1063_v49  ;;  %v1265_v50 = vpop.f32.mrb[12].mxu0  ;;  %v1297_v51 = vpop.f32.mrb[12].mxu1 }
 0x10e   :  { %v972_v52 = vadd.f32 %v1265_v50, %v1514_v40  ;;  %v1004_v53 = vadd.f32 %v1297_v51, %v1514_v40  ;;  %v549_v54 = vpop.f32.mrb[13].mxu0  ;;  %v677_v55 = vpop.f32.mrb[13].mxu1 }
 0x10f   :  { %v970_v56 = vadd.f32 %v1514_v40, %v549_v54  ;;  %v1002_v57 = vadd.f32 %v1514_v40, %v677_v55  ;;  %v1266_v58 = vpop.f32.mrb[14].mxu0  ;;  %v1298_v59 = vpop.f32.mrb[14].mxu1 }
 0x110   :  { %v1036_v60 = vmax.f32 %v972_v52, 0.0  ;;  %v1068_v61 = vmax.f32 %v1004_v53, 0.0  ;;  %v973_v62 = vadd.f32 %v1266_v58, %v1514_v40  ;;  %v1005_v63 = vadd.f32 %v1298_v59, %v1514_v40  ;;  %v552_v0 = vpop.f32.mrb[15].mxu0  ;;  %v680_v1 = vpop.f32.mrb[15].mxu1 }
 0x111   :  { %v1034_v2 = vmax.f32 %v970_v56, 0.0  ;;  %v1066_v3 = vmax.f32 %v1002_v57, 0.0  ;;  %v971_v4 = vadd.f32 %v1514_v40, %v552_v0  ;;  %v1003_v5 = vadd.f32 %v1514_v40, %v680_v1 }
 0x112   :  { %1100 = vst [vmem:[%s1775_s3 + $0x70] sm:$0xff] %v1036_v60  ;;  %1132 = vst [vmem:[%s1775_s3 + $0x170] sm:$0xff] %v1068_v61  ;;  %v1037_v6 = vmax.f32 %v973_v62, 0.0  ;;  %v1069_v7 = vmax.f32 %v1005_v63, 0.0 }
 0x113   :  { %1098 = vst [vmem:[%s1775_s3 + $0x60] sm:$0xff] %v1034_v2  ;;  %1130 = vst [vmem:[%s1775_s3 + $0x160] sm:$0xff] %v1066_v3  ;;  %v1035_v8 = vmax.f32 %v971_v4, 0.0  ;;  %v1067_v9 = vmax.f32 %v1003_v5, 0.0 }
 0x114   :  { %1101 = vst [vmem:[%s1775_s3 + $0x78] sm:$0xff] %v1037_v6  ;;  %1133 = vst [vmem:[%s1775_s3 + $0x178] sm:$0xff] %v1069_v7 }
 0x115   :  { %1099 = vst [vmem:[%s1775_s3 + $0x68] sm:$0xff] %v1035_v8  ;;  %1131 = vst [vmem:[%s1775_s3 + $0x168] sm:$0xff] %v1067_v9  ;;  %v1269_v10 = vpop.f32.mrb[16].mxu0  ;;  %v1301_v11 = vpop.f32.mrb[16].mxu1 }
 0x116   :  { %v976_v12 = vadd.f32 %v1269_v10, %v1514_v40  ;;  %v1008_v13 = vadd.f32 %v1301_v11, %v1514_v40  ;;  %v565_v14 = vpop.f32.mrb[17].mxu0  ;;  %v693_v15 = vpop.f32.mrb[17].mxu1 }
 0x117   :  { %v974_v16 = vadd.f32 %v1514_v40, %v565_v14  ;;  %v1006_v17 = vadd.f32 %v1514_v40, %v693_v15  ;;  %v1270_v18 = vpop.f32.mrb[18].mxu0  ;;  %v1302_v19 = vpop.f32.mrb[18].mxu1 }
 0x118   :  { %v1040_v20 = vmax.f32 %v976_v12, 0.0  ;;  %v1072_v21 = vmax.f32 %v1008_v13, 0.0  ;;  %v977_v22 = vadd.f32 %v1270_v18, %v1514_v40  ;;  %v1009_v23 = vadd.f32 %v1302_v19, %v1514_v40  ;;  %v568_v24 = vpop.f32.mrb[19].mxu0  ;;  %v696_v25 = vpop.f32.mrb[19].mxu1 }
 0x119   :  { %v1038_v26 = vmax.f32 %v974_v16, 0.0  ;;  %v1070_v27 = vmax.f32 %v1006_v17, 0.0  ;;  %v975_v28 = vadd.f32 %v1514_v40, %v568_v24  ;;  %v1007_v29 = vadd.f32 %v1514_v40, %v696_v25 }
 0x11a   :  { %1104 = vst [vmem:[%s1775_s3 + $0x90] sm:$0xff] %v1040_v20  ;;  %1136 = vst [vmem:[%s1775_s3 + $0x190] sm:$0xff] %v1072_v21  ;;  %v1041_v30 = vmax.f32 %v977_v22, 0.0  ;;  %v1073_v31 = vmax.f32 %v1009_v23, 0.0 }
 0x11b   :  { %1102 = vst [vmem:[%s1775_s3 + $0x80] sm:$0xff] %v1038_v26  ;;  %1134 = vst [vmem:[%s1775_s3 + $0x180] sm:$0xff] %v1070_v27  ;;  %v1039_v32 = vmax.f32 %v975_v28, 0.0  ;;  %v1071_v33 = vmax.f32 %v1007_v29, 0.0 }
 0x11c   :  { %1105 = vst [vmem:[%s1775_s3 + $0x98] sm:$0xff] %v1041_v30  ;;  %1137 = vst [vmem:[%s1775_s3 + $0x198] sm:$0xff] %v1073_v31 }
 0x11d   :  { %1103 = vst [vmem:[%s1775_s3 + $0x88] sm:$0xff] %v1039_v32  ;;  %1135 = vst [vmem:[%s1775_s3 + $0x188] sm:$0xff] %v1071_v33  ;;  %v1273_v34 = vpop.f32.mrb[20].mxu0  ;;  %v1305_v35 = vpop.f32.mrb[20].mxu1 }
 0x11e   :  { %v980_v36 = vadd.f32 %v1273_v34, %v1514_v40  ;;  %v1012_v37 = vadd.f32 %v1305_v35, %v1514_v40  ;;  %v581_v38 = vpop.f32.mrb[21].mxu0  ;;  %v709_v39 = vpop.f32.mrb[21].mxu1 }
 0x11f   :  { %v978_v41 = vadd.f32 %v1514_v40, %v581_v38  ;;  %v1010_v42 = vadd.f32 %v1514_v40, %v709_v39  ;;  %v1274_v43 = vpop.f32.mrb[22].mxu0  ;;  %v1306_v44 = vpop.f32.mrb[22].mxu1 }
 0x120   :  { %v1044_v45 = vmax.f32 %v980_v36, 0.0  ;;  %v1076_v46 = vmax.f32 %v1012_v37, 0.0  ;;  %v981_v47 = vadd.f32 %v1274_v43, %v1514_v40  ;;  %v1013_v48 = vadd.f32 %v1306_v44, %v1514_v40  ;;  %v584_v49 = vpop.f32.mrb[23].mxu0  ;;  %v712_v50 = vpop.f32.mrb[23].mxu1 }
 0x121   :  { %v1042_v51 = vmax.f32 %v978_v41, 0.0  ;;  %v1074_v52 = vmax.f32 %v1010_v42, 0.0  ;;  %v979_v53 = vadd.f32 %v1514_v40, %v584_v49  ;;  %v1011_v54 = vadd.f32 %v1514_v40, %v712_v50 }
 0x122   :  { %1108 = vst [vmem:[%s1775_s3 + $0xb0] sm:$0xff] %v1044_v45  ;;  %1140 = vst [vmem:[%s1775_s3 + $0x1b0] sm:$0xff] %v1076_v46  ;;  %v1045_v55 = vmax.f32 %v981_v47, 0.0  ;;  %v1077_v56 = vmax.f32 %v1013_v48, 0.0 }
 0x123   :  { %1106 = vst [vmem:[%s1775_s3 + $0xa0] sm:$0xff] %v1042_v51  ;;  %1138 = vst [vmem:[%s1775_s3 + $0x1a0] sm:$0xff] %v1074_v52  ;;  %v1043_v57 = vmax.f32 %v979_v53, 0.0  ;;  %v1075_v58 = vmax.f32 %v1011_v54, 0.0 }
 0x124   :  { %1109 = vst [vmem:[%s1775_s3 + $0xb8] sm:$0xff] %v1045_v55  ;;  %1141 = vst [vmem:[%s1775_s3 + $0x1b8] sm:$0xff] %v1077_v56 }
 0x125   :  { %1107 = vst [vmem:[%s1775_s3 + $0xa8] sm:$0xff] %v1043_v57  ;;  %1139 = vst [vmem:[%s1775_s3 + $0x1a8] sm:$0xff] %v1075_v58  ;;  %v1277_v59 = vpop.f32.mrb[24].mxu0  ;;  %v1309_v60 = vpop.f32.mrb[24].mxu1 }
 0x126   :  { %v984_v61 = vadd.f32 %v1277_v59, %v1514_v40  ;;  %v1016_v62 = vadd.f32 %v1309_v60, %v1514_v40  ;;  %v597_v63 = vpop.f32.mrb[25].mxu0  ;;  %v725_v0 = vpop.f32.mrb[25].mxu1 }
 0x127   :  { %v982_v1 = vadd.f32 %v1514_v40, %v597_v63  ;;  %v1014_v2 = vadd.f32 %v1514_v40, %v725_v0  ;;  %v1278_v3 = vpop.f32.mrb[26].mxu0  ;;  %v1310_v4 = vpop.f32.mrb[26].mxu1 }
 0x128   :  { %v1048_v5 = vmax.f32 %v984_v61, 0.0  ;;  %v1080_v6 = vmax.f32 %v1016_v62, 0.0  ;;  %v985_v7 = vadd.f32 %v1278_v3, %v1514_v40  ;;  %v1017_v8 = vadd.f32 %v1310_v4, %v1514_v40  ;;  %v600_v9 = vpop.f32.mrb[27].mxu0  ;;  %v728_v10 = vpop.f32.mrb[27].mxu1 }
 0x129   :  { %v1046_v11 = vmax.f32 %v982_v1, 0.0  ;;  %v1078_v12 = vmax.f32 %v1014_v2, 0.0  ;;  %v983_v13 = vadd.f32 %v1514_v40, %v600_v9  ;;  %v1015_v14 = vadd.f32 %v1514_v40, %v728_v10 }
 0x12a   :  { %1112 = vst [vmem:[%s1775_s3 + $0xd0] sm:$0xff] %v1048_v5  ;;  %1144 = vst [vmem:[%s1775_s3 + $0x1d0] sm:$0xff] %v1080_v6  ;;  %v1049_v15 = vmax.f32 %v985_v7, 0.0  ;;  %v1081_v16 = vmax.f32 %v1017_v8, 0.0 }
 0x12b   :  { %1110 = vst [vmem:[%s1775_s3 + $0xc0] sm:$0xff] %v1046_v11  ;;  %1142 = vst [vmem:[%s1775_s3 + $0x1c0] sm:$0xff] %v1078_v12  ;;  %v1047_v17 = vmax.f32 %v983_v13, 0.0  ;;  %v1079_v18 = vmax.f32 %v1015_v14, 0.0 }
 0x12c   :  { %1113 = vst [vmem:[%s1775_s3 + $0xd8] sm:$0xff] %v1049_v15  ;;  %1145 = vst [vmem:[%s1775_s3 + $0x1d8] sm:$0xff] %v1081_v16 }
 0x12d   :  { %1111 = vst [vmem:[%s1775_s3 + $0xc8] sm:$0xff] %v1047_v17  ;;  %1143 = vst [vmem:[%s1775_s3 + $0x1c8] sm:$0xff] %v1079_v18  ;;  %v1281_v19 = vpop.f32.mrb[28].mxu0  ;;  %v1313_v20 = vpop.f32.mrb[28].mxu1 }
 0x12e   :  { %v988_v21 = vadd.f32 %v1281_v19, %v1514_v40  ;;  %v1020_v22 = vadd.f32 %v1313_v20, %v1514_v40  ;;  %v613_v23 = vpop.f32.mrb[29].mxu0  ;;  %v741_v24 = vpop.f32.mrb[29].mxu1 }
 0x12f   :  { %v986_v25 = vadd.f32 %v1514_v40, %v613_v23  ;;  %v1018_v26 = vadd.f32 %v1514_v40, %v741_v24  ;;  %v1282_v27 = vpop.f32.mrb[30].mxu0  ;;  %v1314_v28 = vpop.f32.mrb[30].mxu1 }
 0x130   :  { %v1052_v29 = vmax.f32 %v988_v21, 0.0  ;;  %v1084_v30 = vmax.f32 %v1020_v22, 0.0  ;;  %v989_v31 = vadd.f32 %v1282_v27, %v1514_v40  ;;  %v1021_v32 = vadd.f32 %v1314_v28, %v1514_v40  ;;  %v616_v33 = vpop.f32.mrb[31].mxu0  ;;  %v744_v34 = vpop.f32.mrb[31].mxu1 }
 0x131   :  { %v1050_v35 = vmax.f32 %v986_v25, 0.0  ;;  %v1082_v36 = vmax.f32 %v1018_v26, 0.0  ;;  %v987_v37 = vadd.f32 %v1514_v40, %v616_v33  ;;  %v1019_v38 = vadd.f32 %v1514_v40, %v744_v34 }
 0x132   :  { %1116 = vst [vmem:[%s1775_s3 + $0xf0] sm:$0xff] %v1052_v29  ;;  %1148 = vst [vmem:[%s1775_s3 + $0x1f0] sm:$0xff] %v1084_v30  ;;  %v1053_v39 = vmax.f32 %v989_v31, 0.0  ;;  %v1085_v41 = vmax.f32 %v1021_v32, 0.0 }
 0x133   :  { %1114 = vst [vmem:[%s1775_s3 + $0xe0] sm:$0xff] %v1050_v35  ;;  %1146 = vst [vmem:[%s1775_s3 + $0x1e0] sm:$0xff] %v1082_v36  ;;  %v1051_v42 = vmax.f32 %v987_v37, 0.0  ;;  %v1083_v40 = vmax.f32 %v1019_v38, 0.0 }
 0x134   :  { %1117 = vst [vmem:[%s1775_s3 + $0xf8] sm:$0xff] %v1053_v39  ;;  %1149 = vst [vmem:[%s1775_s3 + $0x1f8] sm:$0xff] %v1085_v41 }
 0x135   :  { %1115 = vst [vmem:[%s1775_s3 + $0xe8] sm:$0xff] %v1051_v42  ;;  %1147 = vst [vmem:[%s1775_s3 + $0x1e8] sm:$0xff] %v1083_v40 }

</bundles_post_ra>
